<compile_context>
chip_gen: v7x
topology: tpu7x:2x2x1
jax: 0.10.0
libtpu: 0.0.40
codegen_flags: <defaults>
</compile_context>

<pallas_src>
import functools

import numpy as np
import jax
import jax.numpy as jnp
from jax.experimental import pallas as pl
from jax.experimental.pallas import tpu as pltpu

SELU_ALPHA = 1.6732632423543772
SELU_SCALE = 1.0507009873554805
NUM_LEVELS = 4  # fixed by the module (input has num_features * 4 channels)


def _selu(x):
    # exp only on the non-positive side -> no inf intermediates (grad-safe too).
    return SELU_SCALE * jnp.where(
        x > 0.0, x, SELU_ALPHA * (jnp.exp(jnp.minimum(x, 0.0)) - 1.0))


def shift_matrices(H, W):
    """S[k, p, r] = 1 iff source position p == (h+dy, w+dx) for output r == (h, w),
    k = (dy+1)*3 + (dx+1); out-of-bounds offsets give zero columns (== zero padding)."""
    HW = H * W
    S = np.zeros((9, HW, HW), dtype=np.float32)
    k = 0
    for dy in (-1, 0, 1):
        for dx in (-1, 0, 1):
            for h in range(H):
                hs = h + dy
                if not (0 <= hs < H):
                    continue
                for w in range(W):
                    ws = w + dx
                    if 0 <= ws < W:
                        S[k, hs * W + ws, h * W + w] = 1.0
            k += 1
    return S


def _conv3x3(x, w_ref, b_ref, s_ref):
    """x: (Cin, HW) f32.  w_ref: (Cout, 9*Cin) f32.  b_ref: (Cout, 1).  s_ref: (9, HW, HW) bf16."""
    xb = x.astype(jnp.bfloat16)
    cols = [
        jnp.dot(xb, s_ref[k], preferred_element_type=jnp.float32).astype(jnp.bfloat16)
        for k in range(9)
    ]
    col = jnp.concatenate(cols, axis=0)                          # (9*Cin, HW) bf16
    y = jnp.dot(w_ref[...].astype(jnp.bfloat16), col,
                preferred_element_type=jnp.float32)              # (Cout, HW) f32
    return y + b_ref[...]


def _conv1x1(x, w_ref, b_ref):
    return jnp.dot(w_ref[...].astype(jnp.bfloat16), x.astype(jnp.bfloat16),
                   preferred_element_type=jnp.float32) + b_ref[...]


def afim_kernel(x_ref, s_ref,
                aw1, ab1, aw2, ab2, aw3, ab3,
                rw1, rb1, rw2, rb2, rw3, rb3,
                out_ref, *, num_features):
    C = num_features
    x = x_ref[0]                                                 # (4C, HW) f32

    # --- attention_phy branch ---
    t = _selu(_conv3x3(x, aw1, ab1, s_ref))                      # (C, HW)
    t = _selu(_conv3x3(t, aw2, ab2, s_ref))                      # (C, HW)
    logits = _conv1x1(t, aw3, ab3)                               # (4C, HW)

    # --- softmax over the 4 levels, fused with the weighted sum ---
    lg = [logits[l * C:(l + 1) * C, :] for l in range(NUM_LEVELS)]
    xs = [x[l * C:(l + 1) * C, :] for l in range(NUM_LEVELS)]
    m = lg[0]
    for l in range(1, NUM_LEVELS):
        m = jnp.maximum(m, lg[l])
    es = [jnp.exp(v - m) for v in lg]
    denom = es[0]
    num = es[0] * xs[0]
    for l in range(1, NUM_LEVELS):
        denom = denom + es[l]
        num = num + es[l] * xs[l]
    amlif = num * pl.reciprocal(denom, approx=True)              # (C, HW)

    # --- refine branch + residual ---
    r = _selu(_conv3x3(amlif, rw1, rb1, s_ref))
    r = _selu(_conv3x3(r, rw2, rb2, s_ref))
    r = _conv1x1(r, rw3, rb3)
    out_ref[0] = (r + amlif).astype(out_ref.dtype)


def afim_forward(mlf, params):
    """mlf: (B, 4, C, H, W) f32.  params: torch-layout (weight(O,I,kh,kw), bias(O,)) pairs
    for [att_conv1, att_conv2, att_conv3, ref_conv1, ref_conv2, ref_conv3].
    Returns (B, C, H, W) f32."""
    B, L, C, H, W = mlf.shape
    assert L == NUM_LEVELS
    HW = H * W
    x = mlf.reshape(B, L * C, HW)                                # level-major channels (== .view(n,-1,h,w))
    S = jnp.asarray(shift_matrices(H, W), dtype=jnp.bfloat16)

    (aw1, ab1), (aw2, ab2), (aw3, ab3), (rw1, rb1), (rw2, rb2), (rw3, rb3) = params

    def k3(w):   # (Cout, Cin, 3, 3) -> (Cout, 9*Cin), columns k-major, k = ky*3+kx
        co, ci = w.shape[0], w.shape[1]
        return jnp.transpose(w, (0, 2, 3, 1)).reshape(co, 9 * ci)

    def k1(w):   # (Cout, Cin, 1, 1) -> (Cout, Cin)
        return w.reshape(w.shape[0], w.shape[1])

    def kb(b):   # (Cout,) -> (Cout, 1)  (per-sublane bias in (C, HW) layout)
        return b.reshape(-1, 1)

    consts = (S,
              k3(aw1), kb(ab1), k3(aw2), kb(ab2), k1(aw3), kb(ab3),
              k3(rw1), kb(rb1), k3(rw2), kb(rb2), k1(rw3), kb(rb3))

    def const_spec(a):
        return pl.BlockSpec(a.shape, lambda b, _nd=a.ndim: (0,) * _nd)

    out = pl.pallas_call(
        functools.partial(afim_kernel, num_features=C),
        out_shape=jax.ShapeDtypeStruct((B, C, HW), jnp.float32),
        grid=(B,),
        in_specs=[pl.BlockSpec((1, L * C, HW), lambda b: (b, 0, 0))]
                 + [const_spec(a) for a in consts],
        out_specs=pl.BlockSpec((1, C, HW), lambda b: (b, 0, 0)),
        compiler_params=pltpu.CompilerParams(
            dimension_semantics=("parallel",),
            vmem_limit_bytes=32 * 1024 * 1024),
    )(x, *consts)
    return out.reshape(B, C, H, W)


def afim_reference(mlf, params):
    """Pure-JAX (XLA conv) f32 reference of the PyTorch forward."""
    B, L, C, H, W = mlf.shape
    (aw1, ab1), (aw2, ab2), (aw3, ab3), (rw1, rb1), (rw2, rb2), (rw3, rb3) = params

    def conv(x, w, b):
        pad = [(w.shape[2] // 2,) * 2, (w.shape[3] // 2,) * 2]
        y = jax.lax.conv_general_dilated(
            x, w, window_strides=(1, 1), padding=pad,
            dimension_numbers=('NCHW', 'OIHW', 'NCHW'))
        return y + b.reshape(1, -1, 1, 1)

    x = mlf.reshape(B, L * C, H, W)
    a = jax.nn.selu(conv(x, aw1, ab1))
    a = jax.nn.selu(conv(a, aw2, ab2))
    a = conv(a, aw3, ab3)                                        # (B, 4C, H, W)
    att = jax.nn.softmax(a.reshape(B, L, C, H, W), axis=1)
    amlif = jnp.sum(att * mlf, axis=1)                           # (B, C, H, W)
    r = jax.nn.selu(conv(amlif, rw1, rb1))
    r = jax.nn.selu(conv(r, rw2, rb2))
    r = conv(r, rw3, rb3)
    return r + amlif


if __name__ == "__main__":
    B, C, H, W = 2, 32, 16, 16        # num_features=32 for the small demo (module default 128)
    L = NUM_LEVELS

    key = jax.random.PRNGKey(0)
    kmlf, *pkeys = jax.random.split(key, 13)

    mlf = jax.random.normal(kmlf, (B, L, C, H, W), dtype=jnp.float32)

    def conv_init(kw, kb_, cout, cin, ksz):
        fan_in = cin * ksz * ksz
        w = jax.random.normal(kw, (cout, cin, ksz, ksz), dtype=jnp.float32) / np.sqrt(fan_in)
        b = 0.1 * jax.random.normal(kb_, (cout,), dtype=jnp.float32)
        return w, b

    layer_shapes = [(C, L * C, 3), (C, C, 3), (L * C, C, 1),     # attention_phy
                    (C, C, 3), (C, C, 3), (C, C, 1)]             # refine
    params = [conv_init(pkeys[2 * i], pkeys[2 * i + 1], *s)
              for i, s in enumerate(layer_shapes)]

    out = jax.block_until_ready(afim_forward(mlf, params))
    ref = jax.block_until_ready(afim_reference(mlf, params))

    assert out.shape == (B, C, H, W), out.shape
    np.testing.assert_allclose(np.asarray(out), np.asarray(ref), rtol=2e-2, atol=2e-2)
    print("KERNEL_OK")
</pallas_src>

<mosaic_0001>
module attributes {stable_mosaic.version = 11 : i64} {
  func.func @afim_kernel(%arg0: i32, %arg1: memref<1x128x256xf32, #tpu.memory_space<vmem>>, %arg2: memref<9x256x256xbf16, #tpu.memory_space<vmem>>, %arg3: memref<32x1152xf32, #tpu.memory_space<vmem>>, %arg4: memref<32x1xf32, #tpu.memory_space<vmem>>, %arg5: memref<32x288xf32, #tpu.memory_space<vmem>>, %arg6: memref<32x1xf32, #tpu.memory_space<vmem>>, %arg7: memref<128x32xf32, #tpu.memory_space<vmem>>, %arg8: memref<128x1xf32, #tpu.memory_space<vmem>>, %arg9: memref<32x288xf32, #tpu.memory_space<vmem>>, %arg10: memref<32x1xf32, #tpu.memory_space<vmem>>, %arg11: memref<32x288xf32, #tpu.memory_space<vmem>>, %arg12: memref<32x1xf32, #tpu.memory_space<vmem>>, %arg13: memref<32x32xf32, #tpu.memory_space<vmem>>, %arg14: memref<32x1xf32, #tpu.memory_space<vmem>>, %arg15: memref<1x32x256xf32, #tpu.memory_space<vmem>>) attributes {dimension_semantics = [#tpu.dimension_semantics<parallel>], iteration_bounds = array<i64: 2>, scalar_prefetch = 0 : i64, scratch_operands = 0 : i64, tpu.core_type = #tpu.core_type<tc>, window_params = [{transform_indices = @transform_0, window_bounds = array<i64: 1, 128, 256>}, {pipeline_mode = #tpu.pipeline_mode<synchronous>, transform_indices = @transform_1, window_bounds = array<i64: 9, 256, 256>}, {pipeline_mode = #tpu.pipeline_mode<synchronous>, transform_indices = @transform_2, window_bounds = array<i64: 32, 1152>}, {pipeline_mode = #tpu.pipeline_mode<synchronous>, transform_indices = @transform_3, window_bounds = array<i64: 32, 1>}, {pipeline_mode = #tpu.pipeline_mode<synchronous>, transform_indices = @transform_4, window_bounds = array<i64: 32, 288>}, {pipeline_mode = #tpu.pipeline_mode<synchronous>, transform_indices = @transform_5, window_bounds = array<i64: 32, 1>}, {pipeline_mode = #tpu.pipeline_mode<synchronous>, transform_indices = @transform_6, window_bounds = array<i64: 128, 32>}, {pipeline_mode = #tpu.pipeline_mode<synchronous>, transform_indices = @transform_7, window_bounds = array<i64: 128, 1>}, {pipeline_mode = #tpu.pipeline_mode<synchronous>, transform_indices = @transform_8, window_bounds = array<i64: 32, 288>}, {pipeline_mode = #tpu.pipeline_mode<synchronous>, transform_indices = @transform_9, window_bounds = array<i64: 32, 1>}, {pipeline_mode = #tpu.pipeline_mode<synchronous>, transform_indices = @transform_10, window_bounds = array<i64: 32, 288>}, {pipeline_mode = #tpu.pipeline_mode<synchronous>, transform_indices = @transform_11, window_bounds = array<i64: 32, 1>}, {pipeline_mode = #tpu.pipeline_mode<synchronous>, transform_indices = @transform_12, window_bounds = array<i64: 32, 32>}, {pipeline_mode = #tpu.pipeline_mode<synchronous>, transform_indices = @transform_13, window_bounds = array<i64: 32, 1>}, {transform_indices = @transform_14, window_bounds = array<i64: 1, 32, 256>}]} {
    %c0 = arith.constant 0 : index
    %c0_0 = arith.constant 0 : index
    %c0_1 = arith.constant 0 : index
    %0 = vector.load %arg1[%c0, %c0_0, %c0_1] : memref<1x128x256xf32, #tpu.memory_space<vmem>>, vector<1x128x256xf32>
    %1 = vector.shape_cast %0 : vector<1x128x256xf32> to vector<128x256xf32>
    %2 = arith.truncf %1 : vector<128x256xf32> to vector<128x256xbf16>
    %c0_2 = arith.constant 0 : index
    %c0_3 = arith.constant 0 : index
    %c0_4 = arith.constant 0 : index
    %3 = vector.load %arg2[%c0_2, %c0_3, %c0_4] : memref<9x256x256xbf16, #tpu.memory_space<vmem>>, vector<1x256x256xbf16>
    %4 = vector.shape_cast %3 : vector<1x256x256xbf16> to vector<256x256xbf16>
    %cst = arith.constant dense<0.000000e+00> : vector<128x256xf32>
    %5 = tpu.matmul %2, %4, %cst {dimension_numbers = #tpu.dot_dimension_numbers<[1], [0], [0], [1], [0, 0, 1, 1], [], []>} : vector<128x256xbf16>, vector<256x256xbf16>, vector<128x256xf32> -> vector<128x256xf32>
    %6 = arith.truncf %5 : vector<128x256xf32> to vector<128x256xbf16>
    %c1 = arith.constant 1 : index
    %c0_5 = arith.constant 0 : index
    %c0_6 = arith.constant 0 : index
    %7 = vector.load %arg2[%c1, %c0_5, %c0_6] : memref<9x256x256xbf16, #tpu.memory_space<vmem>>, vector<1x256x256xbf16>
    %8 = vector.shape_cast %7 : vector<1x256x256xbf16> to vector<256x256xbf16>
    %cst_7 = arith.constant dense<0.000000e+00> : vector<128x256xf32>
    %9 = tpu.matmul %2, %8, %cst_7 {dimension_numbers = #tpu.dot_dimension_numbers<[1], [0], [0], [1], [0, 0, 1, 1], [], []>} : vector<128x256xbf16>, vector<256x256xbf16>, vector<128x256xf32> -> vector<128x256xf32>
    %10 = arith.truncf %9 : vector<128x256xf32> to vector<128x256xbf16>
    %c2 = arith.constant 2 : index
    %c0_8 = arith.constant 0 : index
    %c0_9 = arith.constant 0 : index
    %11 = vector.load %arg2[%c2, %c0_8, %c0_9] : memref<9x256x256xbf16, #tpu.memory_space<vmem>>, vector<1x256x256xbf16>
    %12 = vector.shape_cast %11 : vector<1x256x256xbf16> to vector<256x256xbf16>
    %cst_10 = arith.constant dense<0.000000e+00> : vector<128x256xf32>
    %13 = tpu.matmul %2, %12, %cst_10 {dimension_numbers = #tpu.dot_dimension_numbers<[1], [0], [0], [1], [0, 0, 1, 1], [], []>} : vector<128x256xbf16>, vector<256x256xbf16>, vector<128x256xf32> -> vector<128x256xf32>
    %14 = arith.truncf %13 : vector<128x256xf32> to vector<128x256xbf16>
    %c3 = arith.constant 3 : index
    %c0_11 = arith.constant 0 : index
    %c0_12 = arith.constant 0 : index
    %15 = vector.load %arg2[%c3, %c0_11, %c0_12] : memref<9x256x256xbf16, #tpu.memory_space<vmem>>, vector<1x256x256xbf16>
    %16 = vector.shape_cast %15 : vector<1x256x256xbf16> to vector<256x256xbf16>
    %cst_13 = arith.constant dense<0.000000e+00> : vector<128x256xf32>
    %17 = tpu.matmul %2, %16, %cst_13 {dimension_numbers = #tpu.dot_dimension_numbers<[1], [0], [0], [1], [0, 0, 1, 1], [], []>} : vector<128x256xbf16>, vector<256x256xbf16>, vector<128x256xf32> -> vector<128x256xf32>
    %18 = arith.truncf %17 : vector<128x256xf32> to vector<128x256xbf16>
    %c4 = arith.constant 4 : index
    %c0_14 = arith.constant 0 : index
    %c0_15 = arith.constant 0 : index
    %19 = vector.load %arg2[%c4, %c0_14, %c0_15] : memref<9x256x256xbf16, #tpu.memory_space<vmem>>, vector<1x256x256xbf16>
    %20 = vector.shape_cast %19 : vector<1x256x256xbf16> to vector<256x256xbf16>
    %cst_16 = arith.constant dense<0.000000e+00> : vector<128x256xf32>
    %21 = tpu.matmul %2, %20, %cst_16 {dimension_numbers = #tpu.dot_dimension_numbers<[1], [0], [0], [1], [0, 0, 1, 1], [], []>} : vector<128x256xbf16>, vector<256x256xbf16>, vector<128x256xf32> -> vector<128x256xf32>
    %22 = arith.truncf %21 : vector<128x256xf32> to vector<128x256xbf16>
    %c5 = arith.constant 5 : index
    %c0_17 = arith.constant 0 : index
    %c0_18 = arith.constant 0 : index
    %23 = vector.load %arg2[%c5, %c0_17, %c0_18] : memref<9x256x256xbf16, #tpu.memory_space<vmem>>, vector<1x256x256xbf16>
    %24 = vector.shape_cast %23 : vector<1x256x256xbf16> to vector<256x256xbf16>
    %cst_19 = arith.constant dense<0.000000e+00> : vector<128x256xf32>
    %25 = tpu.matmul %2, %24, %cst_19 {dimension_numbers = #tpu.dot_dimension_numbers<[1], [0], [0], [1], [0, 0, 1, 1], [], []>} : vector<128x256xbf16>, vector<256x256xbf16>, vector<128x256xf32> -> vector<128x256xf32>
    %26 = arith.truncf %25 : vector<128x256xf32> to vector<128x256xbf16>
    %c6 = arith.constant 6 : index
    %c0_20 = arith.constant 0 : index
    %c0_21 = arith.constant 0 : index
    %27 = vector.load %arg2[%c6, %c0_20, %c0_21] : memref<9x256x256xbf16, #tpu.memory_space<vmem>>, vector<1x256x256xbf16>
    %28 = vector.shape_cast %27 : vector<1x256x256xbf16> to vector<256x256xbf16>
    %cst_22 = arith.constant dense<0.000000e+00> : vector<128x256xf32>
    %29 = tpu.matmul %2, %28, %cst_22 {dimension_numbers = #tpu.dot_dimension_numbers<[1], [0], [0], [1], [0, 0, 1, 1], [], []>} : vector<128x256xbf16>, vector<256x256xbf16>, vector<128x256xf32> -> vector<128x256xf32>
    %30 = arith.truncf %29 : vector<128x256xf32> to vector<128x256xbf16>
    %c7 = arith.constant 7 : index
    %c0_23 = arith.constant 0 : index
    %c0_24 = arith.constant 0 : index
    %31 = vector.load %arg2[%c7, %c0_23, %c0_24] : memref<9x256x256xbf16, #tpu.memory_space<vmem>>, vector<1x256x256xbf16>
    %32 = vector.shape_cast %31 : vector<1x256x256xbf16> to vector<256x256xbf16>
    %cst_25 = arith.constant dense<0.000000e+00> : vector<128x256xf32>
    %33 = tpu.matmul %2, %32, %cst_25 {dimension_numbers = #tpu.dot_dimension_numbers<[1], [0], [0], [1], [0, 0, 1, 1], [], []>} : vector<128x256xbf16>, vector<256x256xbf16>, vector<128x256xf32> -> vector<128x256xf32>
    %34 = arith.truncf %33 : vector<128x256xf32> to vector<128x256xbf16>
    %c8 = arith.constant 8 : index
    %c0_26 = arith.constant 0 : index
    %c0_27 = arith.constant 0 : index
    %35 = vector.load %arg2[%c8, %c0_26, %c0_27] : memref<9x256x256xbf16, #tpu.memory_space<vmem>>, vector<1x256x256xbf16>
    %36 = vector.shape_cast %35 : vector<1x256x256xbf16> to vector<256x256xbf16>
    %cst_28 = arith.constant dense<0.000000e+00> : vector<128x256xf32>
    %37 = tpu.matmul %2, %36, %cst_28 {dimension_numbers = #tpu.dot_dimension_numbers<[1], [0], [0], [1], [0, 0, 1, 1], [], []>} : vector<128x256xbf16>, vector<256x256xbf16>, vector<128x256xf32> -> vector<128x256xf32>
    %38 = arith.truncf %37 : vector<128x256xf32> to vector<128x256xbf16>
    %39 = tpu.concatenate %6, %10, %14, %18, %22, %26, %30, %34, %38 in 0 : vector<128x256xbf16>, vector<128x256xbf16>, vector<128x256xbf16>, vector<128x256xbf16>, vector<128x256xbf16>, vector<128x256xbf16>, vector<128x256xbf16>, vector<128x256xbf16>, vector<128x256xbf16> -> vector<1152x256xbf16>
    %c0_29 = arith.constant 0 : index
    %c0_30 = arith.constant 0 : index
    %40 = vector.load %arg3[%c0_29, %c0_30] : memref<32x1152xf32, #tpu.memory_space<vmem>>, vector<32x1152xf32>
    %41 = arith.truncf %40 : vector<32x1152xf32> to vector<32x1152xbf16>
    %cst_31 = arith.constant dense<0.000000e+00> : vector<32x256xf32>
    %42 = tpu.matmul %41, %39, %cst_31 {dimension_numbers = #tpu.dot_dimension_numbers<[1], [0], [0], [1], [0, 0, 1, 1], [], []>} : vector<32x1152xbf16>, vector<1152x256xbf16>, vector<32x256xf32> -> vector<32x256xf32>
    %c0_32 = arith.constant 0 : index
    %c0_33 = arith.constant 0 : index
    %43 = vector.load %arg4[%c0_32, %c0_33] : memref<32x1xf32, #tpu.memory_space<vmem>>, vector<32x1xf32>
    %44 = vector.broadcast %43 : vector<32x1xf32> to vector<32x256xf32>
    %45 = arith.addf %42, %44 : vector<32x256xf32>
    %cst_34 = arith.constant 0.000000e+00 : f32
    %46 = vector.broadcast %cst_34 : f32 to vector<32x256xf32>
    %47 = arith.cmpf ogt, %45, %46 : vector<32x256xf32>
    %cst_35 = arith.constant 0.000000e+00 : f32
    %48 = vector.broadcast %cst_35 : f32 to vector<32x256xf32>
    %49 = arith.minimumf %45, %48 : vector<32x256xf32>
    %50 = math.exp %49 : vector<32x256xf32>
    %cst_36 = arith.constant 1.000000e+00 : f32
    %51 = vector.broadcast %cst_36 : f32 to vector<32x256xf32>
    %52 = arith.subf %50, %51 : vector<32x256xf32>
    %cst_37 = arith.constant 1.67326319 : f32
    %53 = vector.broadcast %cst_37 : f32 to vector<32x256xf32>
    %54 = arith.mulf %53, %52 : vector<32x256xf32>
    %55 = arith.select %47, %45, %54 : vector<32x256xi1>, vector<32x256xf32>
    %cst_38 = arith.constant 1.05070102 : f32
    %56 = vector.broadcast %cst_38 : f32 to vector<32x256xf32>
    %57 = arith.mulf %56, %55 : vector<32x256xf32>
    %58 = arith.truncf %57 : vector<32x256xf32> to vector<32x256xbf16>
    %c0_39 = arith.constant 0 : index
    %c0_40 = arith.constant 0 : index
    %c0_41 = arith.constant 0 : index
    %59 = vector.load %arg2[%c0_39, %c0_40, %c0_41] : memref<9x256x256xbf16, #tpu.memory_space<vmem>>, vector<1x256x256xbf16>
    %60 = vector.shape_cast %59 : vector<1x256x256xbf16> to vector<256x256xbf16>
    %cst_42 = arith.constant dense<0.000000e+00> : vector<32x256xf32>
    %61 = tpu.matmul %58, %60, %cst_42 {dimension_numbers = #tpu.dot_dimension_numbers<[1], [0], [0], [1], [0, 0, 1, 1], [], []>} : vector<32x256xbf16>, vector<256x256xbf16>, vector<32x256xf32> -> vector<32x256xf32>
    %62 = arith.truncf %61 : vector<32x256xf32> to vector<32x256xbf16>
    %c1_43 = arith.constant 1 : index
    %c0_44 = arith.constant 0 : index
    %c0_45 = arith.constant 0 : index
    %63 = vector.load %arg2[%c1_43, %c0_44, %c0_45] : memref<9x256x256xbf16, #tpu.memory_space<vmem>>, vector<1x256x256xbf16>
    %64 = vector.shape_cast %63 : vector<1x256x256xbf16> to vector<256x256xbf16>
    %cst_46 = arith.constant dense<0.000000e+00> : vector<32x256xf32>
    %65 = tpu.matmul %58, %64, %cst_46 {dimension_numbers = #tpu.dot_dimension_numbers<[1], [0], [0], [1], [0, 0, 1, 1], [], []>} : vector<32x256xbf16>, vector<256x256xbf16>, vector<32x256xf32> -> vector<32x256xf32>
    %66 = arith.truncf %65 : vector<32x256xf32> to vector<32x256xbf16>
    %c2_47 = arith.constant 2 : index
    %c0_48 = arith.constant 0 : index
    %c0_49 = arith.constant 0 : index
    %67 = vector.load %arg2[%c2_47, %c0_48, %c0_49] : memref<9x256x256xbf16, #tpu.memory_space<vmem>>, vector<1x256x256xbf16>
    %68 = vector.shape_cast %67 : vector<1x256x256xbf16> to vector<256x256xbf16>
    %cst_50 = arith.constant dense<0.000000e+00> : vector<32x256xf32>
    %69 = tpu.matmul %58, %68, %cst_50 {dimension_numbers = #tpu.dot_dimension_numbers<[1], [0], [0], [1], [0, 0, 1, 1], [], []>} : vector<32x256xbf16>, vector<256x256xbf16>, vector<32x256xf32> -> vector<32x256xf32>
    %70 = arith.truncf %69 : vector<32x256xf32> to vector<32x256xbf16>
    %c3_51 = arith.constant 3 : index
    %c0_52 = arith.constant 0 : index
    %c0_53 = arith.constant 0 : index
    %71 = vector.load %arg2[%c3_51, %c0_52, %c0_53] : memref<9x256x256xbf16, #tpu.memory_space<vmem>>, vector<1x256x256xbf16>
    %72 = vector.shape_cast %71 : vector<1x256x256xbf16> to vector<256x256xbf16>
    %cst_54 = arith.constant dense<0.000000e+00> : vector<32x256xf32>
    %73 = tpu.matmul %58, %72, %cst_54 {dimension_numbers = #tpu.dot_dimension_numbers<[1], [0], [0], [1], [0, 0, 1, 1], [], []>} : vector<32x256xbf16>, vector<256x256xbf16>, vector<32x256xf32> -> vector<32x256xf32>
    %74 = arith.truncf %73 : vector<32x256xf32> to vector<32x256xbf16>
    %c4_55 = arith.constant 4 : index
    %c0_56 = arith.constant 0 : index
    %c0_57 = arith.constant 0 : index
    %75 = vector.load %arg2[%c4_55, %c0_56, %c0_57] : memref<9x256x256xbf16, #tpu.memory_space<vmem>>, vector<1x256x256xbf16>
    %76 = vector.shape_cast %75 : vector<1x256x256xbf16> to vector<256x256xbf16>
    %cst_58 = arith.constant dense<0.000000e+00> : vector<32x256xf32>
    %77 = tpu.matmul %58, %76, %cst_58 {dimension_numbers = #tpu.dot_dimension_numbers<[1], [0], [0], [1], [0, 0, 1, 1], [], []>} : vector<32x256xbf16>, vector<256x256xbf16>, vector<32x256xf32> -> vector<32x256xf32>
    %78 = arith.truncf %77 : vector<32x256xf32> to vector<32x256xbf16>
    %c5_59 = arith.constant 5 : index
    %c0_60 = arith.constant 0 : index
    %c0_61 = arith.constant 0 : index
    %79 = vector.load %arg2[%c5_59, %c0_60, %c0_61] : memref<9x256x256xbf16, #tpu.memory_space<vmem>>, vector<1x256x256xbf16>
    %80 = vector.shape_cast %79 : vector<1x256x256xbf16> to vector<256x256xbf16>
    %cst_62 = arith.constant dense<0.000000e+00> : vector<32x256xf32>
    %81 = tpu.matmul %58, %80, %cst_62 {dimension_numbers = #tpu.dot_dimension_numbers<[1], [0], [0], [1], [0, 0, 1, 1], [], []>} : vector<32x256xbf16>, vector<256x256xbf16>, vector<32x256xf32> -> vector<32x256xf32>
    %82 = arith.truncf %81 : vector<32x256xf32> to vector<32x256xbf16>
    %c6_63 = arith.constant 6 : index
    %c0_64 = arith.constant 0 : index
    %c0_65 = arith.constant 0 : index
    %83 = vector.load %arg2[%c6_63, %c0_64, %c0_65] : memref<9x256x256xbf16, #tpu.memory_space<vmem>>, vector<1x256x256xbf16>
    %84 = vector.shape_cast %83 : vector<1x256x256xbf16> to vector<256x256xbf16>
    %cst_66 = arith.constant dense<0.000000e+00> : vector<32x256xf32>
    %85 = tpu.matmul %58, %84, %cst_66 {dimension_numbers = #tpu.dot_dimension_numbers<[1], [0], [0], [1], [0, 0, 1, 1], [], []>} : vector<32x256xbf16>, vector<256x256xbf16>, vector<32x256xf32> -> vector<32x256xf32>
    %86 = arith.truncf %85 : vector<32x256xf32> to vector<32x256xbf16>
    %c7_67 = arith.constant 7 : index
    %c0_68 = arith.constant 0 : index
    %c0_69 = arith.constant 0 : index
    %87 = vector.load %arg2[%c7_67, %c0_68, %c0_69] : memref<9x256x256xbf16, #tpu.memory_space<vmem>>, vector<1x256x256xbf16>
    %88 = vector.shape_cast %87 : vector<1x256x256xbf16> to vector<256x256xbf16>
    %cst_70 = arith.constant dense<0.000000e+00> : vector<32x256xf32>
    %89 = tpu.matmul %58, %88, %cst_70 {dimension_numbers = #tpu.dot_dimension_numbers<[1], [0], [0], [1], [0, 0, 1, 1], [], []>} : vector<32x256xbf16>, vector<256x256xbf16>, vector<32x256xf32> -> vector<32x256xf32>
    %90 = arith.truncf %89 : vector<32x256xf32> to vector<32x256xbf16>
    %c8_71 = arith.constant 8 : index
    %c0_72 = arith.constant 0 : index
    %c0_73 = arith.constant 0 : index
    %91 = vector.load %arg2[%c8_71, %c0_72, %c0_73] : memref<9x256x256xbf16, #tpu.memory_space<vmem>>, vector<1x256x256xbf16>
    %92 = vector.shape_cast %91 : vector<1x256x256xbf16> to vector<256x256xbf16>
    %cst_74 = arith.constant dense<0.000000e+00> : vector<32x256xf32>
    %93 = tpu.matmul %58, %92, %cst_74 {dimension_numbers = #tpu.dot_dimension_numbers<[1], [0], [0], [1], [0, 0, 1, 1], [], []>} : vector<32x256xbf16>, vector<256x256xbf16>, vector<32x256xf32> -> vector<32x256xf32>
    %94 = arith.truncf %93 : vector<32x256xf32> to vector<32x256xbf16>
    %95 = tpu.concatenate %62, %66, %70, %74, %78, %82, %86, %90, %94 in 0 : vector<32x256xbf16>, vector<32x256xbf16>, vector<32x256xbf16>, vector<32x256xbf16>, vector<32x256xbf16>, vector<32x256xbf16>, vector<32x256xbf16>, vector<32x256xbf16>, vector<32x256xbf16> -> vector<288x256xbf16>
    %c0_75 = arith.constant 0 : index
    %c0_76 = arith.constant 0 : index
    %96 = vector.load %arg5[%c0_75, %c0_76] : memref<32x288xf32, #tpu.memory_space<vmem>>, vector<32x288xf32>
    %97 = arith.truncf %96 : vector<32x288xf32> to vector<32x288xbf16>
    %cst_77 = arith.constant dense<0.000000e+00> : vector<32x256xf32>
    %98 = tpu.matmul %97, %95, %cst_77 {dimension_numbers = #tpu.dot_dimension_numbers<[1], [0], [0], [1], [0, 0, 1, 1], [], []>} : vector<32x288xbf16>, vector<288x256xbf16>, vector<32x256xf32> -> vector<32x256xf32>
    %c0_78 = arith.constant 0 : index
    %c0_79 = arith.constant 0 : index
    %99 = vector.load %arg6[%c0_78, %c0_79] : memref<32x1xf32, #tpu.memory_space<vmem>>, vector<32x1xf32>
    %100 = vector.broadcast %99 : vector<32x1xf32> to vector<32x256xf32>
    %101 = arith.addf %98, %100 : vector<32x256xf32>
    %cst_80 = arith.constant 0.000000e+00 : f32
    %102 = vector.broadcast %cst_80 : f32 to vector<32x256xf32>
    %103 = arith.cmpf ogt, %101, %102 : vector<32x256xf32>
    %cst_81 = arith.constant 0.000000e+00 : f32
    %104 = vector.broadcast %cst_81 : f32 to vector<32x256xf32>
    %105 = arith.minimumf %101, %104 : vector<32x256xf32>
    %106 = math.exp %105 : vector<32x256xf32>
    %cst_82 = arith.constant 1.000000e+00 : f32
    %107 = vector.broadcast %cst_82 : f32 to vector<32x256xf32>
    %108 = arith.subf %106, %107 : vector<32x256xf32>
    %cst_83 = arith.constant 1.67326319 : f32
    %109 = vector.broadcast %cst_83 : f32 to vector<32x256xf32>
    %110 = arith.mulf %109, %108 : vector<32x256xf32>
    %111 = arith.select %103, %101, %110 : vector<32x256xi1>, vector<32x256xf32>
    %cst_84 = arith.constant 1.05070102 : f32
    %112 = vector.broadcast %cst_84 : f32 to vector<32x256xf32>
    %113 = arith.mulf %112, %111 : vector<32x256xf32>
    %c0_85 = arith.constant 0 : index
    %c0_86 = arith.constant 0 : index
    %114 = vector.load %arg7[%c0_85, %c0_86] : memref<128x32xf32, #tpu.memory_space<vmem>>, vector<128x32xf32>
    %115 = arith.truncf %114 : vector<128x32xf32> to vector<128x32xbf16>
    %116 = arith.truncf %113 : vector<32x256xf32> to vector<32x256xbf16>
    %cst_87 = arith.constant dense<0.000000e+00> : vector<128x256xf32>
    %117 = tpu.matmul %115, %116, %cst_87 {dimension_numbers = #tpu.dot_dimension_numbers<[1], [0], [0], [1], [0, 0, 1, 1], [], []>} : vector<128x32xbf16>, vector<32x256xbf16>, vector<128x256xf32> -> vector<128x256xf32>
    %c0_88 = arith.constant 0 : index
    %c0_89 = arith.constant 0 : index
    %118 = vector.load %arg8[%c0_88, %c0_89] : memref<128x1xf32, #tpu.memory_space<vmem>>, vector<128x1xf32>
    %119 = vector.broadcast %118 : vector<128x1xf32> to vector<128x256xf32>
    %120 = arith.addf %117, %119 : vector<128x256xf32>
    %121 = vector.extract_strided_slice %120 {offsets = [0, 0], sizes = [32, 256], strides = [1, 1]} : vector<128x256xf32> to vector<32x256xf32>
    %122 = vector.extract_strided_slice %120 {offsets = [32, 0], sizes = [32, 256], strides = [1, 1]} : vector<128x256xf32> to vector<32x256xf32>
    %123 = vector.extract_strided_slice %120 {offsets = [64, 0], sizes = [32, 256], strides = [1, 1]} : vector<128x256xf32> to vector<32x256xf32>
    %124 = vector.extract_strided_slice %120 {offsets = [96, 0], sizes = [32, 256], strides = [1, 1]} : vector<128x256xf32> to vector<32x256xf32>
    %125 = vector.extract_strided_slice %1 {offsets = [0, 0], sizes = [32, 256], strides = [1, 1]} : vector<128x256xf32> to vector<32x256xf32>
    %126 = vector.extract_strided_slice %1 {offsets = [32, 0], sizes = [32, 256], strides = [1, 1]} : vector<128x256xf32> to vector<32x256xf32>
    %127 = vector.extract_strided_slice %1 {offsets = [64, 0], sizes = [32, 256], strides = [1, 1]} : vector<128x256xf32> to vector<32x256xf32>
    %128 = vector.extract_strided_slice %1 {offsets = [96, 0], sizes = [32, 256], strides = [1, 1]} : vector<128x256xf32> to vector<32x256xf32>
    %129 = arith.maximumf %121, %122 : vector<32x256xf32>
    %130 = arith.maximumf %129, %123 : vector<32x256xf32>
    %131 = arith.maximumf %130, %124 : vector<32x256xf32>
    %132 = arith.subf %121, %131 : vector<32x256xf32>
    %133 = math.exp %132 : vector<32x256xf32>
    %134 = arith.subf %122, %131 : vector<32x256xf32>
    %135 = math.exp %134 : vector<32x256xf32>
    %136 = arith.subf %123, %131 : vector<32x256xf32>
    %137 = math.exp %136 : vector<32x256xf32>
    %138 = arith.subf %124, %131 : vector<32x256xf32>
    %139 = math.exp %138 : vector<32x256xf32>
    %140 = arith.mulf %133, %125 : vector<32x256xf32>
    %141 = arith.addf %133, %135 : vector<32x256xf32>
    %142 = arith.mulf %135, %126 : vector<32x256xf32>
    %143 = arith.addf %140, %142 : vector<32x256xf32>
    %144 = arith.addf %141, %137 : vector<32x256xf32>
    %145 = arith.mulf %137, %127 : vector<32x256xf32>
    %146 = arith.addf %143, %145 : vector<32x256xf32>
    %147 = arith.addf %144, %139 : vector<32x256xf32>
    %148 = arith.mulf %139, %128 : vector<32x256xf32>
    %149 = arith.addf %146, %148 : vector<32x256xf32>
    %150 = tpu.reciprocal %147 {approx = true} : vector<32x256xf32> -> vector<32x256xf32>
    %151 = arith.mulf %149, %150 : vector<32x256xf32>
    %152 = arith.truncf %151 : vector<32x256xf32> to vector<32x256xbf16>
    %c0_90 = arith.constant 0 : index
    %c0_91 = arith.constant 0 : index
    %c0_92 = arith.constant 0 : index
    %153 = vector.load %arg2[%c0_90, %c0_91, %c0_92] : memref<9x256x256xbf16, #tpu.memory_space<vmem>>, vector<1x256x256xbf16>
    %154 = vector.shape_cast %153 : vector<1x256x256xbf16> to vector<256x256xbf16>
    %cst_93 = arith.constant dense<0.000000e+00> : vector<32x256xf32>
    %155 = tpu.matmul %152, %154, %cst_93 {dimension_numbers = #tpu.dot_dimension_numbers<[1], [0], [0], [1], [0, 0, 1, 1], [], []>} : vector<32x256xbf16>, vector<256x256xbf16>, vector<32x256xf32> -> vector<32x256xf32>
    %156 = arith.truncf %155 : vector<32x256xf32> to vector<32x256xbf16>
    %c1_94 = arith.constant 1 : index
    %c0_95 = arith.constant 0 : index
    %c0_96 = arith.constant 0 : index
    %157 = vector.load %arg2[%c1_94, %c0_95, %c0_96] : memref<9x256x256xbf16, #tpu.memory_space<vmem>>, vector<1x256x256xbf16>
    %158 = vector.shape_cast %157 : vector<1x256x256xbf16> to vector<256x256xbf16>
    %cst_97 = arith.constant dense<0.000000e+00> : vector<32x256xf32>
    %159 = tpu.matmul %152, %158, %cst_97 {dimension_numbers = #tpu.dot_dimension_numbers<[1], [0], [0], [1], [0, 0, 1, 1], [], []>} : vector<32x256xbf16>, vector<256x256xbf16>, vector<32x256xf32> -> vector<32x256xf32>
    %160 = arith.truncf %159 : vector<32x256xf32> to vector<32x256xbf16>
    %c2_98 = arith.constant 2 : index
    %c0_99 = arith.constant 0 : index
    %c0_100 = arith.constant 0 : index
    %161 = vector.load %arg2[%c2_98, %c0_99, %c0_100] : memref<9x256x256xbf16, #tpu.memory_space<vmem>>, vector<1x256x256xbf16>
    %162 = vector.shape_cast %161 : vector<1x256x256xbf16> to vector<256x256xbf16>
    %cst_101 = arith.constant dense<0.000000e+00> : vector<32x256xf32>
    %163 = tpu.matmul %152, %162, %cst_101 {dimension_numbers = #tpu.dot_dimension_numbers<[1], [0], [0], [1], [0, 0, 1, 1], [], []>} : vector<32x256xbf16>, vector<256x256xbf16>, vector<32x256xf32> -> vector<32x256xf32>
    %164 = arith.truncf %163 : vector<32x256xf32> to vector<32x256xbf16>
    %c3_102 = arith.constant 3 : index
    %c0_103 = arith.constant 0 : index
    %c0_104 = arith.constant 0 : index
    %165 = vector.load %arg2[%c3_102, %c0_103, %c0_104] : memref<9x256x256xbf16, #tpu.memory_space<vmem>>, vector<1x256x256xbf16>
    %166 = vector.shape_cast %165 : vector<1x256x256xbf16> to vector<256x256xbf16>
    %cst_105 = arith.constant dense<0.000000e+00> : vector<32x256xf32>
    %167 = tpu.matmul %152, %166, %cst_105 {dimension_numbers = #tpu.dot_dimension_numbers<[1], [0], [0], [1], [0, 0, 1, 1], [], []>} : vector<32x256xbf16>, vector<256x256xbf16>, vector<32x256xf32> -> vector<32x256xf32>
    %168 = arith.truncf %167 : vector<32x256xf32> to vector<32x256xbf16>
    %c4_106 = arith.constant 4 : index
    %c0_107 = arith.constant 0 : index
    %c0_108 = arith.constant 0 : index
    %169 = vector.load %arg2[%c4_106, %c0_107, %c0_108] : memref<9x256x256xbf16, #tpu.memory_space<vmem>>, vector<1x256x256xbf16>
    %170 = vector.shape_cast %169 : vector<1x256x256xbf16> to vector<256x256xbf16>
    %cst_109 = arith.constant dense<0.000000e+00> : vector<32x256xf32>
    %171 = tpu.matmul %152, %170, %cst_109 {dimension_numbers = #tpu.dot_dimension_numbers<[1], [0], [0], [1], [0, 0, 1, 1], [], []>} : vector<32x256xbf16>, vector<256x256xbf16>, vector<32x256xf32> -> vector<32x256xf32>
    %172 = arith.truncf %171 : vector<32x256xf32> to vector<32x256xbf16>
    %c5_110 = arith.constant 5 : index
    %c0_111 = arith.constant 0 : index
    %c0_112 = arith.constant 0 : index
    %173 = vector.load %arg2[%c5_110, %c0_111, %c0_112] : memref<9x256x256xbf16, #tpu.memory_space<vmem>>, vector<1x256x256xbf16>
    %174 = vector.shape_cast %173 : vector<1x256x256xbf16> to vector<256x256xbf16>
    %cst_113 = arith.constant dense<0.000000e+00> : vector<32x256xf32>
    %175 = tpu.matmul %152, %174, %cst_113 {dimension_numbers = #tpu.dot_dimension_numbers<[1], [0], [0], [1], [0, 0, 1, 1], [], []>} : vector<32x256xbf16>, vector<256x256xbf16>, vector<32x256xf32> -> vector<32x256xf32>
    %176 = arith.truncf %175 : vector<32x256xf32> to vector<32x256xbf16>
    %c6_114 = arith.constant 6 : index
    %c0_115 = arith.constant 0 : index
    %c0_116 = arith.constant 0 : index
    %177 = vector.load %arg2[%c6_114, %c0_115, %c0_116] : memref<9x256x256xbf16, #tpu.memory_space<vmem>>, vector<1x256x256xbf16>
    %178 = vector.shape_cast %177 : vector<1x256x256xbf16> to vector<256x256xbf16>
    %cst_117 = arith.constant dense<0.000000e+00> : vector<32x256xf32>
    %179 = tpu.matmul %152, %178, %cst_117 {dimension_numbers = #tpu.dot_dimension_numbers<[1], [0], [0], [1], [0, 0, 1, 1], [], []>} : vector<32x256xbf16>, vector<256x256xbf16>, vector<32x256xf32> -> vector<32x256xf32>
    %180 = arith.truncf %179 : vector<32x256xf32> to vector<32x256xbf16>
    %c7_118 = arith.constant 7 : index
    %c0_119 = arith.constant 0 : index
    %c0_120 = arith.constant 0 : index
    %181 = vector.load %arg2[%c7_118, %c0_119, %c0_120] : memref<9x256x256xbf16, #tpu.memory_space<vmem>>, vector<1x256x256xbf16>
    %182 = vector.shape_cast %181 : vector<1x256x256xbf16> to vector<256x256xbf16>
    %cst_121 = arith.constant dense<0.000000e+00> : vector<32x256xf32>
    %183 = tpu.matmul %152, %182, %cst_121 {dimension_numbers = #tpu.dot_dimension_numbers<[1], [0], [0], [1], [0, 0, 1, 1], [], []>} : vector<32x256xbf16>, vector<256x256xbf16>, vector<32x256xf32> -> vector<32x256xf32>
    %184 = arith.truncf %183 : vector<32x256xf32> to vector<32x256xbf16>
    %c8_122 = arith.constant 8 : index
    %c0_123 = arith.constant 0 : index
    %c0_124 = arith.constant 0 : index
    %185 = vector.load %arg2[%c8_122, %c0_123, %c0_124] : memref<9x256x256xbf16, #tpu.memory_space<vmem>>, vector<1x256x256xbf16>
    %186 = vector.shape_cast %185 : vector<1x256x256xbf16> to vector<256x256xbf16>
    %cst_125 = arith.constant dense<0.000000e+00> : vector<32x256xf32>
    %187 = tpu.matmul %152, %186, %cst_125 {dimension_numbers = #tpu.dot_dimension_numbers<[1], [0], [0], [1], [0, 0, 1, 1], [], []>} : vector<32x256xbf16>, vector<256x256xbf16>, vector<32x256xf32> -> vector<32x256xf32>
    %188 = arith.truncf %187 : vector<32x256xf32> to vector<32x256xbf16>
    %189 = tpu.concatenate %156, %160, %164, %168, %172, %176, %180, %184, %188 in 0 : vector<32x256xbf16>, vector<32x256xbf16>, vector<32x256xbf16>, vector<32x256xbf16>, vector<32x256xbf16>, vector<32x256xbf16>, vector<32x256xbf16>, vector<32x256xbf16>, vector<32x256xbf16> -> vector<288x256xbf16>
    %c0_126 = arith.constant 0 : index
    %c0_127 = arith.constant 0 : index
    %190 = vector.load %arg9[%c0_126, %c0_127] : memref<32x288xf32, #tpu.memory_space<vmem>>, vector<32x288xf32>
    %191 = arith.truncf %190 : vector<32x288xf32> to vector<32x288xbf16>
    %cst_128 = arith.constant dense<0.000000e+00> : vector<32x256xf32>
    %192 = tpu.matmul %191, %189, %cst_128 {dimension_numbers = #tpu.dot_dimension_numbers<[1], [0], [0], [1], [0, 0, 1, 1], [], []>} : vector<32x288xbf16>, vector<288x256xbf16>, vector<32x256xf32> -> vector<32x256xf32>
    %c0_129 = arith.constant 0 : index
    %c0_130 = arith.constant 0 : index
    %193 = vector.load %arg10[%c0_129, %c0_130] : memref<32x1xf32, #tpu.memory_space<vmem>>, vector<32x1xf32>
    %194 = vector.broadcast %193 : vector<32x1xf32> to vector<32x256xf32>
    %195 = arith.addf %192, %194 : vector<32x256xf32>
    %cst_131 = arith.constant 0.000000e+00 : f32
    %196 = vector.broadcast %cst_131 : f32 to vector<32x256xf32>
    %197 = arith.cmpf ogt, %195, %196 : vector<32x256xf32>
    %cst_132 = arith.constant 0.000000e+00 : f32
    %198 = vector.broadcast %cst_132 : f32 to vector<32x256xf32>
    %199 = arith.minimumf %195, %198 : vector<32x256xf32>
    %200 = math.exp %199 : vector<32x256xf32>
    %cst_133 = arith.constant 1.000000e+00 : f32
    %201 = vector.broadcast %cst_133 : f32 to vector<32x256xf32>
    %202 = arith.subf %200, %201 : vector<32x256xf32>
    %cst_134 = arith.constant 1.67326319 : f32
    %203 = vector.broadcast %cst_134 : f32 to vector<32x256xf32>
    %204 = arith.mulf %203, %202 : vector<32x256xf32>
    %205 = arith.select %197, %195, %204 : vector<32x256xi1>, vector<32x256xf32>
    %cst_135 = arith.constant 1.05070102 : f32
    %206 = vector.broadcast %cst_135 : f32 to vector<32x256xf32>
    %207 = arith.mulf %206, %205 : vector<32x256xf32>
    %208 = arith.truncf %207 : vector<32x256xf32> to vector<32x256xbf16>
    %c0_136 = arith.constant 0 : index
    %c0_137 = arith.constant 0 : index
    %c0_138 = arith.constant 0 : index
    %209 = vector.load %arg2[%c0_136, %c0_137, %c0_138] : memref<9x256x256xbf16, #tpu.memory_space<vmem>>, vector<1x256x256xbf16>
    %210 = vector.shape_cast %209 : vector<1x256x256xbf16> to vector<256x256xbf16>
    %cst_139 = arith.constant dense<0.000000e+00> : vector<32x256xf32>
    %211 = tpu.matmul %208, %210, %cst_139 {dimension_numbers = #tpu.dot_dimension_numbers<[1], [0], [0], [1], [0, 0, 1, 1], [], []>} : vector<32x256xbf16>, vector<256x256xbf16>, vector<32x256xf32> -> vector<32x256xf32>
    %212 = arith.truncf %211 : vector<32x256xf32> to vector<32x256xbf16>
    %c1_140 = arith.constant 1 : index
    %c0_141 = arith.constant 0 : index
    %c0_142 = arith.constant 0 : index
    %213 = vector.load %arg2[%c1_140, %c0_141, %c0_142] : memref<9x256x256xbf16, #tpu.memory_space<vmem>>, vector<1x256x256xbf16>
    %214 = vector.shape_cast %213 : vector<1x256x256xbf16> to vector<256x256xbf16>
    %cst_143 = arith.constant dense<0.000000e+00> : vector<32x256xf32>
    %215 = tpu.matmul %208, %214, %cst_143 {dimension_numbers = #tpu.dot_dimension_numbers<[1], [0], [0], [1], [0, 0, 1, 1], [], []>} : vector<32x256xbf16>, vector<256x256xbf16>, vector<32x256xf32> -> vector<32x256xf32>
    %216 = arith.truncf %215 : vector<32x256xf32> to vector<32x256xbf16>
    %c2_144 = arith.constant 2 : index
    %c0_145 = arith.constant 0 : index
    %c0_146 = arith.constant 0 : index
    %217 = vector.load %arg2[%c2_144, %c0_145, %c0_146] : memref<9x256x256xbf16, #tpu.memory_space<vmem>>, vector<1x256x256xbf16>
    %218 = vector.shape_cast %217 : vector<1x256x256xbf16> to vector<256x256xbf16>
    %cst_147 = arith.constant dense<0.000000e+00> : vector<32x256xf32>
    %219 = tpu.matmul %208, %218, %cst_147 {dimension_numbers = #tpu.dot_dimension_numbers<[1], [0], [0], [1], [0, 0, 1, 1], [], []>} : vector<32x256xbf16>, vector<256x256xbf16>, vector<32x256xf32> -> vector<32x256xf32>
    %220 = arith.truncf %219 : vector<32x256xf32> to vector<32x256xbf16>
    %c3_148 = arith.constant 3 : index
    %c0_149 = arith.constant 0 : index
    %c0_150 = arith.constant 0 : index
    %221 = vector.load %arg2[%c3_148, %c0_149, %c0_150] : memref<9x256x256xbf16, #tpu.memory_space<vmem>>, vector<1x256x256xbf16>
    %222 = vector.shape_cast %221 : vector<1x256x256xbf16> to vector<256x256xbf16>
    %cst_151 = arith.constant dense<0.000000e+00> : vector<32x256xf32>
    %223 = tpu.matmul %208, %222, %cst_151 {dimension_numbers = #tpu.dot_dimension_numbers<[1], [0], [0], [1], [0, 0, 1, 1], [], []>} : vector<32x256xbf16>, vector<256x256xbf16>, vector<32x256xf32> -> vector<32x256xf32>
    %224 = arith.truncf %223 : vector<32x256xf32> to vector<32x256xbf16>
    %c4_152 = arith.constant 4 : index
    %c0_153 = arith.constant 0 : index
    %c0_154 = arith.constant 0 : index
    %225 = vector.load %arg2[%c4_152, %c0_153, %c0_154] : memref<9x256x256xbf16, #tpu.memory_space<vmem>>, vector<1x256x256xbf16>
    %226 = vector.shape_cast %225 : vector<1x256x256xbf16> to vector<256x256xbf16>
    %cst_155 = arith.constant dense<0.000000e+00> : vector<32x256xf32>
    %227 = tpu.matmul %208, %226, %cst_155 {dimension_numbers = #tpu.dot_dimension_numbers<[1], [0], [0], [1], [0, 0, 1, 1], [], []>} : vector<32x256xbf16>, vector<256x256xbf16>, vector<32x256xf32> -> vector<32x256xf32>
    %228 = arith.truncf %227 : vector<32x256xf32> to vector<32x256xbf16>
    %c5_156 = arith.constant 5 : index
    %c0_157 = arith.constant 0 : index
    %c0_158 = arith.constant 0 : index
    %229 = vector.load %arg2[%c5_156, %c0_157, %c0_158] : memref<9x256x256xbf16, #tpu.memory_space<vmem>>, vector<1x256x256xbf16>
    %230 = vector.shape_cast %229 : vector<1x256x256xbf16> to vector<256x256xbf16>
    %cst_159 = arith.constant dense<0.000000e+00> : vector<32x256xf32>
    %231 = tpu.matmul %208, %230, %cst_159 {dimension_numbers = #tpu.dot_dimension_numbers<[1], [0], [0], [1], [0, 0, 1, 1], [], []>} : vector<32x256xbf16>, vector<256x256xbf16>, vector<32x256xf32> -> vector<32x256xf32>
    %232 = arith.truncf %231 : vector<32x256xf32> to vector<32x256xbf16>
    %c6_160 = arith.constant 6 : index
    %c0_161 = arith.constant 0 : index
    %c0_162 = arith.constant 0 : index
    %233 = vector.load %arg2[%c6_160, %c0_161, %c0_162] : memref<9x256x256xbf16, #tpu.memory_space<vmem>>, vector<1x256x256xbf16>
    %234 = vector.shape_cast %233 : vector<1x256x256xbf16> to vector<256x256xbf16>
    %cst_163 = arith.constant dense<0.000000e+00> : vector<32x256xf32>
    %235 = tpu.matmul %208, %234, %cst_163 {dimension_numbers = #tpu.dot_dimension_numbers<[1], [0], [0], [1], [0, 0, 1, 1], [], []>} : vector<32x256xbf16>, vector<256x256xbf16>, vector<32x256xf32> -> vector<32x256xf32>
    %236 = arith.truncf %235 : vector<32x256xf32> to vector<32x256xbf16>
    %c7_164 = arith.constant 7 : index
    %c0_165 = arith.constant 0 : index
    %c0_166 = arith.constant 0 : index
    %237 = vector.load %arg2[%c7_164, %c0_165, %c0_166] : memref<9x256x256xbf16, #tpu.memory_space<vmem>>, vector<1x256x256xbf16>
    %238 = vector.shape_cast %237 : vector<1x256x256xbf16> to vector<256x256xbf16>
    %cst_167 = arith.constant dense<0.000000e+00> : vector<32x256xf32>
    %239 = tpu.matmul %208, %238, %cst_167 {dimension_numbers = #tpu.dot_dimension_numbers<[1], [0], [0], [1], [0, 0, 1, 1], [], []>} : vector<32x256xbf16>, vector<256x256xbf16>, vector<32x256xf32> -> vector<32x256xf32>
    %240 = arith.truncf %239 : vector<32x256xf32> to vector<32x256xbf16>
    %c8_168 = arith.constant 8 : index
    %c0_169 = arith.constant 0 : index
    %c0_170 = arith.constant 0 : index
    %241 = vector.load %arg2[%c8_168, %c0_169, %c0_170] : memref<9x256x256xbf16, #tpu.memory_space<vmem>>, vector<1x256x256xbf16>
    %242 = vector.shape_cast %241 : vector<1x256x256xbf16> to vector<256x256xbf16>
    %cst_171 = arith.constant dense<0.000000e+00> : vector<32x256xf32>
    %243 = tpu.matmul %208, %242, %cst_171 {dimension_numbers = #tpu.dot_dimension_numbers<[1], [0], [0], [1], [0, 0, 1, 1], [], []>} : vector<32x256xbf16>, vector<256x256xbf16>, vector<32x256xf32> -> vector<32x256xf32>
    %244 = arith.truncf %243 : vector<32x256xf32> to vector<32x256xbf16>
    %245 = tpu.concatenate %212, %216, %220, %224, %228, %232, %236, %240, %244 in 0 : vector<32x256xbf16>, vector<32x256xbf16>, vector<32x256xbf16>, vector<32x256xbf16>, vector<32x256xbf16>, vector<32x256xbf16>, vector<32x256xbf16>, vector<32x256xbf16>, vector<32x256xbf16> -> vector<288x256xbf16>
    %c0_172 = arith.constant 0 : index
    %c0_173 = arith.constant 0 : index
    %246 = vector.load %arg11[%c0_172, %c0_173] : memref<32x288xf32, #tpu.memory_space<vmem>>, vector<32x288xf32>
    %247 = arith.truncf %246 : vector<32x288xf32> to vector<32x288xbf16>
    %cst_174 = arith.constant dense<0.000000e+00> : vector<32x256xf32>
    %248 = tpu.matmul %247, %245, %cst_174 {dimension_numbers = #tpu.dot_dimension_numbers<[1], [0], [0], [1], [0, 0, 1, 1], [], []>} : vector<32x288xbf16>, vector<288x256xbf16>, vector<32x256xf32> -> vector<32x256xf32>
    %c0_175 = arith.constant 0 : index
    %c0_176 = arith.constant 0 : index
    %249 = vector.load %arg12[%c0_175, %c0_176] : memref<32x1xf32, #tpu.memory_space<vmem>>, vector<32x1xf32>
    %250 = vector.broadcast %249 : vector<32x1xf32> to vector<32x256xf32>
    %251 = arith.addf %248, %250 : vector<32x256xf32>
    %cst_177 = arith.constant 0.000000e+00 : f32
    %252 = vector.broadcast %cst_177 : f32 to vector<32x256xf32>
    %253 = arith.cmpf ogt, %251, %252 : vector<32x256xf32>
    %cst_178 = arith.constant 0.000000e+00 : f32
    %254 = vector.broadcast %cst_178 : f32 to vector<32x256xf32>
    %255 = arith.minimumf %251, %254 : vector<32x256xf32>
    %256 = math.exp %255 : vector<32x256xf32>
    %cst_179 = arith.constant 1.000000e+00 : f32
    %257 = vector.broadcast %cst_179 : f32 to vector<32x256xf32>
    %258 = arith.subf %256, %257 : vector<32x256xf32>
    %cst_180 = arith.constant 1.67326319 : f32
    %259 = vector.broadcast %cst_180 : f32 to vector<32x256xf32>
    %260 = arith.mulf %259, %258 : vector<32x256xf32>
    %261 = arith.select %253, %251, %260 : vector<32x256xi1>, vector<32x256xf32>
    %cst_181 = arith.constant 1.05070102 : f32
    %262 = vector.broadcast %cst_181 : f32 to vector<32x256xf32>
    %263 = arith.mulf %262, %261 : vector<32x256xf32>
    %c0_182 = arith.constant 0 : index
    %c0_183 = arith.constant 0 : index
    %264 = vector.load %arg13[%c0_182, %c0_183] : memref<32x32xf32, #tpu.memory_space<vmem>>, vector<32x32xf32>
    %265 = arith.truncf %264 : vector<32x32xf32> to vector<32x32xbf16>
    %266 = arith.truncf %263 : vector<32x256xf32> to vector<32x256xbf16>
    %cst_184 = arith.constant dense<0.000000e+00> : vector<32x256xf32>
    %267 = tpu.matmul %265, %266, %cst_184 {dimension_numbers = #tpu.dot_dimension_numbers<[1], [0], [0], [1], [0, 0, 1, 1], [], []>} : vector<32x32xbf16>, vector<32x256xbf16>, vector<32x256xf32> -> vector<32x256xf32>
    %c0_185 = arith.constant 0 : index
    %c0_186 = arith.constant 0 : index
    %268 = vector.load %arg14[%c0_185, %c0_186] : memref<32x1xf32, #tpu.memory_space<vmem>>, vector<32x1xf32>
    %269 = vector.broadcast %268 : vector<32x1xf32> to vector<32x256xf32>
    %270 = arith.addf %267, %269 : vector<32x256xf32>
    %271 = arith.addf %270, %151 : vector<32x256xf32>
    %c0_187 = arith.constant 0 : index
    %c0_188 = arith.constant 0 : index
    %c0_189 = arith.constant 0 : index
    %272 = vector.load %arg15[%c0_187, %c0_188, %c0_189] : memref<1x32x256xf32, #tpu.memory_space<vmem>>, vector<1x32x256xf32>
    %273 = vector.shape_cast %272 : vector<1x32x256xf32> to vector<32x256xf32>
    %274 = vector.shape_cast %271 : vector<32x256xf32> to vector<1x32x256xf32>
    tpu.vector_store %arg15[%c0_187, %c0_188, %c0_189], %274 {strides = array<i32>} : memref<1x32x256xf32, #tpu.memory_space<vmem>>, vector<1x32x256xf32>,
    return
  }
  func.func @transform_0(%arg0: i32) -> (i32, i32, i32) {
    %c0_i32 = arith.constant 0 : i32
    %c0_i32_0 = arith.constant 0 : i32
    %c0_i32_1 = arith.constant 0 : i32
    return %arg0, %c0_i32, %c0_i32_0 : i32, i32, i32
  }
  func.func @transform_1(%arg0: i32) -> (i32, i32, i32) {
    %c0_i32 = arith.constant 0 : i32
    %c0_i32_0 = arith.constant 0 : i32
    %c0_i32_1 = arith.constant 0 : i32
    %c0_i32_2 = arith.constant 0 : i32
    return %c0_i32, %c0_i32_0, %c0_i32_1 : i32, i32, i32
  }
  func.func @transform_2(%arg0: i32) -> (i32, i32) {
    %c0_i32 = arith.constant 0 : i32
    %c0_i32_0 = arith.constant 0 : i32
    %c0_i32_1 = arith.constant 0 : i32
    return %c0_i32, %c0_i32_0 : i32, i32
  }
  func.func @transform_3(%arg0: i32) -> (i32, i32) {
    %c0_i32 = arith.constant 0 : i32
    %c0_i32_0 = arith.constant 0 : i32
    %c0_i32_1 = arith.constant 0 : i32
    return %c0_i32, %c0_i32_0 : i32, i32
  }
  func.func @transform_4(%arg0: i32) -> (i32, i32) {
    %c0_i32 = arith.constant 0 : i32
    %c0_i32_0 = arith.constant 0 : i32
    %c0_i32_1 = arith.constant 0 : i32
    return %c0_i32, %c0_i32_0 : i32, i32
  }
  func.func @transform_5(%arg0: i32) -> (i32, i32) {
    %c0_i32 = arith.constant 0 : i32
    %c0_i32_0 = arith.constant 0 : i32
    %c0_i32_1 = arith.constant 0 : i32
    return %c0_i32, %c0_i32_0 : i32, i32
  }
  func.func @transform_6(%arg0: i32) -> (i32, i32) {
    %c0_i32 = arith.constant 0 : i32
    %c0_i32_0 = arith.constant 0 : i32
    %c0_i32_1 = arith.constant 0 : i32
    return %c0_i32, %c0_i32_0 : i32, i32
  }
  func.func @transform_7(%arg0: i32) -> (i32, i32) {
    %c0_i32 = arith.constant 0 : i32
    %c0_i32_0 = arith.constant 0 : i32
    %c0_i32_1 = arith.constant 0 : i32
    return %c0_i32, %c0_i32_0 : i32, i32
  }
  func.func @transform_8(%arg0: i32) -> (i32, i32) {
    %c0_i32 = arith.constant 0 : i32
    %c0_i32_0 = arith.constant 0 : i32
    %c0_i32_1 = arith.constant 0 : i32
    return %c0_i32, %c0_i32_0 : i32, i32
  }
  func.func @transform_9(%arg0: i32) -> (i32, i32) {
    %c0_i32 = arith.constant 0 : i32
    %c0_i32_0 = arith.constant 0 : i32
    %c0_i32_1 = arith.constant 0 : i32
    return %c0_i32, %c0_i32_0 : i32, i32
  }
  func.func @transform_10(%arg0: i32) -> (i32, i32) {
    %c0_i32 = arith.constant 0 : i32
    %c0_i32_0 = arith.constant 0 : i32
    %c0_i32_1 = arith.constant 0 : i32
    return %c0_i32, %c0_i32_0 : i32, i32
  }
  func.func @transform_11(%arg0: i32) -> (i32, i32) {
    %c0_i32 = arith.constant 0 : i32
    %c0_i32_0 = arith.constant 0 : i32
    %c0_i32_1 = arith.constant 0 : i32
    return %c0_i32, %c0_i32_0 : i32, i32
  }
  func.func @transform_12(%arg0: i32) -> (i32, i32) {
    %c0_i32 = arith.constant 0 : i32
    %c0_i32_0 = arith.constant 0 : i32
    %c0_i32_1 = arith.constant 0 : i32
    return %c0_i32, %c0_i32_0 : i32, i32
  }
  func.func @transform_13(%arg0: i32) -> (i32, i32) {
    %c0_i32 = arith.constant 0 : i32
    %c0_i32_0 = arith.constant 0 : i32
    %c0_i32_1 = arith.constant 0 : i32
    return %c0_i32, %c0_i32_0 : i32, i32
  }
  func.func @transform_14(%arg0: i32) -> (i32, i32, i32) {
    %c0_i32 = arith.constant 0 : i32
    %c0_i32_0 = arith.constant 0 : i32
    %c0_i32_1 = arith.constant 0 : i32
    return %arg0, %c0_i32, %c0_i32_0 : i32, i32, i32
  }
}

</mosaic_0001>

<bundles_post_ra>
// kernel: tpu_custom_call.1
= control target key start
LH: loop header
LB: loop body
LE: loop exit
PB: predicated region body
PF: predicated region fallthrough
CT: control target
= control target key end

     0   :  { %s11338_s0 = inlined_call_operand.hbm [shape: f32[2,128,256], index: 0, kind: input, shape index: {}]   ;;  %s11339_s1 = inlined_call_operand.hbm [shape: bf16[9,256,256], index: 1, kind: input, shape index: {}]   ;;  %s11340_s2 = inlined_call_operand.hbm [shape: f32[32,1152], index: 2, kind: input, shape index: {}]   ;;  %s11341_s3 = inlined_call_operand.vmem [shape: f32[32,1], index: 3, kind: input, shape index: {}]   ;;  %s11342_s4 = inlined_call_operand.hbm [shape: f32[32,288], index: 4, kind: input, shape index: {}]   ;;  %s11343_s5 = inlined_call_operand.vmem [shape: f32[32,1], index: 5, kind: input, shape index: {}]   ;;  %s11344_s6 = inlined_call_operand.vmem [shape: f32[128,32], index: 6, kind: input, shape index: {}]   ;;  %s11345_s7 = inlined_call_operand.vmem [shape: f32[128,1], index: 7, kind: input, shape index: {}]   ;;  %s11346_s8 = inlined_call_operand.hbm [shape: f32[32,288], index: 8, kind: input, shape index: {}]   ;;  %s11347_s9 = inlined_call_operand.vmem [shape: f32[32,1], index: 9, kind: input, shape index: {}]   ;;  %s11348_s10 = inlined_call_operand.hbm [shape: f32[32,288], index: 10, kind: input, shape index: {}]   ;;  %s11349_s11 = inlined_call_operand.vmem [shape: f32[32,1], index: 11, kind: input, shape index: {}]   ;;  %s11350_s12 = inlined_call_operand.hbm [shape: f32[32,32], index: 12, kind: input, shape index: {}]   ;;  %s11351_s13 = inlined_call_operand.vmem [shape: f32[32,1], index: 13, kind: input, shape index: {}]   ;;  %s11352_s14 = inlined_call_operand.hbm [shape: f32[2,32,256], index: 14, kind: output, shape index: {}]  }
   0x1   :  { %11379 = sst [smem:[#allocation31_spill]] %s11338_s0 }
   0x2   :  { %11380 = sst [smem:[#allocation32_spill]] %s11339_s1 }
   0x3   :  { %11381 = sst [smem:[#allocation33_spill]] %s11340_s2 }
   0x4   :  { %11382 = sst [smem:[#allocation34_spill]] %s11341_s3 }
   0x5   :  { %11383 = sst [smem:[#allocation35_spill]] %s11344_s6 }
   0x6   :  { %11384 = sst [smem:[#allocation36_spill]] %s11345_s7 }
   0x7   :  { %11385 = sst [smem:[#allocation37_spill]] %s11347_s9 }
   0x8   :  { %11386 = sst [smem:[#allocation38_spill]] %s11349_s11 }
   0x9   :  { %11387 = sst [smem:[#allocation39_spill]] %s11351_s13 }
   0xa   :  { %11388 = sst [smem:[#allocation40_spill]] %s11352_s14 }
   0xb   :  { %19 = vsyncpa [#allocation3], 0 }
   0xc   :  { %21 = vsyncpa [#allocation3 + $0x1], 0 }
   0xd   :  { %22 = vsyncpa [#allocation6], 0 }
   0xe   :  { %23 = vsyncpa [#allocation9], 0 }
   0xf   :  { %24 = vsyncpa [#allocation12], 0 }
  0x10   :  { %25 = vsyncpa [#allocation4], 0 }
  0x11   :  { %27 = vsyncpa [#allocation4 + $0x1], 0  ;;  %s9250_s29 = smov 0   ;;  %s9252_s30 = smov 0  }
  0x12   :  { %s9254_s15 = smov 0   ;;  %s9256_s16 = smov 0  }
  0x13 LB: > { %s9156_s17 = smov [#allocation5]   ;;  %s9271_s19 = sadd.s32 4294967295, %s9154_s16   ;;  %s9154_s16 = sphi %s9256_s16, %s11461_s16   ;;  %s9150_s15 = sphi %s9254_s15, %s11460_s15   ;;  %s9146_s30 = sphi %s9252_s30, %s11459_s30   ;;  %s9142_s29 = sphi %s9250_s29, %s11458_s29  }
  0x14   : > { %s375_s18 = sshll.u32 %s9156_s17, 4  ;;  %p6863_p0 = scmp.ge.s32.totalorder %s9154_s16, 1  ;;  %s9276_s18 = int_to_ptr.vmem [resolvable:$true] %s375_s18 }
  0x15   : > { %p11360_p1 = scmp.eq.s32.totalorder %s9271_s19, 0  ;;  %p363_p2 = scmp.lt.s32.totalorder %s9154_s16, 3 }
  0x16   : > { %s9157_s21 = smov [#allocation8]   ;;  %s9158_s24 = smov [#allocation11]  }
  0x17   : > { %p9278_p3 = pnand %p6863_p0, %p363_p2  ;;  %s404_s22 = sshll.u32 %s9157_s21, 4  ;;  %s9291_s22 = int_to_ptr.vmem [resolvable:$true] %s404_s22 }
  0x18   : > { %s9293_s25 = sshll.u32 %s9158_s24, 4  ;;  %s11391_s1 = sld [smem:[#allocation32_spill]]  ;;  %s443_s25 = int_to_ptr.vmem [resolvable:$true] %s9293_s25 }
  0x19   : > { %s11389_s20 = scalar_select %p9278_p3, 1, 0 }
  0x1a   : > { %p7346_p5 = pneg %p9278_p3 }
  0x1c   : > { %p9287_p6 = pnand %p7346_p5, %p11360_p1 }
  0x1e   : > { %s8878_s28 = scalar_lea.hbm %s11391_s1, 36864  ;;  %p9303_p8 = pneg %p9287_p6 }
  0x1f   : > { %p8879_p7 = scmp.ne.s32.totalorder %s11391_s1, %s8878_s28  ;;  %p8885_p11 = scmp.lt.u32.totalorder %s8878_s28, %s11391_s1 }
  0x21   : > { %p8881_p9 = pnand %p9303_p8, %p8879_p7 }
  0x23   : > { %p8882_p10 = pneg %p8881_p9 }
  0x25   : > { %p8887_p12 = pnand %p8885_p11, %p8882_p10 }
  0x27   : > { %8890 = shalt.err (!%p8887_p12)
}
  0x28   : > { %s8891_s14 = scalar_lea.vmem %s9276_s18, 36864  ;;  %p8899_p5 = scmp.lt.s32.totalorder %s9276_s18, %s9276_s18 }
  0x29   : > { %p8892_p13 = scmp.ne.s32.totalorder %s9276_s18, %s8891_s14  ;;  %p8900_p4 = scmp.lt.s32.totalorder %s8891_s14, %s8891_s14 }
  0x2b   : > { %p8894_p0 = pnand %p8892_p13, %p9303_p8  ;;  %p8901_p7 = por %p8900_p4, %p8899_p5 }
  0x2d   : > { %p8895_p2 = pneg %p8894_p0 }
  0x2f   : > { %p8902_p9 = pnand %p8901_p7, %p8895_p2 }
  0x31   : > { %8905 = shalt.err (!%p8902_p9)
}
  0x32   : > { %s11359_s26 = smov 128   ;;  %s11362_s6 = smov 8  }
  0x33   : > { %7349 = dma.hbm_to_vmem [thread:$0]  (!%p9287_p6), %s11391_s1, 36864, %s9276_s18, [#allocation6], %s11359_s26, %s11359_s26, %s11362_s6  }
  0x34   : > { %s8906_s14 = scalar_lea.hbm %s11342_s4, 1536 }
  0x35   : > { %p8907_p4 = scmp.ne.s32.totalorder %s11342_s4, %s8906_s14  ;;  %p8913_p12 = scmp.lt.u32.totalorder %s8906_s14, %s11342_s4 }
  0x37   : > { %p8909_p10 = pnand %p8907_p4, %p9303_p8 }
  0x39   : > { %p8910_p11 = pneg %p8909_p10 }
  0x3b   : > { %p8915_p13 = pnand %p8913_p12, %p8910_p11 }
  0x3d   : > { %8918 = shalt.err (!%p8915_p13)
}
  0x3e   : > { %s8919_s18 = scalar_lea.vmem %s9291_s22, 1536  ;;  %p8927_p7 = scmp.lt.s32.totalorder %s9291_s22, %s9291_s22 }
  0x3f   : > { %p8920_p0 = scmp.ne.s32.totalorder %s9291_s22, %s8919_s18  ;;  %p8928_p9 = scmp.lt.s32.totalorder %s8919_s18, %s8919_s18 }
  0x41   : > { %p8922_p2 = pnand %p8920_p0, %p9303_p8  ;;  %p8929_p4 = por %p8928_p9, %p8927_p7 }
  0x43   : > { %p8923_p5 = pneg %p8922_p2 }
  0x45   : > { %p8930_p10 = pnand %p8929_p4, %p8923_p5 }
  0x47   : > { %8933 = shalt.err (!%p8930_p10)
}
  0x48   : > { %s11363_s11 = smov 384   ;;  %s11364_s7 = smov 24  }
  0x49   : > { %7355 = dma.hbm_to_vmem [thread:$0]  (!%p9287_p6), %s11342_s4, 1536, %s9291_s22, [#allocation9], %s11363_s11, %s11363_s11, %s11364_s7  }
  0x4a   : > { %s8934_s17 = scalar_lea.hbm %s11348_s10, 1536 }
  0x4b   : > { %p8935_p11 = scmp.ne.s32.totalorder %s11348_s10, %s8934_s17  ;;  %p8941_p0 = scmp.lt.u32.totalorder %s8934_s17, %s11348_s10 }
  0x4d   : > { %p8937_p12 = pnand %p8935_p11, %p9303_p8 }
  0x4f   : > { %p8938_p13 = pneg %p8937_p12 }
  0x51   : > { %p8943_p2 = pnand %p8941_p0, %p8938_p13 }
  0x53   : > { %8946 = shalt.err (!%p8943_p2)
}
  0x54   : > { %s8947_s9 = scalar_lea.vmem %s443_s25, 1536  ;;  %p8955_p4 = scmp.lt.s32.totalorder %s443_s25, %s443_s25 }
  0x55   : > { %p8948_p5 = scmp.ne.s32.totalorder %s443_s25, %s8947_s9  ;;  %p8956_p10 = scmp.lt.s32.totalorder %s8947_s9, %s8947_s9 }
  0x57   : > { %p8950_p7 = pnand %p8948_p5, %p9303_p8  ;;  %p8957_p1 = por %p8956_p10, %p8955_p4 }
  0x59   : > { %p8951_p9 = pneg %p8950_p7 }
  0x5b   : > { %p8958_p3 = pnand %p8957_p1, %p8951_p9 }
  0x5d   : > { %8961 = shalt.err (!%p8958_p3)
}
  0x5e   : > { %7361 = dma.hbm_to_vmem [thread:$0]  (!%p9287_p6), %s11348_s10, 1536, %s443_s25, [#allocation12], %s11363_s11, %s11363_s11, %s11364_s7  }
  0x5f   : > { %s9163_s13 = smov [#allocation7]   ;;  %s11393_s2 = sld [smem:[#allocation33_spill]] }
  0x60   : > { %s388_s27 = sshll.u32 %s9163_s13, 4  ;;  %s389_s27 = int_to_ptr.vmem [resolvable:$true] %s388_s27 }
  0x65   : > { %s8962_s24 = scalar_lea.hbm %s11393_s2, 4608 }
  0x66   : > { %p8963_p1 = scmp.ne.s32.totalorder %s11393_s2, %s8962_s24  ;;  %p8969_p12 = scmp.lt.u32.totalorder %s8962_s24, %s11393_s2 }
  0x68   : > { %p8965_p3 = pnand %p8963_p1, %p9303_p8 }
  0x6a   : > { %p8966_p11 = pneg %p8965_p3 }
  0x6c   : > { %p8971_p13 = pnand %p8969_p12, %p8966_p11 }
  0x6e   : > { %8974 = shalt.err (!%p8971_p13)
}
  0x6f   : > { %s8975_s25 = scalar_lea.vmem %s389_s27, 4608  ;;  %p8983_p7 = scmp.lt.s32.totalorder %s389_s27, %s389_s27 }
  0x70   : > { %p8976_p0 = scmp.ne.s32.totalorder %s389_s27, %s8975_s25  ;;  %p8984_p9 = scmp.lt.s32.totalorder %s8975_s25, %s8975_s25 }
  0x72   : > { %p8978_p2 = pnand %p8976_p0, %p9303_p8  ;;  %p8985_p4 = por %p8984_p9, %p8983_p7 }
  0x74   : > { %p8979_p5 = pneg %p8978_p2 }
  0x76   : > { %p8986_p10 = pnand %p8985_p4, %p8979_p5 }
  0x78   : > { %8989 = shalt.err (!%p8986_p10)
}
  0x79   : > { %s9164_s22 = smov 1152   ;;  %s9165_s26 = smov 72  }
  0x7a   : > { %7352 = dma.hbm_to_vmem [thread:$0]  (!%p9287_p6), %s11393_s2, 4608, %s389_s27, [#allocation6], %s9164_s22, %s9164_s22, %s9165_s26  }
  0x7b   : > { %s9166_s28 = smov [#allocation10]   ;;  %s9167_s24 = smov [#allocation13]  }
  0x7c   : > { %s426_s17 = sshll.u32 %s9166_s28, 4  ;;  %s458_s14 = sshll.u32 %s9167_s24, 4  ;;  %s427_s17 = int_to_ptr.vmem [resolvable:$true] %s426_s17  ;;  %s9393_s14 = int_to_ptr.vmem [resolvable:$true] %s458_s14 }
  0x7d   : > { %s8990_s25 = scalar_lea.hbm %s11346_s8, 1536 }
  0x7e   : > { %p8991_p1 = scmp.ne.s32.totalorder %s11346_s8, %s8990_s25  ;;  %p8997_p12 = scmp.lt.u32.totalorder %s8990_s25, %s11346_s8 }
  0x80   : > { %p8993_p3 = pnand %p8991_p1, %p9303_p8 }
  0x82   : > { %p8994_p11 = pneg %p8993_p3 }
  0x84   : > { %p8999_p13 = pnand %p8997_p12, %p8994_p11 }
  0x86   : > { %9002 = shalt.err (!%p8999_p13)
}
  0x87   : > { %s9003_s22 = scalar_lea.vmem %s427_s17, 1536  ;;  %p9011_p7 = scmp.lt.s32.totalorder %s427_s17, %s427_s17 }
  0x88   : > { %p9004_p0 = scmp.ne.s32.totalorder %s427_s17, %s9003_s22  ;;  %p9012_p9 = scmp.lt.s32.totalorder %s9003_s22, %s9003_s22 }
  0x8a   : > { %p9006_p2 = pnand %p9004_p0, %p9303_p8  ;;  %p9013_p4 = por %p9012_p9, %p9011_p7 }
  0x8c   : > { %p9007_p5 = pneg %p9006_p2 }
  0x8e   : > { %p9014_p10 = pnand %p9013_p4, %p9007_p5 }
  0x90   : > { %9017 = shalt.err (!%p9014_p10)
}
  0x91   : > { %s11394_s11 = smov 24   ;;  %s11395_s7 = smov 384  }
  0x92   : > { %7358 = dma.hbm_to_vmem [thread:$0]  (!%p9287_p6), %s11346_s8, 1536, %s427_s17, [#allocation9], %s11395_s7, %s11395_s7, %s11394_s11  }
  0x93   : > { %s9018_s18 = scalar_lea.hbm %s11350_s12, 512 }
  0x94   : > { %p9019_p1 = scmp.ne.s32.totalorder %s11350_s12, %s9018_s18  ;;  %p9025_p12 = scmp.lt.u32.totalorder %s9018_s18, %s11350_s12 }
  0x96   : > { %p9021_p3 = pnand %p9019_p1, %p9303_p8 }
  0x98   : > { %p9022_p11 = pneg %p9021_p3 }
  0x9a   : > { %p9027_p13 = pnand %p9025_p12, %p9022_p11 }
  0x9c   : > { %9030 = shalt.err (!%p9027_p13)
}
  0x9d   : > { %s9031_s17 = scalar_lea.vmem %s9393_s14, 512  ;;  %p9039_p7 = scmp.lt.s32.totalorder %s9393_s14, %s9393_s14 }
  0x9e   : > { %p9032_p0 = scmp.ne.s32.totalorder %s9393_s14, %s9031_s17  ;;  %p9040_p9 = scmp.lt.s32.totalorder %s9031_s17, %s9031_s17 }
  0xa0   : > { %p9034_p2 = pnand %p9032_p0, %p9303_p8  ;;  %p9041_p4 = por %p9040_p9, %p9039_p7 }
  0xa2   : > { %p9035_p5 = pneg %p9034_p2 }
  0xa4   : > { %p9042_p10 = pnand %p9041_p4, %p9035_p5 }
  0xa6   : > { %9045 = shalt.err (!%p9042_p10)
}
  0xa7   : > { %s11396_s22 = smov 8   ;;  %s11397_s11 = smov 128  }
  0xa8   : > { %7364 = dma.hbm_to_vmem [thread:$0]  (!%p9287_p6), %s11350_s12, 512, %s9393_s14, [#allocation12], %s11397_s11, %s11397_s11, %s11396_s22  }
  0xa9   : > { %s6862_s23 = sadd.s32 4294967294, %s9154_s16   ;;  %s9444_s21 = sadd.s32 1, %s9154_s16  }
  0xaa   : > { %s37_s13 = ssub.s32 %s9154_s16, %s9444_s21  ;;  %s40_s28 = sadd.s32 1, %s9150_s15 }
  0xab   : > { %p38_p8 = scmp.eq.s32.totalorder %s37_s13, 0  ;;  %p47_p1 = scmp.ne.s32.totalorder %s9150_s15, %s9146_s30 }
  0xac   : > { %p48_p3 = scmp.eq.s32.totalorder %s9154_s16, 0  ;;  %p53_p11 = scmp.ne.s32.totalorder %s9146_s30, %s9142_s29 }
  0xad   : > { %s9455_s24 = scalar_select %p38_p8, %s9150_s15, %s40_s28  }
  0xae   : > { %p9457_p12 = por %p48_p3, %p47_p1  ;;  %p11399_p13 = scmp.eq.s32.totalorder %s9271_s19, 0 }
  0xaf   : > { %p350_p0 = scmp.eq.s32.totalorder %s9271_s19, 1  ;;  %p356_p2 = scmp.eq.s32.totalorder %s6862_s23, 1 }
  0xb0   : > { %p9463_p6 = por %p11399_p13, %p53_p11  ;;  %p7379_p5 = scmp.lt.s32.totalorder %s9154_s16, 2 }
  0xb1   : > { %s475_s9 = sand.u32 1, %s9150_s15   ;;  %p9470_p7 = por %p350_p0, %p47_p1 }
  0xb2   : > { %p9474_p9 = por %p356_p2, %p53_p11  ;;  %s6871_s27 = sshll.u32 %s475_s9, 8 }
  0xb3   : > { %s11401_s25 = scalar_select %p9470_p7, 1, 0 }
  0xb4   : > { %s11402_s6 = scalar_select %p9474_p9, 1, 0 }
  0xb5   : > { %s7224_s17 = sshll.u32 %s9154_s16, 12  ;;  %s11403_s0 = sld [smem:[#allocation31_spill]] }
  0xb6   : > { %s479_s26 = scalar_lea.vmem [#allocation2], %s6871_s27  ;;  %p9488_p4 = pnand %p7379_p5, %p9457_p12 }
  0xb7   : > { %s486_s23 = sshll.u32 %s479_s26, 4  ;;  %s9492_s28 = scalar_lea.sflag [#allocation3], %s475_s9  ;;  %s9484_s23 = int_to_ptr.vmem [resolvable:$true] %s486_s23 }
  0xb8   : > { %p9048_p8 = pneg %p9488_p4 }
  0xbb   : > { %s9482_s7 = scalar_lea.hbm %s11403_s0, %s7224_s17  ;;  %s9051_s18 = scalar_lea.hbm %s11403_s0, 8192 }
  0xbc   : > { %s9046_s22 = scalar_lea.hbm %s9482_s7, 4096  ;;  %p9052_p11 = scmp.lt.u32.totalorder %s9482_s7, %s11403_s0 }
  0xbd   : > { %p9047_p10 = scmp.ne.s32.totalorder %s9482_s7, %s9046_s22  ;;  %p9053_p12 = scmp.lt.u32.totalorder %s9051_s18, %s9046_s22 }
  0xbe   : > { %p9055_p0 = scmp.lt.u32.totalorder %s9046_s22, %s9482_s7 }
  0xbf   : > { %p9049_p1 = pnand %p9048_p8, %p9047_p10  ;;  %p9054_p13 = por %p9053_p12, %p9052_p11 }
  0xc1   : > { %p9050_p3 = pneg %p9049_p1  ;;  %p9056_p2 = por %p9055_p0, %p9054_p13 }
  0xc3   : > { %p9057_p5 = pnand %p9056_p2, %p9050_p3 }
  0xc5   : > { %9060 = shalt.err (!%p9057_p5)
}
  0xc6   : > { %s9061_s9 = scalar_lea.vmem %s9484_s23, 4096  ;;  %s9168_s27 = smov [#allocation2]  }
  0xc7   : > { %p9062_p10 = scmp.ne.s32.totalorder %s9484_s23, %s9061_s9  ;;  %s9066_s17 = sshll.u32 %s9168_s27, 4  ;;  %s9067_s17 = int_to_ptr.vmem [resolvable:$false] %s9066_s17 }
  0xc8   : > { %s9068_s11 = scalar_lea.vmem %s9067_s17, 8192  ;;  %p9069_p7 = scmp.lt.s32.totalorder %s9484_s23, %s9067_s17 }
  0xc9   : > { %p9064_p1 = pnand %p9062_p10, %p9048_p8  ;;  %p9070_p11 = scmp.lt.s32.totalorder %s9068_s11, %s9061_s9 }
  0xcb   : > { %p9065_p9 = pneg %p9064_p1  ;;  %p9071_p12 = por %p9070_p11, %p9069_p7 }
  0xcd   : > { %p9072_p13 = pnand %p9071_p12, %p9065_p9 }
  0xcf   : > { %9075 = shalt.err (!%p9072_p13)
}
  0xd0   : > { %s9169_s22 = smov 256   ;;  %s9170_s18 = smov 16  }
  0xd1   : > { %7368 = dma.hbm_to_vmem [thread:$0]  (!%p9488_p4), %s9482_s7, 4096, %s9484_s23, %s9492_s28, %s9169_s22, %s9169_s22, %s9170_s18  }
  0xd2   : > { %p11405_p8 = scmp.ne.s32.totalorder %s11389_s20, 0 }
  0xd4   : > { %498 = sbr.rel (%p11405_p8) target bundleno = 3905 (0xf41), region = 76 }
  0xdb   : > { %s9523_s26 = sand.u32 1, %s9146_s30  }
  0xdc   : > { %s6875_s9 = sshll.u32 %s9523_s26, 8  ;;  %s501_s27 = scalar_lea.sflag [#allocation3], %s9523_s26 }
  0xdd   : > { %s9527_s17 = scalar_lea.vmem [#allocation2], %s6875_s9 }
  0xde   : > { %9121 = dma.done.wait (%p9463_p6), %s501_s27, 4096  }
  0xdf   : > { %9123 = vsyncadd (%p9463_p6), %s501_s27, 4294963200  ;;  %p11406_p7 = scmp.eq.s32.totalorder %s9271_s19, 0 }
  0xe1   : > { %9125 = dma.done.wait (%p11406_p7), [#allocation6], 41472   ;;  %p11407_p9 = pmov %p11406_p7 }
  0xe2   : > { %p11408_p4 = pmov %p11406_p7 }
  0xe3   : > { %9127 = vsyncadd (%p11407_p9), [#allocation6], 4294925824 }
  0xe4   : > { %9129 = dma.done.wait (%p11408_p4), [#allocation9], 3072   ;;  %p11409_p3 = pmov %p11408_p4 }
  0xe6   : > { %9131 = vsyncadd (%p11409_p3), [#allocation9], 4294964224  ;;  %p11410_p0 = pmov %p11409_p3 }
  0xe8   : > { %9133 = dma.done.wait (%p11410_p0), [#allocation12], 2048   ;;  %p11411_p2 = pmov %p11410_p0 }
  0xe9   : > { %v7438_v0 = vld [vmem:[#allocation5 + $0x4] ss:$8 sps:$4 sm:$0xff]   ;;  %v7440_v1 = vld [vmem:[#allocation5] ss:$8 sps:$4 sm:$0xff]   ;;  %v7441_v2 = vld [vmem:[#allocation5 + $0x14] ss:$8 sps:$4 sm:$0xff]  }
  0xea   : > { %9135 = vsyncadd (%p11411_p2), [#allocation12], 4294965248  ;;  %814 = vmatprep.subr.bf16.mxu0 %v7438_v0  ;;  %v7443_v3 = vld [vmem:[#allocation5 + $0x10] ss:$8 sps:$4 sm:$0xff]   ;;  %v7444_v4 = vld [vmem:[#allocation5 + $0x24] ss:$8 sps:$4 sm:$0xff]  }
  0xeb   : > { %815 = vmatpush1.bf16.msra.mxu0 %v7440_v1  ;;  %v7446_v5 = vld [vmem:[#allocation5 + $0x20] ss:$8 sps:$4 sm:$0xff]   ;;  %v7447_v6 = vld [vmem:[#allocation5 + $0x34] ss:$8 sps:$4 sm:$0xff]   ;;  %v7459_v7 = vld [vmem:[#allocation5 + $0x104] ss:$8 sps:$4 sm:$0xff]  }
  0xec   : > { %816 = vmatprep.subr.bf16.mxu0 %v7441_v2  ;;  %v7461_v8 = vld [vmem:[#allocation5 + $0x100] ss:$8 sps:$4 sm:$0xff]   ;;  %v7449_v9 = vld [vmem:[#allocation5 + $0x30] ss:$8 sps:$4 sm:$0xff]   ;;  %v7450_v10 = vld [vmem:[#allocation5 + $0x44] ss:$8 sps:$4 sm:$0xff]   ;;  %1136 = vmatprep.subr.bf16.mxu1 %v7459_v7 }
  0xed   : > { %v7465_v11 = vld [vmem:[#allocation5 + $0x114] ss:$8 sps:$4 sm:$0xff]   ;;  %1137 = vmatpush1.bf16.msra.mxu1 %v7461_v8  ;;  %v7467_v12 = vld [vmem:[#allocation5 + $0x110] ss:$8 sps:$4 sm:$0xff]   ;;  %v7452_v13 = vld [vmem:[#allocation5 + $0x40] ss:$8 sps:$4 sm:$0xff]  }
  0xee   : > { %1138 = vmatprep.subr.bf16.mxu1 %v7465_v11  ;;  %v7471_v14 = vld [vmem:[#allocation5 + $0x124] ss:$8 sps:$4 sm:$0xff]   ;;  %v7453_v15 = vld [vmem:[#allocation5 + $0x54] ss:$8 sps:$4 sm:$0xff]   ;;  %v7473_v16 = vld [vmem:[#allocation5 + $0x120] ss:$8 sps:$4 sm:$0xff]  }
  0xef   : > { %817 = vmatpush1.bf16.msra.mxu0 %v7443_v3  ;;  %v7477_v17 = vld [vmem:[#allocation5 + $0x134] ss:$8 sps:$4 sm:$0xff]   ;;  %v7455_v18 = vld [vmem:[#allocation5 + $0x50] ss:$8 sps:$4 sm:$0xff]   ;;  %v7456_v19 = vld [vmem:[#allocation5 + $0x64] ss:$8 sps:$4 sm:$0xff]  }
  0xf0   : > { %818 = vmatprep.subr.bf16.mxu0 %v7444_v4  ;;  %v7479_v20 = vld [vmem:[#allocation5 + $0x130] ss:$8 sps:$4 sm:$0xff]   ;;  %v7483_v21 = vld [vmem:[#allocation5 + $0x144] ss:$8 sps:$4 sm:$0xff]   ;;  %v7458_v22 = vld [vmem:[#allocation5 + $0x60] ss:$8 sps:$4 sm:$0xff]  }
  0xf1   : > { %1139 = vmatpush1.bf16.msra.mxu1 %v7467_v12  ;;  %v7462_v23 = vld [vmem:[#allocation5 + $0x74] ss:$8 sps:$4 sm:$0xff]   ;;  %v7485_v24 = vld [vmem:[#allocation5 + $0x140] ss:$8 sps:$4 sm:$0xff]   ;;  %v7464_v26 = vld [vmem:[#allocation5 + $0x70] ss:$8 sps:$4 sm:$0xff]  }
  0xf2   : > { %1140 = vmatprep.subr.bf16.mxu1 %v7471_v14  ;;  %v7489_v25 = vld [vmem:[#allocation5 + $0x154] ss:$8 sps:$4 sm:$0xff]   ;;  %v7468_v27 = vld [vmem:[#allocation5 + $0x84] ss:$8 sps:$4 sm:$0xff]   ;;  %v7491_v28 = vld [vmem:[#allocation5 + $0x150] ss:$8 sps:$4 sm:$0xff]  }
  0xf3   : > { %819 = vmatpush1.bf16.msra.mxu0 %v7446_v5  ;;  %v7495_v29 = vld [vmem:[#allocation5 + $0x164] ss:$8 sps:$4 sm:$0xff]   ;;  %v7470_v30 = vld [vmem:[#allocation5 + $0x80] ss:$8 sps:$4 sm:$0xff]   ;;  %v7474_v31 = vld [vmem:[#allocation5 + $0x94] ss:$8 sps:$4 sm:$0xff]  }
  0xf4   : > { %820 = vmatprep.subr.bf16.mxu0 %v7447_v6  ;;  %v7497_v32 = vld [vmem:[#allocation5 + $0x160] ss:$8 sps:$4 sm:$0xff]   ;;  %v7501_v33 = vld [vmem:[#allocation5 + $0x174] ss:$8 sps:$4 sm:$0xff]   ;;  %v7476_v35 = vld [vmem:[#allocation5 + $0x90] ss:$8 sps:$4 sm:$0xff]  }
  0xf5   : > { %1141 = vmatpush1.bf16.msra.mxu1 %v7473_v16  ;;  %v575_v34 = vld [vmem:[%s9527_s17 + $0x8] sm:$0xff]  ;;  %v577_v36 = vld [vmem:[%s9527_s17 + $0x18] sm:$0xff]  ;;  %v574_v60 = vld [vmem:[%s9527_s17] sm:$0xff]  ;;  %s11412_s3 = sld [smem:[#allocation34_spill]]  ;;  %s11413_s28 = sld [smem:[#allocation36_spill]]  ;;  %vm4485_vm8 = vcmask 261120  }
  0xf6   : > { %1142 = vmatprep.subr.bf16.mxu1 %v7477_v17  ;;  %v7480_v37 = vld [vmem:[#allocation5 + $0xa4] ss:$8 sps:$4 sm:$0xff]   ;;  %v9547_v38 = vpack.c.bf16 %v577_v36, %v575_v34  ;;  %v7503_v39 = vld [vmem:[#allocation5 + $0x170] ss:$8 sps:$4 sm:$0xff]   ;;  %v7482_v41 = vld [vmem:[#allocation5 + $0xa0] ss:$8 sps:$4 sm:$0xff]  }
  0xf7   : > { %821 = vmatpush1.bf16.msra.mxu0 %v7449_v9  ;;  %v7507_v40 = vld [vmem:[#allocation5 + $0x184] ss:$8 sps:$4 sm:$0xff]   ;;  %v7486_v42 = vld [vmem:[#allocation5 + $0xb4] ss:$8 sps:$4 sm:$0xff]   ;;  %v7509_v43 = vld [vmem:[#allocation5 + $0x180] ss:$8 sps:$4 sm:$0xff]  }
  0xf8   : > { %822 = vmatprep.subr.bf16.mxu0 %v7450_v10  ;;  %846 = vmatprep.mubr.bf16.mxu0 %v9547_v38  ;;  %v7513_v44 = vld [vmem:[#allocation5 + $0x194] ss:$8 sps:$4 sm:$0xff]   ;;  %v7488_v45 = vld [vmem:[#allocation5 + $0xb0] ss:$8 sps:$4 sm:$0xff]   ;;  %v7492_v46 = vld [vmem:[#allocation5 + $0xc4] ss:$8 sps:$4 sm:$0xff]  }
  0xf9   : > { %1143 = vmatpush1.bf16.msra.mxu1 %v7479_v20  ;;  %1168 = vmatprep.mubr.bf16.mxu1 %v9547_v38  ;;  %v7515_v47 = vld [vmem:[#allocation5 + $0x190] ss:$8 sps:$4 sm:$0xff]   ;;  %v7518_v48 = vld [vmem:[#allocation5 + $0x1a4] ss:$8 sps:$4 sm:$0xff]   ;;  %v7494_v49 = vld [vmem:[#allocation5 + $0xc0] ss:$8 sps:$4 sm:$0xff]  }
  0xfa   : > { %1144 = vmatprep.subr.bf16.mxu1 %v7483_v21  ;;  %v7498_v50 = vld [vmem:[#allocation5 + $0xd4] ss:$8 sps:$4 sm:$0xff]   ;;  %v7521_v51 = vld [vmem:[#allocation5 + $0x1a0] ss:$8 sps:$4 sm:$0xff]   ;;  %v7500_v53 = vld [vmem:[#allocation5 + $0xd0] ss:$8 sps:$4 sm:$0xff]  }
  0xfb   : > { %823 = vmatpush1.bf16.msra.mxu0 %v7452_v13  ;;  %v7524_v52 = vld [vmem:[#allocation5 + $0x1b4] ss:$8 sps:$4 sm:$0xff]   ;;  %v7504_v54 = vld [vmem:[#allocation5 + $0xe4] ss:$8 sps:$4 sm:$0xff]   ;;  %v7527_v55 = vld [vmem:[#allocation5 + $0x1b0] ss:$8 sps:$4 sm:$0xff]  }
  0xfc   : > { %824 = vmatprep.subr.bf16.mxu0 %v7453_v15  ;;  %v7530_v56 = vld [vmem:[#allocation5 + $0x1c4] ss:$8 sps:$4 sm:$0xff]   ;;  %v7506_v57 = vld [vmem:[#allocation5 + $0xe0] ss:$8 sps:$4 sm:$0xff]   ;;  %v7510_v58 = vld [vmem:[#allocation5 + $0xf4] ss:$8 sps:$4 sm:$0xff]  }
  0xfd   : > { %1145 = vmatpush1.bf16.msra.mxu1 %v7485_v24  ;;  %v7512_v59 = vld [vmem:[#allocation5 + $0xf0] ss:$8 sps:$4 sm:$0xff]   ;;  %v7533_v61 = vld [vmem:[#allocation5 + $0x1c0] ss:$8 sps:$4 sm:$0xff]   ;;  %v7536_v63 = vld [vmem:[#allocation5 + $0x1d4] ss:$8 sps:$4 sm:$0xff]  }
  0xfe   : > { %1146 = vmatprep.subr.bf16.mxu1 %v7489_v25  ;;  %v576_v62 = vld [vmem:[%s9527_s17 + $0x10] sm:$0xff]  ;;  %v7516_v0 = vld [vmem:[#allocation5 + $0x204] ss:$8 sps:$4 sm:$0xff]   ;;  %v581_v2 = vld [vmem:[%s9527_s17 + $0x38] sm:$0xff]  ;;  %s11414_s18 = sld [smem:[#allocation37_spill]]  ;;  %s11415_s22 = sld [smem:[#allocation38_spill]] }
  0xff   : > { %825 = vmatpush1.bf16.msra.mxu0 %v7455_v18  ;;  %v579_v1 = vld [vmem:[%s9527_s17 + $0x28] sm:$0xff]  ;;  %v7539_v3 = vld [vmem:[#allocation5 + $0x1d0] ss:$8 sps:$4 sm:$0xff]   ;;  %v9555_v4 = vpack.c.bf16 %v576_v62, %v574_v60  ;;  %v7522_v8 = vld [vmem:[#allocation5 + $0x214] ss:$8 sps:$4 sm:$0xff]   ;;  %s11416_s9 = sld [smem:[#allocation39_spill]] }
 0x100   : > { %826 = vmatprep.subr.bf16.mxu0 %v7456_v19  ;;  %v7542_v5 = vld [vmem:[#allocation5 + $0x1e4] ss:$8 sps:$4 sm:$0xff]   ;;  %v7520_v6 = vld [vmem:[#allocation5 + $0x200] ss:$8 sps:$4 sm:$0xff]   ;;  %v9557_v7 = vpack.c.bf16 %v581_v2, %v579_v1  ;;  %v7526_v10 = vld [vmem:[#allocation5 + $0x210] ss:$8 sps:$4 sm:$0xff]  }
 0x101   : > { %1147 = vmatpush1.bf16.msra.mxu1 %v7491_v28  ;;  %v7545_v9 = vld [vmem:[#allocation5 + $0x1e0] ss:$8 sps:$4 sm:$0xff]   ;;  %v7548_v11 = vld [vmem:[#allocation5 + $0x1f4] ss:$8 sps:$4 sm:$0xff]   ;;  %v7528_v14 = vld [vmem:[#allocation5 + $0x224] ss:$8 sps:$4 sm:$0xff]  }
 0x102   : > { %1148 = vmatprep.subr.bf16.mxu1 %v7495_v29  ;;  %v578_v12 = vld [vmem:[%s9527_s17 + $0x20] sm:$0xff]  ;;  %v580_v13 = vld [vmem:[%s9527_s17 + $0x30] sm:$0xff]  ;;  %v583_v15 = vld [vmem:[%s9527_s17 + $0x48] sm:$0xff]  ;;  %s11453_s7 = sld [smem:[#allocation35_spill]]  ;;  %s7225_s11 = sshll.u32 %s9271_s19, 10 }
 0x103   : > { %827 = vmatpush1.bf16.msra.mxu0 %v7458_v22  ;;  %v585_v16 = vld [vmem:[%s9527_s17 + $0x58] sm:$0xff]  ;;  %v9565_v18 = vpack.c.bf16 %v580_v13, %v578_v12  ;;  %v7555_v19 = vld [vmem:[#allocation5 + $0x304] ss:$8 sps:$4 sm:$0xff]   ;;  %v7532_v20 = vld [vmem:[#allocation5 + $0x220] ss:$8 sps:$4 sm:$0xff]   ;;  %s11454_s14 = sld [smem:[#allocation40_spill]] }
 0x104   : > { %828 = vmatprep.subr.bf16.mxu0 %v7462_v23  ;;  %v7551_v17 = vld [vmem:[#allocation5 + $0x1f0] ss:$8 sps:$4 sm:$0xff]   ;;  %v9567_v21 = vpack.c.bf16 %v585_v16, %v583_v15  ;;  %v7534_v22 = vld [vmem:[#allocation5 + $0x234] ss:$8 sps:$4 sm:$0xff]   ;;  %v7557_v23 = vld [vmem:[#allocation5 + $0x300] ss:$8 sps:$4 sm:$0xff]  }
 0x105   : > { %1149 = vmatpush1.bf16.msra.mxu1 %v7497_v32  ;;  %v7538_v24 = vld [vmem:[#allocation5 + $0x230] ss:$8 sps:$4 sm:$0xff]   ;;  %v582_v25 = vld [vmem:[%s9527_s17 + $0x40] sm:$0xff]  ;;  %v587_v29 = vld [vmem:[%s9527_s17 + $0x68] sm:$0xff]  ;;  %p11455_p5 = scmp.ne.s32.totalorder %s11401_s25, 0  ;;  %s9172_s1 = smov [#allocation14]  }
 0x106   : > { %1150 = vmatprep.subr.bf16.mxu1 %v7501_v33  ;;  %v7540_v28 = vld [vmem:[#allocation5 + $0x244] ss:$8 sps:$4 sm:$0xff]   ;;  %v7544_v34 = vld [vmem:[#allocation5 + $0x240] ss:$8 sps:$4 sm:$0xff]   ;;  %v7546_v36 = vld [vmem:[#allocation5 + $0x254] ss:$8 sps:$4 sm:$0xff]  }
 0x107   : > { %829 = vmatpush1.bf16.msra.mxu0 %v7464_v26  ;;  %v7561_v26 = vld [vmem:[#allocation5 + $0x314] ss:$8 sps:$4 sm:$0xff]   ;;  %v7567_v33 = vld [vmem:[#allocation5 + $0x324] ss:$8 sps:$4 sm:$0xff]   ;;  %v7587_v60 = vld [vmem:[#allocation5 + $0x350] ss:$8 sps:$4 sm:$0xff]  }
 0x108   : > { %830 = vmatprep.subr.bf16.mxu0 %v7468_v27  ;;  %v584_v27 = vld [vmem:[%s9527_s17 + $0x50] sm:$0xff]  ;;  %v7591_v62 = vld [vmem:[#allocation5 + $0x364] ss:$8 sps:$4 sm:$0xff]   ;;  %v7578_v15 = vld [vmem:[#allocation5 + $0x2a0] ss:$8 sps:$4 sm:$0xff]   ;;  %s9080_s2 = sshll.u32 %s9172_s1, 4  ;;  %s9081_s2 = int_to_ptr.vmem [resolvable:$false] %s9080_s2 }
 0x109   : > { %1151 = vmatpush1.bf16.msra.mxu1 %v7503_v39  ;;  %v9577_v32 = vpack.c.bf16 %v584_v27, %v582_v25  ;;  %v586_v39 = vld [vmem:[%s9527_s17 + $0x60] sm:$0xff]  ;;  %v7570_v1 = vld [vmem:[#allocation5 + $0x294] ss:$8 sps:$4 sm:$0xff]   ;;  %v7572_v2 = vld [vmem:[#allocation5 + $0x290] ss:$8 sps:$4 sm:$0xff]   ;;  %s11293_s19 = scalar_lea.hbm %s11454_s14, %s7225_s11 }
 0x10a   : > { %1152 = vmatprep.subr.bf16.mxu1 %v7507_v40  ;;  %v7569_v40 = vld [vmem:[#allocation5 + $0x320] ss:$8 sps:$4 sm:$0xff]   ;;  %v7599_v12 = vld [vmem:[#allocation5 + $0x370] ss:$8 sps:$4 sm:$0xff]   ;;  %v7588_v25 = vld [vmem:[#allocation5 + $0x2c4] ss:$8 sps:$4 sm:$0xff]  }
 0x10b   : > { %831 = vmatpush1.bf16.msra.mxu0 %v7470_v30  ;;  %v589_v30 = vld [vmem:[%s9527_s17 + $0x78] sm:$0xff] }
 0x10c   : > { %832 = vmatprep.subr.bf16.mxu0 %v7474_v31  ;;  %v7563_v31 = vld [vmem:[#allocation5 + $0x310] ss:$8 sps:$4 sm:$0xff]  }
 0x10d   : > { %1153 = vmatpush1.bf16.msra.mxu1 %v7509_v43  ;;  %v7552_v43 = vld [vmem:[#allocation5 + $0x264] ss:$8 sps:$4 sm:$0xff]   ;;  %v605_v27 = vld [vmem:[%s9527_s17 + $0xf8] sm:$0xff] }
 0x10e   : > { %1154 = vmatprep.subr.bf16.mxu1 %v7513_v44  ;;  %v591_v44 = vld [vmem:[%s9527_s17 + $0x88] sm:$0xff] }
 0x10f   : > { %833 = vmatpush1.bf16.msra.mxu0 %v7476_v35  ;;  %v9579_v35 = vpack.c.bf16 %v589_v30, %v587_v29  ;;  %v7614_v30 = vld [vmem:[#allocation5 + $0x3a4] ss:$8 sps:$4 sm:$0xff]  }
 0x110   : > { %834 = vmatprep.subr.bf16.mxu0 %v7480_v37  ;;  %v7550_v37 = vld [vmem:[#allocation5 + $0x250] ss:$8 sps:$4 sm:$0xff]  }
 0x111   : > { %1155 = vmatpush1.bf16.msra.mxu1 %v7515_v47 }
 0x112   : > { %1156 = vmatprep.subr.bf16.mxu1 %v7518_v48  ;;  %v7579_v48 = vld [vmem:[#allocation5 + $0x344] ss:$8 sps:$4 sm:$0xff]  }
 0x113   : > { %835 = vmatpush1.bf16.msra.mxu0 %v7482_v41  ;;  %v588_v41 = vld [vmem:[%s9527_s17 + $0x70] sm:$0xff] }
 0x114   : > { %836 = vmatprep.subr.bf16.mxu0 %v7486_v42  ;;  %v7573_v42 = vld [vmem:[#allocation5 + $0x334] ss:$8 sps:$4 sm:$0xff]   ;;  %v9589_v47 = vpack.c.bf16 %v588_v41, %v586_v39 }
 0x115   : > { %1157 = vmatpush1.bf16.msra.mxu1 %v7521_v51  ;;  %v7558_v51 = vld [vmem:[#allocation5 + $0x274] ss:$8 sps:$4 sm:$0xff]  }
 0x116   : > { %1158 = vmatprep.subr.bf16.mxu1 %v7524_v52  ;;  %v7560_v52 = vld [vmem:[#allocation5 + $0x270] ss:$8 sps:$4 sm:$0xff]   ;;  %v7620_v39 = vld [vmem:[#allocation5 + $0x3b4] ss:$8 sps:$4 sm:$0xff]  }
 0x117   : > { %837 = vmatpush1.bf16.msra.mxu0 %v7488_v45  ;;  %v593_v45 = vld [vmem:[%s9527_s17 + $0x98] sm:$0xff]  ;;  %v604_v41 = vld [vmem:[%s9527_s17 + $0xf0] sm:$0xff] }
 0x118   : > { %838 = vmatprep.subr.bf16.mxu0 %v7492_v46  ;;  %v7575_v46 = vld [vmem:[#allocation5 + $0x330] ss:$8 sps:$4 sm:$0xff]  }
 0x119   : > { %1159 = vmatpush1.bf16.msra.mxu1 %v7527_v55  ;;  %v592_v55 = vld [vmem:[%s9527_s17 + $0x90] sm:$0xff] }
 0x11a   : > { %1160 = vmatprep.subr.bf16.mxu1 %v7530_v56  ;;  %v7585_v56 = vld [vmem:[#allocation5 + $0x354] ss:$8 sps:$4 sm:$0xff]  }
 0x11b   : > { %839 = vmatpush1.bf16.msra.mxu0 %v7494_v49  ;;  %v7554_v49 = vld [vmem:[#allocation5 + $0x260] ss:$8 sps:$4 sm:$0xff]  }
 0x11c   : > { %840 = vmatprep.subr.bf16.mxu0 %v7498_v50  ;;  %v9591_v50 = vpack.c.bf16 %v593_v45, %v591_v44  ;;  %v7626_v45 = vld [vmem:[#allocation5 + $0x3c4] ss:$8 sps:$4 sm:$0xff]  }
 0x11d   : > { %1161 = vmatpush1.bf16.msra.mxu1 %v7533_v61 }
 0x11e   : > { %1162 = vmatprep.subr.bf16.mxu1 %v7536_v63  ;;  %v7566_v63 = vld [vmem:[#allocation5 + $0x280] ss:$8 sps:$4 sm:$0xff]  }
 0x11f   : > { %841 = vmatpush1.bf16.msra.mxu0 %v7500_v53  ;;  %v590_v53 = vld [vmem:[%s9527_s17 + $0x80] sm:$0xff] }
 0x120   : > { %842 = vmatprep.subr.bf16.mxu0 %v7504_v54  ;;  %v7581_v54 = vld [vmem:[#allocation5 + $0x340] ss:$8 sps:$4 sm:$0xff]   ;;  %v9601_v61 = vpack.c.bf16 %v592_v55, %v590_v53  ;;  %v7612_v53 = vld [vmem:[#allocation5 + $0x404] ss:$8 sps:$4 sm:$0xff]  }
 0x121   : > { %1163 = vmatpush1.bf16.msra.mxu1 %v7539_v3  ;;  %v594_v3 = vld [vmem:[%s9527_s17 + $0xa0] sm:$0xff] }
 0x122   : > { %1164 = vmatprep.subr.bf16.mxu1 %v7542_v5  ;;  %v7593_v5 = vld [vmem:[#allocation5 + $0x360] ss:$8 sps:$4 sm:$0xff]   ;;  %v7638_v55 = vld [vmem:[#allocation5 + $0x3e4] ss:$8 sps:$4 sm:$0xff]  }
 0x123   : > { %843 = vmatpush1.bf16.msra.mxu0 %v7506_v57  ;;  %v7564_v57 = vld [vmem:[#allocation5 + $0x284] ss:$8 sps:$4 sm:$0xff]  }
 0x124   : > { %844 = vmatprep.subr.bf16.mxu0 %v7510_v58  ;;  %v595_v58 = vld [vmem:[%s9527_s17 + $0xa8] sm:$0xff] }
 0x125   : > { %1165 = vmatpush1.bf16.msra.mxu1 %v7545_v9  ;;  %v7576_v9 = vld [vmem:[#allocation5 + $0x2a4] ss:$8 sps:$4 sm:$0xff]  }
 0x126   : > { %1166 = vmatprep.subr.bf16.mxu1 %v7548_v11  ;;  %v601_v11 = vld [vmem:[%s9527_s17 + $0xd8] sm:$0xff] }
 0x127   : > { %845 = vmatpush1.bf16.msra.mxu0 %v7512_v59  ;;  %v597_v59 = vld [vmem:[%s9527_s17 + $0xb8] sm:$0xff] }
 0x128   : > { %1458 = vmatprep.subr.bf16.mxu0 %v7516_v0  ;;  %v9603_v0 = vpack.c.bf16 %v597_v59, %v595_v58  ;;  %v7641_v58 = vld [vmem:[#allocation5 + $0x3e0] ss:$8 sps:$4 sm:$0xff]   ;;  %v7644_v59 = vld [vmem:[#allocation5 + $0x3f4] ss:$8 sps:$4 sm:$0xff]  }
 0x129   : > { %1167 = vmatpush1.bf16.msra.mxu1 %v7551_v17  ;;  %v7582_v17 = vld [vmem:[#allocation5 + $0x2b4] ss:$8 sps:$4 sm:$0xff]  }
 0x12a   : > { %847 = vmatmul.mubr.bf16.vlgmr.msra.gmra.mrb[0].mxu0 %v9555_v4  ;;  %1780 = vmatprep.subr.bf16.mxu1 %v7555_v19  ;;  %v7584_v19 = vld [vmem:[#allocation5 + $0x2b0] ss:$8 sps:$4 sm:$0xff]  }
 0x12b   : > { %1459 = vmatpush1.bf16.msra.mxu0 %v7520_v6  ;;  %856 = vmatprep.mubr.bf16.mxu0 %v9557_v7  ;;  %v596_v6 = vld [vmem:[%s9527_s17 + $0xb0] sm:$0xff] }
 0x12c   : > { %1460 = vmatprep.subr.bf16.mxu0 %v7522_v8  ;;  %1169 = vmatmul.mubr.bf16.vlgmr.msra.gmra.mrb[0].mxu1 %v9555_v4  ;;  %v7597_v8 = vld [vmem:[#allocation5 + $0x374] ss:$8 sps:$4 sm:$0xff]   ;;  %v9613_v13 = vpack.c.bf16 %v596_v6, %v594_v3 }
 0x12d   : > { %1781 = vmatpush1.bf16.msra.mxu1 %v7557_v23  ;;  %1178 = vmatprep.mubr.bf16.mxu1 %v9557_v7  ;;  %v600_v23 = vld [vmem:[%s9527_s17 + $0xd0] sm:$0xff] }
 0x12e   : > { %1782 = vmatprep.subr.bf16.mxu1 %v7561_v26  ;;  %v603_v26 = vld [vmem:[%s9527_s17 + $0xe8] sm:$0xff]  ;;  %v7630_v3 = vld [vmem:[#allocation5 + $0x434] ss:$8 sps:$4 sm:$0xff]  }
 0x12f   : > { %1461 = vmatpush1.bf16.msra.mxu0 %v7526_v10  ;;  %v599_v10 = vld [vmem:[%s9527_s17 + $0xc8] sm:$0xff]  ;;  %v7657_v6 = vld [vmem:[#allocation5 + $0x514] ss:$8 sps:$4 sm:$0xff]  }
 0x130   : > { %1462 = vmatprep.subr.bf16.mxu0 %v7528_v14  ;;  %v7603_v14 = vld [vmem:[#allocation5 + $0x384] ss:$8 sps:$4 sm:$0xff]   ;;  %v9615_v16 = vpack.c.bf16 %v601_v11, %v599_v10  ;;  %v7659_v10 = vld [vmem:[#allocation5 + $0x510] ss:$8 sps:$4 sm:$0xff]  }
 0x131   : > { %1783 = vmatpush1.bf16.msra.mxu1 %v7563_v31  ;;  %v7590_v31 = vld [vmem:[#allocation5 + $0x2c0] ss:$8 sps:$4 sm:$0xff]   ;;  %v7663_v11 = vld [vmem:[#allocation5 + $0x524] ss:$8 sps:$4 sm:$0xff]  }
 0x132   : > { %857 = vmatmul.mubr.bf16.gmra.mrb[4].mxu0 %v9565_v18  ;;  %1784 = vmatprep.subr.bf16.mxu1 %v7567_v33  ;;  %v9627_v33 = vpack.c.bf16 %v605_v27, %v603_v26  ;;  %v7677_v26 = vld [vmem:[#allocation5 + $0x540] ss:$8 sps:$4 sm:$0xff]   ;;  %v7681_v27 = vld [vmem:[#allocation5 + $0x554] ss:$8 sps:$4 sm:$0xff]  }
 0x133   : > { %1463 = vmatpush1.bf16.msra.mxu0 %v7532_v20  ;;  %866 = vmatprep.mubr.bf16.mxu0 %v9567_v21  ;;  %v598_v20 = vld [vmem:[%s9527_s17 + $0xc0] sm:$0xff] }
 0x134   : > { %1464 = vmatprep.subr.bf16.mxu0 %v7534_v22  ;;  %1179 = vmatmul.mubr.bf16.gmra.mrb[4].mxu1 %v9565_v18  ;;  %v7605_v22 = vld [vmem:[#allocation5 + $0x380] ss:$8 sps:$4 sm:$0xff]   ;;  %v9625_v29 = vpack.c.bf16 %v600_v23, %v598_v20  ;;  %v7648_v20 = vld [vmem:[#allocation5 + $0x464] ss:$8 sps:$4 sm:$0xff]  }
 0x135   : > { %1785 = vmatpush1.bf16.msra.mxu1 %v7569_v40  ;;  %1188 = vmatprep.mubr.bf16.mxu1 %v9567_v21  ;;  %v602_v40 = vld [vmem:[%s9527_s17 + $0xe0] sm:$0xff] }
 0x136   : > { %1786 = vmatprep.subr.bf16.mxu1 %v7573_v42  ;;  %v7600_v42 = vld [vmem:[#allocation5 + $0x2e4] ss:$8 sps:$4 sm:$0xff]   ;;  %v9635_v44 = vpack.c.bf16 %v604_v41, %v602_v40  ;;  %v7693_v40 = vld [vmem:[#allocation5 + $0x574] ss:$8 sps:$4 sm:$0xff]   ;;  %v7668_v41 = vld [vmem:[#allocation5 + $0x490] ss:$8 sps:$4 sm:$0xff]  }
 0x137   : > { %1465 = vmatpush1.bf16.msra.mxu0 %v7538_v24  ;;  %v7609_v24 = vld [vmem:[#allocation5 + $0x394] ss:$8 sps:$4 sm:$0xff]   ;;  %v7675_v23 = vld [vmem:[#allocation5 + $0x544] ss:$8 sps:$4 sm:$0xff]  }
 0x138   : > { %1466 = vmatprep.subr.bf16.mxu0 %v7540_v28  ;;  %v7611_v28 = vld [vmem:[#allocation5 + $0x390] ss:$8 sps:$4 sm:$0xff]  }
 0x139   : > { %1787 = vmatpush1.bf16.msra.mxu1 %v7575_v46  ;;  %v7602_v46 = vld [vmem:[#allocation5 + $0x2e0] ss:$8 sps:$4 sm:$0xff]  }
 0x13a   : > { %867 = vmatmul.mubr.bf16.gmra.mrb[8].mxu0 %v9577_v32  ;;  %1788 = vmatprep.subr.bf16.mxu1 %v7579_v48  ;;  %v7606_v48 = vld [vmem:[#allocation5 + $0x2f4] ss:$8 sps:$4 sm:$0xff]  }
 0x13b   : > { %1467 = vmatpush1.bf16.msra.mxu0 %v7544_v34  ;;  %876 = vmatprep.mubr.bf16.mxu0 %v9579_v35  ;;  %v7594_v34 = vld [vmem:[#allocation5 + $0x2d4] ss:$8 sps:$4 sm:$0xff]  }
 0x13c   : > { %1468 = vmatprep.subr.bf16.mxu0 %v7546_v36  ;;  %1189 = vmatmul.mubr.bf16.gmra.mrb[8].mxu1 %v9577_v32  ;;  %v7617_v36 = vld [vmem:[#allocation5 + $0x3a0] ss:$8 sps:$4 sm:$0xff]  }
 0x13d   : > { %1789 = vmatpush1.bf16.msra.mxu1 %v7581_v54  ;;  %1198 = vmatprep.mubr.bf16.mxu1 %v9579_v35  ;;  %v7635_v54 = vld [vmem:[#allocation5 + $0x3d0] ss:$8 sps:$4 sm:$0xff]  }
 0x13e   : > { %1790 = vmatprep.subr.bf16.mxu1 %v7585_v56  ;;  %v7616_v56 = vld [vmem:[#allocation5 + $0x400] ss:$8 sps:$4 sm:$0xff]  }
 0x13f   : > { %1469 = vmatpush1.bf16.msra.mxu0 %v7550_v37  ;;  %v7596_v37 = vld [vmem:[#allocation5 + $0x2d0] ss:$8 sps:$4 sm:$0xff]  }
 0x140   : > { %1470 = vmatprep.subr.bf16.mxu0 %v7552_v43  ;;  %v7623_v43 = vld [vmem:[#allocation5 + $0x3b0] ss:$8 sps:$4 sm:$0xff]  }
 0x141   : > { %1791 = vmatpush1.bf16.msra.mxu1 %v7587_v60  ;;  %v7622_v60 = vld [vmem:[#allocation5 + $0x410] ss:$8 sps:$4 sm:$0xff]  }
 0x142   : > { %877 = vmatmul.mubr.bf16.gmra.mrb[12].mxu0 %v9589_v47  ;;  %1792 = vmatprep.subr.bf16.mxu1 %v7591_v62  ;;  %v7624_v62 = vld [vmem:[#allocation5 + $0x424] ss:$8 sps:$4 sm:$0xff]  }
 0x143   : > { %1471 = vmatpush1.bf16.msra.mxu0 %v7554_v49  ;;  %886 = vmatprep.mubr.bf16.mxu0 %v9591_v50  ;;  %v7629_v49 = vld [vmem:[#allocation5 + $0x3c0] ss:$8 sps:$4 sm:$0xff]  }
 0x144   : > { %1472 = vmatprep.subr.bf16.mxu0 %v7558_v51  ;;  %1199 = vmatmul.mubr.bf16.gmra.mrb[12].mxu1 %v9589_v47  ;;  %v7632_v51 = vld [vmem:[#allocation5 + $0x3d4] ss:$8 sps:$4 sm:$0xff]  }
 0x145   : > { %1793 = vmatpush1.bf16.msra.mxu1 %v7593_v5  ;;  %1208 = vmatprep.mubr.bf16.mxu1 %v9591_v50  ;;  %v7653_v5 = vld [vmem:[#allocation5 + $0x500] ss:$8 sps:$4 sm:$0xff]  }
 0x146   : > { %1794 = vmatprep.subr.bf16.mxu1 %v7597_v8  ;;  %v7634_v8 = vld [vmem:[#allocation5 + $0x430] ss:$8 sps:$4 sm:$0xff]  }
 0x147   : > { %1473 = vmatpush1.bf16.msra.mxu0 %v7560_v52  ;;  %v7608_v52 = vld [vmem:[#allocation5 + $0x2f0] ss:$8 sps:$4 sm:$0xff]  }
 0x148   : > { %1474 = vmatprep.subr.bf16.mxu0 %v7564_v57  ;;  %v7618_v57 = vld [vmem:[#allocation5 + $0x414] ss:$8 sps:$4 sm:$0xff]  }
 0x149   : > { %1795 = vmatpush1.bf16.msra.mxu1 %v7599_v12  ;;  %v7640_v12 = vld [vmem:[#allocation5 + $0x440] ss:$8 sps:$4 sm:$0xff]  }
 0x14a   : > { %887 = vmatmul.mubr.bf16.gmra.mrb[16].mxu0 %v9601_v61  ;;  %1796 = vmatprep.subr.bf16.mxu1 %v7603_v14  ;;  %v7642_v14 = vld [vmem:[#allocation5 + $0x454] ss:$8 sps:$4 sm:$0xff]  }
 0x14b   : > { %1475 = vmatpush1.bf16.msra.mxu0 %v7566_v63  ;;  %896 = vmatprep.mubr.bf16.mxu0 %v9603_v0  ;;  %v7647_v63 = vld [vmem:[#allocation5 + $0x3f0] ss:$8 sps:$4 sm:$0xff]  }
 0x14c   : > { %1476 = vmatprep.subr.bf16.mxu0 %v7570_v1  ;;  %1209 = vmatmul.mubr.bf16.gmra.mrb[16].mxu1 %v9601_v61  ;;  %v7651_v1 = vld [vmem:[#allocation5 + $0x504] ss:$8 sps:$4 sm:$0xff]  }
 0x14d   : > { %1797 = vmatpush1.bf16.msra.mxu1 %v7605_v22  ;;  %1218 = vmatprep.mubr.bf16.mxu1 %v9603_v0  ;;  %v7671_v22 = vld [vmem:[#allocation5 + $0x530] ss:$8 sps:$4 sm:$0xff]  }
 0x14e   : > { %1798 = vmatprep.subr.bf16.mxu1 %v7609_v24  ;;  %v7650_v24 = vld [vmem:[#allocation5 + $0x460] ss:$8 sps:$4 sm:$0xff]  }
 0x14f   : > { %1477 = vmatpush1.bf16.msra.mxu0 %v7572_v2  ;;  %v7628_v2 = vld [vmem:[#allocation5 + $0x420] ss:$8 sps:$4 sm:$0xff]  }
 0x150   : > { %1478 = vmatprep.subr.bf16.mxu0 %v7576_v9  ;;  %v7636_v9 = vld [vmem:[#allocation5 + $0x444] ss:$8 sps:$4 sm:$0xff]  }
 0x151   : > { %1799 = vmatpush1.bf16.msra.mxu1 %v7611_v28  ;;  %v7656_v28 = vld [vmem:[#allocation5 + $0x470] ss:$8 sps:$4 sm:$0xff]  }
 0x152   : > { %897 = vmatmul.mubr.bf16.gmra.mrb[20].mxu0 %v9613_v13  ;;  %1800 = vmatprep.subr.bf16.mxu1 %v7614_v30  ;;  %v7660_v30 = vld [vmem:[#allocation5 + $0x484] ss:$8 sps:$4 sm:$0xff]  }
 0x153   : > { %1479 = vmatpush1.bf16.msra.mxu0 %v7578_v15  ;;  %906 = vmatprep.mubr.bf16.mxu0 %v9615_v16  ;;  %v7665_v15 = vld [vmem:[#allocation5 + $0x520] ss:$8 sps:$4 sm:$0xff]  }
 0x154   : > { %1480 = vmatprep.subr.bf16.mxu0 %v7582_v17  ;;  %1219 = vmatmul.mubr.bf16.gmra.mrb[20].mxu1 %v9613_v13  ;;  %v7669_v17 = vld [vmem:[#allocation5 + $0x534] ss:$8 sps:$4 sm:$0xff]  }
 0x155   : > { %1801 = vmatpush1.bf16.msra.mxu1 %v7617_v36  ;;  %1228 = vmatprep.mubr.bf16.mxu1 %v9615_v16  ;;  %v7662_v36 = vld [vmem:[#allocation5 + $0x480] ss:$8 sps:$4 sm:$0xff]  }
 0x156   : > { %1802 = vmatprep.subr.bf16.mxu1 %v7620_v39  ;;  %v7689_v39 = vld [vmem:[#allocation5 + $0x560] ss:$8 sps:$4 sm:$0xff]  }
 0x157   : > { %1481 = vmatpush1.bf16.msra.mxu0 %v7584_v19  ;;  %v7646_v19 = vld [vmem:[#allocation5 + $0x450] ss:$8 sps:$4 sm:$0xff]  }
 0x158   : > { %1482 = vmatprep.subr.bf16.mxu0 %v7588_v25  ;;  %v7654_v25 = vld [vmem:[#allocation5 + $0x474] ss:$8 sps:$4 sm:$0xff]  }
 0x159   : > { %1803 = vmatpush1.bf16.msra.mxu1 %v7623_v43  ;;  %v7695_v43 = vld [vmem:[#allocation5 + $0x570] ss:$8 sps:$4 sm:$0xff]  }
 0x15a   : > { %907 = vmatmul.mubr.bf16.gmra.mrb[24].mxu0 %v9625_v29  ;;  %1804 = vmatprep.subr.bf16.mxu1 %v7626_v45  ;;  %v7699_v45 = vld [vmem:[#allocation5 + $0x584] ss:$8 sps:$4 sm:$0xff]  }
 0x15b   : > { %1483 = vmatpush1.bf16.msra.mxu0 %v7590_v31  ;;  %916 = vmatprep.mubr.bf16.mxu0 %v9627_v33  ;;  %v7683_v31 = vld [vmem:[#allocation5 + $0x550] ss:$8 sps:$4 sm:$0xff]  }
 0x15c   : > { %1484 = vmatprep.subr.bf16.mxu0 %v7594_v34  ;;  %1229 = vmatmul.mubr.bf16.gmra.mrb[24].mxu1 %v9625_v29  ;;  %v7687_v34 = vld [vmem:[#allocation5 + $0x564] ss:$8 sps:$4 sm:$0xff]  }
 0x15d   : > { %1805 = vmatpush1.bf16.msra.mxu1 %v7629_v49  ;;  %1238 = vmatprep.mubr.bf16.mxu1 %v9627_v33  ;;  %v7701_v49 = vld [vmem:[#allocation5 + $0x580] ss:$8 sps:$4 sm:$0xff]  }
 0x15e   : > { %1806 = vmatprep.subr.bf16.mxu1 %v7632_v51  ;;  %v7705_v51 = vld [vmem:[#allocation5 + $0x594] ss:$8 sps:$4 sm:$0xff]  }
 0x15f   : > { %1485 = vmatpush1.bf16.msra.mxu0 %v7596_v37  ;;  %v7666_v37 = vld [vmem:[#allocation5 + $0x494] ss:$8 sps:$4 sm:$0xff]  }
 0x160   : > { %1486 = vmatprep.subr.bf16.mxu0 %v7600_v42  ;;  %v7672_v42 = vld [vmem:[#allocation5 + $0x4a4] ss:$8 sps:$4 sm:$0xff]  }
 0x161   : > { %1807 = vmatpush1.bf16.msra.mxu1 %v7635_v54  ;;  %v7707_v54 = vld [vmem:[#allocation5 + $0x590] ss:$8 sps:$4 sm:$0xff]  }
 0x162   : > { %917 = vmatmul.mubr.bf16.gmra.mrb[28].mxu0 %v9635_v44  ;;  %1808 = vmatprep.subr.bf16.mxu1 %v7638_v55  ;;  %v7710_v55 = vld [vmem:[#allocation5 + $0x5a4] ss:$8 sps:$4 sm:$0xff]  }
 0x163   : > { %1487 = vmatpush1.bf16.msra.mxu0 %v7602_v46  ;;  %1490 = vmatprep.mubr.bf16.mxu0 %v9547_v38  ;;  %v7674_v46 = vld [vmem:[#allocation5 + $0x4a0] ss:$8 sps:$4 sm:$0xff]  }
 0x164   : > { %1488 = vmatprep.subr.bf16.mxu0 %v7606_v48  ;;  %1239 = vmatmul.mubr.bf16.gmra.mrb[28].mxu1 %v9635_v44  ;;  %v7678_v48 = vld [vmem:[#allocation5 + $0x4b4] ss:$8 sps:$4 sm:$0xff]  }
 0x165   : > { %1809 = vmatpush1.bf16.msra.mxu1 %v7641_v58  ;;  %1812 = vmatprep.mubr.bf16.mxu1 %v9547_v38  ;;  %v7713_v58 = vld [vmem:[#allocation5 + $0x5a0] ss:$8 sps:$4 sm:$0xff]  }
 0x166   : > { %1810 = vmatprep.subr.bf16.mxu1 %v7644_v59  ;;  %v7716_v59 = vld [vmem:[#allocation5 + $0x5b4] ss:$8 sps:$4 sm:$0xff]  }
 0x167   : > { %1489 = vmatpush1.bf16.msra.mxu0 %v7608_v52  ;;  %v7680_v52 = vld [vmem:[#allocation5 + $0x4b0] ss:$8 sps:$4 sm:$0xff]  }
 0x168   : > { %2102 = vmatprep.subr.bf16.mxu0 %v7612_v53  ;;  %v7684_v53 = vld [vmem:[#allocation5 + $0x4c4] ss:$8 sps:$4 sm:$0xff]  }
 0x169   : > { %1811 = vmatpush1.bf16.msra.mxu1 %v7647_v63  ;;  %v7719_v63 = vld [vmem:[#allocation5 + $0x5b0] ss:$8 sps:$4 sm:$0xff]  }
 0x16a   : > { %1491 = vmatmul.mubr.bf16.vlgmr.msra.gmra.mrb[32].mxu0 %v9555_v4  ;;  %2424 = vmatprep.subr.bf16.mxu1 %v7651_v1  ;;  %v7722_v1 = vld [vmem:[#allocation5 + $0x5c4] ss:$8 sps:$4 sm:$0xff]  }
 0x16b   : > { %2103 = vmatpush1.bf16.msra.mxu0 %v7616_v56  ;;  %1500 = vmatprep.mubr.bf16.mxu0 %v9557_v7  ;;  %v7686_v56 = vld [vmem:[#allocation5 + $0x4c0] ss:$8 sps:$4 sm:$0xff]  }
 0x16c   : > { %2104 = vmatprep.subr.bf16.mxu0 %v7618_v57  ;;  %1813 = vmatmul.mubr.bf16.vlgmr.msra.gmra.mrb[32].mxu1 %v9555_v4  ;;  %v7690_v57 = vld [vmem:[#allocation5 + $0x4d4] ss:$8 sps:$4 sm:$0xff]  }
 0x16d   : > { %2425 = vmatpush1.bf16.msra.mxu1 %v7653_v5  ;;  %1822 = vmatprep.mubr.bf16.mxu1 %v9557_v7  ;;  %v7725_v5 = vld [vmem:[#allocation5 + $0x5c0] ss:$8 sps:$4 sm:$0xff]  }
 0x16e   : > { %2426 = vmatprep.subr.bf16.mxu1 %v7657_v6  ;;  %v7728_v6 = vld [vmem:[#allocation5 + $0x5d4] ss:$8 sps:$4 sm:$0xff]  }
 0x16f   : > { %2105 = vmatpush1.bf16.msra.mxu0 %v7622_v60  ;;  %v7692_v60 = vld [vmem:[#allocation5 + $0x4d0] ss:$8 sps:$4 sm:$0xff]  }
 0x170   : > { %2106 = vmatprep.subr.bf16.mxu0 %v7624_v62  ;;  %v7696_v62 = vld [vmem:[#allocation5 + $0x4e4] ss:$8 sps:$4 sm:$0xff]  }
 0x171   : > { %2427 = vmatpush1.bf16.msra.mxu1 %v7659_v10  ;;  %v7731_v10 = vld [vmem:[#allocation5 + $0x5d0] ss:$8 sps:$4 sm:$0xff]  }
 0x172   : > { %1501 = vmatmul.mubr.bf16.gmra.mrb[36].mxu0 %v9565_v18  ;;  %2428 = vmatprep.subr.bf16.mxu1 %v7663_v11  ;;  %v7734_v11 = vld [vmem:[#allocation5 + $0x5e4] ss:$8 sps:$4 sm:$0xff]  }
 0x173   : > { %2107 = vmatpush1.bf16.msra.mxu0 %v7628_v2  ;;  %1510 = vmatprep.mubr.bf16.mxu0 %v9567_v21  ;;  %v7698_v2 = vld [vmem:[#allocation5 + $0x4e0] ss:$8 sps:$4 sm:$0xff]  }
 0x174   : > { %2108 = vmatprep.subr.bf16.mxu0 %v7630_v3  ;;  %1823 = vmatmul.mubr.bf16.gmra.mrb[36].mxu1 %v9565_v18  ;;  %v7702_v3 = vld [vmem:[#allocation5 + $0x4f4] ss:$8 sps:$4 sm:$0xff]  }
 0x175   : > { %2429 = vmatpush1.bf16.msra.mxu1 %v7665_v15  ;;  %1832 = vmatprep.mubr.bf16.mxu1 %v9567_v21  ;;  %v7737_v15 = vld [vmem:[#allocation5 + $0x5e0] ss:$8 sps:$4 sm:$0xff]  }
 0x176   : > { %2430 = vmatprep.subr.bf16.mxu1 %v7669_v17  ;;  %v7740_v17 = vld [vmem:[#allocation5 + $0x5f4] ss:$8 sps:$4 sm:$0xff]  }
 0x177   : > { %2109 = vmatpush1.bf16.msra.mxu0 %v7634_v8  ;;  %v7704_v8 = vld [vmem:[#allocation5 + $0x4f0] ss:$8 sps:$4 sm:$0xff]  }
 0x178   : > { %2110 = vmatprep.subr.bf16.mxu0 %v7636_v9  ;;  %v7708_v9 = vld [vmem:[#allocation5 + $0x604] ss:$8 sps:$4 sm:$0xff]  }
 0x179   : > { %2431 = vmatpush1.bf16.msra.mxu1 %v7671_v22  ;;  %v7743_v22 = vld [vmem:[#allocation5 + $0x5f0] ss:$8 sps:$4 sm:$0xff]  }
 0x17a   : > { %1511 = vmatmul.mubr.bf16.gmra.mrb[40].mxu0 %v9577_v32  ;;  %2432 = vmatprep.subr.bf16.mxu1 %v7675_v23  ;;  %v7747_v23 = vld [vmem:[#allocation5 + $0x704] ss:$8 sps:$4 sm:$0xff]  }
 0x17b   : > { %2111 = vmatpush1.bf16.msra.mxu0 %v7640_v12  ;;  %1520 = vmatprep.mubr.bf16.mxu0 %v9579_v35  ;;  %v7712_v12 = vld [vmem:[#allocation5 + $0x600] ss:$8 sps:$4 sm:$0xff]  }
 0x17c   : > { %2112 = vmatprep.subr.bf16.mxu0 %v7642_v14  ;;  %1833 = vmatmul.mubr.bf16.gmra.mrb[40].mxu1 %v9577_v32  ;;  %v7714_v14 = vld [vmem:[#allocation5 + $0x614] ss:$8 sps:$4 sm:$0xff]  }
 0x17d   : > { %2433 = vmatpush1.bf16.msra.mxu1 %v7677_v26  ;;  %1842 = vmatprep.mubr.bf16.mxu1 %v9579_v35  ;;  %v7749_v26 = vld [vmem:[#allocation5 + $0x700] ss:$8 sps:$4 sm:$0xff]  }
 0x17e   : > { %2434 = vmatprep.subr.bf16.mxu1 %v7681_v27  ;;  %v7753_v27 = vld [vmem:[#allocation5 + $0x714] ss:$8 sps:$4 sm:$0xff]  }
 0x17f   : > { %2113 = vmatpush1.bf16.msra.mxu0 %v7646_v19  ;;  %v7718_v19 = vld [vmem:[#allocation5 + $0x610] ss:$8 sps:$4 sm:$0xff]  }
 0x180   : > { %2114 = vmatprep.subr.bf16.mxu0 %v7648_v20  ;;  %v7720_v20 = vld [vmem:[#allocation5 + $0x624] ss:$8 sps:$4 sm:$0xff]  }
 0x181   : > { %2435 = vmatpush1.bf16.msra.mxu1 %v7683_v31  ;;  %v7755_v31 = vld [vmem:[#allocation5 + $0x710] ss:$8 sps:$4 sm:$0xff]  }
 0x182   : > { %1521 = vmatmul.mubr.bf16.gmra.mrb[44].mxu0 %v9589_v47  ;;  %2436 = vmatprep.subr.bf16.mxu1 %v7687_v34  ;;  %v7759_v34 = vld [vmem:[#allocation5 + $0x724] ss:$8 sps:$4 sm:$0xff]  }
 0x183   : > { %2115 = vmatpush1.bf16.msra.mxu0 %v7650_v24  ;;  %1530 = vmatprep.mubr.bf16.mxu0 %v9591_v50  ;;  %v7724_v24 = vld [vmem:[#allocation5 + $0x620] ss:$8 sps:$4 sm:$0xff]  }
 0x184   : > { %2116 = vmatprep.subr.bf16.mxu0 %v7654_v25  ;;  %1843 = vmatmul.mubr.bf16.gmra.mrb[44].mxu1 %v9589_v47  ;;  %v7726_v25 = vld [vmem:[#allocation5 + $0x634] ss:$8 sps:$4 sm:$0xff]  }
 0x185   : > { %2437 = vmatpush1.bf16.msra.mxu1 %v7689_v39  ;;  %1852 = vmatprep.mubr.bf16.mxu1 %v9591_v50  ;;  %v7761_v39 = vld [vmem:[#allocation5 + $0x720] ss:$8 sps:$4 sm:$0xff]  }
 0x186   : > { %2438 = vmatprep.subr.bf16.mxu1 %v7693_v40  ;;  %v7765_v40 = vld [vmem:[#allocation5 + $0x734] ss:$8 sps:$4 sm:$0xff]  }
 0x187   : > { %2117 = vmatpush1.bf16.msra.mxu0 %v7656_v28  ;;  %v7730_v28 = vld [vmem:[#allocation5 + $0x630] ss:$8 sps:$4 sm:$0xff]  }
 0x188   : > { %2118 = vmatprep.subr.bf16.mxu0 %v7660_v30  ;;  %v7732_v30 = vld [vmem:[#allocation5 + $0x644] ss:$8 sps:$4 sm:$0xff]  }
 0x189   : > { %2439 = vmatpush1.bf16.msra.mxu1 %v7695_v43  ;;  %v7767_v43 = vld [vmem:[#allocation5 + $0x730] ss:$8 sps:$4 sm:$0xff]  }
 0x18a   : > { %1531 = vmatmul.mubr.bf16.gmra.mrb[48].mxu0 %v9601_v61  ;;  %2440 = vmatprep.subr.bf16.mxu1 %v7699_v45  ;;  %v7771_v45 = vld [vmem:[#allocation5 + $0x744] ss:$8 sps:$4 sm:$0xff]  }
 0x18b   : > { %2119 = vmatpush1.bf16.msra.mxu0 %v7662_v36  ;;  %1540 = vmatprep.mubr.bf16.mxu0 %v9603_v0  ;;  %v7736_v36 = vld [vmem:[#allocation5 + $0x640] ss:$8 sps:$4 sm:$0xff]  }
 0x18c   : > { %2120 = vmatprep.subr.bf16.mxu0 %v7666_v37  ;;  %1853 = vmatmul.mubr.bf16.gmra.mrb[48].mxu1 %v9601_v61  ;;  %v7738_v37 = vld [vmem:[#allocation5 + $0x654] ss:$8 sps:$4 sm:$0xff]  }
 0x18d   : > { %2441 = vmatpush1.bf16.msra.mxu1 %v7701_v49  ;;  %1862 = vmatprep.mubr.bf16.mxu1 %v9603_v0  ;;  %v7773_v49 = vld [vmem:[#allocation5 + $0x740] ss:$8 sps:$4 sm:$0xff]  }
 0x18e   : > { %2442 = vmatprep.subr.bf16.mxu1 %v7705_v51  ;;  %v7777_v51 = vld [vmem:[#allocation5 + $0x754] ss:$8 sps:$4 sm:$0xff]  }
 0x18f   : > { %2121 = vmatpush1.bf16.msra.mxu0 %v7668_v41  ;;  %v7742_v41 = vld [vmem:[#allocation5 + $0x650] ss:$8 sps:$4 sm:$0xff]  }
 0x190   : > { %2122 = vmatprep.subr.bf16.mxu0 %v7672_v42  ;;  %v7744_v42 = vld [vmem:[#allocation5 + $0x664] ss:$8 sps:$4 sm:$0xff]  }
 0x191   : > { %2443 = vmatpush1.bf16.msra.mxu1 %v7707_v54  ;;  %v7779_v54 = vld [vmem:[#allocation5 + $0x750] ss:$8 sps:$4 sm:$0xff]  }
 0x192   : > { %1541 = vmatmul.mubr.bf16.gmra.mrb[52].mxu0 %v9613_v13  ;;  %2444 = vmatprep.subr.bf16.mxu1 %v7710_v55  ;;  %v7783_v55 = vld [vmem:[#allocation5 + $0x764] ss:$8 sps:$4 sm:$0xff]  }
 0x193   : > { %2123 = vmatpush1.bf16.msra.mxu0 %v7674_v46  ;;  %1550 = vmatprep.mubr.bf16.mxu0 %v9615_v16  ;;  %v7746_v46 = vld [vmem:[#allocation5 + $0x660] ss:$8 sps:$4 sm:$0xff]  }
 0x194   : > { %2124 = vmatprep.subr.bf16.mxu0 %v7678_v48  ;;  %1863 = vmatmul.mubr.bf16.gmra.mrb[52].mxu1 %v9613_v13  ;;  %v7750_v48 = vld [vmem:[#allocation5 + $0x674] ss:$8 sps:$4 sm:$0xff]  }
 0x195   : > { %2445 = vmatpush1.bf16.msra.mxu1 %v7713_v58  ;;  %1872 = vmatprep.mubr.bf16.mxu1 %v9615_v16  ;;  %v7785_v58 = vld [vmem:[#allocation5 + $0x760] ss:$8 sps:$4 sm:$0xff]  }
 0x196   : > { %2446 = vmatprep.subr.bf16.mxu1 %v7716_v59  ;;  %v7789_v59 = vld [vmem:[#allocation5 + $0x774] ss:$8 sps:$4 sm:$0xff]  }
 0x197   : > { %2125 = vmatpush1.bf16.msra.mxu0 %v7680_v52  ;;  %v7752_v52 = vld [vmem:[#allocation5 + $0x670] ss:$8 sps:$4 sm:$0xff]  }
 0x198   : > { %2126 = vmatprep.subr.bf16.mxu0 %v7684_v53  ;;  %v7756_v53 = vld [vmem:[#allocation5 + $0x684] ss:$8 sps:$4 sm:$0xff]  }
 0x199   : > { %2447 = vmatpush1.bf16.msra.mxu1 %v7719_v63  ;;  %v7791_v63 = vld [vmem:[#allocation5 + $0x770] ss:$8 sps:$4 sm:$0xff]  }
 0x19a   : > { %1551 = vmatmul.mubr.bf16.gmra.mrb[56].mxu0 %v9625_v29  ;;  %2448 = vmatprep.subr.bf16.mxu1 %v7722_v1  ;;  %v7795_v1 = vld [vmem:[#allocation5 + $0x784] ss:$8 sps:$4 sm:$0xff]  }
 0x19b   : > { %2127 = vmatpush1.bf16.msra.mxu0 %v7686_v56  ;;  %1560 = vmatprep.mubr.bf16.mxu0 %v9627_v33  ;;  %v7758_v56 = vld [vmem:[#allocation5 + $0x680] ss:$8 sps:$4 sm:$0xff]  }
 0x19c   : > { %2128 = vmatprep.subr.bf16.mxu0 %v7690_v57  ;;  %1873 = vmatmul.mubr.bf16.gmra.mrb[56].mxu1 %v9625_v29  ;;  %v7762_v57 = vld [vmem:[#allocation5 + $0x694] ss:$8 sps:$4 sm:$0xff]  }
 0x19d   : > { %2449 = vmatpush1.bf16.msra.mxu1 %v7725_v5  ;;  %1882 = vmatprep.mubr.bf16.mxu1 %v9627_v33  ;;  %v7797_v5 = vld [vmem:[#allocation5 + $0x780] ss:$8 sps:$4 sm:$0xff]  }
 0x19e   : > { %2450 = vmatprep.subr.bf16.mxu1 %v7728_v6  ;;  %v7801_v6 = vld [vmem:[#allocation5 + $0x794] ss:$8 sps:$4 sm:$0xff]  }
 0x19f   : > { %2129 = vmatpush1.bf16.msra.mxu0 %v7692_v60  ;;  %v7764_v60 = vld [vmem:[#allocation5 + $0x690] ss:$8 sps:$4 sm:$0xff]  }
 0x1a0   : > { %2130 = vmatprep.subr.bf16.mxu0 %v7696_v62  ;;  %v7768_v62 = vld [vmem:[#allocation5 + $0x6a4] ss:$8 sps:$4 sm:$0xff]  }
 0x1a1   : > { %2451 = vmatpush1.bf16.msra.mxu1 %v7731_v10  ;;  %v7803_v10 = vld [vmem:[#allocation5 + $0x790] ss:$8 sps:$4 sm:$0xff]  }
 0x1a2   : > { %1561 = vmatmul.mubr.bf16.gmra.mrb[60].mxu0 %v9635_v44  ;;  %2452 = vmatprep.subr.bf16.mxu1 %v7734_v11  ;;  %v7806_v11 = vld [vmem:[#allocation5 + $0x7a4] ss:$8 sps:$4 sm:$0xff]  }
 0x1a3   : > { %2131 = vmatpush1.bf16.msra.mxu0 %v7698_v2  ;;  %2134 = vmatprep.mubr.bf16.mxu0 %v9547_v38  ;;  %v7770_v2 = vld [vmem:[#allocation5 + $0x6a0] ss:$8 sps:$4 sm:$0xff]  }
 0x1a4   : > { %2132 = vmatprep.subr.bf16.mxu0 %v7702_v3  ;;  %1883 = vmatmul.mubr.bf16.gmra.mrb[60].mxu1 %v9635_v44  ;;  %v7774_v3 = vld [vmem:[#allocation5 + $0x6b4] ss:$8 sps:$4 sm:$0xff]  }
 0x1a5   : > { %2453 = vmatpush1.bf16.msra.mxu1 %v7737_v15  ;;  %2456 = vmatprep.mubr.bf16.mxu1 %v9547_v38  ;;  %v7809_v15 = vld [vmem:[#allocation5 + $0x7a0] ss:$8 sps:$4 sm:$0xff]  }
 0x1a6   : > { %2454 = vmatprep.subr.bf16.mxu1 %v7740_v17  ;;  %v7812_v17 = vld [vmem:[#allocation5 + $0x7b4] ss:$8 sps:$4 sm:$0xff]  }
 0x1a7   : > { %2133 = vmatpush1.bf16.msra.mxu0 %v7704_v8  ;;  %v7776_v8 = vld [vmem:[#allocation5 + $0x6b0] ss:$8 sps:$4 sm:$0xff]  }
 0x1a8   : > { %2746 = vmatprep.subr.bf16.mxu0 %v7708_v9  ;;  %v7780_v9 = vld [vmem:[#allocation5 + $0x6c4] ss:$8 sps:$4 sm:$0xff]  }
 0x1a9   : > { %2455 = vmatpush1.bf16.msra.mxu1 %v7743_v22  ;;  %v7815_v22 = vld [vmem:[#allocation5 + $0x7b0] ss:$8 sps:$4 sm:$0xff]  }
 0x1aa   : > { %2135 = vmatmul.mubr.bf16.vlgmr.msra.gmra.mrb[64].mxu0 %v9555_v4  ;;  %3068 = vmatprep.subr.bf16.mxu1 %v7747_v23  ;;  %v7818_v23 = vld [vmem:[#allocation5 + $0x7c4] ss:$8 sps:$4 sm:$0xff]  }
 0x1ab   : > { %2747 = vmatpush1.bf16.msra.mxu0 %v7712_v12  ;;  %2144 = vmatprep.mubr.bf16.mxu0 %v9557_v7  ;;  %v7782_v12 = vld [vmem:[#allocation5 + $0x6c0] ss:$8 sps:$4 sm:$0xff]  }
 0x1ac   : > { %2748 = vmatprep.subr.bf16.mxu0 %v7714_v14  ;;  %2457 = vmatmul.mubr.bf16.vlgmr.msra.gmra.mrb[64].mxu1 %v9555_v4  ;;  %v7786_v14 = vld [vmem:[#allocation5 + $0x6d4] ss:$8 sps:$4 sm:$0xff]  }
 0x1ad   : > { %3069 = vmatpush1.bf16.msra.mxu1 %v7749_v26  ;;  %2466 = vmatprep.mubr.bf16.mxu1 %v9557_v7  ;;  %v7821_v26 = vld [vmem:[#allocation5 + $0x7c0] ss:$8 sps:$4 sm:$0xff]  }
 0x1ae   : > { %3070 = vmatprep.subr.bf16.mxu1 %v7753_v27  ;;  %v7824_v27 = vld [vmem:[#allocation5 + $0x7d4] ss:$8 sps:$4 sm:$0xff]  }
 0x1af   : > { %2749 = vmatpush1.bf16.msra.mxu0 %v7718_v19  ;;  %v7788_v19 = vld [vmem:[#allocation5 + $0x6d0] ss:$8 sps:$4 sm:$0xff]  }
 0x1b0   : > { %2750 = vmatprep.subr.bf16.mxu0 %v7720_v20  ;;  %v7792_v20 = vld [vmem:[#allocation5 + $0x6e4] ss:$8 sps:$4 sm:$0xff]  }
 0x1b1   : > { %3071 = vmatpush1.bf16.msra.mxu1 %v7755_v31  ;;  %v7827_v31 = vld [vmem:[#allocation5 + $0x7d0] ss:$8 sps:$4 sm:$0xff]  }
 0x1b2   : > { %2145 = vmatmul.mubr.bf16.gmra.mrb[68].mxu0 %v9565_v18  ;;  %3072 = vmatprep.subr.bf16.mxu1 %v7759_v34  ;;  %v7830_v34 = vld [vmem:[#allocation5 + $0x7e4] ss:$8 sps:$4 sm:$0xff]  }
 0x1b3   : > { %2751 = vmatpush1.bf16.msra.mxu0 %v7724_v24  ;;  %2154 = vmatprep.mubr.bf16.mxu0 %v9567_v21  ;;  %v7794_v24 = vld [vmem:[#allocation5 + $0x6e0] ss:$8 sps:$4 sm:$0xff]  }
 0x1b4   : > { %2752 = vmatprep.subr.bf16.mxu0 %v7726_v25  ;;  %2467 = vmatmul.mubr.bf16.gmra.mrb[68].mxu1 %v9565_v18  ;;  %v7798_v25 = vld [vmem:[#allocation5 + $0x6f4] ss:$8 sps:$4 sm:$0xff]  }
 0x1b5   : > { %3073 = vmatpush1.bf16.msra.mxu1 %v7761_v39  ;;  %2476 = vmatprep.mubr.bf16.mxu1 %v9567_v21  ;;  %v7833_v39 = vld [vmem:[#allocation5 + $0x7e0] ss:$8 sps:$4 sm:$0xff]  }
 0x1b6   : > { %3074 = vmatprep.subr.bf16.mxu1 %v7765_v40  ;;  %v7836_v40 = vld [vmem:[#allocation5 + $0x7f4] ss:$8 sps:$4 sm:$0xff]  }
 0x1b7   : > { %2753 = vmatpush1.bf16.msra.mxu0 %v7730_v28  ;;  %v7800_v28 = vld [vmem:[#allocation5 + $0x6f0] ss:$8 sps:$4 sm:$0xff]  }
 0x1b8   : > { %2754 = vmatprep.subr.bf16.mxu0 %v7732_v30  ;;  %v7804_v30 = vld [vmem:[#allocation5 + $0x804] ss:$8 sps:$4 sm:$0xff]  }
 0x1b9   : > { %3075 = vmatpush1.bf16.msra.mxu1 %v7767_v43  ;;  %v7839_v43 = vld [vmem:[#allocation5 + $0x7f0] ss:$8 sps:$4 sm:$0xff]  }
 0x1ba   : > { %2155 = vmatmul.mubr.bf16.gmra.mrb[72].mxu0 %v9577_v32  ;;  %3076 = vmatprep.subr.bf16.mxu1 %v7771_v45  ;;  %v7820_v45 = vld [vmem:[#allocation5 + $0x820] ss:$8 sps:$4 sm:$0xff]  }
 0x1bb   : > { %2755 = vmatpush1.bf16.msra.mxu0 %v7736_v36  ;;  %2164 = vmatprep.mubr.bf16.mxu0 %v9579_v35  ;;  %v7808_v36 = vld [vmem:[#allocation5 + $0x800] ss:$8 sps:$4 sm:$0xff]  }
 0x1bc   : > { %2756 = vmatprep.subr.bf16.mxu0 %v7738_v37  ;;  %2477 = vmatmul.mubr.bf16.gmra.mrb[72].mxu1 %v9577_v32  ;;  %v7810_v37 = vld [vmem:[#allocation5 + $0x814] ss:$8 sps:$4 sm:$0xff]  }
 0x1bd   : > { %3077 = vmatpush1.bf16.msra.mxu1 %v7773_v49  ;;  %2486 = vmatprep.mubr.bf16.mxu1 %v9579_v35  ;;  %v7828_v49 = vld [vmem:[#allocation5 + $0x844] ss:$8 sps:$4 sm:$0xff]  }
 0x1be   : > { %3078 = vmatprep.subr.bf16.mxu1 %v7777_v51  ;;  %v7832_v51 = vld [vmem:[#allocation5 + $0x840] ss:$8 sps:$4 sm:$0xff]  }
 0x1bf   : > { %2757 = vmatpush1.bf16.msra.mxu0 %v7742_v41  ;;  %v7814_v41 = vld [vmem:[#allocation5 + $0x810] ss:$8 sps:$4 sm:$0xff]  }
 0x1c0   : > { %2758 = vmatprep.subr.bf16.mxu0 %v7744_v42  ;;  %v7816_v42 = vld [vmem:[#allocation5 + $0x824] ss:$8 sps:$4 sm:$0xff]  }
 0x1c1   : > { %3079 = vmatpush1.bf16.msra.mxu1 %v7779_v54  ;;  %v7840_v54 = vld [vmem:[#allocation5 + $0x864] ss:$8 sps:$4 sm:$0xff]  }
 0x1c2   : > { %2165 = vmatmul.mubr.bf16.gmra.mrb[76].mxu0 %v9589_v47  ;;  %3080 = vmatprep.subr.bf16.mxu1 %v7783_v55 }
 0x1c3   : > { %2759 = vmatpush1.bf16.msra.mxu0 %v7746_v46  ;;  %2174 = vmatprep.mubr.bf16.mxu0 %v9591_v50  ;;  %v7822_v46 = vld [vmem:[#allocation5 + $0x834] ss:$8 sps:$4 sm:$0xff]  }
 0x1c4   : > { %2760 = vmatprep.subr.bf16.mxu0 %v7750_v48  ;;  %2487 = vmatmul.mubr.bf16.gmra.mrb[76].mxu1 %v9589_v47  ;;  %v7826_v48 = vld [vmem:[#allocation5 + $0x830] ss:$8 sps:$4 sm:$0xff]  }
 0x1c5   : > { %3081 = vmatpush1.bf16.msra.mxu1 %v7785_v58  ;;  %2496 = vmatprep.mubr.bf16.mxu1 %v9591_v50  ;;  %v7842_v58 = vld [vmem:[#allocation5 + $0x860] ss:$8 sps:$4 sm:$0xff]  }
 0x1c6   : > { %3082 = vmatprep.subr.bf16.mxu1 %v7789_v59 }
 0x1c7   : > { %2761 = vmatpush1.bf16.msra.mxu0 %v7752_v52  ;;  %v7834_v52 = vld [vmem:[#allocation5 + $0x854] ss:$8 sps:$4 sm:$0xff]  }
 0x1c8   : > { %2762 = vmatprep.subr.bf16.mxu0 %v7756_v53  ;;  %v7838_v53 = vld [vmem:[#allocation5 + $0x850] ss:$8 sps:$4 sm:$0xff]  }
 0x1c9   : > { %3083 = vmatpush1.bf16.msra.mxu1 %v7791_v63 }
 0x1ca   : > { %2175 = vmatmul.mubr.bf16.gmra.mrb[80].mxu0 %v9601_v61  ;;  %3084 = vmatprep.subr.bf16.mxu1 %v7795_v1  ;;  %v7845_v1 = vld [vmem:[#allocation5 + $0x870] ss:$8 sps:$4 sm:$0xff]  }
 0x1cb   : > { %2763 = vmatpush1.bf16.msra.mxu0 %v7758_v56  ;;  %2184 = vmatprep.mubr.bf16.mxu0 %v9603_v0 }
 0x1cc   : > { %2764 = vmatprep.subr.bf16.mxu0 %v7762_v57  ;;  %2497 = vmatmul.mubr.bf16.gmra.mrb[80].mxu1 %v9601_v61 }
 0x1cd   : > { %3085 = vmatpush1.bf16.msra.mxu1 %v7797_v5  ;;  %2506 = vmatprep.mubr.bf16.mxu1 %v9603_v0 }
 0x1ce   : > { %3086 = vmatprep.subr.bf16.mxu1 %v7801_v6 }
 0x1cf   : > { %2765 = vmatpush1.bf16.msra.mxu0 %v7764_v60 }
 0x1d0   : > { %2766 = vmatprep.subr.bf16.mxu0 %v7768_v62  ;;  %v7843_v62 = vld [vmem:[#allocation5 + $0x874] ss:$8 sps:$4 sm:$0xff]  }
 0x1d1   : > { %3087 = vmatpush1.bf16.msra.mxu1 %v7803_v10 }
 0x1d2   : > { %2185 = vmatmul.mubr.bf16.gmra.mrb[84].mxu0 %v9613_v13  ;;  %3088 = vmatprep.subr.bf16.mxu1 %v7806_v11 }
 0x1d3   : > { %2767 = vmatpush1.bf16.msra.mxu0 %v7770_v2  ;;  %2194 = vmatprep.mubr.bf16.mxu0 %v9615_v16  ;;  %v7846_v2 = vld [vmem:[#allocation5 + $0x884] ss:$8 sps:$4 sm:$0xff]  }
 0x1d4   : > { %2768 = vmatprep.subr.bf16.mxu0 %v7774_v3  ;;  %2507 = vmatmul.mubr.bf16.gmra.mrb[84].mxu1 %v9613_v13 }
 0x1d5   : > { %3089 = vmatpush1.bf16.msra.mxu1 %v7809_v15  ;;  %2516 = vmatprep.mubr.bf16.mxu1 %v9615_v16 }
 0x1d6   : > { %3090 = vmatprep.subr.bf16.mxu1 %v7812_v17 }
 0x1d7   : > { %2769 = vmatpush1.bf16.msra.mxu0 %v7776_v8  ;;  %v7848_v8 = vld [vmem:[#allocation5 + $0x880] ss:$8 sps:$4 sm:$0xff]  }
 0x1d8   : > { %2770 = vmatprep.subr.bf16.mxu0 %v7780_v9 }
 0x1d9   : > { %3091 = vmatpush1.bf16.msra.mxu1 %v7815_v22  ;;  %v7851_v22 = vld [vmem:[#allocation5 + $0x890] ss:$8 sps:$4 sm:$0xff]  }
 0x1da   : > { %2195 = vmatmul.mubr.bf16.gmra.mrb[88].mxu0 %v9625_v29  ;;  %3092 = vmatprep.subr.bf16.mxu1 %v7818_v23 }
 0x1db   : > { %2771 = vmatpush1.bf16.msra.mxu0 %v7782_v12  ;;  %2204 = vmatprep.mubr.bf16.mxu0 %v9627_v33  ;;  %v7849_v12 = vld [vmem:[#allocation5 + $0x894] ss:$8 sps:$4 sm:$0xff]  }
 0x1dc   : > { %2772 = vmatprep.subr.bf16.mxu0 %v7786_v14  ;;  %2517 = vmatmul.mubr.bf16.gmra.mrb[88].mxu1 %v9625_v29 }
 0x1dd   : > { %3093 = vmatpush1.bf16.msra.mxu1 %v7821_v26  ;;  %2526 = vmatprep.mubr.bf16.mxu1 %v9627_v33 }
 0x1de   : > { %3094 = vmatprep.subr.bf16.mxu1 %v7824_v27 }
 0x1df   : > { %2773 = vmatpush1.bf16.msra.mxu0 %v7788_v19 }
 0x1e0   : > { %2774 = vmatprep.subr.bf16.mxu0 %v7792_v20 }
 0x1e1   : > { %3095 = vmatpush1.bf16.msra.mxu1 %v7827_v31 }
 0x1e2   : > { %2205 = vmatmul.mubr.bf16.gmra.mrb[92].mxu0 %v9635_v44  ;;  %3096 = vmatprep.subr.bf16.mxu1 %v7830_v34 }
 0x1e3   : > { %2775 = vmatpush1.bf16.msra.mxu0 %v7794_v24  ;;  %2778 = vmatprep.mubr.bf16.mxu0 %v9547_v38  ;;  %v7852_v24 = vld [vmem:[#allocation5 + $0x8a4] ss:$8 sps:$4 sm:$0xff]  }
 0x1e4   : > { %2776 = vmatprep.subr.bf16.mxu0 %v7798_v25  ;;  %2527 = vmatmul.mubr.bf16.gmra.mrb[92].mxu1 %v9635_v44 }
 0x1e5   : > { %3097 = vmatpush1.bf16.msra.mxu1 %v7833_v39  ;;  %3100 = vmatprep.mubr.bf16.mxu1 %v9547_v38 }
 0x1e6   : > { %3098 = vmatprep.subr.bf16.mxu1 %v7836_v40 }
 0x1e7   : > { %2777 = vmatpush1.bf16.msra.mxu0 %v7800_v28  ;;  %v7854_v28 = vld [vmem:[#allocation5 + $0x8a0] ss:$8 sps:$4 sm:$0xff]  }
 0x1e8   : > { %3390 = vmatprep.subr.bf16.mxu0 %v7804_v30 }
 0x1e9   : > { %3099 = vmatpush1.bf16.msra.mxu1 %v7839_v43  ;;  %v7857_v43 = vld [vmem:[#allocation5 + $0x8b0] ss:$8 sps:$4 sm:$0xff]  }
 0x1ea   : > { %2779 = vmatmul.mubr.bf16.vlgmr.msra.gmra.mrb[96].mxu0 %v9555_v4 }
 0x1eb   : > { %3391 = vmatpush1.bf16.msra.mxu0 %v7808_v36  ;;  %2788 = vmatprep.mubr.bf16.mxu0 %v9557_v7  ;;  %v7855_v36 = vld [vmem:[#allocation5 + $0x8b4] ss:$8 sps:$4 sm:$0xff]  }
 0x1ec   : > { %3392 = vmatprep.subr.bf16.mxu0 %v7810_v37  ;;  %3101 = vmatmul.mubr.bf16.vlgmr.msra.gmra.mrb[96].mxu1 %v9555_v4 }
 0x1ed   : > { %3110 = vmatprep.mubr.bf16.mxu1 %v9557_v7 }
 0x1ef   : > { %3393 = vmatpush1.bf16.msra.mxu0 %v7814_v41 }
 0x1f0   : > { %3394 = vmatprep.subr.bf16.mxu0 %v7816_v42 }
 0x1f2   : > { %2789 = vmatmul.mubr.bf16.gmra.mrb[100].mxu0 %v9565_v18 }
 0x1f3   : > { %3395 = vmatpush1.bf16.msra.mxu0 %v7820_v45  ;;  %2798 = vmatprep.mubr.bf16.mxu0 %v9567_v21 }
 0x1f4   : > { %3396 = vmatprep.subr.bf16.mxu0 %v7822_v46  ;;  %3111 = vmatmul.mubr.bf16.gmra.mrb[100].mxu1 %v9565_v18  ;;  %v7858_v46 = vld [vmem:[#allocation5 + $0x8c4] ss:$8 sps:$4 sm:$0xff]  }
 0x1f5   : > { %3120 = vmatprep.mubr.bf16.mxu1 %v9567_v21 }
 0x1f7   : > { %3397 = vmatpush1.bf16.msra.mxu0 %v7826_v48 }
 0x1f8   : > { %3398 = vmatprep.subr.bf16.mxu0 %v7828_v49 }
 0x1fa   : > { %2799 = vmatmul.mubr.bf16.gmra.mrb[104].mxu0 %v9577_v32 }
 0x1fb   : > { %3399 = vmatpush1.bf16.msra.mxu0 %v7832_v51  ;;  %2808 = vmatprep.mubr.bf16.mxu0 %v9579_v35 }
 0x1fc   : > { %3400 = vmatprep.subr.bf16.mxu0 %v7834_v52  ;;  %3121 = vmatmul.mubr.bf16.gmra.mrb[104].mxu1 %v9577_v32  ;;  %v7860_v52 = vld [vmem:[#allocation5 + $0x8c0] ss:$8 sps:$4 sm:$0xff]  }
 0x1fd   : > { %v848_v55 = vpop.f32.mrb[0].mxu0  ;;  %3130 = vmatprep.mubr.bf16.mxu1 %v9579_v35 }
 0x1fe   : > { %v850_v56 = vpop.f32.mrb[1].mxu0 }
 0x1ff   : > { %v852_v57 = vpop.f32.mrb[2].mxu0  ;;  %3401 = vmatpush1.bf16.msra.mxu0 %v7838_v53  ;;  %v9721_v9 = vpop.f32.mrb[0].mxu1 }
 0x200   : > { %v927_v59 = vpack.c.bf16 %v852_v57, %v848_v55  ;;  %v854_v60 = vpop.f32.mrb[3].mxu0  ;;  %3402 = vmatprep.subr.bf16.mxu0 %v7840_v54  ;;  %v9723_v14 = vpop.f32.mrb[1].mxu1 }
 0x201   : > { %v928_v63 = vpack.c.bf16 %v854_v60, %v850_v56  ;;  %v9725_v17 = vpop.f32.mrb[2].mxu1  ;;  %v7861_v56 = vld [vmem:[#allocation5 + $0x8d4] ss:$8 sps:$4 sm:$0xff]  }
 0x202   : > { %2809 = vmatmul.mubr.bf16.gmra.mrb[108].mxu0 %v9589_v47  ;;  %v1249_v19 = vpack.c.bf16 %v9725_v17, %v9721_v9  ;;  %v9730_v20 = vpop.f32.mrb[3].mxu1 }
 0x203   : > { %3403 = vmatpush1.bf16.msra.mxu0 %v7842_v58  ;;  %3597 = vmatprep.subr.bf16.mxu1 %v928_v63  ;;  %v1250_v23 = vpack.c.bf16 %v9730_v20, %v9723_v14  ;;  %v7863_v63 = vld [vmem:[#allocation5 + $0x8d0] ss:$8 sps:$4 sm:$0xff]  }
 0x204   : > { %3598 = vmatpush1.bf16.msra.mxu1 %v927_v59  ;;  %3404 = vmatprep.subr.bf16.mxu0 %v7843_v62  ;;  %v8025_v14 = vld [vmem:[#allocation5 + $0x50] ss:$8 sps:$4 sm:$0xff]  }
 0x205   : > { %v858_v3 = vpop.f32.mrb[4].mxu0  ;;  %2818 = vmatprep.mubr.bf16.mxu0 %v9591_v50  ;;  %3131 = vmatmul.mubr.bf16.gmra.mrb[108].mxu1 %v9589_v47 }
 0x206   : > { %v860_v5 = vpop.f32.mrb[5].mxu0  ;;  %3140 = vmatprep.mubr.bf16.mxu1 %v9591_v50 }
 0x207   : > { %v862_v6 = vpop.f32.mrb[6].mxu0  ;;  %3405 = vmatpush1.bf16.msra.mxu0 %v7845_v1  ;;  %v9737_v30 = vpop.f32.mrb[4].mxu1 }
 0x208   : > { %v929_v10 = vpack.c.bf16 %v862_v6, %v858_v3  ;;  %v864_v11 = vpop.f32.mrb[7].mxu0  ;;  %3406 = vmatprep.subr.bf16.mxu0 %v7846_v2  ;;  %v9739_v37 = vpop.f32.mrb[5].mxu1  ;;  %v7864_v2 = vld [vmem:[#allocation5 + $0x8e4] ss:$8 sps:$4 sm:$0xff]  }
 0x209   : > { %v930_v15 = vpack.c.bf16 %v864_v11, %v860_v5  ;;  %v9741_v40 = vpop.f32.mrb[6].mxu1 }
 0x20a   : > { %2819 = vmatmul.mubr.bf16.gmra.mrb[112].mxu0 %v9601_v61  ;;  %v1251_v41 = vpack.c.bf16 %v9741_v40, %v9737_v30  ;;  %v9746_v42 = vpop.f32.mrb[7].mxu1 }
 0x20b   : > { %3407 = vmatpush1.bf16.msra.mxu0 %v7848_v8  ;;  %3599 = vmatprep.subr.bf16.mxu1 %v930_v15  ;;  %v1252_v45 = vpack.c.bf16 %v9746_v42, %v9739_v37  ;;  %v7866_v8 = vld [vmem:[#allocation5 + $0x8e0] ss:$8 sps:$4 sm:$0xff]   ;;  %v7867_v15 = vld [vmem:[#allocation5 + $0x8f4] ss:$8 sps:$4 sm:$0xff]  }
 0x20c   : > { %3600 = vmatpush1.bf16.msra.mxu1 %v929_v10  ;;  %3408 = vmatprep.subr.bf16.mxu0 %v7849_v12  ;;  %v8027_v37 = vld [vmem:[#allocation5 + $0x60] ss:$8 sps:$4 sm:$0xff]  }
 0x20d   : > { %v868_v25 = vpop.f32.mrb[8].mxu0  ;;  %2828 = vmatprep.mubr.bf16.mxu0 %v9603_v0  ;;  %3141 = vmatmul.mubr.bf16.gmra.mrb[112].mxu1 %v9601_v61 }
 0x20e   : > { %v870_v26 = vpop.f32.mrb[9].mxu0  ;;  %3150 = vmatprep.mubr.bf16.mxu1 %v9603_v0 }
 0x20f   : > { %v872_v27 = vpop.f32.mrb[10].mxu0  ;;  %3409 = vmatpush1.bf16.msra.mxu0 %v7851_v22  ;;  %v9753_v53 = vpop.f32.mrb[8].mxu1 }
 0x210   : > { %v931_v31 = vpack.c.bf16 %v872_v27, %v868_v25  ;;  %v874_v34 = vpop.f32.mrb[11].mxu0  ;;  %3410 = vmatprep.subr.bf16.mxu0 %v7852_v24  ;;  %v9755_v57 = vpop.f32.mrb[9].mxu1 }
 0x211   : > { %v932_v39 = vpack.c.bf16 %v874_v34, %v870_v26  ;;  %v9757_v59 = vpop.f32.mrb[10].mxu1 }
 0x212   : > { %2829 = vmatmul.mubr.bf16.gmra.mrb[116].mxu0 %v9613_v13  ;;  %v1253_v60 = vpack.c.bf16 %v9757_v59, %v9753_v53  ;;  %v9762_v62 = vpop.f32.mrb[11].mxu1 }
 0x213   : > { %3411 = vmatpush1.bf16.msra.mxu0 %v7854_v28  ;;  %3601 = vmatprep.subr.bf16.mxu1 %v932_v39  ;;  %v1254_v1 = vpack.c.bf16 %v9762_v62, %v9755_v57  ;;  %v7869_v28 = vld [vmem:[#allocation5 + $0x8f0] ss:$8 sps:$4 sm:$0xff]  }
 0x214   : > { %3602 = vmatpush1.bf16.msra.mxu1 %v931_v31  ;;  %3412 = vmatprep.subr.bf16.mxu0 %v7855_v36  ;;  %v8029_v57 = vld [vmem:[#allocation5 + $0x70] ss:$8 sps:$4 sm:$0xff]  }
 0x215   : > { %v878_v48 = vpop.f32.mrb[12].mxu0  ;;  %2838 = vmatprep.mubr.bf16.mxu0 %v9615_v16  ;;  %3151 = vmatmul.mubr.bf16.gmra.mrb[116].mxu1 %v9613_v13 }
 0x216   : > { %v880_v49 = vpop.f32.mrb[13].mxu0  ;;  %3160 = vmatprep.mubr.bf16.mxu1 %v9615_v16 }
 0x217   : > { %v882_v51 = vpop.f32.mrb[14].mxu0  ;;  %3413 = vmatpush1.bf16.msra.mxu0 %v7857_v43  ;;  %v9769_v10 = vpop.f32.mrb[12].mxu1 }
 0x218   : > { %v933_v54 = vpack.c.bf16 %v882_v51, %v878_v48  ;;  %v884_v55 = vpop.f32.mrb[15].mxu0  ;;  %3414 = vmatprep.subr.bf16.mxu0 %v7858_v46  ;;  %v9771_v22 = vpop.f32.mrb[13].mxu1  ;;  %v3520_v46 = vld [vmem:[#allocation7 + $0x8] sm:$0xff]  ;;  %v3529_v48 = vld [vmem:[#allocation7 + $0x50] sm:$0xff] }
 0x219   : > { %v934_v58 = vpack.c.bf16 %v884_v55, %v880_v49  ;;  %v9773_v25 = vpop.f32.mrb[14].mxu1 }
 0x21a   : > { %2839 = vmatmul.mubr.bf16.gmra.mrb[120].mxu0 %v9625_v29  ;;  %v1255_v26 = vpack.c.bf16 %v9773_v25, %v9769_v10  ;;  %v9778_v27 = vpop.f32.mrb[15].mxu1 }
 0x21b   : > { %3415 = vmatpush1.bf16.msra.mxu0 %v7860_v52  ;;  %3603 = vmatprep.subr.bf16.mxu1 %v934_v58  ;;  %v1256_v31 = vpack.c.bf16 %v9778_v27, %v9771_v22  ;;  %v8031_v22 = vld [vmem:[#allocation5 + $0x80] ss:$8 sps:$4 sm:$0xff]  }
 0x21c   : > { %3604 = vmatpush1.bf16.msra.mxu1 %v933_v54  ;;  %3416 = vmatprep.subr.bf16.mxu0 %v7861_v56  ;;  %v8014_v54 = vld [vmem:[#allocation5 + $0x4] ss:$8 sps:$4 sm:$0xff]  }
 0x21d   : > { %v888_v3 = vpop.f32.mrb[16].mxu0  ;;  %2848 = vmatprep.mubr.bf16.mxu0 %v9627_v33  ;;  %3161 = vmatmul.mubr.bf16.gmra.mrb[120].mxu1 %v9625_v29 }
 0x21e   : > { %v890_v5 = vpop.f32.mrb[17].mxu0  ;;  %3170 = vmatprep.mubr.bf16.mxu1 %v9627_v33 }
 0x21f   : > { %v892_v6 = vpop.f32.mrb[18].mxu0  ;;  %3417 = vmatpush1.bf16.msra.mxu0 %v7863_v63  ;;  %v9785_v43 = vpop.f32.mrb[16].mxu1  ;;  %v3556_v63 = vpack.c.bf16 %v3529_v48, %v3520_v46 }
 0x220   : > { %v935_v11 = vpack.c.bf16 %v892_v6, %v888_v3  ;;  %v894_v12 = vpop.f32.mrb[19].mxu0  ;;  %3418 = vmatprep.subr.bf16.mxu0 %v7864_v2  ;;  %v9787_v52 = vpop.f32.mrb[17].mxu1  ;;  %v8015_v3 = vld [vmem:[#allocation5] ss:$8 sps:$4 sm:$0xff]   ;;  %v8016_v6 = vld [vmem:[#allocation5 + $0x14] ss:$8 sps:$4 sm:$0xff]  }
 0x221   : > { %v936_v24 = vpack.c.bf16 %v894_v12, %v890_v5  ;;  %v9789_v56 = vpop.f32.mrb[18].mxu1 }
 0x222   : > { %2849 = vmatmul.mubr.bf16.gmra.mrb[124].mxu0 %v9635_v44  ;;  %v9794_v58 = vpop.f32.mrb[19].mxu1 }
 0x223   : > { %3419 = vmatpush1.bf16.msra.mxu0 %v7866_v8  ;;  %3605 = vmatprep.subr.bf16.mxu1 %v936_v24  ;;  %v1258_v2 = vpack.c.bf16 %v9794_v58, %v9787_v52  ;;  %v8033_v52 = vld [vmem:[#allocation5 + $0x90] ss:$8 sps:$4 sm:$0xff]  }
 0x224   : > { %3606 = vmatpush1.bf16.msra.mxu1 %v935_v11  ;;  %3420 = vmatprep.subr.bf16.mxu0 %v7867_v15 }
 0x225   : > { %v898_v34 = vpop.f32.mrb[20].mxu0  ;;  %3422 = vmatprep.mubr.bf16.mxu0 %v9547_v38  ;;  %v1257_v38 = vpack.c.bf16 %v9789_v56, %v9785_v43  ;;  %3171 = vmatmul.mubr.bf16.gmra.mrb[124].mxu1 %v9635_v44 }
 0x226   : > { %v900_v36 = vpop.f32.mrb[21].mxu0  ;;  %3629 = vmatprep.mubr.bf16.mxu1 %v3556_v63 }
 0x227   : > { %v902_v39 = vpop.f32.mrb[22].mxu0  ;;  %3421 = vmatpush1.bf16.msra.mxu0 %v7869_v28  ;;  %v9800_v11 = vpop.f32.mrb[20].mxu1 }
 0x228   : > { %v937_v49 = vpack.c.bf16 %v902_v39, %v898_v34  ;;  %v904_v51 = vpop.f32.mrb[23].mxu0  ;;  %3930 = vmatprep.subr.bf16.mxu0 %v8014_v54  ;;  %v9802_v24 = vpop.f32.mrb[21].mxu1  ;;  %v8020_v54 = vld [vmem:[#allocation5 + $0x34] ss:$8 sps:$4 sm:$0xff]  }
 0x229   : > { %v938_v55 = vpack.c.bf16 %v904_v51, %v900_v36  ;;  %v9804_v34 = vpop.f32.mrb[22].mxu1  ;;  %v8018_v36 = vld [vmem:[#allocation5 + $0x24] ss:$8 sps:$4 sm:$0xff]  }
 0x22a   : > { %3423 = vmatmul.mubr.bf16.vlgmr.msra.gmra.mrb[128].mxu0 %v9555_v4  ;;  %v1259_v39 = vpack.c.bf16 %v9804_v34, %v9800_v11  ;;  %v9809_v46 = vpop.f32.mrb[23].mxu1 }
 0x22b   : > { %3607 = vmatprep.subr.bf16.mxu1 %v938_v55  ;;  %3432 = vmatprep.mubr.bf16.mxu0 %v9557_v7  ;;  %v8017_v7 = vld [vmem:[#allocation5 + $0x10] ss:$8 sps:$4 sm:$0xff]   ;;  %v1260_v48 = vpack.c.bf16 %v9809_v46, %v9802_v24  ;;  %v8035_v24 = vld [vmem:[#allocation5 + $0xa0] ss:$8 sps:$4 sm:$0xff]  }
 0x22c   : > { %3608 = vmatpush1.bf16.msra.mxu1 %v937_v49  ;;  %3931 = vmatpush1.bf16.msra.mxu0 %v8015_v3  ;;  %v8019_v49 = vld [vmem:[#allocation5 + $0x20] ss:$8 sps:$4 sm:$0xff]  }
 0x22d   : > { %v908_v5 = vpop.f32.mrb[24].mxu0  ;;  %3932 = vmatprep.subr.bf16.mxu0 %v8016_v6 }
 0x22e   : > { %v910_v4 = vpop.f32.mrb[25].mxu0 }
 0x22f   : > { %v912_v8 = vpop.f32.mrb[26].mxu0 }
 0x230   : > { %v939_v12 = vpack.c.bf16 %v912_v8, %v908_v5  ;;  %v914_v15 = vpop.f32.mrb[27].mxu0  ;;  %3933 = vmatpush1.bf16.msra.mxu0 %v8017_v7 }
 0x231   : > { %v940_v28 = vpack.c.bf16 %v914_v15, %v910_v4  ;;  %3934 = vmatprep.subr.bf16.mxu0 %v8018_v36  ;;  %v8021_v4 = vld [vmem:[#allocation5 + $0x30] ss:$8 sps:$4 sm:$0xff]   ;;  %v8022_v15 = vld [vmem:[#allocation5 + $0x44] ss:$8 sps:$4 sm:$0xff]   ;;  %v8023_v36 = vld [vmem:[#allocation5 + $0x40] ss:$8 sps:$4 sm:$0xff]  }
 0x232   : > { %3433 = vmatmul.mubr.bf16.gmra.mrb[132].mxu0 %v9565_v18  ;;  %v9814_v18 = vpop.f32.mrb[24].mxu1 }
 0x233   : > { %3609 = vmatprep.subr.bf16.mxu1 %v940_v28  ;;  %3442 = vmatprep.mubr.bf16.mxu0 %v9567_v21  ;;  %v9816_v6 = vpop.f32.mrb[25].mxu1 }
 0x234   : > { %3610 = vmatpush1.bf16.msra.mxu1 %v939_v12  ;;  %3935 = vmatpush1.bf16.msra.mxu0 %v8019_v49  ;;  %v9818_v8 = vpop.f32.mrb[26].mxu1 }
 0x235   : > { %v918_v51 = vpop.f32.mrb[28].mxu0  ;;  %3936 = vmatprep.subr.bf16.mxu0 %v8020_v54  ;;  %v1261_v12 = vpack.c.bf16 %v9818_v8, %v9814_v18  ;;  %v9823_v7 = vpop.f32.mrb[27].mxu1 }
 0x236   : > { %v920_v55 = vpop.f32.mrb[29].mxu0  ;;  %v1262_v28 = vpack.c.bf16 %v9823_v7, %v9816_v6  ;;  %v3528_v6 = vld [vmem:[#allocation7 + $0x48] sm:$0xff] }
 0x237   : > { %v922_v63 = vpop.f32.mrb[30].mxu0 }
 0x238   : > { %v941_v3 = vpack.c.bf16 %v922_v63, %v918_v51  ;;  %v924_v5 = vpop.f32.mrb[31].mxu0  ;;  %3937 = vmatpush1.bf16.msra.mxu0 %v8021_v4 }
 0x239   : > { %v942_v21 = vpack.c.bf16 %v924_v5, %v920_v55  ;;  %3938 = vmatprep.subr.bf16.mxu0 %v8022_v15  ;;  %v9837_v55 = vpop.f32.mrb[28].mxu1  ;;  %v8026_v5 = vld [vmem:[#allocation5 + $0x64] ss:$8 sps:$4 sm:$0xff]  }
 0x23a   : > { %3443 = vmatmul.mubr.bf16.gmra.mrb[136].mxu0 %v9577_v32  ;;  %v8024_v32 = vld [vmem:[#allocation5 + $0x54] ss:$8 sps:$4 sm:$0xff]  }
 0x23b   : > { %3611 = vmatprep.subr.bf16.mxu1 %v942_v21  ;;  %3452 = vmatprep.mubr.bf16.mxu0 %v9579_v35  ;;  %v8030_v21 = vld [vmem:[#allocation5 + $0x84] ss:$8 sps:$4 sm:$0xff]  }
 0x23c   : > { %3612 = vmatpush1.bf16.msra.mxu1 %v941_v3  ;;  %3939 = vmatpush1.bf16.msra.mxu0 %v8023_v36  ;;  %v9846_v3 = vpop.f32.mrb[29].mxu1  ;;  %v8034_v36 = vld [vmem:[#allocation5 + $0xa4] ss:$8 sps:$4 sm:$0xff]  }
 0x23d   : > { %v9828_v49 = vpop.f32.mrb[32].mxu0  ;;  %3613 = vmatprep.subr.bf16.mxu1 %v1250_v23  ;;  %3940 = vmatprep.subr.bf16.mxu0 %v8024_v32  ;;  %v9851_v20 = vpop.f32.mrb[30].mxu1 }
 0x23e   : > { %v9833_v51 = vpop.f32.mrb[33].mxu0  ;;  %v1263_v9 = vpack.c.bf16 %v9851_v20, %v9837_v55  ;;  %v9858_v17 = vpop.f32.mrb[31].mxu1 }
 0x23f   : > { %v9835_v54 = vpop.f32.mrb[34].mxu0  ;;  %v9875_v4 = vpop.f32.mrb[32].mxu1 }
 0x240   : > { %v1571_v35 = vpack.c.bf16 %v9835_v54, %v9828_v49  ;;  %v9841_v63 = vpop.f32.mrb[35].mxu0  ;;  %3614 = vmatpush1.bf16.msra.mxu1 %v1249_v19  ;;  %3941 = vmatpush1.bf16.msra.mxu0 %v8025_v14  ;;  %v1264_v19 = vpack.c.bf16 %v9858_v17, %v9846_v3 }
 0x241   : > { %3615 = vmatprep.subr.bf16.mxu1 %v1252_v45  ;;  %v1572_v23 = vpack.c.bf16 %v9841_v63, %v9833_v51  ;;  %3942 = vmatprep.subr.bf16.mxu0 %v8026_v5  ;;  %v3546_v51 = vld [vmem:[#allocation7 + $0xd8] sm:$0xff] }
 0x242   : > { %3453 = vmatmul.mubr.bf16.gmra.mrb[140].mxu0 %v9589_v47  ;;  %v8028_v47 = vld [vmem:[#allocation5 + $0x74] ss:$8 sps:$4 sm:$0xff]  }
 0x243   : > { %3462 = vmatprep.mubr.bf16.mxu0 %v9591_v50 }
 0x244   : > { %3616 = vmatpush1.bf16.msra.mxu1 %v1251_v41  ;;  %3943 = vmatpush1.bf16.msra.mxu0 %v8027_v37  ;;  %v9884_v41 = vpop.f32.mrb[33].mxu1  ;;  %v3538_v37 = vld [vmem:[#allocation7 + $0x98] sm:$0xff] }
 0x245   : > { %v9866_v42 = vpop.f32.mrb[36].mxu0  ;;  %3617 = vmatprep.subr.bf16.mxu1 %v1254_v1  ;;  %3944 = vmatprep.subr.bf16.mxu0 %v8028_v47  ;;  %v9891_v1 = vpop.f32.mrb[34].mxu1  ;;  %v3547_v47 = vld [vmem:[#allocation7 + $0xe0] sm:$0xff] }
 0x246   : > { %v9871_v45 = vpop.f32.mrb[37].mxu0  ;;  %v1893_v53 = vpack.c.bf16 %v9891_v1, %v9875_v4  ;;  %v9896_v59 = vpop.f32.mrb[35].mxu1  ;;  %v3565_v17 = vpack.c.bf16 %v3547_v47, %v3538_v37 }
 0x247   : > { %v9873_v50 = vpop.f32.mrb[38].mxu0  ;;  %v9913_v15 = vpop.f32.mrb[36].mxu1 }
 0x248   : > { %v1573_v30 = vpack.c.bf16 %v9873_v50, %v9866_v42  ;;  %v9879_v40 = vpop.f32.mrb[39].mxu0  ;;  %3618 = vmatpush1.bf16.msra.mxu1 %v1253_v60  ;;  %3945 = vmatpush1.bf16.msra.mxu0 %v8029_v57  ;;  %v1894_v60 = vpack.c.bf16 %v9896_v59, %v9884_v41  ;;  %v8038_v57 = vld [vmem:[#allocation5 + $0xc4] ss:$8 sps:$4 sm:$0xff]  }
 0x249   : > { %v1574_v62 = vpack.c.bf16 %v9879_v40, %v9871_v45  ;;  %3619 = vmatprep.subr.bf16.mxu1 %v1256_v31  ;;  %3946 = vmatprep.subr.bf16.mxu0 %v8030_v21 }
 0x24a   : > { %3463 = vmatmul.mubr.bf16.gmra.mrb[144].mxu0 %v9601_v61  ;;  %v8032_v61 = vld [vmem:[#allocation5 + $0x94] ss:$8 sps:$4 sm:$0xff]  }
 0x24b   : > { %3472 = vmatprep.mubr.bf16.mxu0 %v9603_v0 }
 0x24c   : > { %3620 = vmatpush1.bf16.msra.mxu1 %v1255_v26  ;;  %3947 = vmatpush1.bf16.msra.mxu0 %v8031_v22  ;;  %v9922_v26 = vpop.f32.mrb[37].mxu1 }
 0x24d   : > { %v9904_v27 = vpop.f32.mrb[40].mxu0  ;;  %3621 = vmatprep.subr.bf16.mxu1 %v1258_v2  ;;  %3948 = vmatprep.subr.bf16.mxu0 %v8032_v61  ;;  %v9929_v2 = vpop.f32.mrb[38].mxu1 }
 0x24e   : > { %v9909_v31 = vpop.f32.mrb[41].mxu0  ;;  %v1895_v43 = vpack.c.bf16 %v9929_v2, %v9913_v15  ;;  %v9934_v56 = vpop.f32.mrb[39].mxu1 }
 0x24f   : > { %v9911_v0 = vpop.f32.mrb[42].mxu0  ;;  %v9951_v32 = vpop.f32.mrb[40].mxu1 }
 0x250   : > { %v1575_v10 = vpack.c.bf16 %v9911_v0, %v9904_v27  ;;  %v9917_v25 = vpop.f32.mrb[43].mxu0  ;;  %3622 = vmatpush1.bf16.msra.mxu1 %v1257_v38  ;;  %3949 = vmatpush1.bf16.msra.mxu0 %v8033_v52  ;;  %v1896_v38 = vpack.c.bf16 %v9934_v56, %v9922_v26  ;;  %v9960_v7 = vpop.f32.mrb[41].mxu1 }
 0x251   : > { %v1576_v58 = vpack.c.bf16 %v9917_v25, %v9909_v31  ;;  %3623 = vmatprep.subr.bf16.mxu1 %v1260_v48  ;;  %3950 = vmatprep.subr.bf16.mxu0 %v8034_v36  ;;  %v9967_v5 = vpop.f32.mrb[42].mxu1  ;;  %v3522_v36 = vld [vmem:[#allocation7 + $0x18] sm:$0xff] }
 0x252   : > { %3473 = vmatmul.mubr.bf16.gmra.mrb[148].mxu0 %v9613_v13  ;;  %v8036_v13 = vld [vmem:[#allocation5 + $0xb4] ss:$8 sps:$4 sm:$0xff]   ;;  %v1897_v18 = vpack.c.bf16 %v9967_v5, %v9951_v32  ;;  %v9972_v8 = vpop.f32.mrb[43].mxu1  ;;  %v8045_v31 = vld [vmem:[#allocation5 + $0xf0] ss:$8 sps:$4 sm:$0xff]  }
 0x253   : > { %3482 = vmatprep.mubr.bf16.mxu0 %v9615_v16  ;;  %v1898_v3 = vpack.c.bf16 %v9972_v8, %v9960_v7 }
 0x254   : > { %3624 = vmatpush1.bf16.msra.mxu1 %v1259_v39  ;;  %3951 = vmatpush1.bf16.msra.mxu0 %v8035_v24  ;;  %v3519_v39 = vld [vmem:[#allocation7] sm:$0xff] }
 0x255   : > { %v9942_v46 = vpop.f32.mrb[44].mxu0  ;;  %3625 = vmatprep.subr.bf16.mxu1 %v1262_v28  ;;  %3952 = vmatprep.subr.bf16.mxu0 %v8036_v13  ;;  %v8037_v28 = vld [vmem:[#allocation5 + $0xb0] ss:$8 sps:$4 sm:$0xff]   ;;  %v3531_v24 = vld [vmem:[#allocation7 + $0x60] sm:$0xff] }
 0x256   : > { %v9947_v48 = vpop.f32.mrb[45].mxu0  ;;  %v8041_v13 = vld [vmem:[#allocation5 + $0xd0] ss:$8 sps:$4 sm:$0xff]   ;;  %v3558_v40 = vpack.c.bf16 %v3531_v24, %v3522_v36 }
 0x257   : > { %v9949_v16 = vpop.f32.mrb[46].mxu0  ;;  %v9985_v61 = vpop.f32.mrb[44].mxu1 }
 0x258   : > { %v1577_v11 = vpack.c.bf16 %v9949_v16, %v9942_v46  ;;  %v9955_v34 = vpop.f32.mrb[47].mxu0  ;;  %3626 = vmatpush1.bf16.msra.mxu1 %v1261_v12  ;;  %3953 = vmatpush1.bf16.msra.mxu0 %v8037_v28  ;;  %v3555_v12 = vpack.c.bf16 %v3528_v6, %v3519_v39  ;;  %v9991_v20 = vpop.f32.mrb[45].mxu1  ;;  %v8044_v28 = vld [vmem:[#allocation5 + $0xf4] ss:$8 sps:$4 sm:$0xff]  }
 0x259   : > { %v1578_v14 = vpack.c.bf16 %v9955_v34, %v9947_v48  ;;  %3627 = vmatprep.subr.bf16.mxu1 %v1264_v19  ;;  %3954 = vmatprep.subr.bf16.mxu0 %v8038_v57  ;;  %v8039_v19 = vld [vmem:[#allocation5 + $0xc0] ss:$8 sps:$4 sm:$0xff]  }
 0x25a   : > { %3483 = vmatmul.mubr.bf16.gmra.mrb[152].mxu0 %v9625_v29  ;;  %v8040_v29 = vld [vmem:[#allocation5 + $0xd4] ss:$8 sps:$4 sm:$0xff]  }
 0x25b   : > { %3492 = vmatprep.mubr.bf16.mxu0 %v9627_v33 }
 0x25c   : > { %3628 = vmatpush1.bf16.msra.mxu1 %v1263_v9  ;;  %3955 = vmatpush1.bf16.msra.mxu0 %v8039_v19  ;;  %v3537_v9 = vld [vmem:[#allocation7 + $0x90] sm:$0xff] }
 0x25d   : > { %v9980_v21 = vpop.f32.mrb[48].mxu0  ;;  %3650 = vmatprep.subr.bf16.mxu1 %v1572_v23  ;;  %3956 = vmatprep.subr.bf16.mxu0 %v8040_v29  ;;  %v9996_v23 = vpop.f32.mrb[46].mxu1  ;;  %v3564_v45 = vpack.c.bf16 %v3546_v51, %v3537_v9 }
 0x25e   : > { %v1534_v22 = vpop.f32.mrb[49].mxu0  ;;  %v1899_v49 = vpack.c.bf16 %v9996_v23, %v9985_v61  ;;  %v10001_v54 = vpop.f32.mrb[47].mxu1 }
 0x25f   : > { %v1536_v33 = vpop.f32.mrb[50].mxu0  ;;  %3630 = vmatmul.mubr.bf16.vlgmr.msra.gmra.mrb[128].mxu1 %v3555_v12  ;;  %v1900_v39 = vpack.c.bf16 %v10001_v54, %v9991_v20  ;;  %v10011_v47 = vpop.f32.mrb[48].mxu1 }
 0x260   : > { %v1579_v52 = vpack.c.bf16 %v1536_v33, %v9980_v21  ;;  %v1538_v55 = vpop.f32.mrb[51].mxu0  ;;  %3651 = vmatpush1.bf16.msra.mxu1 %v1571_v35  ;;  %3639 = vmatprep.mubr.bf16.mxu1 %v3565_v17  ;;  %v8042_v35 = vld [vmem:[#allocation5 + $0xe4] ss:$8 sps:$4 sm:$0xff]   ;;  %v10016_v42 = vpop.f32.mrb[49].mxu1 }
 0x261   : > { %v1580_v63 = vpack.c.bf16 %v1538_v55, %v1534_v22  ;;  %3652 = vmatprep.subr.bf16.mxu1 %v1574_v62  ;;  %3957 = vmatpush1.bf16.msra.mxu0 %v8041_v13  ;;  %v8046_v17 = vld [vmem:[#allocation5 + $0x104] ss:$8 sps:$4 sm:$0xff]  }
 0x262   : > { %3493 = vmatmul.mubr.bf16.gmra.mrb[156].mxu0 %v9635_v44  ;;  %3958 = vmatprep.subr.bf16.mxu0 %v8042_v35  ;;  %v8043_v44 = vld [vmem:[#allocation5 + $0xe0] ss:$8 sps:$4 sm:$0xff]  }
 0x264   : > { %3653 = vmatpush1.bf16.msra.mxu1 %v1573_v30  ;;  %v10021_v30 = vpop.f32.mrb[50].mxu1 }
 0x265   : > { %v1542_v62 = vpop.f32.mrb[52].mxu0  ;;  %3654 = vmatprep.subr.bf16.mxu1 %v1576_v58  ;;  %3959 = vmatpush1.bf16.msra.mxu0 %v8043_v44  ;;  %v1901_v25 = vpack.c.bf16 %v10021_v30, %v10011_v47  ;;  %v10025_v58 = vpop.f32.mrb[51].mxu1 }
 0x266   : > { %v1544_v6 = vpop.f32.mrb[53].mxu0  ;;  %3960 = vmatprep.subr.bf16.mxu0 %v8044_v28  ;;  %v1902_v27 = vpack.c.bf16 %v10025_v58, %v10016_v42 }
 0x267   : > { %v1546_v37 = vpop.f32.mrb[54].mxu0  ;;  %3640 = vmatmul.mubr.bf16.gmra.mrb[132].mxu1 %v3564_v45  ;;  %v10032_v34 = vpop.f32.mrb[52].mxu1 }
 0x268   : > { %v1581_v57 = vpack.c.bf16 %v1546_v37, %v1542_v62  ;;  %v1548_v12 = vpop.f32.mrb[55].mxu0  ;;  %3655 = vmatpush1.bf16.msra.mxu1 %v1575_v10  ;;  %3682 = vmatprep.mubr.bf16.mxu1 %v3558_v40  ;;  %v10034_v21 = vpop.f32.mrb[53].mxu1 }
 0x269   : > { %v1582_v50 = vpack.c.bf16 %v1548_v12, %v1544_v6  ;;  %3656 = vmatprep.subr.bf16.mxu1 %v1578_v14  ;;  %3961 = vmatpush1.bf16.msra.mxu0 %v8045_v31  ;;  %v10036_v22 = vpop.f32.mrb[54].mxu1 }
 0x26a   : > { %3987 = vmatprep.subr.bf16.mxu0 %v8046_v17  ;;  %v1903_v33 = vpack.c.bf16 %v10036_v22, %v10032_v34  ;;  %v1870_v46 = vpop.f32.mrb[55].mxu1  ;;  %v3540_v34 = vld [vmem:[#allocation7 + $0xa8] sm:$0xff]  ;;  %v3549_v22 = vld [vmem:[#allocation7 + $0xf0] sm:$0xff] }
 0x26b   : > { %v1904_v16 = vpack.c.bf16 %v1870_v46, %v10034_v21 }
 0x26c   : > { %3657 = vmatpush1.bf16.msra.mxu1 %v1577_v11 }
 0x26d   : > { %v1552_v0 = vpop.f32.mrb[56].mxu0  ;;  %3658 = vmatprep.subr.bf16.mxu1 %v1580_v63 }
 0x26e   : > { %v1554_v10 = vpop.f32.mrb[57].mxu0 }
 0x26f   : > { %v1556_v48 = vpop.f32.mrb[58].mxu0  ;;  %v10041_v51 = vpop.f32.mrb[56].mxu1 }
 0x270   : > { %v1583_v14 = vpack.c.bf16 %v1556_v48, %v1552_v0  ;;  %v1558_v19 = vpop.f32.mrb[59].mxu0  ;;  %3659 = vmatpush1.bf16.msra.mxu1 %v1579_v52  ;;  %v1876_v36 = vpop.f32.mrb[57].mxu1  ;;  %v3521_v48 = vld [vmem:[#allocation7 + $0x10] sm:$0xff] }
 0x271   : > { %v1584_v29 = vpack.c.bf16 %v1558_v19, %v1554_v10  ;;  %3660 = vmatprep.subr.bf16.mxu1 %v1582_v50  ;;  %v1878_v13 = vpop.f32.mrb[58].mxu1 }
 0x272   : > { %v1905_v35 = vpack.c.bf16 %v1878_v13, %v10041_v51  ;;  %v1880_v45 = vpop.f32.mrb[59].mxu1 }
 0x273   : > { %v1906_v40 = vpack.c.bf16 %v1880_v45, %v1876_v36  ;;  %v3548_v45 = vld [vmem:[#allocation7 + $0xe8] sm:$0xff] }
 0x274   : > { %3661 = vmatpush1.bf16.msra.mxu1 %v1581_v57 }
 0x275   : > { %v1562_v11 = vpop.f32.mrb[60].mxu0  ;;  %3662 = vmatprep.subr.bf16.mxu1 %v1584_v29 }
 0x276   : > { %v1564_v55 = vpop.f32.mrb[61].mxu0 }
 0x277   : > { %v1566_v9 = vpop.f32.mrb[62].mxu0  ;;  %v10053_v28 = vpop.f32.mrb[60].mxu1 }
 0x278   : > { %v1585_v52 = vpack.c.bf16 %v1566_v9, %v1562_v11  ;;  %v1568_v63 = vpop.f32.mrb[63].mxu0  ;;  %3663 = vmatpush1.bf16.msra.mxu1 %v1583_v14  ;;  %v1886_v12 = vpop.f32.mrb[61].mxu1  ;;  %v3530_v14 = vld [vmem:[#allocation7 + $0x58] sm:$0xff] }
 0x279   : > { %v1586_v24 = vpack.c.bf16 %v1568_v63, %v1564_v55  ;;  %v1888_v59 = vpop.f32.mrb[62].mxu1  ;;  %v3567_v55 = vpack.c.bf16 %v3549_v22, %v3540_v34 }
 0x27a   : > { %v1890_v50 = vpop.f32.mrb[63].mxu1 }
 0x27b   : > { %3664 = vmatprep.subr.bf16.mxu1 %v1586_v24  ;;  %v1908_v31 = vpack.c.bf16 %v1890_v50, %v1886_v12 }
 0x27c   : > { %3665 = vmatpush1.bf16.msra.mxu1 %v1585_v52 }
 0x27d   : > { %v10044_v62 = vpop.f32.mrb[64].mxu0  ;;  %3666 = vmatprep.subr.bf16.mxu1 %v1894_v60  ;;  %v1907_v60 = vpack.c.bf16 %v1888_v59, %v10053_v28  ;;  %v3524_v28 = vld [vmem:[#allocation7 + $0x28] sm:$0xff] }
 0x27e   : > { %v10049_v44 = vpop.f32.mrb[65].mxu0 }
 0x27f   : > { %v10051_v6 = vpop.f32.mrb[66].mxu0 }
 0x280   : > { %v2215_v37 = vpack.c.bf16 %v10051_v6, %v10044_v62  ;;  %v10057_v57 = vpop.f32.mrb[67].mxu0  ;;  %3667 = vmatpush1.bf16.msra.mxu1 %v1893_v53  ;;  %v10080_v53 = vpop.f32.mrb[64].mxu1 }
 0x281   : > { %v2216_v41 = vpack.c.bf16 %v10057_v57, %v10049_v44  ;;  %3668 = vmatprep.subr.bf16.mxu1 %v1896_v38  ;;  %v10087_v15 = vpop.f32.mrb[65].mxu1  ;;  %v3533_v57 = vld [vmem:[#allocation7 + $0x70] sm:$0xff] }
 0x284   : > { %3669 = vmatpush1.bf16.msra.mxu1 %v1895_v43  ;;  %v10093_v43 = vpop.f32.mrb[66].mxu1 }
 0x285   : > { %v10071_v17 = vpop.f32.mrb[68].mxu0  ;;  %3670 = vmatprep.subr.bf16.mxu1 %v1898_v3  ;;  %v2537_v38 = vpack.c.bf16 %v10093_v43, %v10080_v53  ;;  %v10097_v7 = vpop.f32.mrb[67].mxu1 }
 0x286   : > { %v10076_v4 = vpop.f32.mrb[69].mxu0  ;;  %v2538_v8 = vpack.c.bf16 %v10097_v7, %v10087_v15 }
 0x287   : > { %v10078_v1 = vpop.f32.mrb[70].mxu0  ;;  %v10111_v3 = vpop.f32.mrb[68].mxu1 }
 0x288   : > { %v2217_v26 = vpack.c.bf16 %v10078_v1, %v10071_v17  ;;  %v2152_v56 = vpop.f32.mrb[71].mxu0  ;;  %3671 = vmatpush1.bf16.msra.mxu1 %v1897_v18  ;;  %v10118_v61 = vpop.f32.mrb[69].mxu1 }
 0x289   : > { %v2218_v2 = vpack.c.bf16 %v2152_v56, %v10076_v4  ;;  %3672 = vmatprep.subr.bf16.mxu1 %v1900_v39 }
 0x28c   : > { %3673 = vmatpush1.bf16.msra.mxu1 %v1899_v49  ;;  %v10120_v49 = vpop.f32.mrb[70].mxu1 }
 0x28d   : > { %v10104_v32 = vpop.f32.mrb[72].mxu0  ;;  %3674 = vmatprep.subr.bf16.mxu1 %v1902_v27  ;;  %v2539_v39 = vpack.c.bf16 %v10120_v49, %v10111_v3  ;;  %v10124_v42 = vpop.f32.mrb[71].mxu1 }
 0x28e   : > { %v2158_v5 = vpop.f32.mrb[73].mxu0  ;;  %v2540_v58 = vpack.c.bf16 %v10124_v42, %v10118_v61 }
 0x28f   : > { %v10109_v18 = vpop.f32.mrb[74].mxu0  ;;  %v10133_v27 = vpop.f32.mrb[72].mxu1 }
 0x290   : > { %v2219_v20 = vpack.c.bf16 %v10109_v18, %v10104_v32  ;;  %v2162_v54 = vpop.f32.mrb[75].mxu0  ;;  %3675 = vmatpush1.bf16.msra.mxu1 %v1901_v25  ;;  %v10136_v19 = vpop.f32.mrb[73].mxu1 }
 0x291   : > { %v2220_v23 = vpack.c.bf16 %v2162_v54, %v2158_v5  ;;  %3676 = vmatprep.subr.bf16.mxu1 %v1904_v16  ;;  %v10138_v29 = vpop.f32.mrb[74].mxu1  ;;  %v3557_v16 = vpack.c.bf16 %v3530_v14, %v3521_v48 }
 0x292   : > { %v10142_v46 = vpop.f32.mrb[75].mxu1 }
 0x293   : > { %v2542_v11 = vpack.c.bf16 %v10142_v46, %v10136_v19 }
 0x294   : > { %3677 = vmatpush1.bf16.msra.mxu1 %v1903_v33  ;;  %v2541_v33 = vpack.c.bf16 %v10138_v29, %v10133_v27 }
 0x295   : > { %v10131_v47 = vpop.f32.mrb[76].mxu0  ;;  %3678 = vmatprep.subr.bf16.mxu1 %v1906_v40 }
 0x296   : > { %v2168_v30 = vpop.f32.mrb[77].mxu0 }
 0x297   : > { %v2170_v25 = vpop.f32.mrb[78].mxu0  ;;  %v10146_v63 = vpop.f32.mrb[76].mxu1 }
 0x298   : > { %v2221_v0 = vpack.c.bf16 %v2170_v25, %v10131_v47  ;;  %v2172_v10 = vpop.f32.mrb[79].mxu0  ;;  %3679 = vmatpush1.bf16.msra.mxu1 %v1905_v35  ;;  %v10151_v13 = vpop.f32.mrb[77].mxu1  ;;  %v3539_v35 = vld [vmem:[#allocation7 + $0xa0] sm:$0xff] }
 0x299   : > { %v2222_v21 = vpack.c.bf16 %v2172_v10, %v2168_v30  ;;  %3680 = vmatprep.subr.bf16.mxu1 %v1908_v31  ;;  %v10153_v44 = vpop.f32.mrb[78].mxu1  ;;  %v3566_v6 = vpack.c.bf16 %v3548_v45, %v3539_v35 }
 0x29a   : > { %v2543_v12 = vpack.c.bf16 %v10153_v44, %v10146_v63 }
 0x29c   : > { %3681 = vmatpush1.bf16.msra.mxu1 %v1907_v60 }
 0x29d   : > { %v2176_v9 = vpop.f32.mrb[80].mxu0  ;;  %3703 = vmatprep.subr.bf16.mxu1 %v2216_v41  ;;  %v10157_v41 = vpop.f32.mrb[79].mxu1 }
 0x29e   : > { %v2178_v51 = vpop.f32.mrb[81].mxu0  ;;  %v2544_v62 = vpack.c.bf16 %v10157_v41, %v10151_v13  ;;  %v4461_v41 = vld [vmem:[%s11343_s5] sm:$0xff] }
 0x29f   : > { %v2180_v52 = vpop.f32.mrb[82].mxu0  ;;  %3683 = vmatmul.mubr.bf16.vlgmr.msra.gmra.mrb[128].mxu1 %v3557_v16  ;;  %v10164_v31 = vpop.f32.mrb[80].mxu1 }
 0x2a0   : > { %v2223_v36 = vpack.c.bf16 %v2180_v52, %v2176_v9  ;;  %v2182_v24 = vpop.f32.mrb[83].mxu0  ;;  %3704 = vmatpush1.bf16.msra.mxu1 %v2215_v37  ;;  %3692 = vmatprep.mubr.bf16.mxu1 %v3567_v55  ;;  %v3560_v37 = vpack.c.bf16 %v3533_v57, %v3524_v28  ;;  %v11366_v57 = vmov 0  }
 0x2a1   : > { %v2224_v40 = vpack.c.bf16 %v2182_v24, %v2178_v51  ;;  %3705 = vmatprep.subr.bf16.mxu1 %v2218_v2  ;;  %v10169_v2 = vpop.f32.mrb[81].mxu1  ;;  %7436 = vset.pattern.permute.xlu0 %v11366_v57 }
 0x2a2   : > { %v10171_v17 = vpop.f32.mrb[82].mxu1  ;;  %7437 = vset.pattern.permute.xlu1 %v11366_v57 }
 0x2a3   : > { %v2545_v1 = vpack.c.bf16 %v10171_v17, %v10164_v31 }
 0x2a4   : > { %3706 = vmatpush1.bf16.msra.mxu1 %v2217_v26  ;;  %v10175_v26 = vpop.f32.mrb[83].mxu1 }
 0x2a5   : > { %v2186_v59 = vpop.f32.mrb[84].mxu0  ;;  %3707 = vmatprep.subr.bf16.mxu1 %v2220_v23  ;;  %v2546_v54 = vpack.c.bf16 %v10175_v26, %v10169_v2 }
 0x2a6   : > { %v2188_v60 = vpop.f32.mrb[85].mxu0 }
 0x2a7   : > { %v2190_v50 = vpop.f32.mrb[86].mxu0  ;;  %3693 = vmatmul.mubr.bf16.gmra.mrb[132].mxu1 %v3566_v6 }
 0x2a8   : > { %v2225_v4 = vpack.c.bf16 %v2190_v50, %v2186_v59  ;;  %v2192_v56 = vpop.f32.mrb[87].mxu0  ;;  %3708 = vmatpush1.bf16.msra.mxu1 %v2219_v20  ;;  %3735 = vmatprep.mubr.bf16.mxu1 %v3560_v37  ;;  %v10179_v20 = vpop.f32.mrb[84].mxu1 }
 0x2a9   : > { %v2226_v5 = vpack.c.bf16 %v2192_v56, %v2188_v60  ;;  %3709 = vmatprep.subr.bf16.mxu1 %v2222_v21  ;;  %v10181_v25 = vpop.f32.mrb[85].mxu1 }
 0x2aa   : > { %v10183_v48 = vpop.f32.mrb[86].mxu1 }
 0x2ab   : > { %v2547_v14 = vpack.c.bf16 %v10183_v48, %v10179_v20  ;;  %v10187_v21 = vpop.f32.mrb[87].mxu1 }
 0x2ac   : > { %3710 = vmatpush1.bf16.msra.mxu1 %v2221_v0  ;;  %v2548_v0 = vpack.c.bf16 %v10187_v21, %v10181_v25  ;;  %v4690_v25 = vld [vmem:[%s11413_s28] sm:$0xff]  ;;  %v4464_v21 = vld [vmem:[%s11343_s5 + $0x18] sm:$0xff] }
 0x2ad   : > { %v2196_v23 = vpop.f32.mrb[88].mxu0  ;;  %3711 = vmatprep.subr.bf16.mxu1 %v2224_v40 }
 0x2ae   : > { %v2198_v32 = vpop.f32.mrb[89].mxu0 }
 0x2af   : > { %v2200_v18 = vpop.f32.mrb[90].mxu0  ;;  %v10191_v55 = vpop.f32.mrb[88].mxu1 }
 0x2b0   : > { %v2227_v47 = vpack.c.bf16 %v2200_v18, %v2196_v23  ;;  %v2202_v30 = vpop.f32.mrb[91].mxu0  ;;  %3712 = vmatpush1.bf16.msra.mxu1 %v2223_v36  ;;  %v10193_v52 = vpop.f32.mrb[89].mxu1  ;;  %v3576_v23 = vld [vmem:[%s11412_s3 + $0x18] sm:$0xff]  ;;  %v4463_v18 = vld [vmem:[%s11343_s5 + $0x10] sm:$0xff] }
 0x2b1   : > { %v2228_v10 = vpack.c.bf16 %v2202_v30, %v2198_v32  ;;  %3713 = vmatprep.subr.bf16.mxu1 %v2226_v5  ;;  %v10195_v24 = vpop.f32.mrb[90].mxu1  ;;  %v3575_v5 = vld [vmem:[%s11412_s3 + $0x10] sm:$0xff] }
 0x2b2   : > { %v2549_v35 = vpack.c.bf16 %v10195_v24, %v10191_v55  ;;  %v10199_v45 = vpop.f32.mrb[91].mxu1  ;;  %3589 = vperm.xlu1 %7437, %v3575_v5   ;;  %v4691_v24 = vld [vmem:[%s11413_s28 + $0x8] sm:$0xff] }
 0x2b3   : > { %v2550_v40 = vpack.c.bf16 %v10199_v45, %v10193_v52  ;;  %v3551_v52 = vld [vmem:[#allocation7 + $0x100] sm:$0xff] }
 0x2b4   : > { %3714 = vmatpush1.bf16.msra.mxu1 %v2225_v4 }
 0x2b5   : > { %v2206_v34 = vpop.f32.mrb[92].mxu0  ;;  %3715 = vmatprep.subr.bf16.mxu1 %v2228_v10 }
 0x2b6   : > { %v2208_v22 = vpop.f32.mrb[93].mxu0  ;;  %3594 = vperm.xlu1 %7437, %v3576_v23  }
 0x2b7   : > { %v2210_v16 = vpop.f32.mrb[94].mxu0  ;;  %v10214_v59 = vpop.f32.mrb[92].mxu1 }
 0x2b8   : > { %v2229_v9 = vpack.c.bf16 %v2210_v16, %v2206_v34  ;;  %v2212_v51 = vpop.f32.mrb[95].mxu0  ;;  %3716 = vmatpush1.bf16.msra.mxu1 %v2227_v47  ;;  %v10223_v15 = vpop.f32.mrb[93].mxu1  ;;  %v3532_v34 = vld [vmem:[#allocation7 + $0x68] sm:$0xff] }
 0x2b9   : > { %v2230_v36 = vpack.c.bf16 %v2212_v51, %v2208_v22  ;;  %v3542_v51 = vld [vmem:[#allocation7 + $0xb8] sm:$0xff] }
 0x2bb   : > { %3717 = vmatprep.subr.bf16.mxu1 %v2230_v36  ;;  %v4694_v36 = vld [vmem:[%s11413_s28 + $0x20] sm:$0xff] }
 0x2bc   : > { %3718 = vmatpush1.bf16.msra.mxu1 %v2229_v9 }
 0x2bd   : > { %v10203_v28 = vpop.f32.mrb[96].mxu0  ;;  %3719 = vmatprep.subr.bf16.mxu1 %v2538_v8  ;;  %v10230_v8 = vpop.f32.mrb[94].mxu1 }
 0x2be   : > { %v10209_v6 = vpop.f32.mrb[97].mxu0  ;;  %v2551_v4 = vpack.c.bf16 %v10230_v8, %v10214_v59  ;;  %v10234_v56 = vpop.f32.mrb[95].mxu1  ;;  %v4695_v59 = vld [vmem:[%s11413_s28 + $0x28] sm:$0xff] }
 0x2bf   : > { %v10212_v37 = vpop.f32.mrb[98].mxu0  ;;  %v2552_v53 = vpack.c.bf16 %v10234_v56, %v10223_v15  ;;  %v10250_v42 = vpop.f32.mrb[96].mxu1  ;;  %v3569_v56 = vpack.c.bf16 %v3551_v52, %v3542_v51  ;;  %v4696_v52 = vld [vmem:[%s11413_s28 + $0x30] sm:$0xff] }
 0x2c0   : > { %v2859_v60 = vpack.c.bf16 %v10212_v37, %v10203_v28  ;;  %v10218_v50 = vpop.f32.mrb[99].mxu0  ;;  %3720 = vmatpush1.bf16.msra.mxu1 %v2537_v38  ;;  %v4702_v28 = vld [vmem:[%s11413_s28 + $0x60] sm:$0xff] }
 0x2c1   : > { %v2860_v7 = vpack.c.bf16 %v10218_v50, %v10209_v6  ;;  %3721 = vmatprep.subr.bf16.mxu1 %v2540_v58  ;;  %v3573_v58 = vld [vmem:[%s11412_s3] sm:$0xff]  ;;  %v3541_v50 = vld [vmem:[#allocation7 + $0xb0] sm:$0xff] }
 0x2c2   : > { %3579 = vperm.xlu0 %7436, %v3573_v58  }
 0x2c4   : > { %3722 = vmatpush1.bf16.msra.mxu1 %v2539_v39  ;;  %v10262_v39 = vpop.f32.mrb[97].mxu1 }
 0x2c5   : > { %v10241_v43 = vpop.f32.mrb[100].mxu0  ;;  %3723 = vmatprep.subr.bf16.mxu1 %v2542_v11  ;;  %v10269_v46 = vpop.f32.mrb[98].mxu1  ;;  %v3574_v11 = vld [vmem:[%s11412_s3 + $0x8] sm:$0xff]  ;;  %s9082_s3 = scalar_lea.vmem %s9081_s2, 2048 }
 0x2c6   : > { %v10246_v38 = vpop.f32.mrb[101].mxu0  ;;  %v3181_v27 = vpack.c.bf16 %v10269_v46, %v10250_v42  ;;  %v10276_v29 = vpop.f32.mrb[99].mxu1  ;;  %3584 = vperm.xlu0 %7436, %v3574_v11   ;;  %v4698_v11 = vld [vmem:[%s11413_s28 + $0x40] sm:$0xff]  ;;  %v6410_v42 = vld [vmem:[%s11415_s22 + $0x8] sm:$0xff] }
 0x2c7   : > { %v10248_v61 = vpop.f32.mrb[102].mxu0  ;;  %v10301_v44 = vpop.f32.mrb[100].mxu1 }
 0x2c8   : > { %v2861_v3 = vpack.c.bf16 %v10248_v61, %v10241_v43  ;;  %v10257_v49 = vpop.f32.mrb[103].mxu0  ;;  %3724 = vmatpush1.bf16.msra.mxu1 %v2541_v33  ;;  %v3182_v33 = vpack.c.bf16 %v10276_v29, %v10262_v39  ;;  %v10310_v26 = vpop.f32.mrb[101].mxu1  ;;  %v4703_v43 = vld [vmem:[%s11413_s28 + $0x68] sm:$0xff] }
 0x2c9   : > { %v2862_v19 = vpack.c.bf16 %v10257_v49, %v10246_v38  ;;  %3725 = vmatprep.subr.bf16.mxu1 %v2544_v62  ;;  %v10317_v32 = vpop.f32.mrb[102].mxu1  ;;  %v4699_v38 = vld [vmem:[%s11413_s28 + $0x48] sm:$0xff] }
 0x2ca   : > { %4467 = vperm.xlu0 %7436, %v4461_v41   ;;  %v3183_v31 = vpack.c.bf16 %v10317_v32, %v10301_v44  ;;  %v10324_v17 = vpop.f32.mrb[103].mxu1 }
 0x2cb   : > { %v3184_v47 = vpack.c.bf16 %v10324_v17, %v10310_v26  ;;  %v6619_v17 = vld [vmem:[%s11416_s9] sm:$0xff] }
 0x2cc   : > { %3726 = vmatpush1.bf16.msra.mxu1 %v2543_v12 }
 0x2cd   : > { %v10286_v13 = vpop.f32.mrb[104].mxu0  ;;  %3727 = vmatprep.subr.bf16.mxu1 %v2546_v54 }
 0x2ce   : > { %v10294_v62 = vpop.f32.mrb[105].mxu0  ;;  %4477 = vperm.xlu0 %7436, %v4463_v18   ;;  %v3526_v18 = vld [vmem:[#allocation7 + $0x38] sm:$0xff] }
 0x2cf   : > { %v10299_v63 = vpop.f32.mrb[106].mxu0  ;;  %v10356_v22 = vpop.f32.mrb[104].mxu1 }
 0x2d0   : > { %v2863_v12 = vpack.c.bf16 %v10299_v63, %v10286_v13  ;;  %v10305_v2 = vpop.f32.mrb[107].mxu0  ;;  %3728 = vmatpush1.bf16.msra.mxu1 %v2545_v1  ;;  %v4462_v1 = vld [vmem:[%s11343_s5 + $0x8] sm:$0xff]  ;;  %v10360_v9 = vpop.f32.mrb[105].mxu1  ;;  %v4693_v63 = vld [vmem:[%s11413_s28 + $0x18] sm:$0xff] }
 0x2d1   : > { %v2864_v54 = vpack.c.bf16 %v10305_v2, %v10294_v62  ;;  %3729 = vmatprep.subr.bf16.mxu1 %v2548_v0  ;;  %4472 = vperm.xlu1 %7437, %v4462_v1   ;;  %v3523_v0 = vld [vmem:[#allocation7 + $0x20] sm:$0xff]  ;;  %v10365_v55 = vpop.f32.mrb[106].mxu1 }
 0x2d2   : > { %4708 = vperm.xlu0 %7436, %v4690_v25   ;;  %v3185_v45 = vpack.c.bf16 %v10365_v55, %v10356_v22  ;;  %v3535_v1 = vld [vmem:[#allocation7 + $0x80] sm:$0xff] }
 0x2d4   : > { %3730 = vmatpush1.bf16.msra.mxu1 %v2547_v14 }
 0x2d5   : > { %v10334_v30 = vpop.f32.mrb[108].mxu0  ;;  %3731 = vmatprep.subr.bf16.mxu1 %v2550_v40  ;;  %4482 = vperm.xlu1 %7437, %v4464_v21   ;;  %v10372_v40 = vpop.f32.mrb[107].mxu1 }
 0x2d6   : > { %v10342_v10 = vpop.f32.mrb[109].mxu0  ;;  %v3186_v15 = vpack.c.bf16 %v10372_v40, %v10360_v9  ;;  %4728 = vperm.xlu0 %7436, %v4694_v36   ;;  %v6621_v9 = vld [vmem:[%s11416_s9 + $0x10] sm:$0xff]  ;;  %v6620_v40 = vld [vmem:[%s11416_s9 + $0x8] sm:$0xff] }
 0x2d7   : > { %v10347_v20 = vpop.f32.mrb[110].mxu0 }
 0x2d8   : > { %v2865_v48 = vpack.c.bf16 %v10347_v20, %v10334_v30  ;;  %v10351_v14 = vpop.f32.mrb[111].mxu0  ;;  %3732 = vmatpush1.bf16.msra.mxu1 %v2549_v35  ;;  %v3559_v35 = vpack.c.bf16 %v3532_v34, %v3523_v0  ;;  %v10394_v6 = vpop.f32.mrb[108].mxu1  ;;  %v4692_v0 = vld [vmem:[%s11413_s28 + $0x10] sm:$0xff] }
 0x2d9   : > { %v2866_v16 = vpack.c.bf16 %v10351_v14, %v10342_v10  ;;  %3733 = vmatprep.subr.bf16.mxu1 %v2552_v53  ;;  %4713 = vperm.xlu1 %7437, %v4691_v24   ;;  %v10399_v23 = vpop.f32.mrb[109].mxu1 }
 0x2da   : > { %4748 = vperm.xlu0 %7436, %v4698_v11   ;;  %v10401_v25 = vpop.f32.mrb[110].mxu1 }
 0x2db   : > { %v3187_v37 = vpack.c.bf16 %v10401_v25, %v10394_v6 }
 0x2dc   : > { %3734 = vmatpush1.bf16.msra.mxu1 %v2551_v4 }
 0x2dd   : > { %v10379_v53 = vpop.f32.mrb[112].mxu0  ;;  %3756 = vmatprep.subr.bf16.mxu1 %v2860_v7  ;;  %v3550_v7 = vld [vmem:[#allocation7 + $0xf8] sm:$0xff]  ;;  %4733 = vperm.xlu1 %7437, %v4695_v59   ;;  %v4704_v59 = vld [vmem:[%s11413_s28 + $0x70] sm:$0xff] }
 0x2de   : > { %v2822_v58 = vpop.f32.mrb[113].mxu0  ;;  %v3568_v10 = vpack.c.bf16 %v3550_v7, %v3541_v50  ;;  %4768 = vperm.xlu0 %7436, %v4702_v28  }
 0x2df   : > { %v2824_v5 = vpop.f32.mrb[114].mxu0  ;;  %3736 = vmatmul.mubr.bf16.vlgmr.msra.gmra.mrb[128].mxu1 %v3559_v35  ;;  %v4700_v35 = vld [vmem:[%s11413_s28 + $0x50] sm:$0xff] }
 0x2e0   : > { %v2867_v8 = vpack.c.bf16 %v2824_v5, %v10379_v53  ;;  %v2826_v4 = vpop.f32.mrb[115].mxu0  ;;  %3757 = vmatpush1.bf16.msra.mxu1 %v2859_v60  ;;  %3745 = vmatprep.mubr.bf16.mxu1 %v3569_v56  ;;  %v10408_v60 = vpop.f32.mrb[111].mxu1  ;;  %v4697_v53 = vld [vmem:[%s11413_s28 + $0x38] sm:$0xff] }
 0x2e1   : > { %v2868_v41 = vpack.c.bf16 %v2826_v4, %v2822_v58  ;;  %3758 = vmatprep.subr.bf16.mxu1 %v2862_v19  ;;  %v3188_v49 = vpack.c.bf16 %v10408_v60, %v10399_v23  ;;  %v3562_v19 = vpack.c.bf16 %v3535_v1, %v3526_v18  ;;  %4753 = vperm.xlu1 %7437, %v4699_v38   ;;  %v10430_v62 = vpop.f32.mrb[112].mxu1  ;;  %v5674_v1 = vld [vmem:[%s11414_s18] sm:$0xff] }
 0x2e2   : > { %4718 = vperm.xlu0 %7436, %v4692_v0  }
 0x2e4   : > { %3759 = vmatpush1.bf16.msra.mxu1 %v2861_v3 }
 0x2e5   : > { %v2830_v21 = vpop.f32.mrb[116].mxu0  ;;  %3760 = vmatprep.subr.bf16.mxu1 %v2864_v54  ;;  %v10432_v54 = vpop.f32.mrb[113].mxu1  ;;  %4773 = vperm.xlu1 %7437, %v4703_v43   ;;  %v5676_v43 = vld [vmem:[%s11414_s18 + $0x10] sm:$0xff] }
 0x2e6   : > { %v2832_v14 = vpop.f32.mrb[117].mxu0  ;;  %v10434_v51 = vpop.f32.mrb[114].mxu1  ;;  %4738 = vperm.xlu0 %7436, %v4696_v52  }
 0x2e7   : > { %v2834_v34 = vpop.f32.mrb[118].mxu0  ;;  %3746 = vmatmul.mubr.bf16.gmra.mrb[132].mxu1 %v3568_v10  ;;  %v3189_v36 = vpack.c.bf16 %v10434_v51, %v10430_v62  ;;  %v10441_v13 = vpop.f32.mrb[115].mxu1  ;;  %v4705_v10 = vld [vmem:[%s11413_s28 + $0x78] sm:$0xff]  ;;  %v3525_v62 = vld [vmem:[#allocation7 + $0x30] sm:$0xff] }
 0x2e8   : > { %v2869_v61 = vpack.c.bf16 %v2834_v34, %v2830_v21  ;;  %v2836_v3 = vpop.f32.mrb[119].mxu0  ;;  %3761 = vmatpush1.bf16.msra.mxu1 %v2863_v12  ;;  %3788 = vmatprep.mubr.bf16.mxu1 %v3562_v19  ;;  %v3190_v12 = vpack.c.bf16 %v10441_v13, %v10432_v54  ;;  %v10457_v20 = vpop.f32.mrb[116].mxu1  ;;  %v3534_v51 = vld [vmem:[#allocation7 + $0x78] sm:$0xff] }
 0x2e9   : > { %v2870_v2 = vpack.c.bf16 %v2836_v3, %v2832_v14  ;;  %3762 = vmatprep.subr.bf16.mxu1 %v2866_v16  ;;  %4723 = vperm.xlu1 %7437, %v4693_v63   ;;  %v10459_v11 = vpop.f32.mrb[117].mxu1 }
 0x2ea   : > { %4758 = vperm.xlu0 %7436, %v4700_v35   ;;  %v10461_v5 = vpop.f32.mrb[118].mxu1 }
 0x2eb   : > { %v3191_v4 = vpack.c.bf16 %v10461_v5, %v10457_v20  ;;  %v10468_v50 = vpop.f32.mrb[119].mxu1 }
 0x2ec   : > { %3763 = vmatpush1.bf16.msra.mxu1 %v2865_v48  ;;  %v3192_v7 = vpack.c.bf16 %v10468_v50, %v10459_v11  ;;  %v3553_v11 = vld [vmem:[#allocation7 + $0x110] sm:$0xff]  ;;  %v3561_v50 = vpack.c.bf16 %v3534_v51, %v3525_v62  ;;  %v8071_v51 = vld [vmem:[#allocation5 + $0x4c4] ss:$8 sps:$4 sm:$0xff]  }
 0x2ed   : > { %v2840_v16 = vpop.f32.mrb[120].mxu0  ;;  %3764 = vmatprep.subr.bf16.mxu1 %v2868_v41  ;;  %4743 = vperm.xlu1 %7437, %v4697_v53   ;;  %v8070_v62 = vld [vmem:[#allocation5 + $0x4b0] ss:$8 sps:$4 sm:$0xff]  }
 0x2ee   : > { %v2842_v24 = vpop.f32.mrb[121].mxu0  ;;  %4778 = vperm.xlu0 %7436, %v4704_v59  }
 0x2ef   : > { %v2844_v56 = vpop.f32.mrb[122].mxu0 }
 0x2f0   : > { %v2871_v58 = vpack.c.bf16 %v2844_v56, %v2840_v16  ;;  %v2846_v30 = vpop.f32.mrb[123].mxu0  ;;  %3765 = vmatpush1.bf16.msra.mxu1 %v2867_v8  ;;  %v4701_v8 = vld [vmem:[%s11413_s28 + $0x58] sm:$0xff]  ;;  %v10481_v21 = vpop.f32.mrb[120].mxu1 }
 0x2f1   : > { %v2872_v48 = vpack.c.bf16 %v2846_v30, %v2842_v24  ;;  %3766 = vmatprep.subr.bf16.mxu1 %v2870_v2  ;;  %4763 = vperm.xlu1 %7437, %v4701_v8   ;;  %v10483_v0 = vpop.f32.mrb[121].mxu1  ;;  %v5675_v2 = vld [vmem:[%s11414_s18 + $0x8] sm:$0xff]  ;;  %v6409_v24 = vld [vmem:[%s11415_s22] sm:$0xff]  ;;  %v5677_v56 = vld [vmem:[%s11414_s18 + $0x18] sm:$0xff] }
 0x2f2   : > { %5680 = vperm.xlu0 %7436, %v5674_v1   ;;  %v10485_v34 = vpop.f32.mrb[122].mxu1 }
 0x2f3   : > { %v3168_v3 = vpop.f32.mrb[123].mxu1 }
 0x2f4   : > { %3767 = vmatpush1.bf16.msra.mxu1 %v2869_v61  ;;  %v3193_v61 = vpack.c.bf16 %v10485_v34, %v10481_v21  ;;  %v3194_v52 = vpack.c.bf16 %v3168_v3, %v10483_v0 }
 0x2f5   : > { %v2850_v41 = vpop.f32.mrb[124].mxu0  ;;  %3768 = vmatprep.subr.bf16.mxu1 %v2872_v48  ;;  %4783 = vperm.xlu1 %7437, %v4705_v10   ;;  %v6411_v48 = vld [vmem:[%s11415_s22 + $0x10] sm:$0xff]  ;;  %v3552_v10 = vld [vmem:[#allocation7 + $0x108] sm:$0xff] }
 0x2f6   : > { %v2852_v18 = vpop.f32.mrb[125].mxu0  ;;  %5690 = vperm.xlu0 %7436, %v5676_v43  }
 0x2f7   : > { %v2854_v28 = vpop.f32.mrb[126].mxu0 }
 0x2f8   : > { %v2873_v38 = vpack.c.bf16 %v2854_v28, %v2850_v41  ;;  %v2856_v19 = vpop.f32.mrb[127].mxu0  ;;  %3769 = vmatpush1.bf16.msra.mxu1 %v2871_v58  ;;  %v3172_v39 = vpop.f32.mrb[124].mxu1  ;;  %v6412_v41 = vld [vmem:[%s11415_s22 + $0x18] sm:$0xff]  ;;  %v3543_v28 = vld [vmem:[#allocation7 + $0xc0] sm:$0xff] }
 0x2f9   : > { %v2874_v14 = vpack.c.bf16 %v2856_v19, %v2852_v18  ;;  %5685 = vperm.xlu1 %7437, %v5675_v2   ;;  %v3570_v19 = vpack.c.bf16 %v3552_v10, %v3543_v28 }
 0x2fa   : > { %6415 = vperm.xlu0 %7436, %v6409_v24  }
 0x2fb   : > { %3770 = vmatprep.subr.bf16.mxu1 %v2874_v14 }
 0x2fc   : > { %3771 = vmatpush1.bf16.msra.mxu1 %v2873_v38 }
 0x2fd   : > { %v10496_v63 = vpop.f32.mrb[128].mxu0  ;;  %3772 = vmatprep.subr.bf16.mxu1 %v3182_v33  ;;  %v3174_v33 = vpop.f32.mrb[125].mxu1  ;;  %5695 = vperm.xlu1 %7437, %v5677_v56  }
 0x2fe   : > { %v10501_v16 = vpop.f32.mrb[129].mxu0  ;;  %v3176_v30 = vpop.f32.mrb[126].mxu1  ;;  %6425 = vperm.xlu0 %7436, %v6411_v48  }
 0x2ff   : > { %v10506_v35 = vpop.f32.mrb[130].mxu0  ;;  %v3195_v59 = vpack.c.bf16 %v3176_v30, %v3172_v39  ;;  %v3178_v8 = vpop.f32.mrb[127].mxu1 }
 0x300   : > { %v3503_v53 = vpack.c.bf16 %v10506_v35, %v10496_v63  ;;  %v10513_v58 = vpop.f32.mrb[131].mxu0  ;;  %3773 = vmatpush1.bf16.msra.mxu1 %v3181_v27  ;;  %v3196_v46 = vpack.c.bf16 %v3178_v8, %v3174_v33  ;;  %v3536_v33 = vld [vmem:[#allocation7 + $0x88] sm:$0xff]  ;;  %v3545_v8 = vld [vmem:[#allocation7 + $0xd0] sm:$0xff] }
 0x301   : > { %v3504_v29 = vpack.c.bf16 %v10513_v58, %v10501_v16  ;;  %3774 = vmatprep.subr.bf16.mxu1 %v3184_v47  ;;  %6420 = vperm.xlu1 %7437, %v6410_v42   ;;  %v3554_v42 = vld [vmem:[#allocation7 + $0x118] sm:$0xff] }
 0x302   : > { %6625 = vperm.xlu0 %7436, %v6619_v17   ;;  %v8050_v17 = vld [vmem:[#allocation5 + $0x410] ss:$8 sps:$4 sm:$0xff]  }
 0x304   : > { %3775 = vmatpush1.bf16.msra.mxu1 %v3183_v31 }
 0x305   : > { %v3434_v27 = vpop.f32.mrb[132].mxu0  ;;  %3776 = vmatprep.subr.bf16.mxu1 %v3186_v15  ;;  %6430 = vperm.xlu1 %7437, %v6412_v41   ;;  %v6622_v15 = vld [vmem:[%s11416_s9 + $0x18] sm:$0xff]  ;;  %v8052_v41 = vld [vmem:[#allocation5 + $0x420] ss:$8 sps:$4 sm:$0xff]  }
 0x306   : > { %v3436_v26 = vpop.f32.mrb[133].mxu0  ;;  %6635 = vperm.xlu0 %7436, %v6621_v9   ;;  %v8056_v9 = vld [vmem:[#allocation5 + $0x440] ss:$8 sps:$4 sm:$0xff]  }
 0x307   : > { %v3438_v47 = vpop.f32.mrb[134].mxu0 }
 0x308   : > { %v3505_v44 = vpack.c.bf16 %v3438_v47, %v3434_v27  ;;  %v3440_v32 = vpop.f32.mrb[135].mxu0  ;;  %3777 = vmatpush1.bf16.msra.mxu1 %v3185_v45  ;;  %v8049_v27 = vld [vmem:[#allocation5 + $0x414] ss:$8 sps:$4 sm:$0xff]   ;;  %v8051_v47 = vld [vmem:[#allocation5 + $0x424] ss:$8 sps:$4 sm:$0xff]  }
 0x309   : > { %v3506_v31 = vpack.c.bf16 %v3440_v32, %v3436_v26  ;;  %3778 = vmatprep.subr.bf16.mxu1 %v3188_v49  ;;  %6630 = vperm.xlu1 %7437, %v6620_v40   ;;  %v3572_v26 = vpack.c.bf16 %v3554_v42, %v3545_v8  ;;  %v8054_v32 = vld [vmem:[#allocation5 + $0x430] ss:$8 sps:$4 sm:$0xff]   ;;  %v8057_v40 = vld [vmem:[#allocation5 + $0x454] ss:$8 sps:$4 sm:$0xff]  }
 0x30c   : > { %3779 = vmatpush1.bf16.msra.mxu1 %v3187_v37 }
 0x30d   : > { %v3444_v22 = vpop.f32.mrb[136].mxu0  ;;  %3780 = vmatprep.subr.bf16.mxu1 %v3190_v12  ;;  %6640 = vperm.xlu1 %7437, %v6622_v15   ;;  %v3544_v12 = vld [vmem:[#allocation7 + $0xc8] sm:$0xff]  ;;  %v8061_v15 = vld [vmem:[#allocation5 + $0x474] ss:$8 sps:$4 sm:$0xff]  }
 0x30e   : > { %v3446_v55 = vpop.f32.mrb[137].mxu0  ;;  %v3571_v20 = vpack.c.bf16 %v3553_v11, %v3544_v12  ;;  %v8073_v12 = vld [vmem:[#allocation5 + $0x4d4] ss:$8 sps:$4 sm:$0xff]   ;;  %v8074_v11 = vld [vmem:[#allocation5 + $0x4d0] ss:$8 sps:$4 sm:$0xff]  }
 0x30f   : > { %v3448_v45 = vpop.f32.mrb[138].mxu0 }
 0x310   : > { %v3507_v23 = vpack.c.bf16 %v3448_v45, %v3444_v22  ;;  %v3450_v60 = vpop.f32.mrb[139].mxu0  ;;  %3781 = vmatpush1.bf16.msra.mxu1 %v3189_v36  ;;  %v8058_v22 = vld [vmem:[#allocation5 + $0x450] ss:$8 sps:$4 sm:$0xff]   ;;  %v8060_v45 = vld [vmem:[#allocation5 + $0x460] ss:$8 sps:$4 sm:$0xff]  }
 0x311   : > { %v3508_v6 = vpack.c.bf16 %v3450_v60, %v3446_v55  ;;  %3782 = vmatprep.subr.bf16.mxu1 %v3192_v7  ;;  %v8059_v55 = vld [vmem:[#allocation5 + $0x464] ss:$8 sps:$4 sm:$0xff]  }
 0x312   : > { %v8063_v60 = vld [vmem:[#allocation5 + $0x484] ss:$8 sps:$4 sm:$0xff]  }
 0x314   : > { %3783 = vmatpush1.bf16.msra.mxu1 %v3191_v4 }
 0x315   : > { %v3454_v25 = vpop.f32.mrb[140].mxu0  ;;  %3784 = vmatprep.subr.bf16.mxu1 %v3194_v52 }
 0x316   : > { %v3456_v37 = vpop.f32.mrb[141].mxu0 }
 0x317   : > { %v3458_v49 = vpop.f32.mrb[142].mxu0 }
 0x318   : > { %v3509_v54 = vpack.c.bf16 %v3458_v49, %v3454_v25  ;;  %v3460_v13 = vpop.f32.mrb[143].mxu0  ;;  %3785 = vmatpush1.bf16.msra.mxu1 %v3193_v61  ;;  %v8065_v25 = vld [vmem:[#allocation5 + $0x494] ss:$8 sps:$4 sm:$0xff]   ;;  %v8067_v49 = vld [vmem:[#allocation5 + $0x4a4] ss:$8 sps:$4 sm:$0xff]  }
 0x319   : > { %v3510_v36 = vpack.c.bf16 %v3460_v13, %v3456_v37  ;;  %3786 = vmatprep.subr.bf16.mxu1 %v3196_v46  ;;  %v8048_v46 = vld [vmem:[#allocation5 + $0x400] ss:$8 sps:$4 sm:$0xff]   ;;  %v8066_v37 = vld [vmem:[#allocation5 + $0x490] ss:$8 sps:$4 sm:$0xff]   ;;  %v8069_v13 = vld [vmem:[#allocation5 + $0x4b4] ss:$8 sps:$4 sm:$0xff]  }
 0x31c   : > { %3787 = vmatpush1.bf16.msra.mxu1 %v3195_v59  ;;  %v8047_v59 = vld [vmem:[#allocation5 + $0x404] ss:$8 sps:$4 sm:$0xff]  }
 0x31d   : > { %v3464_v5 = vpop.f32.mrb[144].mxu0  ;;  %3809 = vmatprep.subr.bf16.mxu1 %v3504_v29  ;;  %v3527_v29 = vld [vmem:[#allocation7 + $0x40] sm:$0xff] }
 0x31e   : > { %v3466_v4 = vpop.f32.mrb[145].mxu0  ;;  %v3563_v48 = vpack.c.bf16 %v3536_v33, %v3527_v29 }
 0x31f   : > { %v3468_v7 = vpop.f32.mrb[146].mxu0  ;;  %3789 = vmatmul.mubr.bf16.vlgmr.msra.gmra.mrb[128].mxu1 %v3561_v50  ;;  %v8075_v50 = vld [vmem:[#allocation5 + $0x4e4] ss:$8 sps:$4 sm:$0xff]  }
 0x320   : > { %v3511_v18 = vpack.c.bf16 %v3468_v7, %v3464_v5  ;;  %v3470_v1 = vpop.f32.mrb[147].mxu0  ;;  %3810 = vmatpush1.bf16.msra.mxu1 %v3503_v53  ;;  %3798 = vmatprep.mubr.bf16.mxu1 %v3571_v20  ;;  %v8076_v20 = vld [vmem:[#allocation5 + $0x4e0] ss:$8 sps:$4 sm:$0xff]   ;;  %v8077_v5 = vld [vmem:[#allocation5 + $0x4f4] ss:$8 sps:$4 sm:$0xff]  }
 0x321   : > { %v3512_v38 = vpack.c.bf16 %v3470_v1, %v3466_v4  ;;  %3811 = vmatprep.subr.bf16.mxu1 %v3506_v31  ;;  %v8055_v31 = vld [vmem:[#allocation5 + $0x444] ss:$8 sps:$4 sm:$0xff]   ;;  %v8078_v4 = vld [vmem:[#allocation5 + $0x4f0] ss:$8 sps:$4 sm:$0xff]  }
 0x322   : > { %v8079_v7 = vld [vmem:[#allocation5 + $0x604] ss:$8 sps:$4 sm:$0xff]  }
 0x324   : > { %3812 = vmatpush1.bf16.msra.mxu1 %v3505_v44  ;;  %v8053_v44 = vld [vmem:[#allocation5 + $0x434] ss:$8 sps:$4 sm:$0xff]  }
 0x325   : > { %v3474_v21 = vpop.f32.mrb[148].mxu0  ;;  %3813 = vmatprep.subr.bf16.mxu1 %v3508_v6  ;;  %v8064_v6 = vld [vmem:[#allocation5 + $0x480] ss:$8 sps:$4 sm:$0xff]  }
 0x326   : > { %v3476_v14 = vpop.f32.mrb[149].mxu0 }
 0x327   : > { %v3478_v0 = vpop.f32.mrb[150].mxu0  ;;  %3799 = vmatmul.mubr.bf16.gmra.mrb[132].mxu1 %v3570_v19 }
 0x328   : > { %v3513_v34 = vpack.c.bf16 %v3478_v0, %v3474_v21  ;;  %v3480_v43 = vpop.f32.mrb[151].mxu0  ;;  %3814 = vmatpush1.bf16.msra.mxu1 %v3507_v23  ;;  %3841 = vmatprep.mubr.bf16.mxu1 %v11366_v57  ;;  %v8062_v23 = vld [vmem:[#allocation5 + $0x470] ss:$8 sps:$4 sm:$0xff]  }
 0x329   : > { %v3514_v61 = vpack.c.bf16 %v3480_v43, %v3476_v14  ;;  %3815 = vmatprep.subr.bf16.mxu1 %v3510_v36  ;;  %v8072_v36 = vld [vmem:[#allocation5 + $0x4c0] ss:$8 sps:$4 sm:$0xff]  }
 0x32c   : > { %3816 = vmatpush1.bf16.msra.mxu1 %v3509_v54  ;;  %v8068_v54 = vld [vmem:[#allocation5 + $0x4a0] ss:$8 sps:$4 sm:$0xff]  }
 0x32d   : > { %v3484_v3 = vpop.f32.mrb[152].mxu0  ;;  %3817 = vmatprep.subr.bf16.mxu1 %v3512_v38 }
 0x32e   : > { %v3486_v2 = vpop.f32.mrb[153].mxu0 }
 0x32f   : > { %v3488_v52 = vpop.f32.mrb[154].mxu0 }
 0x330   : > { %v3515_v63 = vpack.c.bf16 %v3488_v52, %v3484_v3  ;;  %v3490_v16 = vpop.f32.mrb[155].mxu0  ;;  %3818 = vmatpush1.bf16.msra.mxu1 %v3511_v18 }
 0x331   : > { %v3516_v24 = vpack.c.bf16 %v3490_v16, %v3486_v2  ;;  %3819 = vmatprep.subr.bf16.mxu1 %v3514_v61  ;;  %v3590_v43 = vpop.permute.xlu1 %3589 }
 0x334   : > { %3820 = vmatpush1.bf16.msra.mxu1 %v3513_v34 }
 0x335   : > { %v3494_v35 = vpop.f32.mrb[156].mxu0  ;;  %3821 = vmatprep.subr.bf16.mxu1 %v3516_v24 }
 0x336   : > { %v3496_v56 = vpop.f32.mrb[157].mxu0 }
 0x337   : > { %v3498_v53 = vpop.f32.mrb[158].mxu0 }
 0x338   : > { %v3517_v58 = vpack.c.bf16 %v3498_v53, %v3494_v35  ;;  %v3500_v39 = vpop.f32.mrb[159].mxu0  ;;  %3822 = vmatpush1.bf16.msra.mxu1 %v3515_v63 }
 0x339   : > { %v3518_v30 = vpack.c.bf16 %v3500_v39, %v3496_v56  ;;  %v3595_v39 = vpop.permute.xlu1 %3594 }
 0x33b   : > { %3823 = vmatprep.subr.bf16.mxu1 %v3518_v30 }
 0x33c   : > { %3824 = vmatpush1.bf16.msra.mxu1 %v3517_v58 }
 0x33d   : > { %4158 = vmatprep.subr.bf16.mxu1 %v8047_v59 }
 0x33f   : > { %3842 = vmatmul.mubr.bf16.vlgmr.msra.gmra.mrb[128].mxu1 %v3563_v48 }
 0x340   : > { %3851 = vmatprep.mubr.bf16.mxu1 %v11366_v57  ;;  %4159 = vmatpush1.bf16.msra.mxu1 %v8048_v46 }
 0x341   : > { %4160 = vmatprep.subr.bf16.mxu1 %v8049_v27  ;;  %v3580_v18 = vpop.permute.xlu0 %3579 }
 0x344   : > { %4161 = vmatpush1.bf16.msra.mxu1 %v8050_v17 }
 0x345   : > { %4162 = vmatprep.subr.bf16.mxu1 %v8051_v47  ;;  %v3585_v38 = vpop.permute.xlu0 %3584 }
 0x347   : > { %3852 = vmatmul.mubr.bf16.gmra.mrb[132].mxu1 %v3572_v26 }
 0x348   : > { %4163 = vmatpush1.bf16.msra.mxu1 %v8052_v41 }
 0x349   : > { %4164 = vmatprep.subr.bf16.mxu1 %v8053_v44 }
 0x34c   : > { %4165 = vmatpush1.bf16.msra.mxu1 %v8054_v32 }
 0x34d   : > { %4166 = vmatprep.subr.bf16.mxu1 %v8055_v31 }
 0x350   : > { %4167 = vmatpush1.bf16.msra.mxu1 %v8056_v9 }
 0x351   : > { %4168 = vmatprep.subr.bf16.mxu1 %v8057_v40 }
 0x354   : > { %4169 = vmatpush1.bf16.msra.mxu1 %v8058_v22 }
 0x355   : > { %4170 = vmatprep.subr.bf16.mxu1 %v8059_v55 }
 0x358   : > { %4171 = vmatpush1.bf16.msra.mxu1 %v8060_v45 }
 0x359   : > { %4172 = vmatprep.subr.bf16.mxu1 %v8061_v15 }
 0x35c   : > { %4173 = vmatpush1.bf16.msra.mxu1 %v8062_v23 }
 0x35d   : > { %4174 = vmatprep.subr.bf16.mxu1 %v8063_v60 }
 0x360   : > { %4175 = vmatpush1.bf16.msra.mxu1 %v8064_v6 }
 0x361   : > { %4176 = vmatprep.subr.bf16.mxu1 %v8065_v25 }
 0x364   : > { %4177 = vmatpush1.bf16.msra.mxu1 %v8066_v37 }
 0x365   : > { %4178 = vmatprep.subr.bf16.mxu1 %v8067_v49 }
 0x368   : > { %4179 = vmatpush1.bf16.msra.mxu1 %v8068_v54 }
 0x369   : > { %4180 = vmatprep.subr.bf16.mxu1 %v8069_v13 }
 0x36c   : > { %4181 = vmatpush1.bf16.msra.mxu1 %v8070_v62 }
 0x36d   : > { %4182 = vmatprep.subr.bf16.mxu1 %v8071_v51 }
 0x370   : > { %4183 = vmatpush1.bf16.msra.mxu1 %v8072_v36 }
 0x371   : > { %4184 = vmatprep.subr.bf16.mxu1 %v8073_v12 }
 0x374   : > { %4185 = vmatpush1.bf16.msra.mxu1 %v8074_v11 }
 0x375   : > { %4186 = vmatprep.subr.bf16.mxu1 %v8075_v50 }
 0x378   : > { %4187 = vmatpush1.bf16.msra.mxu1 %v8076_v20 }
 0x379   : > { %4188 = vmatprep.subr.bf16.mxu1 %v8077_v5 }
 0x37c   : > { %4189 = vmatpush1.bf16.msra.mxu1 %v8078_v4 }
 0x37d   : > { %4272 = vmatprep.subr.bf16.mxu1 %v8079_v7 }
 0x412   : > { %v3843_v1 = vpop.f32.mrb[128].mxu1 }
 0x413   : > { %v7230_v28 = vadd.f32 %v3843_v1, %v3580_v18  ;;  %v3845_v10 = vpop.f32.mrb[129].mxu1 }
 0x414   : > { %v7231_v19 = vadd.f32 %v3845_v10, %v3580_v18  ;;  %v3847_v21 = vpop.f32.mrb[130].mxu1 }
 0x415   : > { %v3870_v14 = vmin.f32 %v7230_v28, 0.0  ;;  %v7232_v0 = vadd.f32 %v3847_v21, %v3585_v38  ;;  %v3849_v34 = vpop.f32.mrb[131].mxu1  ;;  %vm3862_vm0 = vcmp.gt.f32.partialorder %v7230_v28, 0.0 }
 0x416   : > { %v3871_v61 = vmin.f32 %v7231_v19, 0.0  ;;  %v7233_v3 = vadd.f32 %v3849_v34, %v3585_v38  ;;  %vm3863_vm1 = vcmp.gt.f32.partialorder %v7231_v19, 0.0 }
 0x417   : > { %v3878_v2 = vmul.f32 1.442695, %v3870_v14  ;;  %v3872_v52 = vmin.f32 %v7232_v0, 0.0  ;;  %vm3864_vm2 = vcmp.gt.f32.partialorder %v7232_v0, 0.0 }
 0x418   : > { %v3880_v63 = vmul.f32 1.442695, %v3871_v61  ;;  %v3873_v16 = vmin.f32 %v7233_v3, 0.0  ;;  %vm3865_vm3 = vcmp.gt.f32.partialorder %v7233_v3, 0.0  ;;  %v8081_v61 = vld [vmem:[#allocation5 + $0x600] ss:$8 sps:$4 sm:$0xff]  }
 0x419   : > { %7870 = vpow2.f32 %v3878_v2  ;;  %v3882_v24 = vmul.f32 1.442695, %v3872_v52 }
 0x41a   : > { %7872 = vpow2.f32 %v3880_v63  ;;  %v3884_v35 = vmul.f32 1.442695, %v3873_v16  ;;  %v3853_v56 = vpop.f32.mrb[132].mxu1  ;;  %v10595_v63 = vld [vmem:[#allocation5 + $0x114] ss:$8 sps:$4 sm:$0xff]  }
 0x41b   : > { %7874 = vpow2.f32 %v3882_v24  ;;  %v7234_v53 = vadd.f32 %v3853_v56, %v3590_v43  ;;  %v3855_v58 = vpop.f32.mrb[133].mxu1  ;;  %v8083_v16 = vld [vmem:[#allocation5 + $0x614] ss:$8 sps:$4 sm:$0xff]  }
 0x41c   : > { %7876 = vpow2.f32 %v3884_v35  ;;  %v7235_v29 = vadd.f32 %v3855_v58, %v3590_v43  ;;  %v3857_v33 = vpop.f32.mrb[134].mxu1  ;;  %v10591_v43 = vld [vmem:[#allocation5 + $0x100] ss:$8 sps:$4 sm:$0xff]   ;;  %v10602_v58 = vld [vmem:[#allocation5 + $0x110] ss:$8 sps:$4 sm:$0xff]  }
 0x41d   : > { %v3874_v30 = vmin.f32 %v7234_v53, 0.0  ;;  %v7236_v48 = vadd.f32 %v3857_v33, %v3595_v39  ;;  %v3859_v59 = vpop.f32.mrb[135].mxu1  ;;  %vm3866_vm4 = vcmp.gt.f32.partialorder %v7234_v53, 0.0  ;;  %v8087_v33 = vld [vmem:[#allocation5 + $0x624] ss:$8 sps:$4 sm:$0xff]  }
 0x41e   : > { %v3875_v8 = vmin.f32 %v7235_v29, 0.0  ;;  %v10579_v42 = vadd.f32 %v3859_v59, %v3595_v39  ;;  %vm3867_vm5 = vcmp.gt.f32.partialorder %v7235_v29, 0.0  ;;  %v8085_v39 = vld [vmem:[#allocation5 + $0x610] ss:$8 sps:$4 sm:$0xff]   ;;  %v10617_v59 = vld [vmem:[#allocation5 + $0x134] ss:$8 sps:$4 sm:$0xff]  }
 0x41f   : > { %v3886_v46 = vmul.f32 1.442695, %v3874_v30  ;;  %v3876_v27 = vmin.f32 %v7236_v48, 0.0  ;;  %vm3868_vm6 = vcmp.gt.f32.partialorder %v7236_v48, 0.0  ;;  %v10612_v30 = vld [vmem:[#allocation5 + $0x120] ss:$8 sps:$4 sm:$0xff]  }
 0x420   : > { %v3888_v26 = vmul.f32 1.442695, %v3875_v8  ;;  %v3877_v17 = vmin.f32 %v10579_v42, 0.0  ;;  %vm3869_vm7 = vcmp.gt.f32.partialorder %v10579_v42, 0.0  ;;  %v8091_v8 = vld [vmem:[#allocation5 + $0x634] ss:$8 sps:$4 sm:$0xff]  }
 0x421   : > { %7878 = vpow2.f32 %v3886_v46  ;;  %v3890_v47 = vmul.f32 1.442695, %v3876_v27  ;;  %v8093_v46 = vld [vmem:[#allocation5 + $0x630] ss:$8 sps:$4 sm:$0xff]   ;;  %v10623_v27 = vld [vmem:[#allocation5 + $0x144] ss:$8 sps:$4 sm:$0xff]  }
 0x422   : > { %7880 = vpow2.f32 %v3888_v26  ;;  %v3892_v41 = vmul.f32 1.442695, %v3877_v17  ;;  %v8095_v26 = vld [vmem:[#allocation5 + $0x644] ss:$8 sps:$4 sm:$0xff]   ;;  %v10626_v17 = vld [vmem:[#allocation5 + $0x140] ss:$8 sps:$4 sm:$0xff]  }
 0x423   : > { %v7871_v44 = vpop.eup %7870  ;;  %7882 = vpow2.f32 %v3890_v47  ;;  %v8097_v47 = vld [vmem:[#allocation5 + $0x640] ss:$8 sps:$4 sm:$0xff]  }
 0x424   : > { %v7873_v32 = vpop.eup %7872  ;;  %v7171_v31 = vadd.f32 -1.0, %v7871_v44  ;;  %7884 = vpow2.f32 %v3892_v41  ;;  %v10629_v41 = vld [vmem:[#allocation5 + $0x154] ss:$8 sps:$4 sm:$0xff]  }
 0x425   : > { %v7875_v9 = vpop.eup %7874  ;;  %v7172_v40 = vadd.f32 -1.0, %v7873_v32  ;;  %v8099_v44 = vld [vmem:[#allocation5 + $0x654] ss:$8 sps:$4 sm:$0xff]   ;;  %v10632_v32 = vld [vmem:[#allocation5 + $0x150] ss:$8 sps:$4 sm:$0xff]  }
 0x426   : > { %v7877_v22 = vpop.eup %7876  ;;  %v3902_v55 = vmul.f32 1.6732632, %v7171_v31  ;;  %v7173_v45 = vadd.f32 -1.0, %v7875_v9  ;;  %v8101_v31 = vld [vmem:[#allocation5 + $0x650] ss:$8 sps:$4 sm:$0xff]  }
 0x427   : > { %v3903_v15 = vmul.f32 1.6732632, %v7172_v40  ;;  %v7174_v23 = vadd.f32 -1.0, %v7877_v22  ;;  %v10635_v9 = vld [vmem:[#allocation5 + $0x164] ss:$8 sps:$4 sm:$0xff]  }
 0x428   : > { %v3910_v60 = vsel %vm3862_vm0, %v7230_v28, %v3902_v55  ;;  %v3904_v6 = vmul.f32 1.6732632, %v7173_v45  ;;  %v8103_v40 = vld [vmem:[#allocation5 + $0x664] ss:$8 sps:$4 sm:$0xff]   ;;  %v10638_v22 = vld [vmem:[#allocation5 + $0x160] ss:$8 sps:$4 sm:$0xff]  }
 0x429   : > { %v3911_v25 = vsel %vm3863_vm1, %v7231_v19, %v3903_v15  ;;  %v3905_v37 = vmul.f32 1.6732632, %v7174_v23  ;;  %v3918_v13 = vmul.f32 1.050701, %v3910_v60  ;;  %v8105_v55 = vld [vmem:[#allocation5 + $0x660] ss:$8 sps:$4 sm:$0xff]  }
 0x42a   : > { %v3912_v49 = vsel %vm3864_vm2, %v7232_v0, %v3904_v6  ;;  %v3919_v12 = vmul.f32 1.050701, %v3911_v25  ;;  %v10641_v45 = vld [vmem:[#allocation5 + $0x174] ss:$8 sps:$4 sm:$0xff]   ;;  %v10644_v23 = vld [vmem:[#allocation5 + $0x170] ss:$8 sps:$4 sm:$0xff]  }
 0x42b   : > { %v7879_v54 = vpop.eup %7878  ;;  %v3920_v62 = vmul.f32 1.050701, %v3912_v49  ;;  %v3913_v51 = vsel %vm3865_vm3, %v7233_v3, %v3905_v37  ;;  %v8107_v15 = vld [vmem:[#allocation5 + $0x674] ss:$8 sps:$4 sm:$0xff]   ;;  %v8109_v60 = vld [vmem:[#allocation5 + $0x670] ss:$8 sps:$4 sm:$0xff]  }
 0x42c   : > { %v7881_v36 = vpop.eup %7880  ;;  %v3921_v11 = vmul.f32 1.050701, %v3913_v51  ;;  %v7175_v50 = vadd.f32 -1.0, %v7879_v54  ;;  %v10647_v6 = vld [vmem:[#allocation5 + $0x184] ss:$8 sps:$4 sm:$0xff]  }
 0x42d   : > { %v7883_v20 = vpop.eup %7882  ;;  %v10582_v5 = vpack.c.bf16 %v3920_v62, %v3918_v13  ;;  %v7176_v4 = vadd.f32 -1.0, %v7881_v36  ;;  %v8111_v25 = vld [vmem:[#allocation5 + $0x684] ss:$8 sps:$4 sm:$0xff]   ;;  %v10650_v37 = vld [vmem:[#allocation5 + $0x180] ss:$8 sps:$4 sm:$0xff]  }
 0x42e   : > { %v7885_v7 = vpop.eup %7884  ;;  %v10584_v18 = vpack.c.bf16 %v3921_v11, %v3919_v12  ;;  %v3906_v1 = vmul.f32 1.6732632, %v7175_v50  ;;  %v7177_v28 = vadd.f32 -1.0, %v7883_v20  ;;  %v8113_v49 = vld [vmem:[#allocation5 + $0x680] ss:$8 sps:$4 sm:$0xff]  }
 0x42f   : > { %v3907_v10 = vmul.f32 1.6732632, %v7176_v4  ;;  %v7178_v38 = vadd.f32 -1.0, %v7885_v7  ;;  %v10653_v54 = vld [vmem:[#allocation5 + $0x194] ss:$8 sps:$4 sm:$0xff]  }
 0x430   : > { %v3914_v19 = vsel %vm3866_vm4, %v7234_v53, %v3906_v1  ;;  %v3908_v21 = vmul.f32 1.6732632, %v7177_v28  ;;  %3962 = vmatprep.mubr.bf16.mxu0 %v10584_v18  ;;  %4190 = vmatprep.mubr.bf16.mxu1 %v10584_v18  ;;  %v8115_v13 = vld [vmem:[#allocation5 + $0x694] ss:$8 sps:$4 sm:$0xff]   ;;  %v10656_v62 = vld [vmem:[#allocation5 + $0x190] ss:$8 sps:$4 sm:$0xff]  }
 0x431   : > { %v3915_v14 = vsel %vm3867_vm5, %v7235_v29, %v3907_v10  ;;  %v3909_v0 = vmul.f32 1.6732632, %v7178_v38  ;;  %3963 = vmatmul.mubr.bf16.vlgmr.msra.gmra.mrb[160].mxu0 %v10582_v5  ;;  %4191 = vmatmul.mubr.bf16.vlgmr.msra.gmra.mrb[136].mxu1 %v10582_v5  ;;  %v3922_v3 = vmul.f32 1.050701, %v3914_v19  ;;  %v10605_v29 = vld [vmem:[#allocation5 + $0x124] ss:$8 sps:$4 sm:$0xff]  }
 0x432   : > { %v3916_v34 = vsel %vm3868_vm6, %v7236_v48, %v3908_v21  ;;  %3988 = vmatpush1.bf16.msra.mxu0 %v10591_v43  ;;  %4273 = vmatpush1.bf16.msra.mxu1 %v8081_v61  ;;  %v3923_v24 = vmul.f32 1.050701, %v3915_v14  ;;  %v8089_v48 = vld [vmem:[#allocation5 + $0x620] ss:$8 sps:$4 sm:$0xff]   ;;  %v8117_v51 = vld [vmem:[#allocation5 + $0x690] ss:$8 sps:$4 sm:$0xff]  }
 0x433   : > { %v3924_v2 = vmul.f32 1.050701, %v3916_v34  ;;  %v3917_v52 = vsel %vm3869_vm7, %v10579_v42, %v3909_v0  ;;  %3989 = vmatprep.subr.bf16.mxu0 %v10595_v63  ;;  %4274 = vmatprep.subr.bf16.mxu1 %v8083_v16  ;;  %v10620_v42 = vld [vmem:[#allocation5 + $0x130] ss:$8 sps:$4 sm:$0xff]   ;;  %v10659_v36 = vld [vmem:[#allocation5 + $0x1a4] ss:$8 sps:$4 sm:$0xff]  }
 0x434   : > { %v3925_v35 = vmul.f32 1.050701, %v3917_v52  ;;  %v8119_v12 = vld [vmem:[#allocation5 + $0x6a4] ss:$8 sps:$4 sm:$0xff]   ;;  %v10662_v11 = vld [vmem:[#allocation5 + $0x1a0] ss:$8 sps:$4 sm:$0xff]  }
 0x435   : > { %v10598_v56 = vpack.c.bf16 %v3924_v2, %v3922_v3  ;;  %v8121_v50 = vld [vmem:[#allocation5 + $0x6a0] ss:$8 sps:$4 sm:$0xff]   ;;  %v10665_v20 = vld [vmem:[#allocation5 + $0x1b4] ss:$8 sps:$4 sm:$0xff]   ;;  %v10668_v7 = vld [vmem:[#allocation5 + $0x1b0] ss:$8 sps:$4 sm:$0xff]  }
 0x436   : > { %v10600_v53 = vpack.c.bf16 %v3925_v35, %v3923_v24  ;;  %3990 = vmatpush1.bf16.msra.mxu0 %v10602_v58  ;;  %4275 = vmatpush1.bf16.msra.mxu1 %v8085_v39  ;;  %11417 = vst [vmem:[#allocation20_spill] sm:$0xff] %v10665_v20  ;;  %v8123_v4 = vld [vmem:[#allocation5 + $0x6b4] ss:$8 sps:$4 sm:$0xff]   ;;  %11418 = vst [vmem:[#allocation21_spill] sm:$0xff] %v10668_v7  ;;  %v8125_v1 = vld [vmem:[#allocation5 + $0x6b0] ss:$8 sps:$4 sm:$0xff]  }
 0x437   : > { %3991 = vmatprep.subr.bf16.mxu0 %v10605_v29  ;;  %4276 = vmatprep.subr.bf16.mxu1 %v8087_v33  ;;  %v10671_v28 = vld [vmem:[#allocation5 + $0x1c4] ss:$8 sps:$4 sm:$0xff]   ;;  %v10674_v38 = vld [vmem:[#allocation5 + $0x1c0] ss:$8 sps:$4 sm:$0xff]   ;;  %v10677_v21 = vld [vmem:[#allocation5 + $0x1d4] ss:$8 sps:$4 sm:$0xff]  }
 0x438   : > { %3972 = vmatprep.mubr.bf16.mxu0 %v10600_v53  ;;  %4200 = vmatprep.mubr.bf16.mxu1 %v10600_v53  ;;  %11419 = vst [vmem:[#allocation22_spill] sm:$0xff] %v10671_v28  ;;  %v8127_v10 = vld [vmem:[#allocation5 + $0x6c4] ss:$8 sps:$4 sm:$0xff]   ;;  %11420 = vst [vmem:[#allocation23_spill] sm:$0xff] %v10674_v38  ;;  %v8129_v19 = vld [vmem:[#allocation5 + $0x6c0] ss:$8 sps:$4 sm:$0xff]  }
 0x439   : > { %3973 = vmatmul.mubr.bf16.gmra.mrb[164].mxu0 %v10598_v56  ;;  %4201 = vmatmul.mubr.bf16.gmra.mrb[140].mxu1 %v10598_v56  ;;  %11421 = vst [vmem:[#allocation24_spill] sm:$0xff] %v10677_v21  ;;  %v8131_v14 = vld [vmem:[#allocation5 + $0x6d4] ss:$8 sps:$4 sm:$0xff]   ;;  %v10680_v0 = vld [vmem:[#allocation5 + $0x1d0] ss:$8 sps:$4 sm:$0xff]  }
 0x43a   : > { %3992 = vmatpush1.bf16.msra.mxu0 %v10612_v30  ;;  %4277 = vmatpush1.bf16.msra.mxu1 %v8089_v48  ;;  %11422 = vst [vmem:[#allocation25_spill] sm:$0xff] %v10680_v0  ;;  %v8133_v34 = vld [vmem:[#allocation5 + $0x6d0] ss:$8 sps:$4 sm:$0xff]   ;;  %v10683_v61 = vld [vmem:[#allocation5 + $0x1e4] ss:$8 sps:$4 sm:$0xff]  }
 0x43b   : > { %4019 = vmatprep.mubr.bf16.mxu0 %v10584_v18  ;;  %4304 = vmatprep.mubr.bf16.mxu1 %v10584_v18  ;;  %11423 = vst [vmem:[#allocation26_spill] sm:$0xff] %v10683_v61  ;;  %v8135_v3 = vld [vmem:[#allocation5 + $0x6e4] ss:$8 sps:$4 sm:$0xff]   ;;  %v10686_v2 = vld [vmem:[#allocation5 + $0x1e0] ss:$8 sps:$4 sm:$0xff]  }
 0x43c   : > { %3993 = vmatprep.subr.bf16.mxu0 %v10617_v59  ;;  %4278 = vmatprep.subr.bf16.mxu1 %v8091_v8  ;;  %11424 = vst [vmem:[#allocation27_spill] sm:$0xff] %v10686_v2  ;;  %v8137_v52 = vld [vmem:[#allocation5 + $0x6e0] ss:$8 sps:$4 sm:$0xff]   ;;  %v10689_v16 = vld [vmem:[#allocation5 + $0x1f4] ss:$8 sps:$4 sm:$0xff]  }
 0x43d   : > { %11425 = vst [vmem:[#allocation28_spill] sm:$0xff] %v10689_v16  ;;  %v8139_v24 = vld [vmem:[#allocation5 + $0x6f4] ss:$8 sps:$4 sm:$0xff]   ;;  %v10692_v35 = vld [vmem:[#allocation5 + $0x1f0] ss:$8 sps:$4 sm:$0xff]  }
 0x43e   : > { %3994 = vmatpush1.bf16.msra.mxu0 %v10620_v42  ;;  %4279 = vmatpush1.bf16.msra.mxu1 %v8093_v46  ;;  %11426 = vst [vmem:[#allocation29_spill] sm:$0xff] %v10692_v35  ;;  %v8141_v39 = vld [vmem:[#allocation5 + $0x6f0] ss:$8 sps:$4 sm:$0xff]   ;;  %v8142_v33 = vld [vmem:[#allocation5 + $0x204] ss:$8 sps:$4 sm:$0xff]  }
 0x43f   : > { %3995 = vmatprep.subr.bf16.mxu0 %v10623_v27  ;;  %4280 = vmatprep.subr.bf16.mxu1 %v8095_v26  ;;  %v8143_v48 = vld [vmem:[#allocation5 + $0x804] ss:$8 sps:$4 sm:$0xff]   ;;  %v8144_v8 = vld [vmem:[#allocation5 + $0x200] ss:$8 sps:$4 sm:$0xff]   ;;  %v8146_v26 = vld [vmem:[#allocation5 + $0x214] ss:$8 sps:$4 sm:$0xff]  }
 0x440   : > { %v8145_v46 = vld [vmem:[#allocation5 + $0x800] ss:$8 sps:$4 sm:$0xff]  }
 0x442   : > { %3996 = vmatpush1.bf16.msra.mxu0 %v10626_v17  ;;  %4281 = vmatpush1.bf16.msra.mxu1 %v8097_v47  ;;  %v8147_v47 = vld [vmem:[#allocation5 + $0x814] ss:$8 sps:$4 sm:$0xff]  }
 0x443   : > { %3997 = vmatprep.subr.bf16.mxu0 %v10629_v41  ;;  %4282 = vmatprep.subr.bf16.mxu1 %v8099_v44  ;;  %v8148_v44 = vld [vmem:[#allocation5 + $0x210] ss:$8 sps:$4 sm:$0xff]  }
 0x446   : > { %3998 = vmatpush1.bf16.msra.mxu0 %v10632_v32  ;;  %4283 = vmatpush1.bf16.msra.mxu1 %v8101_v31  ;;  %v8149_v31 = vld [vmem:[#allocation5 + $0x810] ss:$8 sps:$4 sm:$0xff]  }
 0x447   : > { %3999 = vmatprep.subr.bf16.mxu0 %v10635_v9  ;;  %4284 = vmatprep.subr.bf16.mxu1 %v8103_v40  ;;  %v8150_v40 = vld [vmem:[#allocation5 + $0x224] ss:$8 sps:$4 sm:$0xff]  }
 0x44a   : > { %4000 = vmatpush1.bf16.msra.mxu0 %v10638_v22  ;;  %4285 = vmatpush1.bf16.msra.mxu1 %v8105_v55  ;;  %v8151_v55 = vld [vmem:[#allocation5 + $0x824] ss:$8 sps:$4 sm:$0xff]  }
 0x44b   : > { %4001 = vmatprep.subr.bf16.mxu0 %v10641_v45  ;;  %4286 = vmatprep.subr.bf16.mxu1 %v8107_v15  ;;  %v8152_v15 = vld [vmem:[#allocation5 + $0x220] ss:$8 sps:$4 sm:$0xff]  }
 0x44e   : > { %4002 = vmatpush1.bf16.msra.mxu0 %v10644_v23  ;;  %4287 = vmatpush1.bf16.msra.mxu1 %v8109_v60  ;;  %v8153_v60 = vld [vmem:[#allocation5 + $0x820] ss:$8 sps:$4 sm:$0xff]  }
 0x44f   : > { %4003 = vmatprep.subr.bf16.mxu0 %v10647_v6  ;;  %4288 = vmatprep.subr.bf16.mxu1 %v8111_v25  ;;  %v8154_v25 = vld [vmem:[#allocation5 + $0x234] ss:$8 sps:$4 sm:$0xff]  }
 0x452   : > { %4004 = vmatpush1.bf16.msra.mxu0 %v10650_v37  ;;  %4289 = vmatpush1.bf16.msra.mxu1 %v8113_v49  ;;  %v8155_v49 = vld [vmem:[#allocation5 + $0x834] ss:$8 sps:$4 sm:$0xff]  }
 0x453   : > { %4005 = vmatprep.subr.bf16.mxu0 %v10653_v54  ;;  %4290 = vmatprep.subr.bf16.mxu1 %v8115_v13  ;;  %v8156_v13 = vld [vmem:[#allocation5 + $0x230] ss:$8 sps:$4 sm:$0xff]  }
 0x456   : > { %4006 = vmatpush1.bf16.msra.mxu0 %v10656_v62  ;;  %4291 = vmatpush1.bf16.msra.mxu1 %v8117_v51  ;;  %v8157_v51 = vld [vmem:[#allocation5 + $0x830] ss:$8 sps:$4 sm:$0xff]  }
 0x457   : > { %4007 = vmatprep.subr.bf16.mxu0 %v10659_v36  ;;  %4292 = vmatprep.subr.bf16.mxu1 %v8119_v12  ;;  %v8158_v12 = vld [vmem:[#allocation5 + $0x244] ss:$8 sps:$4 sm:$0xff]  }
 0x45a   : > { %4008 = vmatpush1.bf16.msra.mxu0 %v10662_v11  ;;  %4293 = vmatpush1.bf16.msra.mxu1 %v8121_v50  ;;  %v8159_v50 = vld [vmem:[#allocation5 + $0x844] ss:$8 sps:$4 sm:$0xff]  }
 0x45b   : > { %4009 = vmatprep.subr.bf16.mxu0 %v10665_v20  ;;  %4294 = vmatprep.subr.bf16.mxu1 %v8123_v4  ;;  %v8160_v4 = vld [vmem:[#allocation5 + $0x240] ss:$8 sps:$4 sm:$0xff]   ;;  %v8289_v20 = vld [vmem:[#allocation5 + $0x790] ss:$8 sps:$4 sm:$0xff]  }
 0x45e   : > { %4010 = vmatpush1.bf16.msra.mxu0 %v10668_v7  ;;  %4295 = vmatpush1.bf16.msra.mxu1 %v8125_v1  ;;  %v8161_v1 = vld [vmem:[#allocation5 + $0x840] ss:$8 sps:$4 sm:$0xff]   ;;  %v8288_v7 = vld [vmem:[#allocation5 + $0x794] ss:$8 sps:$4 sm:$0xff]  }
 0x45f   : > { %4011 = vmatprep.subr.bf16.mxu0 %v10671_v28  ;;  %4296 = vmatprep.subr.bf16.mxu1 %v8127_v10  ;;  %v8162_v10 = vld [vmem:[#allocation5 + $0x254] ss:$8 sps:$4 sm:$0xff]   ;;  %v8287_v28 = vld [vmem:[#allocation5 + $0x780] ss:$8 sps:$4 sm:$0xff]  }
 0x462   : > { %4012 = vmatpush1.bf16.msra.mxu0 %v10674_v38  ;;  %4297 = vmatpush1.bf16.msra.mxu1 %v8129_v19  ;;  %v8163_v19 = vld [vmem:[#allocation5 + $0x854] ss:$8 sps:$4 sm:$0xff]  }
 0x463   : > { %4013 = vmatprep.subr.bf16.mxu0 %v10677_v21  ;;  %4298 = vmatprep.subr.bf16.mxu1 %v8131_v14  ;;  %v8164_v14 = vld [vmem:[#allocation5 + $0x250] ss:$8 sps:$4 sm:$0xff]   ;;  %v8296_v38 = vld [vmem:[#allocation5 + $0x7d4] ss:$8 sps:$4 sm:$0xff]  }
 0x466   : > { %4014 = vmatpush1.bf16.msra.mxu0 %v10680_v0  ;;  %4299 = vmatpush1.bf16.msra.mxu1 %v8133_v34  ;;  %v8165_v34 = vld [vmem:[#allocation5 + $0x850] ss:$8 sps:$4 sm:$0xff]  }
 0x467   : > { %4015 = vmatprep.subr.bf16.mxu0 %v10683_v61  ;;  %4300 = vmatprep.subr.bf16.mxu1 %v8135_v3  ;;  %v8166_v3 = vld [vmem:[#allocation5 + $0x264] ss:$8 sps:$4 sm:$0xff]  }
 0x46a   : > { %4016 = vmatpush1.bf16.msra.mxu0 %v10686_v2  ;;  %4301 = vmatpush1.bf16.msra.mxu1 %v8137_v52  ;;  %v8167_v52 = vld [vmem:[#allocation5 + $0x864] ss:$8 sps:$4 sm:$0xff]  }
 0x46b   : > { %4017 = vmatprep.subr.bf16.mxu0 %v10689_v16  ;;  %4302 = vmatprep.subr.bf16.mxu1 %v8139_v24  ;;  %v8168_v24 = vld [vmem:[#allocation5 + $0x260] ss:$8 sps:$4 sm:$0xff]  }
 0x46e   : > { %4018 = vmatpush1.bf16.msra.mxu0 %v10692_v35  ;;  %4303 = vmatpush1.bf16.msra.mxu1 %v8141_v39  ;;  %v8169_v39 = vld [vmem:[#allocation5 + $0x860] ss:$8 sps:$4 sm:$0xff]  }
 0x46f   : > { %4044 = vmatprep.subr.bf16.mxu0 %v8142_v33  ;;  %4386 = vmatprep.subr.bf16.mxu1 %v8143_v48  ;;  %v8170_v33 = vld [vmem:[#allocation5 + $0x274] ss:$8 sps:$4 sm:$0xff]   ;;  %v8283_v35 = vld [vmem:[#allocation5 + $0x760] ss:$8 sps:$4 sm:$0xff]  }
 0x470   : > { %v8171_v48 = vld [vmem:[#allocation5 + $0x874] ss:$8 sps:$4 sm:$0xff]  }
 0x471   : > { %4020 = vmatmul.mubr.bf16.vlgmr.msra.gmra.mrb[168].mxu0 %v10582_v5  ;;  %4305 = vmatmul.mubr.bf16.vlgmr.msra.gmra.mrb[144].mxu1 %v10582_v5 }
 0x472   : > { %4029 = vmatprep.mubr.bf16.mxu0 %v10600_v53  ;;  %4045 = vmatpush1.bf16.msra.mxu0 %v8144_v8  ;;  %v8172_v8 = vld [vmem:[#allocation5 + $0x270] ss:$8 sps:$4 sm:$0xff]  }
 0x473   : > { %4314 = vmatprep.mubr.bf16.mxu1 %v10600_v53  ;;  %4387 = vmatpush1.bf16.msra.mxu1 %v8145_v46  ;;  %v8173_v46 = vld [vmem:[#allocation5 + $0x870] ss:$8 sps:$4 sm:$0xff]  }
 0x474   : > { %4046 = vmatprep.subr.bf16.mxu0 %v8146_v26  ;;  %4388 = vmatprep.subr.bf16.mxu1 %v8147_v47  ;;  %v8174_v26 = vld [vmem:[#allocation5 + $0x284] ss:$8 sps:$4 sm:$0xff]  }
 0x475   : > { %v8175_v47 = vld [vmem:[#allocation5 + $0x884] ss:$8 sps:$4 sm:$0xff]  }
 0x476   : > { %4047 = vmatpush1.bf16.msra.mxu0 %v8148_v44  ;;  %v8176_v44 = vld [vmem:[#allocation5 + $0x280] ss:$8 sps:$4 sm:$0xff]  }
 0x477   : > { %4389 = vmatpush1.bf16.msra.mxu1 %v8149_v31  ;;  %4048 = vmatprep.subr.bf16.mxu0 %v8150_v40  ;;  %v8177_v31 = vld [vmem:[#allocation5 + $0x880] ss:$8 sps:$4 sm:$0xff]   ;;  %v8178_v40 = vld [vmem:[#allocation5 + $0x294] ss:$8 sps:$4 sm:$0xff]  }
 0x478   : > { %4390 = vmatprep.subr.bf16.mxu1 %v8151_v55  ;;  %v8179_v55 = vld [vmem:[#allocation5 + $0x894] ss:$8 sps:$4 sm:$0xff]  }
 0x479   : > { %4030 = vmatmul.mubr.bf16.gmra.mrb[172].mxu0 %v10598_v56  ;;  %4315 = vmatmul.mubr.bf16.gmra.mrb[148].mxu1 %v10598_v56 }
 0x47a   : > { %4049 = vmatpush1.bf16.msra.mxu0 %v8152_v15  ;;  %4076 = vmatprep.mubr.bf16.mxu0 %v10584_v18  ;;  %v8180_v15 = vld [vmem:[#allocation5 + $0x290] ss:$8 sps:$4 sm:$0xff]  }
 0x47b   : > { %4391 = vmatpush1.bf16.msra.mxu1 %v8153_v60  ;;  %4418 = vmatprep.mubr.bf16.mxu1 %v10584_v18  ;;  %v8181_v60 = vld [vmem:[#allocation5 + $0x890] ss:$8 sps:$4 sm:$0xff]  }
 0x47c   : > { %4050 = vmatprep.subr.bf16.mxu0 %v8154_v25  ;;  %4392 = vmatprep.subr.bf16.mxu1 %v8155_v49  ;;  %v8182_v25 = vld [vmem:[#allocation5 + $0x2a4] ss:$8 sps:$4 sm:$0xff]  }
 0x47d   : > { %v8183_v49 = vld [vmem:[#allocation5 + $0x8a4] ss:$8 sps:$4 sm:$0xff]  }
 0x47e   : > { %4051 = vmatpush1.bf16.msra.mxu0 %v8156_v13  ;;  %v8184_v13 = vld [vmem:[#allocation5 + $0x2a0] ss:$8 sps:$4 sm:$0xff]  }
 0x47f   : > { %4393 = vmatpush1.bf16.msra.mxu1 %v8157_v51  ;;  %4052 = vmatprep.subr.bf16.mxu0 %v8158_v12  ;;  %v8185_v51 = vld [vmem:[#allocation5 + $0x8a0] ss:$8 sps:$4 sm:$0xff]   ;;  %v8186_v12 = vld [vmem:[#allocation5 + $0x2b4] ss:$8 sps:$4 sm:$0xff]  }
 0x480   : > { %4394 = vmatprep.subr.bf16.mxu1 %v8159_v50  ;;  %v8187_v50 = vld [vmem:[#allocation5 + $0x8b4] ss:$8 sps:$4 sm:$0xff]  }
 0x482   : > { %4053 = vmatpush1.bf16.msra.mxu0 %v8160_v4  ;;  %v8188_v4 = vld [vmem:[#allocation5 + $0x2b0] ss:$8 sps:$4 sm:$0xff]  }
 0x483   : > { %4395 = vmatpush1.bf16.msra.mxu1 %v8161_v1  ;;  %4054 = vmatprep.subr.bf16.mxu0 %v8162_v10  ;;  %v8189_v1 = vld [vmem:[#allocation5 + $0x8b0] ss:$8 sps:$4 sm:$0xff]   ;;  %v8190_v10 = vld [vmem:[#allocation5 + $0x2c4] ss:$8 sps:$4 sm:$0xff]  }
 0x484   : > { %4396 = vmatprep.subr.bf16.mxu1 %v8163_v19  ;;  %v8191_v19 = vld [vmem:[#allocation5 + $0x8c4] ss:$8 sps:$4 sm:$0xff]  }
 0x486   : > { %4055 = vmatpush1.bf16.msra.mxu0 %v8164_v14  ;;  %v8192_v14 = vld [vmem:[#allocation5 + $0x2c0] ss:$8 sps:$4 sm:$0xff]  }
 0x487   : > { %4397 = vmatpush1.bf16.msra.mxu1 %v8165_v34  ;;  %4056 = vmatprep.subr.bf16.mxu0 %v8166_v3  ;;  %v8193_v34 = vld [vmem:[#allocation5 + $0x8c0] ss:$8 sps:$4 sm:$0xff]   ;;  %v8194_v3 = vld [vmem:[#allocation5 + $0x2d4] ss:$8 sps:$4 sm:$0xff]  }
 0x488   : > { %4398 = vmatprep.subr.bf16.mxu1 %v8167_v52  ;;  %v8195_v52 = vld [vmem:[#allocation5 + $0x8d4] ss:$8 sps:$4 sm:$0xff]  }
 0x48a   : > { %4057 = vmatpush1.bf16.msra.mxu0 %v8168_v24  ;;  %v8196_v24 = vld [vmem:[#allocation5 + $0x2d0] ss:$8 sps:$4 sm:$0xff]  }
 0x48b   : > { %4399 = vmatpush1.bf16.msra.mxu1 %v8169_v39  ;;  %4058 = vmatprep.subr.bf16.mxu0 %v8170_v33  ;;  %v8197_v39 = vld [vmem:[#allocation5 + $0x8d0] ss:$8 sps:$4 sm:$0xff]   ;;  %v8198_v33 = vld [vmem:[#allocation5 + $0x2e4] ss:$8 sps:$4 sm:$0xff]  }
 0x48c   : > { %4400 = vmatprep.subr.bf16.mxu1 %v8171_v48  ;;  %v8199_v48 = vld [vmem:[#allocation5 + $0x8e4] ss:$8 sps:$4 sm:$0xff]  }
 0x48e   : > { %4059 = vmatpush1.bf16.msra.mxu0 %v8172_v8  ;;  %v8200_v8 = vld [vmem:[#allocation5 + $0x2e0] ss:$8 sps:$4 sm:$0xff]  }
 0x48f   : > { %4401 = vmatpush1.bf16.msra.mxu1 %v8173_v46  ;;  %4060 = vmatprep.subr.bf16.mxu0 %v8174_v26  ;;  %v8201_v46 = vld [vmem:[#allocation5 + $0x8e0] ss:$8 sps:$4 sm:$0xff]   ;;  %v8202_v26 = vld [vmem:[#allocation5 + $0x2f4] ss:$8 sps:$4 sm:$0xff]  }
 0x490   : > { %4402 = vmatprep.subr.bf16.mxu1 %v8175_v47  ;;  %v8203_v47 = vld [vmem:[#allocation5 + $0x8f4] ss:$8 sps:$4 sm:$0xff]  }
 0x492   : > { %4061 = vmatpush1.bf16.msra.mxu0 %v8176_v44  ;;  %v8204_v44 = vld [vmem:[#allocation5 + $0x2f0] ss:$8 sps:$4 sm:$0xff]  }
 0x493   : > { %4403 = vmatpush1.bf16.msra.mxu1 %v8177_v31  ;;  %4062 = vmatprep.subr.bf16.mxu0 %v8178_v40  ;;  %v8205_v31 = vld [vmem:[#allocation5 + $0x8f0] ss:$8 sps:$4 sm:$0xff]   ;;  %v10703_v40 = vld [vmem:[#allocation5 + $0x304] ss:$8 sps:$4 sm:$0xff]  }
 0x494   : > { %4404 = vmatprep.subr.bf16.mxu1 %v8179_v55  ;;  %11427 = vst [vmem:[#allocation30_spill] sm:$0xff] %v10703_v40  ;;  %v8207_v55 = vld [vmem:[#allocation5 + $0x300] ss:$8 sps:$4 sm:$0xff]  }
 0x496   : > { %4063 = vmatpush1.bf16.msra.mxu0 %v8180_v15  ;;  %v8208_v15 = vld [vmem:[#allocation5 + $0x314] ss:$8 sps:$4 sm:$0xff]  }
 0x497   : > { %4405 = vmatpush1.bf16.msra.mxu1 %v8181_v60  ;;  %4064 = vmatprep.subr.bf16.mxu0 %v8182_v25  ;;  %v8209_v60 = vld [vmem:[#allocation5 + $0x310] ss:$8 sps:$4 sm:$0xff]   ;;  %v8210_v25 = vld [vmem:[#allocation5 + $0x324] ss:$8 sps:$4 sm:$0xff]  }
 0x498   : > { %4406 = vmatprep.subr.bf16.mxu1 %v8183_v49  ;;  %v8211_v49 = vld [vmem:[#allocation5 + $0x320] ss:$8 sps:$4 sm:$0xff]  }
 0x49a   : > { %4065 = vmatpush1.bf16.msra.mxu0 %v8184_v13  ;;  %v8212_v13 = vld [vmem:[#allocation5 + $0x334] ss:$8 sps:$4 sm:$0xff]  }
 0x49b   : > { %4407 = vmatpush1.bf16.msra.mxu1 %v8185_v51  ;;  %4066 = vmatprep.subr.bf16.mxu0 %v8186_v12  ;;  %v8213_v51 = vld [vmem:[#allocation5 + $0x330] ss:$8 sps:$4 sm:$0xff]   ;;  %v8214_v12 = vld [vmem:[#allocation5 + $0x344] ss:$8 sps:$4 sm:$0xff]  }
 0x49c   : > { %4408 = vmatprep.subr.bf16.mxu1 %v8187_v50  ;;  %v8215_v50 = vld [vmem:[#allocation5 + $0x340] ss:$8 sps:$4 sm:$0xff]  }
 0x49e   : > { %4067 = vmatpush1.bf16.msra.mxu0 %v8188_v4  ;;  %v8216_v4 = vld [vmem:[#allocation5 + $0x354] ss:$8 sps:$4 sm:$0xff]  }
 0x49f   : > { %4409 = vmatpush1.bf16.msra.mxu1 %v8189_v1  ;;  %4068 = vmatprep.subr.bf16.mxu0 %v8190_v10  ;;  %v8217_v1 = vld [vmem:[#allocation5 + $0x350] ss:$8 sps:$4 sm:$0xff]   ;;  %v8218_v10 = vld [vmem:[#allocation5 + $0x364] ss:$8 sps:$4 sm:$0xff]  }
 0x4a0   : > { %4410 = vmatprep.subr.bf16.mxu1 %v8191_v19  ;;  %v8219_v19 = vld [vmem:[#allocation5 + $0x360] ss:$8 sps:$4 sm:$0xff]  }
 0x4a2   : > { %4069 = vmatpush1.bf16.msra.mxu0 %v8192_v14  ;;  %v8220_v14 = vld [vmem:[#allocation5 + $0x374] ss:$8 sps:$4 sm:$0xff]  }
 0x4a3   : > { %4411 = vmatpush1.bf16.msra.mxu1 %v8193_v34  ;;  %4070 = vmatprep.subr.bf16.mxu0 %v8194_v3  ;;  %v8221_v34 = vld [vmem:[#allocation5 + $0x370] ss:$8 sps:$4 sm:$0xff]   ;;  %v8222_v3 = vld [vmem:[#allocation5 + $0x384] ss:$8 sps:$4 sm:$0xff]  }
 0x4a4   : > { %4412 = vmatprep.subr.bf16.mxu1 %v8195_v52  ;;  %v8223_v52 = vld [vmem:[#allocation5 + $0x380] ss:$8 sps:$4 sm:$0xff]  }
 0x4a6   : > { %4071 = vmatpush1.bf16.msra.mxu0 %v8196_v24  ;;  %v8224_v24 = vld [vmem:[#allocation5 + $0x394] ss:$8 sps:$4 sm:$0xff]  }
 0x4a7   : > { %4413 = vmatpush1.bf16.msra.mxu1 %v8197_v39  ;;  %4072 = vmatprep.subr.bf16.mxu0 %v8198_v33  ;;  %v8225_v39 = vld [vmem:[#allocation5 + $0x390] ss:$8 sps:$4 sm:$0xff]   ;;  %v8226_v33 = vld [vmem:[#allocation5 + $0x3a4] ss:$8 sps:$4 sm:$0xff]  }
 0x4a8   : > { %4414 = vmatprep.subr.bf16.mxu1 %v8199_v48  ;;  %v8227_v48 = vld [vmem:[#allocation5 + $0x3a0] ss:$8 sps:$4 sm:$0xff]  }
 0x4aa   : > { %4073 = vmatpush1.bf16.msra.mxu0 %v8200_v8  ;;  %v8228_v8 = vld [vmem:[#allocation5 + $0x3b4] ss:$8 sps:$4 sm:$0xff]  }
 0x4ab   : > { %4415 = vmatpush1.bf16.msra.mxu1 %v8201_v46  ;;  %4074 = vmatprep.subr.bf16.mxu0 %v8202_v26  ;;  %v8229_v46 = vld [vmem:[#allocation5 + $0x3b0] ss:$8 sps:$4 sm:$0xff]   ;;  %v8230_v26 = vld [vmem:[#allocation5 + $0x3c4] ss:$8 sps:$4 sm:$0xff]  }
 0x4ac   : > { %4416 = vmatprep.subr.bf16.mxu1 %v8203_v47  ;;  %v8231_v47 = vld [vmem:[#allocation5 + $0x3c0] ss:$8 sps:$4 sm:$0xff]  }
 0x4ae   : > { %4075 = vmatpush1.bf16.msra.mxu0 %v8204_v44  ;;  %v8232_v44 = vld [vmem:[#allocation5 + $0x3d4] ss:$8 sps:$4 sm:$0xff]  }
 0x4af   : > { %4417 = vmatpush1.bf16.msra.mxu1 %v8205_v31  ;;  %4101 = vmatprep.subr.bf16.mxu0 %v10703_v40  ;;  %v8233_v31 = vld [vmem:[#allocation5 + $0x3d0] ss:$8 sps:$4 sm:$0xff]   ;;  %v8282_v40 = vld [vmem:[#allocation5 + $0x764] ss:$8 sps:$4 sm:$0xff]  }
 0x4b1   : > { %4077 = vmatmul.mubr.bf16.vlgmr.msra.gmra.mrb[176].mxu0 %v10582_v5 }
 0x4b2   : > { %4419 = vmatmul.mubr.bf16.vlgmr.msra.gmra.mrb[152].mxu1 %v10582_v5  ;;  %4086 = vmatprep.mubr.bf16.mxu0 %v10600_v53 }
 0x4b3   : > { %4102 = vmatpush1.bf16.msra.mxu0 %v8207_v55  ;;  %4428 = vmatprep.mubr.bf16.mxu1 %v10600_v53  ;;  %v8234_v55 = vld [vmem:[#allocation5 + $0x3e4] ss:$8 sps:$4 sm:$0xff]  }
 0x4b4   : > { %4103 = vmatprep.subr.bf16.mxu0 %v8208_v15  ;;  %v8235_v15 = vld [vmem:[#allocation5 + $0x3e0] ss:$8 sps:$4 sm:$0xff]  }
 0x4b7   : > { %4104 = vmatpush1.bf16.msra.mxu0 %v8209_v60  ;;  %v8236_v60 = vld [vmem:[#allocation5 + $0x3f4] ss:$8 sps:$4 sm:$0xff]  }
 0x4b8   : > { %4105 = vmatprep.subr.bf16.mxu0 %v8210_v25  ;;  %v8237_v25 = vld [vmem:[#allocation5 + $0x3f0] ss:$8 sps:$4 sm:$0xff]  }
 0x4b9   : > { %4087 = vmatmul.mubr.bf16.gmra.mrb[180].mxu0 %v10598_v56 }
 0x4ba   : > { %4429 = vmatmul.mubr.bf16.gmra.mrb[156].mxu1 %v10598_v56  ;;  %4133 = vmatprep.mubr.bf16.mxu0 %v10584_v18 }
 0x4bb   : > { %4106 = vmatpush1.bf16.msra.mxu0 %v8211_v49  ;;  %4577 = vmatprep.mubr.bf16.mxu1 %v11366_v57  ;;  %v8238_v49 = vld [vmem:[#allocation5 + $0x504] ss:$8 sps:$4 sm:$0xff]   ;;  %v8257_v57 = vld [vmem:[#allocation5 + $0x590] ss:$8 sps:$4 sm:$0xff]  }
 0x4bc   : > { %4107 = vmatprep.subr.bf16.mxu0 %v8212_v13  ;;  %v8239_v13 = vld [vmem:[#allocation5 + $0x500] ss:$8 sps:$4 sm:$0xff]  }
 0x4bf   : > { %4108 = vmatpush1.bf16.msra.mxu0 %v8213_v51  ;;  %v8240_v51 = vld [vmem:[#allocation5 + $0x514] ss:$8 sps:$4 sm:$0xff]  }
 0x4c0   : > { %4109 = vmatprep.subr.bf16.mxu0 %v8214_v12  ;;  %v8241_v12 = vld [vmem:[#allocation5 + $0x510] ss:$8 sps:$4 sm:$0xff]  }
 0x4c3   : > { %4110 = vmatpush1.bf16.msra.mxu0 %v8215_v50  ;;  %v8242_v50 = vld [vmem:[#allocation5 + $0x524] ss:$8 sps:$4 sm:$0xff]  }
 0x4c4   : > { %4111 = vmatprep.subr.bf16.mxu0 %v8216_v4  ;;  %v8243_v4 = vld [vmem:[#allocation5 + $0x520] ss:$8 sps:$4 sm:$0xff]  }
 0x4c7   : > { %4112 = vmatpush1.bf16.msra.mxu0 %v8217_v1  ;;  %v8244_v1 = vld [vmem:[#allocation5 + $0x534] ss:$8 sps:$4 sm:$0xff]  }
 0x4c8   : > { %4113 = vmatprep.subr.bf16.mxu0 %v8218_v10  ;;  %v8245_v10 = vld [vmem:[#allocation5 + $0x530] ss:$8 sps:$4 sm:$0xff]  }
 0x4cb   : > { %4114 = vmatpush1.bf16.msra.mxu0 %v8219_v19  ;;  %v8246_v19 = vld [vmem:[#allocation5 + $0x544] ss:$8 sps:$4 sm:$0xff]  }
 0x4cc   : > { %4115 = vmatprep.subr.bf16.mxu0 %v8220_v14  ;;  %v8247_v14 = vld [vmem:[#allocation5 + $0x540] ss:$8 sps:$4 sm:$0xff]  }
 0x4cf   : > { %4116 = vmatpush1.bf16.msra.mxu0 %v8221_v34 }
 0x4d0   : > { %4117 = vmatprep.subr.bf16.mxu0 %v8222_v3 }
 0x4d3   : > { %4118 = vmatpush1.bf16.msra.mxu0 %v8223_v52  ;;  %v8248_v52 = vld [vmem:[#allocation5 + $0x554] ss:$8 sps:$4 sm:$0xff]  }
 0x4d4   : > { %4119 = vmatprep.subr.bf16.mxu0 %v8224_v24 }
 0x4d7   : > { %4120 = vmatpush1.bf16.msra.mxu0 %v8225_v39 }
 0x4d8   : > { %4121 = vmatprep.subr.bf16.mxu0 %v8226_v33 }
 0x4db   : > { %4122 = vmatpush1.bf16.msra.mxu0 %v8227_v48 }
 0x4dc   : > { %4123 = vmatprep.subr.bf16.mxu0 %v8228_v8  ;;  %v8249_v8 = vld [vmem:[#allocation5 + $0x550] ss:$8 sps:$4 sm:$0xff]  }
 0x4df   : > { %4124 = vmatpush1.bf16.msra.mxu0 %v8229_v46  ;;  %v8263_v46 = vld [vmem:[#allocation5 + $0x5c0] ss:$8 sps:$4 sm:$0xff]  }
 0x4e0   : > { %4125 = vmatprep.subr.bf16.mxu0 %v8230_v26  ;;  %v8258_v26 = vld [vmem:[#allocation5 + $0x5a4] ss:$8 sps:$4 sm:$0xff]  }
 0x4e3   : > { %4126 = vmatpush1.bf16.msra.mxu0 %v8231_v47 }
 0x4e4   : > { %4127 = vmatprep.subr.bf16.mxu0 %v8232_v44 }
 0x4e7   : > { %4128 = vmatpush1.bf16.msra.mxu0 %v8233_v31 }
 0x4e8   : > { %4129 = vmatprep.subr.bf16.mxu0 %v8234_v55  ;;  %v8260_v55 = vld [vmem:[#allocation5 + $0x5b4] ss:$8 sps:$4 sm:$0xff]  }
 0x4eb   : > { %4130 = vmatpush1.bf16.msra.mxu0 %v8235_v15  ;;  %v8250_v15 = vld [vmem:[#allocation5 + $0x564] ss:$8 sps:$4 sm:$0xff]  }
 0x4ec   : > { %4131 = vmatprep.subr.bf16.mxu0 %v8236_v60  ;;  %v8251_v60 = vld [vmem:[#allocation5 + $0x560] ss:$8 sps:$4 sm:$0xff]  }
 0x4ef   : > { %4132 = vmatpush1.bf16.msra.mxu0 %v8237_v25 }
 0x4f0   : > { %4215 = vmatprep.subr.bf16.mxu0 %v8238_v49 }
 0x4f2   : > { %4134 = vmatmul.mubr.bf16.vlgmr.msra.gmra.mrb[184].mxu0 %v10582_v5 }
 0x4f3   : > { %4143 = vmatprep.mubr.bf16.mxu0 %v10600_v53  ;;  %4216 = vmatpush1.bf16.msra.mxu0 %v8239_v13  ;;  %v8252_v13 = vld [vmem:[#allocation5 + $0x574] ss:$8 sps:$4 sm:$0xff]  }
 0x4f4   : > { %4217 = vmatprep.subr.bf16.mxu0 %v8240_v51 }
 0x4f7   : > { %4218 = vmatpush1.bf16.msra.mxu0 %v8241_v12 }
 0x4f8   : > { %4219 = vmatprep.subr.bf16.mxu0 %v8242_v50 }
 0x4fa   : > { %4144 = vmatmul.mubr.bf16.gmra.mrb[188].mxu0 %v10598_v56 }
 0x4fb   : > { %4220 = vmatpush1.bf16.msra.mxu0 %v8243_v4  ;;  %4247 = vmatprep.mubr.bf16.mxu0 %v10584_v18 }
 0x4fc   : > { %4221 = vmatprep.subr.bf16.mxu0 %v8244_v1  ;;  %v8253_v1 = vld [vmem:[#allocation5 + $0x570] ss:$8 sps:$4 sm:$0xff]  }
 0x4ff   : > { %4222 = vmatpush1.bf16.msra.mxu0 %v8245_v10  ;;  %v8261_v10 = vld [vmem:[#allocation5 + $0x5b0] ss:$8 sps:$4 sm:$0xff]  }
 0x500   : > { %4223 = vmatprep.subr.bf16.mxu0 %v8246_v19  ;;  %v8259_v19 = vld [vmem:[#allocation5 + $0x5a0] ss:$8 sps:$4 sm:$0xff]  }
 0x503   : > { %4224 = vmatpush1.bf16.msra.mxu0 %v8247_v14 }
 0x504   : > { %v10718_v34 = vpop.f32.mrb[160].mxu0  ;;  %v10720_v3 = vpop.f32.mrb[136].mxu1  ;;  %4225 = vmatprep.subr.bf16.mxu0 %v8248_v52 }
 0x505   : > { %v10722_v24 = vpop.f32.mrb[161].mxu0  ;;  %v10724_v39 = vpop.f32.mrb[137].mxu1 }
 0x506   : > { %v10726_v33 = vpop.f32.mrb[162].mxu0  ;;  %v10728_v48 = vpop.f32.mrb[138].mxu1 }
 0x507   : > { %4226 = vmatpush1.bf16.msra.mxu0 %v8249_v8  ;;  %v10734_v47 = vpop.f32.mrb[163].mxu0  ;;  %v10736_v44 = vpop.f32.mrb[139].mxu1  ;;  %v8262_v8 = vld [vmem:[#allocation5 + $0x5c4] ss:$8 sps:$4 sm:$0xff]  }
 0x508   : > { %4227 = vmatprep.subr.bf16.mxu0 %v8250_v15  ;;  %v8264_v15 = vld [vmem:[#allocation5 + $0x5d4] ss:$8 sps:$4 sm:$0xff]  }
 0x50b   : > { %4228 = vmatpush1.bf16.msra.mxu0 %v8251_v60  ;;  %v8254_v60 = vld [vmem:[#allocation5 + $0x584] ss:$8 sps:$4 sm:$0xff]  }
 0x50c   : > { %v10742_v25 = vpop.f32.mrb[164].mxu0  ;;  %v10744_v49 = vpop.f32.mrb[140].mxu1  ;;  %4229 = vmatprep.subr.bf16.mxu0 %v8252_v13  ;;  %v8255_v13 = vld [vmem:[#allocation5 + $0x580] ss:$8 sps:$4 sm:$0xff]  }
 0x50d   : > { %v10746_v51 = vpop.f32.mrb[165].mxu0  ;;  %v10748_v12 = vpop.f32.mrb[141].mxu1 }
 0x50e   : > { %v10750_v50 = vpop.f32.mrb[166].mxu0  ;;  %v10752_v4 = vpop.f32.mrb[142].mxu1 }
 0x50f   : > { %4230 = vmatpush1.bf16.msra.mxu0 %v8253_v1  ;;  %v10758_v14 = vpop.f32.mrb[167].mxu0  ;;  %v10760_v52 = vpop.f32.mrb[143].mxu1  ;;  %v8256_v1 = vld [vmem:[#allocation5 + $0x594] ss:$8 sps:$4 sm:$0xff]  }
 0x510   : > { %4231 = vmatprep.subr.bf16.mxu0 %v8254_v60  ;;  %v8265_v60 = vld [vmem:[#allocation5 + $0x5d0] ss:$8 sps:$4 sm:$0xff]  }
 0x513   : > { %4232 = vmatpush1.bf16.msra.mxu0 %v8255_v13  ;;  %v8266_v13 = vld [vmem:[#allocation5 + $0x5e4] ss:$8 sps:$4 sm:$0xff]  }
 0x514   : > { %4233 = vmatprep.subr.bf16.mxu0 %v8256_v1  ;;  %v8267_v1 = vld [vmem:[#allocation5 + $0x5e0] ss:$8 sps:$4 sm:$0xff]  }
 0x517   : > { %4234 = vmatpush1.bf16.msra.mxu0 %v8257_v57  ;;  %v8268_v57 = vld [vmem:[#allocation5 + $0x5f4] ss:$8 sps:$4 sm:$0xff]  }
 0x518   : > { %4235 = vmatprep.subr.bf16.mxu0 %v8258_v26  ;;  %v8269_v26 = vld [vmem:[#allocation5 + $0x5f0] ss:$8 sps:$4 sm:$0xff]  }
 0x51b   : > { %4236 = vmatpush1.bf16.msra.mxu0 %v8259_v19  ;;  %v8270_v19 = vld [vmem:[#allocation5 + $0x704] ss:$8 sps:$4 sm:$0xff]  }
 0x51c   : > { %4237 = vmatprep.subr.bf16.mxu0 %v8260_v55  ;;  %v8271_v55 = vld [vmem:[#allocation5 + $0x700] ss:$8 sps:$4 sm:$0xff]  }
 0x51f   : > { %4238 = vmatpush1.bf16.msra.mxu0 %v8261_v10  ;;  %v8273_v10 = vld [vmem:[#allocation5 + $0x710] ss:$8 sps:$4 sm:$0xff]  }
 0x520   : > { %4239 = vmatprep.subr.bf16.mxu0 %v8262_v8  ;;  %v8274_v8 = vld [vmem:[#allocation5 + $0x724] ss:$8 sps:$4 sm:$0xff]  }
 0x523   : > { %4240 = vmatpush1.bf16.msra.mxu0 %v8263_v46  ;;  %v8272_v46 = vld [vmem:[#allocation5 + $0x714] ss:$8 sps:$4 sm:$0xff]  }
 0x524   : > { %4241 = vmatprep.subr.bf16.mxu0 %v8264_v15  ;;  %v8275_v15 = vld [vmem:[#allocation5 + $0x720] ss:$8 sps:$4 sm:$0xff]  }
 0x527   : > { %4242 = vmatpush1.bf16.msra.mxu0 %v8265_v60  ;;  %v8276_v60 = vld [vmem:[#allocation5 + $0x734] ss:$8 sps:$4 sm:$0xff]  }
 0x528   : > { %4243 = vmatprep.subr.bf16.mxu0 %v8266_v13  ;;  %v8277_v13 = vld [vmem:[#allocation5 + $0x730] ss:$8 sps:$4 sm:$0xff]  }
 0x52b   : > { %4244 = vmatpush1.bf16.msra.mxu0 %v8267_v1  ;;  %v8278_v1 = vld [vmem:[#allocation5 + $0x744] ss:$8 sps:$4 sm:$0xff]  }
 0x52c   : > { %4245 = vmatprep.subr.bf16.mxu0 %v8268_v57  ;;  %v8279_v57 = vld [vmem:[#allocation5 + $0x740] ss:$8 sps:$4 sm:$0xff]  }
 0x52f   : > { %4246 = vmatpush1.bf16.msra.mxu0 %v8269_v26 }
 0x530   : > { %4329 = vmatprep.subr.bf16.mxu0 %v8270_v19 }
 0x532   : > { %4248 = vmatmul.mubr.bf16.vlgmr.msra.gmra.mrb[192].mxu0 %v10582_v5 }
 0x533   : > { %4257 = vmatprep.mubr.bf16.mxu0 %v10600_v53  ;;  %4330 = vmatpush1.bf16.msra.mxu0 %v8271_v55  ;;  %v8280_v55 = vld [vmem:[#allocation5 + $0x754] ss:$8 sps:$4 sm:$0xff]  }
 0x534   : > { %4331 = vmatprep.subr.bf16.mxu0 %v8272_v46 }
 0x537   : > { %4332 = vmatpush1.bf16.msra.mxu0 %v8273_v10 }
 0x538   : > { %4333 = vmatprep.subr.bf16.mxu0 %v8274_v8 }
 0x53a   : > { %4258 = vmatmul.mubr.bf16.gmra.mrb[196].mxu0 %v10598_v56 }
 0x53b   : > { %4334 = vmatpush1.bf16.msra.mxu0 %v8275_v15  ;;  %4361 = vmatprep.mubr.bf16.mxu0 %v10584_v18  ;;  %v8284_v15 = vld [vmem:[#allocation5 + $0x774] ss:$8 sps:$4 sm:$0xff]  }
 0x53c   : > { %4335 = vmatprep.subr.bf16.mxu0 %v8276_v60 }
 0x53f   : > { %4336 = vmatpush1.bf16.msra.mxu0 %v8277_v13  ;;  %v8281_v13 = vld [vmem:[#allocation5 + $0x750] ss:$8 sps:$4 sm:$0xff]  }
 0x540   : > { %4337 = vmatprep.subr.bf16.mxu0 %v8278_v1 }
 0x543   : > { %4338 = vmatpush1.bf16.msra.mxu0 %v8279_v57 }
 0x544   : > { %v10770_v26 = vpop.f32.mrb[168].mxu0  ;;  %v10772_v19 = vpop.f32.mrb[144].mxu1  ;;  %4339 = vmatprep.subr.bf16.mxu0 %v8280_v55 }
 0x545   : > { %v10774_v46 = vpop.f32.mrb[169].mxu0  ;;  %v10776_v10 = vpop.f32.mrb[145].mxu1 }
 0x546   : > { %v10778_v8 = vpop.f32.mrb[170].mxu0  ;;  %v10780_v18 = vpop.f32.mrb[146].mxu1 }
 0x547   : > { %4340 = vmatpush1.bf16.msra.mxu0 %v8281_v13  ;;  %v4027_v1 = vpop.f32.mrb[171].mxu0  ;;  %v10786_v57 = vpop.f32.mrb[147].mxu1 }
 0x548   : > { %v4041_v55 = vpack.c.bf16 %v4027_v1, %v10774_v46  ;;  %4341 = vmatprep.subr.bf16.mxu0 %v8282_v40  ;;  %v8285_v1 = vld [vmem:[#allocation5 + $0x770] ss:$8 sps:$4 sm:$0xff]  }
 0x549   : > { %v8293_v46 = vld [vmem:[#allocation5 + $0x7b0] ss:$8 sps:$4 sm:$0xff]  }
 0x54b   : > { %4342 = vmatpush1.bf16.msra.mxu0 %v8283_v35 }
 0x54c   : > { %v4031_v16 = vpop.f32.mrb[172].mxu0  ;;  %v10791_v2 = vpop.f32.mrb[148].mxu1  ;;  %4343 = vmatprep.subr.bf16.mxu0 %v8284_v15  ;;  %v8286_v15 = vld [vmem:[#allocation5 + $0x784] ss:$8 sps:$4 sm:$0xff]  }
 0x54d   : > { %v4033_v60 = vpop.f32.mrb[173].mxu0  ;;  %v10793_v61 = vpop.f32.mrb[149].mxu1 }
 0x54e   : > { %v4035_v13 = vpop.f32.mrb[174].mxu0  ;;  %v10795_v0 = vpop.f32.mrb[150].mxu1 }
 0x54f   : > { %v4042_v21 = vpack.c.bf16 %v4035_v13, %v4031_v16  ;;  %4344 = vmatpush1.bf16.msra.mxu0 %v8285_v1  ;;  %v4037_v40 = vpop.f32.mrb[175].mxu0  ;;  %v10799_v31 = vpop.f32.mrb[151].mxu1  ;;  %v8290_v16 = vld [vmem:[#allocation5 + $0x7a4] ss:$8 sps:$4 sm:$0xff]   ;;  %v8291_v13 = vld [vmem:[#allocation5 + $0x7a0] ss:$8 sps:$4 sm:$0xff]  }
 0x550   : > { %v4043_v35 = vpack.c.bf16 %v4037_v40, %v4033_v60  ;;  %4345 = vmatprep.subr.bf16.mxu0 %v8286_v15  ;;  %v8292_v1 = vld [vmem:[#allocation5 + $0x7b4] ss:$8 sps:$4 sm:$0xff]   ;;  %v8294_v60 = vld [vmem:[#allocation5 + $0x7c4] ss:$8 sps:$4 sm:$0xff]   ;;  %v8295_v40 = vld [vmem:[#allocation5 + $0x7c0] ss:$8 sps:$4 sm:$0xff]  }
 0x551   : > { %v8297_v15 = vld [vmem:[#allocation5 + $0x7d0] ss:$8 sps:$4 sm:$0xff]  }
 0x553   : > { %4346 = vmatpush1.bf16.msra.mxu0 %v8287_v28  ;;  %v8298_v28 = vld [vmem:[#allocation5 + $0x7e4] ss:$8 sps:$4 sm:$0xff]  }
 0x554   : > { %4347 = vmatprep.subr.bf16.mxu0 %v8288_v7  ;;  %v8299_v7 = vld [vmem:[#allocation5 + $0x7e0] ss:$8 sps:$4 sm:$0xff]  }
 0x557   : > { %4348 = vmatpush1.bf16.msra.mxu0 %v8289_v20  ;;  %v8300_v20 = vld [vmem:[#allocation5 + $0x7f4] ss:$8 sps:$4 sm:$0xff]  }
 0x558   : > { %4349 = vmatprep.subr.bf16.mxu0 %v8290_v16  ;;  %v8301_v16 = vld [vmem:[#allocation5 + $0x7f0] ss:$8 sps:$4 sm:$0xff]  }
 0x55b   : > { %4350 = vmatpush1.bf16.msra.mxu0 %v8291_v13  ;;  %v11428_v13 = vpack.c.bf16 %v10734_v47, %v10722_v24 }
 0x55c   : > { %4351 = vmatprep.subr.bf16.mxu0 %v8292_v1  ;;  %v11431_v1 = vpack.c.bf16 %v10750_v50, %v10742_v25 }
 0x55f   : > { %4352 = vmatpush1.bf16.msra.mxu0 %v8293_v46  ;;  %v11430_v46 = vpack.c.bf16 %v10758_v14, %v10746_v51 }
 0x560   : > { %4353 = vmatprep.subr.bf16.mxu0 %v8294_v60 }
 0x563   : > { %4354 = vmatpush1.bf16.msra.mxu0 %v8295_v40 }
 0x564   : > { %4355 = vmatprep.subr.bf16.mxu0 %v8296_v38  ;;  %v11429_v38 = vpack.c.bf16 %v10726_v33, %v10718_v34 }
 0x567   : > { %4356 = vmatpush1.bf16.msra.mxu0 %v8297_v15 }
 0x568   : > { %4357 = vmatprep.subr.bf16.mxu0 %v8298_v28 }
 0x56b   : > { %4358 = vmatpush1.bf16.msra.mxu0 %v8299_v7 }
 0x56c   : > { %4359 = vmatprep.subr.bf16.mxu0 %v8300_v20 }
 0x56f   : > { %4360 = vmatpush1.bf16.msra.mxu0 %v8301_v16 }
 0x570   : > { %4492 = vmatprep.subr.bf16.mxu0 %v11428_v13 }
 0x572   : > { %4362 = vmatmul.mubr.bf16.vlgmr.msra.gmra.mrb[200].mxu0 %v10582_v5  ;;  %v11432_v5 = vpack.c.bf16 %v10778_v8, %v10770_v26 }
 0x573   : > { %4371 = vmatprep.mubr.bf16.mxu0 %v10600_v53  ;;  %4493 = vmatpush1.bf16.msra.mxu0 %v11429_v38 }
 0x574   : > { %4494 = vmatprep.subr.bf16.mxu0 %v11430_v46 }
 0x577   : > { %4495 = vmatpush1.bf16.msra.mxu0 %v11431_v1 }
 0x578   : > { %4496 = vmatprep.subr.bf16.mxu0 %v4041_v55 }
 0x57a   : > { %4372 = vmatmul.mubr.bf16.gmra.mrb[204].mxu0 %v10598_v56 }
 0x57b   : > { %4497 = vmatpush1.bf16.msra.mxu0 %v11432_v5 }
 0x57c   : > { %4498 = vmatprep.subr.bf16.mxu0 %v4043_v35 }
 0x57f   : > { %4499 = vmatpush1.bf16.msra.mxu0 %v4042_v21 }
 0x584   : > { %v4078_v53 = vpop.f32.mrb[176].mxu0 }
 0x585   : > { %v4420_v34 = vpop.f32.mrb[152].mxu1  ;;  %v4080_v24 = vpop.f32.mrb[177].mxu0 }
 0x586   : > { %v4422_v33 = vpop.f32.mrb[153].mxu1  ;;  %v4082_v47 = vpop.f32.mrb[178].mxu0 }
 0x587   : > { %v4097_v51 = vpack.c.bf16 %v4082_v47, %v4078_v53  ;;  %v4424_v14 = vpop.f32.mrb[154].mxu1  ;;  %v4084_v60 = vpop.f32.mrb[179].mxu0 }
 0x588   : > { %v4439_v40 = vpack.c.bf16 %v4424_v14, %v4420_v34  ;;  %v4098_v25 = vpack.c.bf16 %v4084_v60, %v4080_v24  ;;  %v4426_v50 = vpop.f32.mrb[155].mxu1 }
 0x589   : > { %v4440_v55 = vpack.c.bf16 %v4426_v50, %v4422_v33  ;;  %v4447_v50 = vld [vmem:[#allocation8 + $0x20] sm:$0xff] }
 0x58a   : > { %4500 = vmatprep.subr.bf16.mxu0 %v4098_v25  ;;  %v4444_v25 = vld [vmem:[#allocation8 + $0x8] sm:$0xff] }
 0x58b   : > { %4545 = vmatprep.subr.bf16.mxu1 %v4440_v55  ;;  %4501 = vmatpush1.bf16.msra.mxu0 %v4097_v51  ;;  %v4445_v55 = vld [vmem:[#allocation8 + $0x10] sm:$0xff] }
 0x58c   : > { %4546 = vmatpush1.bf16.msra.mxu1 %v4439_v40  ;;  %v4088_v56 = vpop.f32.mrb[180].mxu0 }
 0x58d   : > { %v4430_v26 = vpop.f32.mrb[156].mxu1  ;;  %v4090_v8 = vpop.f32.mrb[181].mxu0 }
 0x58e   : > { %v4432_v21 = vpop.f32.mrb[157].mxu1  ;;  %v4092_v35 = vpop.f32.mrb[182].mxu0 }
 0x58f   : > { %v4099_v15 = vpack.c.bf16 %v4092_v35, %v4088_v56  ;;  %v4434_v28 = vpop.f32.mrb[158].mxu1  ;;  %v4094_v7 = vpop.f32.mrb[183].mxu0  ;;  %v4456_v56 = vpack.c.bf16 %v4447_v50, %v4444_v25  ;;  %v11434_v35 = vpack.c.bf16 %v10728_v48, %v10720_v3 }
 0x590   : > { %v4441_v20 = vpack.c.bf16 %v4434_v28, %v4430_v26  ;;  %v4100_v16 = vpack.c.bf16 %v4094_v7, %v4090_v8  ;;  %v4436_v13 = vpop.f32.mrb[159].mxu1  ;;  %v4448_v26 = vld [vmem:[#allocation8 + $0x28] sm:$0xff]  ;;  %v11433_v8 = vpack.c.bf16 %v10736_v44, %v10724_v39  ;;  %v4451_v28 = vld [vmem:[#allocation8 + $0x40] sm:$0xff]  ;;  %v4454_v7 = vld [vmem:[#allocation8 + $0x58] sm:$0xff]  ;;  %v11437_v39 = vpack.c.bf16 %v10752_v4, %v10744_v49 }
 0x591   : > { %v4442_v38 = vpack.c.bf16 %v4436_v13, %v4432_v21  ;;  %v4457_v21 = vpack.c.bf16 %v4448_v26, %v4445_v55  ;;  %4524 = vmatprep.mubr.bf16.mxu0 %v4456_v56  ;;  %v11438_v49 = vpack.c.bf16 %v10786_v57, %v10776_v10  ;;  %v11439_v4 = vpack.c.bf16 %v10780_v18, %v10772_v19  ;;  %v4443_v55 = vld [vmem:[#allocation8] sm:$0xff]  ;;  %v4450_v56 = vld [vmem:[#allocation8 + $0x38] sm:$0xff]  ;;  %v4453_v26 = vld [vmem:[#allocation8 + $0x50] sm:$0xff] }
 0x592   : > { %4502 = vmatprep.subr.bf16.mxu0 %v4100_v16  ;;  %v4460_v16 = vpack.c.bf16 %v4454_v7, %v4451_v28 }
 0x593   : > { %4547 = vmatprep.subr.bf16.mxu1 %v4442_v38  ;;  %4503 = vmatpush1.bf16.msra.mxu0 %v4099_v15  ;;  %v11435_v15 = vmov 0  }
 0x594   : > { %4548 = vmatpush1.bf16.msra.mxu1 %v4441_v20  ;;  %v11436_v20 = vpack.c.bf16 %v10760_v52, %v10748_v12 }
 0x597   : > { %7179 = vmatmul.mubr.msk.bf16.vlgmr.msra.gmra.mrb[160].mxu1 %vm4485_vm8, %v4457_v21  ;;  %v4449_v21 = vld [vmem:[#allocation8 + $0x30] sm:$0xff] }
 0x598   : > { %4587 = vmatprep.mubr.bf16.mxu1 %v11435_v15 }
 0x59f   : > { %7180 = vmatmul.mubr.msk.bf16.gmra.mrb[164].mxu1 %vm4485_vm8, %v4460_v16  ;;  %v4473_v16 = vpop.permute.xlu1 %4472 }
 0x5a0   : > { %4842 = vmatprep.mubr.bf16.mxu1 %v11435_v15 }
 0x5c5   : > { %v4135_v46 = vpop.f32.mrb[184].mxu0 }
 0x5c6   : > { %v4137_v1 = vpop.f32.mrb[185].mxu0 }
 0x5c7   : > { %v4139_v5 = vpop.f32.mrb[186].mxu0 }
 0x5c8   : > { %v4154_v53 = vpack.c.bf16 %v4139_v5, %v4135_v46  ;;  %v4141_v34 = vpop.f32.mrb[187].mxu0 }
 0x5c9   : > { %v4155_v24 = vpack.c.bf16 %v4141_v34, %v4137_v1 }
 0x5cb   : > { %4504 = vmatprep.subr.bf16.mxu0 %v4155_v24  ;;  %v11440_v24 = vpack.c.bf16 %v10799_v31, %v10793_v61  ;;  %v4446_v61 = vld [vmem:[#allocation8 + $0x18] sm:$0xff] }
 0x5cc   : > { %4505 = vmatpush1.bf16.msra.mxu0 %v4154_v53 }
 0x5cd   : > { %v4145_v33 = vpop.f32.mrb[188].mxu0 }
 0x5ce   : > { %v4147_v47 = vpop.f32.mrb[189].mxu0 }
 0x5cf   : > { %v4149_v51 = vpop.f32.mrb[190].mxu0 }
 0x5d0   : > { %v4156_v14 = vpack.c.bf16 %v4149_v51, %v4145_v33  ;;  %v4151_v60 = vpop.f32.mrb[191].mxu0  ;;  %v11441_v33 = vpack.c.bf16 %v10795_v0, %v10791_v2  ;;  %v4455_v0 = vpack.c.bf16 %v4446_v61, %v4443_v55  ;;  %v4459_v2 = vpack.c.bf16 %v4453_v26, %v4450_v56 }
 0x5d1   : > { %v4157_v40 = vpack.c.bf16 %v4151_v60, %v4147_v47 }
 0x5d3   : > { %4506 = vmatprep.subr.bf16.mxu0 %v4157_v40 }
 0x5d4   : > { %4507 = vmatpush1.bf16.msra.mxu0 %v4156_v14 }
 0x5d5   : > { %4508 = vmatprep.subr.bf16.mxu0 %v11433_v8  ;;  %v8302_v8 = vld [vmem:[#allocation5 + $0x104] ss:$8 sps:$4 sm:$0xff]  }
 0x5d8   : > { %4509 = vmatpush1.bf16.msra.mxu0 %v11434_v35  ;;  %v4452_v35 = vld [vmem:[#allocation8 + $0x48] sm:$0xff] }
 0x5d9   : > { %4510 = vmatprep.subr.bf16.mxu0 %v11436_v20  ;;  %v4458_v28 = vpack.c.bf16 %v4452_v35, %v4449_v21 }
 0x5dc   : > { %4511 = vmatpush1.bf16.msra.mxu0 %v11437_v39 }
 0x605   : > { %v4249_v44 = vpop.f32.mrb[192].mxu0 }
 0x606   : > { %v4251_v3 = vpop.f32.mrb[193].mxu0 }
 0x607   : > { %v4253_v48 = vpop.f32.mrb[194].mxu0 }
 0x608   : > { %v4268_v13 = vpack.c.bf16 %v4253_v48, %v4249_v44  ;;  %v4255_v38 = vpop.f32.mrb[195].mxu0 }
 0x609   : > { %v4269_v46 = vpack.c.bf16 %v4255_v38, %v4251_v3 }
 0x60b   : > { %4512 = vmatprep.subr.bf16.mxu0 %v4269_v46 }
 0x60c   : > { %4513 = vmatpush1.bf16.msra.mxu0 %v4268_v13 }
 0x60d   : > { %v4259_v1 = vpop.f32.mrb[196].mxu0 }
 0x60e   : > { %v4261_v12 = vpop.f32.mrb[197].mxu0 }
 0x60f   : > { %v4263_v52 = vpop.f32.mrb[198].mxu0 }
 0x610   : > { %v4270_v5 = vpack.c.bf16 %v4263_v52, %v4259_v1  ;;  %v4265_v53 = vpop.f32.mrb[199].mxu0 }
 0x611   : > { %v4271_v34 = vpack.c.bf16 %v4265_v53, %v4261_v12 }
 0x613   : > { %4514 = vmatprep.subr.bf16.mxu0 %v4271_v34 }
 0x614   : > { %4515 = vmatpush1.bf16.msra.mxu0 %v4270_v5 }
 0x615   : > { %4516 = vmatprep.subr.bf16.mxu0 %v11438_v49 }
 0x618   : > { %4517 = vmatpush1.bf16.msra.mxu0 %v11439_v4 }
 0x619   : > { %4518 = vmatprep.subr.bf16.mxu0 %v11440_v24 }
 0x61c   : > { %4519 = vmatpush1.bf16.msra.mxu0 %v11441_v33 }
 0x645   : > { %v4363_v47 = vpop.f32.mrb[200].mxu0 }
 0x646   : > { %v4365_v51 = vpop.f32.mrb[201].mxu0 }
 0x647   : > { %v4367_v14 = vpop.f32.mrb[202].mxu0 }
 0x648   : > { %v4382_v60 = vpack.c.bf16 %v4367_v14, %v4363_v47  ;;  %v4369_v40 = vpop.f32.mrb[203].mxu0 }
 0x649   : > { %v4383_v25 = vpack.c.bf16 %v4369_v40, %v4365_v51 }
 0x64b   : > { %4520 = vmatprep.subr.bf16.mxu0 %v4383_v25 }
 0x64c   : > { %4521 = vmatpush1.bf16.msra.mxu0 %v4382_v60  ;;  %v4483_v60 = vpop.permute.xlu1 %4482 }
 0x64d   : > { %v4373_v10 = vpop.f32.mrb[204].mxu0 }
 0x64e   : > { %v4375_v57 = vpop.f32.mrb[205].mxu0 }
 0x64f   : > { %v4377_v19 = vpop.f32.mrb[206].mxu0 }
 0x650   : > { %v4384_v18 = vpack.c.bf16 %v4377_v19, %v4373_v10  ;;  %v4379_v50 = vpop.f32.mrb[207].mxu0 }
 0x651   : > { %v4385_v31 = vpack.c.bf16 %v4379_v50, %v4375_v57 }
 0x653   : > { %4522 = vmatprep.subr.bf16.mxu0 %v4385_v31 }
 0x654   : > { %4523 = vmatpush1.bf16.msra.mxu0 %v4384_v18 }
 0x655   : > { %5200 = vmatprep.subr.bf16.mxu0 %v8302_v8 }
 0x657   : > { %4525 = vmatmul.mubr.bf16.vlgmr.msra.gmra.mrb[208].mxu0 %v4455_v0 }
 0x658   : > { %4534 = vmatprep.mubr.bf16.mxu0 %v4459_v2  ;;  %5201 = vmatpush1.bf16.msra.mxu0 %v10591_v43  ;;  %v11442_v43 = vld [vmem:[#allocation20_spill] sm:$0xff] }
 0x659   : > { %5202 = vmatprep.subr.bf16.mxu0 %v10595_v63  ;;  %v11443_v63 = vld [vmem:[#allocation21_spill] sm:$0xff] }
 0x65c   : > { %5203 = vmatpush1.bf16.msra.mxu0 %v10602_v58  ;;  %v11444_v58 = vld [vmem:[#allocation22_spill] sm:$0xff] }
 0x65d   : > { %5204 = vmatprep.subr.bf16.mxu0 %v10605_v29  ;;  %v11445_v29 = vld [vmem:[#allocation23_spill] sm:$0xff] }
 0x65f   : > { %4535 = vmatmul.mubr.bf16.gmra.mrb[212].mxu0 %v4458_v28 }
 0x660   : > { %5205 = vmatpush1.bf16.msra.mxu0 %v10612_v30  ;;  %v11446_v30 = vld [vmem:[#allocation24_spill] sm:$0xff] }
 0x661   : > { %5206 = vmatprep.subr.bf16.mxu0 %v10617_v59  ;;  %v11447_v59 = vld [vmem:[#allocation25_spill] sm:$0xff] }
 0x664   : > { %5207 = vmatpush1.bf16.msra.mxu0 %v10620_v42  ;;  %v11448_v42 = vld [vmem:[#allocation26_spill] sm:$0xff] }
 0x665   : > { %5208 = vmatprep.subr.bf16.mxu0 %v10623_v27  ;;  %v11449_v27 = vld [vmem:[#allocation27_spill] sm:$0xff] }
 0x668   : > { %5209 = vmatpush1.bf16.msra.mxu0 %v10626_v17  ;;  %v11450_v17 = vld [vmem:[#allocation28_spill] sm:$0xff] }
 0x669   : > { %5210 = vmatprep.subr.bf16.mxu0 %v10629_v41  ;;  %v11451_v41 = vld [vmem:[#allocation29_spill] sm:$0xff] }
 0x66c   : > { %5211 = vmatpush1.bf16.msra.mxu0 %v10632_v32  ;;  %v11452_v32 = vld [vmem:[#allocation30_spill] sm:$0xff] }
 0x66d   : > { %5212 = vmatprep.subr.bf16.mxu0 %v10635_v9  ;;  %v4579_v9 = vpop.f32.mrb[160].mxu1 }
 0x670   : > { %5213 = vmatpush1.bf16.msra.mxu0 %v10638_v22  ;;  %v4581_v22 = vpop.f32.mrb[161].mxu1 }
 0x671   : > { %5214 = vmatprep.subr.bf16.mxu0 %v10641_v45  ;;  %v4583_v45 = vpop.f32.mrb[162].mxu1 }
 0x674   : > { %5215 = vmatpush1.bf16.msra.mxu0 %v10644_v23  ;;  %v4585_v23 = vpop.f32.mrb[163].mxu1 }
 0x675   : > { %5216 = vmatprep.subr.bf16.mxu0 %v10647_v6  ;;  %v4589_v6 = vpop.f32.mrb[164].mxu1 }
 0x678   : > { %5217 = vmatpush1.bf16.msra.mxu0 %v10650_v37  ;;  %v4591_v37 = vpop.f32.mrb[165].mxu1 }
 0x679   : > { %5218 = vmatprep.subr.bf16.mxu0 %v10653_v54  ;;  %v4593_v54 = vpop.f32.mrb[166].mxu1 }
 0x67c   : > { %5219 = vmatpush1.bf16.msra.mxu0 %v10656_v62  ;;  %v4595_v62 = vpop.f32.mrb[167].mxu1 }
 0x67d   : > { %5220 = vmatprep.subr.bf16.mxu0 %v10659_v36  ;;  %v4468_v36 = vpop.permute.xlu0 %4467 }
 0x680   : > { %5221 = vmatpush1.bf16.msra.mxu0 %v10662_v11 }
 0x681   : > { %5222 = vmatprep.subr.bf16.mxu0 %v11442_v43  ;;  %v4478_v49 = vpop.permute.xlu0 %4477 }
 0x684   : > { %5223 = vmatpush1.bf16.msra.mxu0 %v11443_v63 }
 0x685   : > { %5224 = vmatprep.subr.bf16.mxu0 %v11444_v58 }
 0x688   : > { %5225 = vmatpush1.bf16.msra.mxu0 %v11445_v29 }
 0x689   : > { %5226 = vmatprep.subr.bf16.mxu0 %v11446_v30 }
 0x68c   : > { %5227 = vmatpush1.bf16.msra.mxu0 %v11447_v59 }
 0x68d   : > { %5228 = vmatprep.subr.bf16.mxu0 %v11448_v42 }
 0x690   : > { %5229 = vmatpush1.bf16.msra.mxu0 %v11449_v27 }
 0x691   : > { %5230 = vmatprep.subr.bf16.mxu0 %v11450_v17 }
 0x694   : > { %5231 = vmatpush1.bf16.msra.mxu0 %v11451_v41 }
 0x695   : > { %5314 = vmatprep.subr.bf16.mxu0 %v11452_v32 }
 0x72a   : > { %v4526_v11 = vpop.f32.mrb[208].mxu0 }
 0x72b   : > { %v4527_v7 = vadd.f32 %v4526_v11, %v4468_v36  ;;  %v4528_v20 = vpop.f32.mrb[209].mxu0 }
 0x72c   : > { %v4529_v39 = vadd.f32 %v4528_v20, %v4468_v36  ;;  %v4530_v44 = vpop.f32.mrb[210].mxu0 }
 0x72d   : > { %v4580_v3 = vadd.f32 %v4579_v9, %v4527_v7  ;;  %v4531_v48 = vadd.f32 %v4530_v44, %v4473_v16  ;;  %v4532_v13 = vpop.f32.mrb[211].mxu0 }
 0x72e   : > { %v4582_v38 = vadd.f32 %v4581_v22, %v4529_v39  ;;  %v4533_v46 = vadd.f32 %v4532_v13, %v4473_v16 }
 0x72f   : > { %v4606_v1 = vmin.f32 %v4580_v3, 0.0  ;;  %v4584_v12 = vadd.f32 %v4583_v45, %v4531_v48  ;;  %vm4598_vm9 = vcmp.gt.f32.partialorder %v4580_v3, 0.0 }
 0x730   : > { %v4607_v52 = vmin.f32 %v4582_v38, 0.0  ;;  %v4586_v5 = vadd.f32 %v4585_v23, %v4533_v46  ;;  %vm4599_vm10 = vcmp.gt.f32.partialorder %v4582_v38, 0.0 }
 0x731   : > { %v4614_v53 = vmul.f32 1.442695, %v4606_v1  ;;  %v4608_v34 = vmin.f32 %v4584_v12, 0.0  ;;  %vm4600_vm11 = vcmp.gt.f32.partialorder %v4584_v12, 0.0 }
 0x732   : > { %v4616_v4 = vmul.f32 1.442695, %v4607_v52  ;;  %v4609_v24 = vmin.f32 %v4586_v5, 0.0  ;;  %v4536_v33 = vpop.f32.mrb[212].mxu0  ;;  %vm4601_vm12 = vcmp.gt.f32.partialorder %v4586_v5, 0.0 }
 0x733   : > { %7886 = vpow2.f32 %v4614_v53  ;;  %v4618_v47 = vmul.f32 1.442695, %v4608_v34  ;;  %v4537_v51 = vadd.f32 %v4536_v33, %v4478_v49  ;;  %v4538_v14 = vpop.f32.mrb[213].mxu0 }
 0x734   : > { %7888 = vpow2.f32 %v4616_v4  ;;  %v4620_v40 = vmul.f32 1.442695, %v4609_v24  ;;  %v4539_v25 = vadd.f32 %v4538_v14, %v4478_v49  ;;  %v4540_v10 = vpop.f32.mrb[214].mxu0  ;;  %v4662_v14 = vld [vmem:[%s11453_s7] sm:$0xff] }
 0x735   : > { %7890 = vpow2.f32 %v4618_v47  ;;  %v4590_v57 = vadd.f32 %v4589_v6, %v4537_v51  ;;  %v4541_v19 = vadd.f32 %v4540_v10, %v4483_v60  ;;  %v4542_v18 = vpop.f32.mrb[215].mxu0  ;;  %v8303_v10 = vld [vmem:[#allocation5 + $0x4] ss:$8 sps:$4 sm:$0xff]  }
 0x736   : > { %7892 = vpow2.f32 %v4620_v40  ;;  %v4592_v50 = vadd.f32 %v4591_v37, %v4539_v25  ;;  %v4543_v55 = vadd.f32 %v4542_v18, %v4483_v60  ;;  %v4663_v60 = vld [vmem:[%s11453_s7 + $0x8] sm:$0xff] }
 0x737   : > { %v4610_v61 = vmin.f32 %v4590_v57, 0.0  ;;  %v4594_v31 = vadd.f32 %v4593_v54, %v4541_v19  ;;  %vm4602_vm13 = vcmp.gt.f32.partialorder %v4590_v57, 0.0  ;;  %v4678_v25 = vpack.c.bf16 %v4663_v60, %v4662_v14  ;;  %v4665_v19 = vld [vmem:[%s11453_s7 + $0x18] sm:$0xff]  ;;  %v8304_v18 = vld [vmem:[#allocation5] ss:$8 sps:$4 sm:$0xff]  }
 0x738   : > { %v4611_v56 = vmin.f32 %v4592_v50, 0.0  ;;  %v4596_v26 = vadd.f32 %v4595_v62, %v4543_v55  ;;  %vm4603_vm14 = vcmp.gt.f32.partialorder %v4592_v50, 0.0 }
 0x739   : > { %v4622_v0 = vmul.f32 1.442695, %v4610_v61  ;;  %v4612_v2 = vmin.f32 %v4594_v31, 0.0  ;;  %vm4604_vm15 = vcmp.gt.f32.partialorder %v4594_v31, 0.0  ;;  %v8306_v61 = vld [vmem:[#allocation5 + $0x10] ss:$8 sps:$4 sm:$0xff]  }
 0x73a   : > { %v4624_v8 = vmul.f32 1.442695, %v4611_v56  ;;  %v4613_v21 = vmin.f32 %v4596_v26, 0.0  ;;  %vm4605_vm0 = vcmp.gt.f32.partialorder %v4596_v26, 0.0  ;;  %v4666_v56 = vld [vmem:[%s11453_s7 + $0x20] sm:$0xff] }
 0x73b   : > { %7894 = vpow2.f32 %v4622_v0  ;;  %v4626_v35 = vmul.f32 1.442695, %v4612_v2  ;;  %v8308_v0 = vld [vmem:[#allocation5 + $0x20] ss:$8 sps:$4 sm:$0xff]   ;;  %v8309_v2 = vld [vmem:[#allocation5 + $0x34] ss:$8 sps:$4 sm:$0xff]  }
 0x73c   : > { %7896 = vpow2.f32 %v4624_v8  ;;  %v4628_v28 = vmul.f32 1.442695, %v4613_v21  ;;  %v8310_v21 = vld [vmem:[#allocation5 + $0x30] ss:$8 sps:$4 sm:$0xff]  }
 0x73d   : > { %v7887_v43 = vpop.eup %7886  ;;  %7898 = vpow2.f32 %v4626_v35  ;;  %v8311_v35 = vld [vmem:[#allocation5 + $0x44] ss:$8 sps:$4 sm:$0xff]  }
 0x73e   : > { %v7889_v63 = vpop.eup %7888  ;;  %v7181_v58 = vadd.f32 -1.0, %v7887_v43  ;;  %7900 = vpow2.f32 %v4628_v28  ;;  %v4668_v28 = vld [vmem:[%s11453_s7 + $0x30] sm:$0xff]  ;;  %v4669_v43 = vld [vmem:[%s11453_s7 + $0x38] sm:$0xff] }
 0x73f   : > { %v7891_v29 = vpop.eup %7890  ;;  %v7182_v30 = vadd.f32 -1.0, %v7889_v63  ;;  %v8312_v63 = vld [vmem:[#allocation5 + $0x40] ss:$8 sps:$4 sm:$0xff]  }
 0x740   : > { %v7893_v59 = vpop.eup %7892  ;;  %v4638_v42 = vmul.f32 1.6732632, %v7181_v58  ;;  %v7183_v27 = vadd.f32 -1.0, %v7891_v29  ;;  %v8313_v58 = vld [vmem:[#allocation5 + $0x54] ss:$8 sps:$4 sm:$0xff]   ;;  %v4681_v29 = vpack.c.bf16 %v4669_v43, %v4668_v28 }
 0x741   : > { %v7184_v17 = vadd.f32 -1.0, %v7893_v59  ;;  %v4639_v41 = vmul.f32 1.6732632, %v7182_v30  ;;  %v8314_v30 = vld [vmem:[#allocation5 + $0x50] ss:$8 sps:$4 sm:$0xff]  }
 0x742   : > { %v4646_v32 = vsel %vm4598_vm9, %v4580_v3, %v4638_v42  ;;  %v4640_v9 = vmul.f32 1.6732632, %v7183_v27  ;;  %v8315_v59 = vld [vmem:[#allocation5 + $0x64] ss:$8 sps:$4 sm:$0xff]  }
 0x743   : > { %v4641_v22 = vmul.f32 1.6732632, %v7184_v17  ;;  %v4647_v45 = vsel %vm4599_vm10, %v4582_v38, %v4639_v41  ;;  %v4654_v37 = vmul.f32 1.050701, %v4646_v32  ;;  %v4670_v42 = vld [vmem:[%s11453_s7 + $0x40] sm:$0xff]  ;;  %v4671_v27 = vld [vmem:[%s11453_s7 + $0x48] sm:$0xff] }
 0x744   : > { %v4648_v23 = vsel %vm4600_vm11, %v4584_v12, %v4640_v9  ;;  %v4655_v7 = vmul.f32 1.050701, %v4647_v45  ;;  %v8316_v17 = vld [vmem:[#allocation5 + $0x60] ss:$8 sps:$4 sm:$0xff]   ;;  %v8317_v41 = vld [vmem:[#allocation5 + $0x74] ss:$8 sps:$4 sm:$0xff]   ;;  %v4682_v32 = vpack.c.bf16 %v4671_v27, %v4670_v42 }
 0x745   : > { %v7895_v6 = vpop.eup %7894  ;;  %v4656_v54 = vmul.f32 1.050701, %v4648_v23  ;;  %v4649_v62 = vsel %vm4601_vm12, %v4586_v5, %v4641_v22  ;;  %v8318_v9 = vld [vmem:[#allocation5 + $0x70] ss:$8 sps:$4 sm:$0xff]   ;;  %v8319_v22 = vld [vmem:[#allocation5 + $0x84] ss:$8 sps:$4 sm:$0xff]  }
 0x746   : > { %v7897_v36 = vpop.eup %7896  ;;  %v7185_v11 = vadd.f32 -1.0, %v7895_v6  ;;  %v4657_v20 = vmul.f32 1.050701, %v4649_v62  ;;  %v4672_v45 = vld [vmem:[%s11453_s7 + $0x50] sm:$0xff]  ;;  %v4673_v23 = vld [vmem:[%s11453_s7 + $0x58] sm:$0xff] }
 0x747   : > { %v7899_v16 = vpop.eup %7898  ;;  %v7186_v39 = vadd.f32 -1.0, %v7897_v36  ;;  %v4686_v44 = vpack.c.bf16 %v4656_v54, %v4654_v37  ;;  %v8320_v6 = vld [vmem:[#allocation5 + $0x80] ss:$8 sps:$4 sm:$0xff]   ;;  %v8321_v37 = vld [vmem:[#allocation5 + $0x94] ss:$8 sps:$4 sm:$0xff]   ;;  %v4683_v54 = vpack.c.bf16 %v4673_v23, %v4672_v45 }
 0x748   : > { %v7901_v48 = vpop.eup %7900  ;;  %v4642_v3 = vmul.f32 1.6732632, %v7185_v11  ;;  %v7187_v13 = vadd.f32 -1.0, %v7899_v16  ;;  %v4687_v46 = vpack.c.bf16 %v4657_v20, %v4655_v7  ;;  %v8322_v62 = vld [vmem:[#allocation5 + $0x90] ss:$8 sps:$4 sm:$0xff]   ;;  %v4674_v11 = vld [vmem:[%s11453_s7 + $0x60] sm:$0xff] }
 0x749   : > { %v7188_v1 = vadd.f32 -1.0, %v7901_v48  ;;  %v4643_v38 = vmul.f32 1.6732632, %v7186_v39  ;;  %v8323_v36 = vld [vmem:[#allocation5 + $0xa4] ss:$8 sps:$4 sm:$0xff]  }
 0x74a   : > { %v4650_v12 = vsel %vm4602_vm13, %v4590_v57, %v4642_v3  ;;  %v4644_v52 = vmul.f32 1.6732632, %v7187_v13  ;;  %4810 = vmatprep.subr.bf16.mxu1 %v4687_v46  ;;  %v4664_v57 = vld [vmem:[%s11453_s7 + $0x10] sm:$0xff]  ;;  %v4675_v7 = vld [vmem:[%s11453_s7 + $0x68] sm:$0xff]  ;;  %v4677_v13 = vld [vmem:[%s11453_s7 + $0x78] sm:$0xff] }
 0x74b   : > { %4811 = vmatpush1.bf16.msra.mxu1 %v4686_v44  ;;  %v4645_v5 = vmul.f32 1.6732632, %v7188_v1  ;;  %v4651_v53 = vsel %vm4603_vm14, %v4592_v50, %v4643_v38  ;;  %v4658_v49 = vmul.f32 1.050701, %v4650_v12  ;;  %v8305_v50 = vld [vmem:[#allocation5 + $0x14] ss:$8 sps:$4 sm:$0xff]   ;;  %v4679_v55 = vpack.c.bf16 %v4665_v19, %v4664_v57 }
 0x74c   : > { %v4652_v34 = vsel %vm4604_vm15, %v4594_v31, %v4644_v52  ;;  %v4659_v33 = vmul.f32 1.050701, %v4651_v53  ;;  %v8307_v31 = vld [vmem:[#allocation5 + $0x24] ss:$8 sps:$4 sm:$0xff]   ;;  %v8324_v20 = vld [vmem:[#allocation5 + $0xa0] ss:$8 sps:$4 sm:$0xff]   ;;  %v4684_v39 = vpack.c.bf16 %v4675_v7, %v4674_v11 }
 0x74d   : > { %v4660_v4 = vmul.f32 1.050701, %v4652_v34  ;;  %v4653_v24 = vsel %vm4605_vm0, %v4596_v26, %v4645_v5  ;;  %v4667_v26 = vld [vmem:[%s11453_s7 + $0x28] sm:$0xff]  ;;  %v8325_v16 = vld [vmem:[#allocation5 + $0xb4] ss:$8 sps:$4 sm:$0xff]  }
 0x74e   : > { %v4661_v47 = vmul.f32 1.050701, %v4653_v24  ;;  %v4680_v8 = vpack.c.bf16 %v4667_v26, %v4666_v56  ;;  %v8326_v44 = vld [vmem:[#allocation5 + $0xb0] ss:$8 sps:$4 sm:$0xff]   ;;  %v8327_v48 = vld [vmem:[#allocation5 + $0xc4] ss:$8 sps:$4 sm:$0xff]   ;;  %v4714_v24 = vpop.permute.xlu1 %4713 }
 0x74f   : > { %v4688_v51 = vpack.c.bf16 %v4660_v4, %v4658_v49  ;;  %v4676_v3 = vld [vmem:[%s11453_s7 + $0x70] sm:$0xff]  ;;  %v8328_v46 = vld [vmem:[#allocation5 + $0xc0] ss:$8 sps:$4 sm:$0xff]   ;;  %v8331_v52 = vld [vmem:[#allocation5 + $0xe4] ss:$8 sps:$4 sm:$0xff]   ;;  %v4709_v4 = vpop.permute.xlu0 %4708 }
 0x750   : > { %v4689_v40 = vpack.c.bf16 %v4661_v47, %v4659_v33  ;;  %v8329_v1 = vld [vmem:[#allocation5 + $0xd4] ss:$8 sps:$4 sm:$0xff]   ;;  %v4685_v38 = vpack.c.bf16 %v4677_v13, %v4676_v3  ;;  %v8330_v12 = vld [vmem:[#allocation5 + $0xd0] ss:$8 sps:$4 sm:$0xff]   ;;  %v8332_v5 = vld [vmem:[#allocation5 + $0xe0] ss:$8 sps:$4 sm:$0xff]  }
 0x751   : > { %v8333_v53 = vld [vmem:[#allocation5 + $0xf4] ss:$8 sps:$4 sm:$0xff]   ;;  %v8334_v34 = vld [vmem:[#allocation5 + $0xf0] ss:$8 sps:$4 sm:$0xff]   ;;  %v8335_v49 = vld [vmem:[#allocation5 + $0x204] ss:$8 sps:$4 sm:$0xff]  }
 0x752   : > { %4812 = vmatprep.subr.bf16.mxu1 %v4689_v40  ;;  %v4734_v14 = vpop.permute.xlu1 %4733 }
 0x753   : > { %4813 = vmatpush1.bf16.msra.mxu1 %v4688_v51  ;;  %v4729_v33 = vpop.permute.xlu0 %4728 }
 0x754   : > { %5143 = vmatprep.subr.bf16.mxu1 %v8303_v10 }
 0x756   : > { %7189 = vmatmul.mubr.msk.bf16.vlgmr.msra.gmra.mrb[168].mxu1 %vm4485_vm8, %v4678_v25  ;;  %v4754_v10 = vpop.permute.xlu1 %4753 }
 0x757   : > { %4852 = vmatprep.mubr.bf16.mxu1 %v11435_v15  ;;  %5144 = vmatpush1.bf16.msra.mxu1 %v8304_v18  ;;  %v4749_v25 = vpop.permute.xlu0 %4748 }
 0x758   : > { %5145 = vmatprep.subr.bf16.mxu1 %v8305_v50 }
 0x75b   : > { %5146 = vmatpush1.bf16.msra.mxu1 %v8306_v61  ;;  %v10946_v61 = vpop.permute.xlu1 %4773 }
 0x75c   : > { %5147 = vmatprep.subr.bf16.mxu1 %v8307_v31 }
 0x75e   : > { %7190 = vmatmul.mubr.msk.bf16.gmra.mrb[172].mxu1 %vm4485_vm8, %v4679_v55  ;;  %v10944_v55 = vpop.permute.xlu0 %4768 }
 0x75f   : > { %4862 = vmatprep.mubr.bf16.mxu1 %v11435_v15  ;;  %5148 = vmatpush1.bf16.msra.mxu1 %v8308_v0 }
 0x760   : > { %5149 = vmatprep.subr.bf16.mxu1 %v8309_v2 }
 0x762   : > { %v4719_v2 = vpop.permute.xlu0 %4718 }
 0x763   : > { %5150 = vmatpush1.bf16.msra.mxu1 %v8310_v21 }
 0x764   : > { %5151 = vmatprep.subr.bf16.mxu1 %v8311_v35 }
 0x766   : > { %7191 = vmatmul.mubr.msk.bf16.gmra.mrb[176].mxu1 %vm4485_vm8, %v4680_v8 }
 0x767   : > { %4872 = vmatprep.mubr.bf16.mxu1 %v11435_v15  ;;  %5152 = vmatpush1.bf16.msra.mxu1 %v8312_v63 }
 0x768   : > { %5153 = vmatprep.subr.bf16.mxu1 %v8313_v58 }
 0x76b   : > { %5154 = vmatpush1.bf16.msra.mxu1 %v8314_v30 }
 0x76c   : > { %5155 = vmatprep.subr.bf16.mxu1 %v8315_v59 }
 0x76e   : > { %7192 = vmatmul.mubr.msk.bf16.gmra.mrb[180].mxu1 %vm4485_vm8, %v4681_v29  ;;  %v4724_v29 = vpop.permute.xlu1 %4723 }
 0x76f   : > { %4882 = vmatprep.mubr.bf16.mxu1 %v11435_v15  ;;  %5156 = vmatpush1.bf16.msra.mxu1 %v8316_v17 }
 0x770   : > { %5157 = vmatprep.subr.bf16.mxu1 %v8317_v41  ;;  %v4739_v41 = vpop.permute.xlu0 %4738 }
 0x772   : > { %v4744_v23 = vpop.permute.xlu1 %4743 }
 0x773   : > { %5158 = vmatpush1.bf16.msra.mxu1 %v8318_v9 }
 0x774   : > { %5159 = vmatprep.subr.bf16.mxu1 %v8319_v22 }
 0x776   : > { %7193 = vmatmul.mubr.msk.bf16.gmra.mrb[184].mxu1 %vm4485_vm8, %v4682_v32 }
 0x777   : > { %4892 = vmatprep.mubr.bf16.mxu1 %v11435_v15  ;;  %5160 = vmatpush1.bf16.msra.mxu1 %v8320_v6 }
 0x778   : > { %5161 = vmatprep.subr.bf16.mxu1 %v8321_v37 }
 0x77b   : > { %5162 = vmatpush1.bf16.msra.mxu1 %v8322_v62 }
 0x77c   : > { %5163 = vmatprep.subr.bf16.mxu1 %v8323_v36 }
 0x77e   : > { %7194 = vmatmul.mubr.msk.bf16.gmra.mrb[188].mxu1 %vm4485_vm8, %v4683_v54 }
 0x77f   : > { %4902 = vmatprep.mubr.bf16.mxu1 %v11435_v15  ;;  %5164 = vmatpush1.bf16.msra.mxu1 %v8324_v20 }
 0x780   : > { %5165 = vmatprep.subr.bf16.mxu1 %v8325_v16 }
 0x783   : > { %5166 = vmatpush1.bf16.msra.mxu1 %v8326_v44 }
 0x784   : > { %5167 = vmatprep.subr.bf16.mxu1 %v8327_v48 }
 0x786   : > { %7195 = vmatmul.mubr.msk.bf16.gmra.mrb[192].mxu1 %vm4485_vm8, %v4684_v39 }
 0x787   : > { %4912 = vmatprep.mubr.bf16.mxu1 %v11435_v15  ;;  %5168 = vmatpush1.bf16.msra.mxu1 %v8328_v46 }
 0x788   : > { %5169 = vmatprep.subr.bf16.mxu1 %v8329_v1 }
 0x78b   : > { %5170 = vmatpush1.bf16.msra.mxu1 %v8330_v12 }
 0x78c   : > { %5171 = vmatprep.subr.bf16.mxu1 %v8331_v52 }
 0x78e   : > { %7196 = vmatmul.mubr.msk.bf16.gmra.mrb[196].mxu1 %vm4485_vm8, %v4685_v38 }
 0x78f   : > { %5172 = vmatpush1.bf16.msra.mxu1 %v8332_v5 }
 0x790   : > { %5173 = vmatprep.subr.bf16.mxu1 %v8333_v53 }
 0x793   : > { %5174 = vmatpush1.bf16.msra.mxu1 %v8334_v34 }
 0x794   : > { %5257 = vmatprep.subr.bf16.mxu1 %v8335_v49 }
 0x829   : > { %v4844_v47 = vpop.f32.mrb[168].mxu1 }
 0x82a   : > { %v4846_v51 = vpop.f32.mrb[169].mxu1  ;;  %v10948_v56 = vadd.f32 %v4844_v47, %v4709_v4 }
 0x82b   : > { %v4848_v60 = vpop.f32.mrb[170].mxu1  ;;  %v10952_v8 = vadd.f32 %v4846_v51, %v4709_v4 }
 0x82c   : > { %v4850_v40 = vpop.f32.mrb[171].mxu1  ;;  %v10956_v28 = vadd.f32 %v4848_v60, %v4714_v24 }
 0x82d   : > { %v10962_v30 = vadd.f32 %v4850_v40, %v4714_v24  ;;  %v4759_v24 = vpop.permute.xlu0 %4758 }
 0x831   : > { %v4854_v57 = vpop.f32.mrb[172].mxu1 }
 0x832   : > { %v4856_v19 = vpop.f32.mrb[173].mxu1  ;;  %v10972_v9 = vadd.f32 %v4854_v57, %v4719_v2 }
 0x833   : > { %v4858_v18 = vpop.f32.mrb[174].mxu1  ;;  %v10976_v6 = vadd.f32 %v4856_v19, %v4719_v2 }
 0x834   : > { %v4860_v50 = vpop.f32.mrb[175].mxu1  ;;  %v10980_v62 = vadd.f32 %v4858_v18, %v4724_v29 }
 0x835   : > { %v10986_v20 = vadd.f32 %v4860_v50, %v4724_v29 }
 0x839   : > { %v4864_v31 = vpop.f32.mrb[176].mxu1 }
 0x83a   : > { %v10950_v26 = vadd.f32 %v4864_v31, %v4729_v33  ;;  %v4866_v0 = vpop.f32.mrb[177].mxu1 }
 0x83b   : > { %v10954_v21 = vadd.f32 %v4866_v0, %v4729_v33  ;;  %v4868_v35 = vpop.f32.mrb[178].mxu1 }
 0x83c   : > { %v4923_v43 = vmax.f32 %v10948_v56, %v10950_v26  ;;  %v10960_v63 = vadd.f32 %v4868_v35, %v4734_v14  ;;  %v4870_v58 = vpop.f32.mrb[179].mxu1 }
 0x83d   : > { %v4924_v59 = vmax.f32 %v10952_v8, %v10954_v21  ;;  %v10966_v42 = vadd.f32 %v4870_v58, %v4734_v14  ;;  %v4764_v14 = vpop.permute.xlu1 %4763 }
 0x83e   : > { %v4925_v27 = vmax.f32 %v10956_v28, %v10960_v63 }
 0x83f   : > { %v4926_v17 = vmax.f32 %v10962_v30, %v10966_v42 }
 0x841   : > { %v4874_v32 = vpop.f32.mrb[180].mxu1 }
 0x842   : > { %v10974_v22 = vadd.f32 %v4874_v32, %v4739_v41  ;;  %v4876_v45 = vpop.f32.mrb[181].mxu1 }
 0x843   : > { %v10978_v37 = vadd.f32 %v4876_v45, %v4739_v41  ;;  %v4878_v54 = vpop.f32.mrb[182].mxu1 }
 0x844   : > { %v4927_v36 = vmax.f32 %v10972_v9, %v10974_v22  ;;  %v10984_v11 = vadd.f32 %v4878_v54, %v4744_v23  ;;  %v4880_v7 = vpop.f32.mrb[183].mxu1 }
 0x845   : > { %v4928_v16 = vmax.f32 %v10976_v6, %v10978_v37  ;;  %v10990_v39 = vadd.f32 %v4880_v7, %v4744_v23 }
 0x846   : > { %v4929_v44 = vmax.f32 %v10980_v62, %v10984_v11 }
 0x847   : > { %v4930_v48 = vmax.f32 %v10986_v20, %v10990_v39 }
 0x849   : > { %v4884_v3 = vpop.f32.mrb[184].mxu1 }
 0x84a   : > { %v4885_v13 = vadd.f32 %v4884_v3, %v4749_v25  ;;  %v4886_v46 = vpop.f32.mrb[185].mxu1 }
 0x84b   : > { %v4887_v1 = vadd.f32 %v4886_v46, %v4749_v25  ;;  %v4888_v38 = vpop.f32.mrb[186].mxu1 }
 0x84c   : > { %v4931_v12 = vmax.f32 %v4923_v43, %v4885_v13  ;;  %v10996_v52 = vadd.f32 %v4888_v38, %v4754_v10  ;;  %v4890_v5 = vpop.f32.mrb[187].mxu1 }
 0x84d   : > { %v4932_v53 = vmax.f32 %v4924_v59, %v4887_v1  ;;  %v10998_v34 = vadd.f32 %v4890_v5, %v4754_v10 }
 0x84e   : > { %v4933_v49 = vmax.f32 %v4925_v27, %v10996_v52 }
 0x84f   : > { %v4934_v4 = vmax.f32 %v4926_v17, %v10998_v34 }
 0x851   : > { %v4894_v33 = vpop.f32.mrb[188].mxu1 }
 0x852   : > { %v11002_v47 = vadd.f32 %v4894_v33, %v4759_v24  ;;  %v4896_v51 = vpop.f32.mrb[189].mxu1 }
 0x853   : > { %v11004_v60 = vadd.f32 %v4896_v51, %v4759_v24  ;;  %v4898_v40 = vpop.f32.mrb[190].mxu1 }
 0x854   : > { %v11007_v25 = vmax.f32 %v4927_v36, %v11002_v47  ;;  %v11009_v57 = vadd.f32 %v4898_v40, %v4764_v14  ;;  %v4900_v10 = vpop.f32.mrb[191].mxu1 }
 0x855   : > { %v11012_v19 = vmax.f32 %v4928_v16, %v11004_v60  ;;  %v11014_v18 = vadd.f32 %v4900_v10, %v4764_v14 }
 0x856   : > { %v11017_v50 = vmax.f32 %v4929_v44, %v11009_v57 }
 0x857   : > { %v11020_v31 = vmax.f32 %v4930_v48, %v11014_v18 }
 0x859   : > { %v4904_v0 = vpop.f32.mrb[192].mxu1 }
 0x85a   : > { %v4905_v2 = vadd.f32 %v4904_v0, %v10944_v55  ;;  %v4906_v35 = vpop.f32.mrb[193].mxu1 }
 0x85b   : > { %v4907_v43 = vadd.f32 %v4906_v35, %v10944_v55  ;;  %v4908_v58 = vpop.f32.mrb[194].mxu1 }
 0x85c   : > { %v4939_v29 = vmax.f32 %v4931_v12, %v4905_v2  ;;  %v4909_v59 = vadd.f32 %v4908_v58, %v10946_v61  ;;  %v4910_v27 = vpop.f32.mrb[195].mxu1 }
 0x85d   : > { %v4940_v17 = vmax.f32 %v4932_v53, %v4907_v43  ;;  %v4911_v41 = vadd.f32 %v4910_v27, %v10946_v61 }
 0x85e   : > { %v4947_v32 = vsub.f32 %v10948_v56, %v4939_v29  ;;  %v4971_v45 = vsub.f32 %v10950_v26, %v4939_v29  ;;  %v4995_v23 = vsub.f32 %v4885_v13, %v4939_v29  ;;  %v5019_v54 = vsub.f32 %v4905_v2, %v4939_v29  ;;  %v4784_v2 = vpop.permute.xlu1 %4783 }
 0x85f   : > { %v4948_v36 = vsub.f32 %v10952_v8, %v4940_v17  ;;  %v4972_v7 = vsub.f32 %v10954_v21, %v4940_v17  ;;  %v4996_v16 = vsub.f32 %v4887_v1, %v4940_v17  ;;  %v5020_v55 = vsub.f32 %v4907_v43, %v4940_v17 }
 0x860   : > { %v4955_v44 = vmul.f32 1.442695, %v4947_v32  ;;  %v4979_v48 = vmul.f32 1.442695, %v4971_v45  ;;  %v5003_v3 = vmul.f32 1.442695, %v4995_v23  ;;  %v4941_v46 = vmax.f32 %v4933_v49, %v4909_v59 }
 0x861   : > { %v5027_v38 = vmul.f32 1.442695, %v5019_v54  ;;  %v4957_v12 = vmul.f32 1.442695, %v4948_v36  ;;  %v4942_v5 = vmax.f32 %v4934_v4, %v4911_v41  ;;  %v4981_v61 = vmul.f32 1.442695, %v4972_v7 }
 0x862   : > { %7902 = vpow2.f32 %v4955_v44  ;;  %v5005_v56 = vmul.f32 1.442695, %v4996_v16  ;;  %v4949_v26 = vsub.f32 %v10956_v28, %v4941_v46  ;;  %v4914_v13 = vpop.f32.mrb[196].mxu1  ;;  %v4973_v8 = vsub.f32 %v10960_v63, %v4941_v46  ;;  %v4779_v28 = vpop.permute.xlu0 %4778  ;;  %v8336_v7 = vld [vmem:[%s9527_s17] sm:$0xff] }
 0x863   : > { %7904 = vpow2.f32 %v4979_v48  ;;  %v4997_v21 = vsub.f32 %v10996_v52, %v4941_v46  ;;  %v5021_v1 = vsub.f32 %v4909_v59, %v4941_v46  ;;  %v4916_v53 = vpop.f32.mrb[197].mxu1  ;;  %v5029_v24 = vmul.f32 1.442695, %v5020_v55 }
 0x864   : > { %7906 = vpow2.f32 %v5003_v3  ;;  %v4950_v49 = vsub.f32 %v10962_v30, %v4942_v5  ;;  %v4974_v33 = vsub.f32 %v10966_v42, %v4942_v5  ;;  %v4918_v4 = vpop.f32.mrb[198].mxu1  ;;  %v4959_v51 = vmul.f32 1.442695, %v4949_v26  ;;  %v8339_v26 = vld [vmem:[%s9527_s17 + $0xc0] sm:$0xff] }
 0x865   : > { %7908 = vpow2.f32 %v5027_v38  ;;  %v4983_v14 = vmul.f32 1.442695, %v4973_v8  ;;  %v5007_v40 = vmul.f32 1.442695, %v4997_v21  ;;  %v5031_v10 = vmul.f32 1.442695, %v5021_v1 }
 0x866   : > { %7910 = vpow2.f32 %v4957_v12  ;;  %v4961_v0 = vmul.f32 1.442695, %v4950_v49  ;;  %v4998_v63 = vsub.f32 %v10998_v34, %v4942_v5  ;;  %v4920_v52 = vpop.f32.mrb[199].mxu1  ;;  %v5022_v35 = vsub.f32 %v4911_v41, %v4942_v5  ;;  %v8338_v38 = vld [vmem:[%s9527_s17 + $0x80] sm:$0xff]  ;;  %v8340_v21 = vld [vmem:[%s9527_s17 + $0x8] sm:$0xff] }
 0x867   : > { %7912 = vpow2.f32 %v4981_v61  ;;  %v4915_v43 = vadd.f32 %v4914_v13, %v4779_v28  ;;  %v11036_v58 = vadd.f32 %v4916_v53, %v4779_v28  ;;  %v4985_v30 = vmul.f32 1.442695, %v4974_v33 }
 0x868   : > { %7914 = vpow2.f32 %v5005_v56  ;;  %v11038_v42 = vadd.f32 %v4918_v4, %v4784_v2  ;;  %v11040_v29 = vadd.f32 %v4920_v52, %v4784_v2  ;;  %v5009_v59 = vmul.f32 1.442695, %v4998_v63 }
 0x869   : > { %7916 = vpow2.f32 %v5029_v24  ;;  %v4943_v27 = vmax.f32 %v11007_v25, %v4915_v43  ;;  %v11045_v34 = vmax.f32 %v11012_v19, %v11036_v58  ;;  %v5033_v17 = vmul.f32 1.442695, %v5022_v35 }
 0x86a   : > { %7918 = vpow2.f32 %v4959_v51  ;;  %v11049_v41 = vmax.f32 %v11017_v50, %v11038_v42  ;;  %v11053_v32 = vmax.f32 %v11020_v31, %v11040_v29 }
 0x86b   : > { %7920 = vpow2.f32 %v4983_v14  ;;  %v4951_v45 = vsub.f32 %v10972_v9, %v4943_v27  ;;  %v4975_v25 = vsub.f32 %v10974_v22, %v4943_v27  ;;  %v4999_v23 = vsub.f32 %v11002_v47, %v4943_v27  ;;  %v8337_v47 = vld [vmem:[%s9527_s17 + $0x40] sm:$0xff]  ;;  %v8341_v14 = vld [vmem:[%s9527_s17 + $0x48] sm:$0xff] }
 0x86c   : > { %v7903_v19 = vpop.eup %7902  ;;  %7922 = vpow2.f32 %v5007_v40  ;;  %v5023_v54 = vsub.f32 %v4915_v43, %v4943_v27  ;;  %v4952_v50 = vsub.f32 %v10976_v6, %v11045_v34  ;;  %v4976_v36 = vsub.f32 %v10978_v37, %v11045_v34 }
 0x86d   : > { %v7905_v31 = vpop.eup %7904  ;;  %v5043_v16 = vmul.f32 %v8336_v7, %v7903_v19  ;;  %7924 = vpow2.f32 %v5031_v10  ;;  %v4963_v9 = vmul.f32 1.442695, %v4951_v45  ;;  %v4987_v55 = vmul.f32 1.442695, %v4975_v25  ;;  %v8342_v10 = vld [vmem:[%s9527_s17 + $0x88] sm:$0xff] }
 0x86e   : > { %v7907_v22 = vpop.eup %7906  ;;  %v5051_v44 = vadd.f32 %v7905_v31, %v7903_v19  ;;  %v5059_v48 = vmul.f32 %v8337_v47, %v7905_v31  ;;  %7926 = vpow2.f32 %v4961_v0  ;;  %v5011_v3 = vmul.f32 1.442695, %v4999_v23  ;;  %v8346_v31 = vld [vmem:[%s9527_s17 + $0x90] sm:$0xff] }
 0x86f   : > { %v7909_v46 = vpop.eup %7908  ;;  %v5083_v6 = vmul.f32 %v8338_v38, %v7907_v22  ;;  %7928 = vpow2.f32 %v4985_v30  ;;  %v5035_v12 = vmul.f32 1.442695, %v5023_v54  ;;  %v11065_v37 = vmul.f32 1.442695, %v4952_v50 }
 0x870   : > { %v7911_v5 = vpop.eup %7910  ;;  %v5067_v61 = vadd.f32 %v5059_v48, %v5043_v16  ;;  %v5075_v56 = vadd.f32 %v7907_v22, %v5051_v44  ;;  %v5107_v13 = vmul.f32 %v8339_v26, %v7909_v46  ;;  %7930 = vpow2.f32 %v5009_v59  ;;  %v8343_v59 = vld [vmem:[%s9527_s17 + $0xc8] sm:$0xff] }
 0x871   : > { %v7913_v8 = vpop.eup %7912  ;;  %v5044_v1 = vmul.f32 %v8340_v21, %v7911_v5  ;;  %7932 = vpow2.f32 %v5033_v17  ;;  %v11069_v53 = vmul.f32 1.442695, %v4976_v36  ;;  %v5000_v24 = vsub.f32 %v11004_v60, %v11045_v34  ;;  %v8344_v17 = vld [vmem:[%s9527_s17 + $0x10] sm:$0xff]  ;;  %v8350_v21 = vld [vmem:[%s9527_s17 + $0x98] sm:$0xff] }
 0x872   : > { %v7915_v49 = vpop.eup %7914  ;;  %v5091_v33 = vadd.f32 %v5083_v6, %v5067_v61  ;;  %v5099_v4 = vadd.f32 %v7909_v46, %v5075_v56  ;;  %v5052_v51 = vadd.f32 %v7913_v8, %v7911_v5  ;;  %v5060_v40 = vmul.f32 %v8341_v14, %v7913_v8  ;;  %v8347_v46 = vld [vmem:[%s9527_s17 + $0xd0] sm:$0xff]  ;;  %v8348_v6 = vld [vmem:[%s9527_s17 + $0x18] sm:$0xff] }
 0x873   : > { %v7917_v28 = vpop.eup %7916  ;;  %v5084_v0 = vmul.f32 %v8342_v10, %v7915_v49  ;;  %7934 = vpow2.f32 %v4963_v9  ;;  %v11075_v63 = vmul.f32 1.442695, %v5000_v24  ;;  %v5024_v52 = vsub.f32 %v11036_v58, %v11045_v34  ;;  %v8345_v34 = vld [vmem:[%s9527_s17 + $0x50] sm:$0xff]  ;;  %v8351_v14 = vld [vmem:[%s9527_s17 + $0xd8] sm:$0xff] }
 0x874   : > { %v7919_v2 = vpop.eup %7918  ;;  %v11079_v60 = vadd.f32 %v5107_v13, %v5091_v33  ;;  %7936 = vrcp.f32 %v5099_v4  ;;  %v5068_v35 = vadd.f32 %v5060_v40, %v5044_v1  ;;  %v5076_v43 = vadd.f32 %v7915_v49, %v5052_v51 }
 0x875   : > { %v7921_v30 = vpop.eup %7920  ;;  %v5108_v27 = vmul.f32 %v8343_v59, %v7917_v28  ;;  %v5045_v45 = vmul.f32 %v8344_v17, %v7919_v2  ;;  %7938 = vpow2.f32 %v4987_v55  ;;  %v5037_v25 = vmul.f32 1.442695, %v5024_v52 }
 0x876   : > { %v7923_v23 = vpop.eup %7922  ;;  %v5092_v19 = vadd.f32 %v5084_v0, %v5068_v35  ;;  %v5100_v54 = vadd.f32 %v7917_v28, %v5076_v43  ;;  %v5053_v58 = vadd.f32 %v7921_v30, %v7919_v2  ;;  %v5061_v50 = vmul.f32 %v8345_v34, %v7921_v30  ;;  %v8352_v2 = vld [vmem:[%s9527_s17 + $0x20] sm:$0xff] }
 0x877   : > { %v7925_v36 = vpop.eup %7924  ;;  %v5085_v7 = vmul.f32 %v8346_v31, %v7923_v23  ;;  %7940 = vpow2.f32 %v5011_v3  ;;  %v4953_v16 = vsub.f32 %v10980_v62, %v11049_v41  ;;  %v4977_v9 = vsub.f32 %v10984_v11, %v11049_v41  ;;  %v8349_v11 = vld [vmem:[%s9527_s17 + $0x58] sm:$0xff] }
 0x878   : > { %v7927_v55 = vpop.eup %7926  ;;  %v5116_v22 = vadd.f32 %v5108_v27, %v5092_v19  ;;  %7942 = vrcp.f32 %v5100_v54  ;;  %v5069_v44 = vadd.f32 %v5061_v50, %v5045_v45  ;;  %v5077_v47 = vadd.f32 %v7923_v23, %v5053_v58  ;;  %v8354_v54 = vld [vmem:[%s9527_s17 + $0xa0] sm:$0xff] }
 0x879   : > { %v7929_v48 = vpop.eup %7928  ;;  %v5109_v38 = vmul.f32 %v8347_v46, %v7925_v36  ;;  %v5046_v5 = vmul.f32 %v8348_v6, %v7927_v55  ;;  %7944 = vpow2.f32 %v5035_v12  ;;  %v4967_v3 = vmul.f32 1.442695, %v4953_v16  ;;  %v8355_v16 = vld [vmem:[%s9527_s17 + $0xe0] sm:$0xff] }
 0x87a   : > { %v7931_v61 = vpop.eup %7930  ;;  %v5093_v56 = vadd.f32 %v5085_v7, %v5069_v44  ;;  %v5101_v62 = vadd.f32 %v7925_v36, %v5077_v47  ;;  %v5054_v26 = vadd.f32 %v7929_v48, %v7927_v55  ;;  %v5062_v13 = vmul.f32 %v8349_v11, %v7929_v48  ;;  %v8356_v47 = vld [vmem:[%s9527_s17 + $0x28] sm:$0xff] }
 0x87b   : > { %v7933_v8 = vpop.eup %7932  ;;  %v5086_v1 = vmul.f32 %v8350_v21, %v7931_v61  ;;  %7946 = vpow2.f32 %v11065_v37  ;;  %v4991_v24 = vmul.f32 1.442695, %v4977_v9  ;;  %v5001_v49 = vsub.f32 %v11009_v57, %v11049_v41 }
 0x87c   : > { %v5117_v33 = vadd.f32 %v5109_v38, %v5093_v56  ;;  %7948 = vrcp.f32 %v5101_v62  ;;  %v5070_v12 = vadd.f32 %v5062_v13, %v5046_v5  ;;  %v5078_v4 = vadd.f32 %v7931_v61, %v5054_v26  ;;  %v8358_v26 = vld [vmem:[%s9527_s17 + $0xa8] sm:$0xff] }
 0x87d   : > { %v7935_v51 = vpop.eup %7934  ;;  %v5110_v40 = vmul.f32 %v8351_v14, %v7933_v8  ;;  %7950 = vpow2.f32 %v11069_v53  ;;  %v5015_v28 = vmul.f32 1.442695, %v5001_v49  ;;  %v5025_v10 = vsub.f32 %v11038_v42, %v11049_v41  ;;  %v8353_v41 = vld [vmem:[%s9527_s17 + $0x60] sm:$0xff]  ;;  %v8359_v49 = vld [vmem:[%s9527_s17 + $0xe8] sm:$0xff] }
 0x87e   : > { %v7937_v37 = vpop.eup %7936  ;;  %v5094_v0 = vadd.f32 %v5086_v1, %v5070_v12  ;;  %v5102_v52 = vadd.f32 %v7933_v8, %v5078_v4  ;;  %v5047_v35 = vmul.f32 %v8352_v2, %v7935_v51  ;;  %7952 = vpow2.f32 %v11075_v63  ;;  %v8360_v12 = vld [vmem:[%s9527_s17 + $0x30] sm:$0xff] }
 0x87f   : > { %v7939_v57 = vpop.eup %7938  ;;  %v11103_v43 = vmul.f32 %v7937_v37, %v11079_v60  ;;  %7954 = vpow2.f32 %v5037_v25  ;;  %v5039_v30 = vmul.f32 1.442695, %v5025_v10  ;;  %v4954_v53 = vsub.f32 %v10986_v20, %v11053_v32 }
 0x880   : > { %v5118_v59 = vadd.f32 %v5110_v40, %v5094_v0  ;;  %7956 = vrcp.f32 %v5102_v52  ;;  %v5055_v42 = vadd.f32 %v7939_v57, %v7935_v51  ;;  %v5063_v27 = vmul.f32 %v8353_v41, %v7939_v57 }
 0x881   : > { %v7941_v17 = vpop.eup %7940  ;;  %7958 = vpow2.f32 %v4967_v3  ;;  %v4969_v45 = vmul.f32 1.442695, %v4954_v53  ;;  %v4978_v63 = vsub.f32 %v10990_v39, %v11053_v32  ;;  %v5002_v60 = vsub.f32 %v11014_v18, %v11053_v32  ;;  %v8357_v3 = vld [vmem:[%s9527_s17 + $0x68] sm:$0xff] }
 0x882   : > { %v7943_v25 = vpop.eup %7942  ;;  %v5071_v23 = vadd.f32 %v5063_v27, %v5047_v35  ;;  %v5079_v19 = vadd.f32 %v7941_v17, %v5055_v42  ;;  %v5087_v20 = vmul.f32 %v8354_v54, %v7941_v17  ;;  %7960 = vpow2.f32 %v4991_v24  ;;  %v8363_v42 = vld [vmem:[%s9527_s17 + $0xf0] sm:$0xff]  ;;  %v8364_v27 = vld [vmem:[%s9527_s17 + $0x38] sm:$0xff] }
 0x883   : > { %v7945_v58 = vpop.eup %7944  ;;  %v11113_v34 = vmul.f32 %v7943_v25, %v5116_v22  ;;  %7962 = vpow2.f32 %v5015_v28  ;;  %v4993_v50 = vmul.f32 1.442695, %v4978_v63  ;;  %v5017_v36 = vmul.f32 1.442695, %v5002_v60  ;;  %v8361_v28 = vld [vmem:[%s9527_s17 + $0x70] sm:$0xff] }
 0x884   : > { %v5095_v31 = vadd.f32 %v5087_v20, %v5071_v23  ;;  %v5103_v7 = vadd.f32 %v7945_v58, %v5079_v19  ;;  %v5111_v39 = vmul.f32 %v8355_v16, %v7945_v58  ;;  %7964 = vpow2.f32 %v5039_v30  ;;  %v8362_v30 = vld [vmem:[%s9527_s17 + $0xb0] sm:$0xff]  ;;  %v8365_v23 = vld [vmem:[#allocation5 + $0x200] ss:$8 sps:$4 sm:$0xff]   ;;  %v8367_v58 = vld [vmem:[%s9527_s17 + $0x78] sm:$0xff] }
 0x885   : > { %v7947_v18 = vpop.eup %7946  ;;  %7966 = vpow2.f32 %v4969_v45  ;;  %v5026_v9 = vsub.f32 %v11040_v29, %v11053_v32  ;;  %v8366_v19 = vld [vmem:[#allocation5 + $0x300] ss:$8 sps:$4 sm:$0xff]  }
 0x886   : > { %v7949_v55 = vpop.eup %7948  ;;  %v5119_v44 = vadd.f32 %v5111_v39, %v5095_v31  ;;  %7968 = vrcp.f32 %v5103_v7  ;;  %v5048_v22 = vmul.f32 %v8356_v47, %v7947_v18  ;;  %v8369_v31 = vld [vmem:[#allocation5 + $0x314] ss:$8 sps:$4 sm:$0xff]   ;;  %v8372_v47 = vld [vmem:[#allocation5 + $0x310] ss:$8 sps:$4 sm:$0xff]  }
 0x887   : > { %v7951_v48 = vpop.eup %7950  ;;  %v11119_v46 = vmul.f32 %v7949_v55, %v5117_v33  ;;  %7970 = vpow2.f32 %v4993_v50  ;;  %v5041_v38 = vmul.f32 1.442695, %v5026_v9  ;;  %v8370_v9 = vld [vmem:[%s9527_s17 + $0xb8] sm:$0xff] }
 0x888   : > { %v7953_v6 = vpop.eup %7952  ;;  %v5056_v5 = vadd.f32 %v7951_v48, %v7947_v18  ;;  %v5064_v61 = vmul.f32 %v8357_v3, %v7951_v48  ;;  %7972 = vpow2.f32 %v5017_v36  ;;  %v8368_v36 = vld [vmem:[#allocation5 + $0x214] ss:$8 sps:$4 sm:$0xff]   ;;  %v8375_v3 = vld [vmem:[#allocation5 + $0x324] ss:$8 sps:$4 sm:$0xff]  }
 0x889   : > { %v7955_v56 = vpop.eup %7954  ;;  %7974 = vpow2.f32 %v5041_v38  ;;  %v5088_v11 = vmul.f32 %v8358_v26, %v7953_v6  ;;  %v11134_v0 = vpack.c.bf16 %v11119_v46, %v11103_v43  ;;  %v8373_v38 = vld [vmem:[%s9527_s17 + $0xf8] sm:$0xff]  ;;  %s6882_s17 = sshll.u32 %s9523_s26, 6 }
 0x88a   : > { %v7957_v29 = vpop.eup %7956  ;;  %v5072_v32 = vadd.f32 %v5064_v61, %v5048_v22  ;;  %v5080_v62 = vadd.f32 %v7953_v6, %v5056_v5  ;;  %v5112_v33 = vmul.f32 %v8359_v49, %v7955_v56  ;;  %v8374_v5 = vld [vmem:[#allocation5 + $0x224] ss:$8 sps:$4 sm:$0xff]   ;;  %v8378_v26 = vld [vmem:[#allocation5 + $0x234] ss:$8 sps:$4 sm:$0xff]   ;;  %s572_s23 = scalar_lea.vmem [#allocation14], %s6882_s17  ;;  %s6719_s17 = scalar_lea.sflag [#allocation4], %s9523_s26 }
 0x88b   : > { %v7959_v13 = vpop.eup %7958  ;;  %v11123_v8 = vmul.f32 %v7957_v29, %v5118_v59  ;;  %v8382_v49 = vld [vmem:[#allocation5 + $0x244] ss:$8 sps:$4 sm:$0xff]   ;;  %s6732_s13 = sshll.u32 %s572_s23, 4  ;;  %s11286_s13 = int_to_ptr.vmem [resolvable:$true] %s6732_s13 }
 0x88c   : > { %v7961_v21 = vpop.eup %7960  ;;  %v5096_v1 = vadd.f32 %v5088_v11, %v5072_v32  ;;  %v5104_v24 = vadd.f32 %v7955_v56, %v5080_v62  ;;  %v5049_v4 = vmul.f32 %v8360_v12, %v7959_v13  ;;  %v8376_v32 = vld [vmem:[#allocation5 + $0x220] ss:$8 sps:$4 sm:$0xff]   ;;  %v8379_v11 = vld [vmem:[#allocation5 + $0x334] ss:$8 sps:$4 sm:$0xff]   ;;  %s9076_s0 = scalar_lea.vmem %s11286_s13, 1024  ;;  %p9083_p11 = scmp.lt.s32.totalorder %s11286_s13, %s9081_s2 }
 0x88d   : > { %v7963_v51 = vpop.eup %7962  ;;  %v11129_v14 = vpack.c.bf16 %v11123_v8, %v11113_v34  ;;  %v5057_v40 = vadd.f32 %v7961_v21, %v7959_v13  ;;  %v5065_v10 = vmul.f32 %v8361_v28, %v7961_v21  ;;  %v8377_v62 = vld [vmem:[#allocation5 + $0x320] ss:$8 sps:$4 sm:$0xff]   ;;  %v8380_v21 = vld [vmem:[#allocation5 + $0x230] ss:$8 sps:$4 sm:$0xff]   ;;  %v8387_v28 = vld [vmem:[#allocation5 + $0x354] ss:$8 sps:$4 sm:$0xff]   ;;  %p9077_p6 = scmp.ne.s32.totalorder %s11286_s13, %s9076_s0  ;;  %p9084_p12 = scmp.lt.s32.totalorder %s9082_s3, %s9076_s0 }
 0x88e   : > { %v7965_v37 = vpop.eup %7964  ;;  %v5120_v52 = vadd.f32 %v5112_v33, %v5096_v1  ;;  %7976 = vrcp.f32 %v5104_v24  ;;  %v5089_v53 = vmul.f32 %v8362_v30, %v7963_v51  ;;  %v8381_v1 = vld [vmem:[#allocation5 + $0x330] ss:$8 sps:$4 sm:$0xff]   ;;  %v8383_v33 = vld [vmem:[#allocation5 + $0x344] ss:$8 sps:$4 sm:$0xff]   ;;  %v8384_v12 = vld [vmem:[#allocation5 + $0x240] ss:$8 sps:$4 sm:$0xff]  }
 0x88f   : > { %v7967_v2 = vpop.eup %7966  ;;  %v5073_v35 = vadd.f32 %v5065_v10, %v5049_v4  ;;  %v5081_v57 = vadd.f32 %v7963_v51, %v5057_v40  ;;  %5175 = vmatprep.mubr.bf16.mxu1 %v11129_v14  ;;  %5232 = vmatprep.mubr.bf16.mxu0 %v11129_v14  ;;  %v5113_v41 = vmul.f32 %v8363_v42, %v7965_v37  ;;  %v8385_v4 = vld [vmem:[#allocation5 + $0x340] ss:$8 sps:$4 sm:$0xff]   ;;  %v8386_v40 = vld [vmem:[#allocation5 + $0x254] ss:$8 sps:$4 sm:$0xff]   ;;  %v8391_v30 = vld [vmem:[#allocation5 + $0x364] ss:$8 sps:$4 sm:$0xff]   ;;  %p9078_p10 = pnand %p9077_p6, %p11455_p5  ;;  %p9085_p13 = por %p9084_p12, %p9083_p11 }
 0x890   : > { %v7969_v59 = vpop.eup %7968  ;;  %v5050_v17 = vmul.f32 %v8364_v27, %v7967_v2  ;;  %5176 = vmatmul.mubr.bf16.vlgmr.msra.gmra.mrb[200].mxu1 %v11134_v0  ;;  %5233 = vmatmul.mubr.bf16.vlgmr.msra.gmra.mrb[216].mxu0 %v11134_v0  ;;  %v8394_v42 = vld [vmem:[#allocation5 + $0x274] ss:$8 sps:$4 sm:$0xff]   ;;  %v8396_v27 = vld [vmem:[#allocation5 + $0x270] ss:$8 sps:$4 sm:$0xff]  }
 0x891   : > { %v7971_v45 = vpop.eup %7970  ;;  %v11143_v63 = vmul.f32 %v7969_v59, %v5119_v44  ;;  %v5097_v60 = vadd.f32 %v5089_v53, %v5073_v35  ;;  %v5105_v25 = vadd.f32 %v7965_v37, %v5081_v57  ;;  %5258 = vmatpush1.bf16.msra.mxu1 %v8365_v23  ;;  %5315 = vmatpush1.bf16.msra.mxu0 %v8366_v19  ;;  %v8371_v44 = vld [vmem:[#allocation5 + $0x210] ss:$8 sps:$4 sm:$0xff]   ;;  %v8390_v57 = vld [vmem:[#allocation5 + $0x264] ss:$8 sps:$4 sm:$0xff]   ;;  %v8392_v53 = vld [vmem:[#allocation5 + $0x260] ss:$8 sps:$4 sm:$0xff]   ;;  %p9079_p1 = pneg %p9078_p10 }
 0x892   : > { %v7973_v54 = vpop.eup %7972  ;;  %v5058_v20 = vadd.f32 %v7971_v45, %v7967_v2  ;;  %v5066_v50 = vmul.f32 %v8367_v58, %v7971_v45  ;;  %5259 = vmatprep.subr.bf16.mxu1 %v8368_v36  ;;  %5316 = vmatprep.subr.bf16.mxu0 %v8369_v31  ;;  %v8389_v2 = vld [vmem:[#allocation5 + $0x350] ss:$8 sps:$4 sm:$0xff]   ;;  %v8393_v59 = vld [vmem:[#allocation5 + $0x360] ss:$8 sps:$4 sm:$0xff]   ;;  %v8398_v45 = vld [vmem:[#allocation5 + $0x284] ss:$8 sps:$4 sm:$0xff]  }
 0x893   : > { %v7975_v7 = vpop.eup %7974  ;;  %v5121_v16 = vadd.f32 %v5113_v41, %v5097_v60  ;;  %7978 = vrcp.f32 %v5105_v25  ;;  %v5090_v55 = vmul.f32 %v8370_v9, %v7973_v54  ;;  %v8395_v41 = vld [vmem:[#allocation5 + $0x374] ss:$8 sps:$4 sm:$0xff]   ;;  %v8399_v60 = vld [vmem:[#allocation5 + $0x384] ss:$8 sps:$4 sm:$0xff]   ;;  %v8400_v25 = vld [vmem:[#allocation5 + $0x280] ss:$8 sps:$4 sm:$0xff]   ;;  %p9086_p8 = pnand %p9085_p13, %p9079_p1 }
 0x894   : > { %v5074_v39 = vadd.f32 %v5066_v50, %v5050_v17  ;;  %v5082_v18 = vadd.f32 %v7973_v54, %v5058_v20  ;;  %v5114_v6 = vmul.f32 %v8373_v38, %v7975_v7  ;;  %v8397_v17 = vld [vmem:[#allocation5 + $0x370] ss:$8 sps:$4 sm:$0xff]   ;;  %v8401_v23 = vld [vmem:[#allocation5 + $0x380] ss:$8 sps:$4 sm:$0xff]   ;;  %v8402_v19 = vld [vmem:[#allocation5 + $0x294] ss:$8 sps:$4 sm:$0xff]  }
 0x895   : > { %5260 = vmatpush1.bf16.msra.mxu1 %v8371_v44  ;;  %5317 = vmatpush1.bf16.msra.mxu0 %v8372_v47  ;;  %v8403_v54 = vld [vmem:[#allocation5 + $0x394] ss:$8 sps:$4 sm:$0xff]   ;;  %v8404_v20 = vld [vmem:[#allocation5 + $0x290] ss:$8 sps:$4 sm:$0xff]   ;;  %v8406_v50 = vld [vmem:[#allocation5 + $0x2a4] ss:$8 sps:$4 sm:$0xff]  }
 0x896   : > { %v5098_v22 = vadd.f32 %v5090_v55, %v5074_v39  ;;  %v5106_v48 = vadd.f32 %v7975_v7, %v5082_v18  ;;  %5261 = vmatprep.subr.bf16.mxu1 %v8374_v5  ;;  %5318 = vmatprep.subr.bf16.mxu0 %v8375_v3  ;;  %v8405_v58 = vld [vmem:[#allocation5 + $0x390] ss:$8 sps:$4 sm:$0xff]   ;;  %v8407_v36 = vld [vmem:[#allocation5 + $0x3a4] ss:$8 sps:$4 sm:$0xff]   ;;  %v8408_v31 = vld [vmem:[#allocation5 + $0x2a0] ss:$8 sps:$4 sm:$0xff]  }
 0x897   : > { %v8409_v7 = vld [vmem:[#allocation5 + $0x3a0] ss:$8 sps:$4 sm:$0xff]   ;;  %v8411_v39 = vld [vmem:[#allocation5 + $0x3b4] ss:$8 sps:$4 sm:$0xff]   ;;  %v8412_v18 = vld [vmem:[#allocation5 + $0x2b0] ss:$8 sps:$4 sm:$0xff]  }
 0x898   : > { %v7977_v61 = vpop.eup %7976  ;;  %v5122_v56 = vadd.f32 %v5114_v6, %v5098_v22  ;;  %7980 = vrcp.f32 %v5106_v48  ;;  %v8413_v9 = vld [vmem:[#allocation5 + $0x3b0] ss:$8 sps:$4 sm:$0xff]   ;;  %v8414_v55 = vld [vmem:[#allocation5 + $0x2c4] ss:$8 sps:$4 sm:$0xff]   ;;  %v8416_v47 = vld [vmem:[#allocation5 + $0x2c0] ss:$8 sps:$4 sm:$0xff]  }
 0x899   : > { %v11148_v29 = vmul.f32 %v7977_v61, %v5120_v52  ;;  %5262 = vmatpush1.bf16.msra.mxu1 %v8376_v32  ;;  %5319 = vmatpush1.bf16.msra.mxu0 %v8377_v62  ;;  %v8388_v52 = vld [vmem:[#allocation5 + $0x250] ss:$8 sps:$4 sm:$0xff]   ;;  %v8415_v44 = vld [vmem:[#allocation5 + $0x3c4] ss:$8 sps:$4 sm:$0xff]   ;;  %v8417_v22 = vld [vmem:[#allocation5 + $0x3c0] ss:$8 sps:$4 sm:$0xff]  }
 0x89a   : > { %5263 = vmatprep.subr.bf16.mxu1 %v8378_v26  ;;  %5320 = vmatprep.subr.bf16.mxu0 %v8379_v11  ;;  %v8418_v48 = vld [vmem:[#allocation5 + $0x2d4] ss:$8 sps:$4 sm:$0xff]   ;;  %v8420_v6 = vld [vmem:[#allocation5 + $0x2d0] ss:$8 sps:$4 sm:$0xff]   ;;  %v8422_v3 = vld [vmem:[#allocation5 + $0x2e4] ss:$8 sps:$4 sm:$0xff]  }
 0x89b   : > { %v8419_v38 = vld [vmem:[#allocation5 + $0x3d4] ss:$8 sps:$4 sm:$0xff]   ;;  %v8421_v5 = vld [vmem:[#allocation5 + $0x3d0] ss:$8 sps:$4 sm:$0xff]   ;;  %v8423_v61 = vld [vmem:[#allocation5 + $0x3e4] ss:$8 sps:$4 sm:$0xff]  }
 0x89c   : > { %v8425_v32 = vld [vmem:[#allocation5 + $0x3e0] ss:$8 sps:$4 sm:$0xff]   ;;  %v8426_v62 = vld [vmem:[#allocation5 + $0x2f4] ss:$8 sps:$4 sm:$0xff]   ;;  %v8428_v11 = vld [vmem:[#allocation5 + $0x2f0] ss:$8 sps:$4 sm:$0xff]  }
 0x89d   : > { %v7979_v13 = vpop.eup %7978  ;;  %5264 = vmatpush1.bf16.msra.mxu1 %v8380_v21  ;;  %5321 = vmatpush1.bf16.msra.mxu0 %v8381_v1  ;;  %v8427_v26 = vld [vmem:[#allocation5 + $0x3f4] ss:$8 sps:$4 sm:$0xff]   ;;  %v8430_v21 = vld [vmem:[#allocation5 + $0x404] ss:$8 sps:$4 sm:$0xff]  }
 0x89e   : > { %v11150_v24 = vmul.f32 %v7979_v13, %v5121_v16  ;;  %5265 = vmatprep.subr.bf16.mxu1 %v8382_v49  ;;  %5322 = vmatprep.subr.bf16.mxu0 %v8383_v33  ;;  %v8410_v16 = vld [vmem:[#allocation5 + $0x2b4] ss:$8 sps:$4 sm:$0xff]   ;;  %v8429_v13 = vld [vmem:[#allocation5 + $0x3f0] ss:$8 sps:$4 sm:$0xff]   ;;  %v8431_v1 = vld [vmem:[#allocation5 + $0x504] ss:$8 sps:$4 sm:$0xff]  }
 0x89f   : > { %v8432_v49 = vld [vmem:[#allocation5 + $0x400] ss:$8 sps:$4 sm:$0xff]  }
 0x8a0   : > { %v11160_v35 = vpack.c.bf16 %v11150_v24, %v11143_v63  ;;  %v8433_v33 = vld [vmem:[#allocation5 + $0x500] ss:$8 sps:$4 sm:$0xff]  }
 0x8a1   : > { %5266 = vmatpush1.bf16.msra.mxu1 %v8384_v12  ;;  %5323 = vmatpush1.bf16.msra.mxu0 %v8385_v4  ;;  %v8434_v12 = vld [vmem:[#allocation5 + $0x414] ss:$8 sps:$4 sm:$0xff]  }
 0x8a2   : > { %v7981_v51 = vpop.eup %7980  ;;  %5267 = vmatprep.subr.bf16.mxu1 %v8386_v40  ;;  %5324 = vmatprep.subr.bf16.mxu0 %v8387_v28  ;;  %v8435_v4 = vld [vmem:[#allocation5 + $0x514] ss:$8 sps:$4 sm:$0xff]   ;;  %v8437_v40 = vld [vmem:[#allocation5 + $0x510] ss:$8 sps:$4 sm:$0xff]   ;;  %v8438_v28 = vld [vmem:[#allocation5 + $0x424] ss:$8 sps:$4 sm:$0xff]  }
 0x8a3   : > { %v11152_v10 = vmul.f32 %v7981_v51, %v5122_v56  ;;  %v8424_v56 = vld [vmem:[#allocation5 + $0x2e0] ss:$8 sps:$4 sm:$0xff]   ;;  %v8436_v51 = vld [vmem:[#allocation5 + $0x410] ss:$8 sps:$4 sm:$0xff]  }
 0x8a5   : > { %v11156_v37 = vpack.c.bf16 %v11152_v10, %v11148_v29  ;;  %5268 = vmatpush1.bf16.msra.mxu1 %v8388_v52  ;;  %5325 = vmatpush1.bf16.msra.mxu0 %v8389_v2  ;;  %v8439_v52 = vld [vmem:[#allocation5 + $0x524] ss:$8 sps:$4 sm:$0xff]   ;;  %v8440_v2 = vld [vmem:[#allocation5 + $0x420] ss:$8 sps:$4 sm:$0xff]  }
 0x8a6   : > { %5269 = vmatprep.subr.bf16.mxu1 %v8390_v57  ;;  %5326 = vmatprep.subr.bf16.mxu0 %v8391_v30  ;;  %v8441_v57 = vld [vmem:[#allocation5 + $0x520] ss:$8 sps:$4 sm:$0xff]   ;;  %v8442_v30 = vld [vmem:[#allocation5 + $0x434] ss:$8 sps:$4 sm:$0xff]  }
 0x8a7   : > { %5185 = vmatprep.mubr.bf16.mxu1 %v11156_v37  ;;  %5242 = vmatprep.mubr.bf16.mxu0 %v11156_v37 }
 0x8a8   : > { %5186 = vmatmul.mubr.bf16.gmra.mrb[204].mxu1 %v11160_v35  ;;  %5243 = vmatmul.mubr.bf16.gmra.mrb[220].mxu0 %v11160_v35 }
 0x8a9   : > { %5289 = vmatprep.mubr.bf16.mxu1 %v11129_v14  ;;  %5346 = vmatprep.mubr.bf16.mxu0 %v11129_v14 }
 0x8aa   : > { %5270 = vmatpush1.bf16.msra.mxu1 %v8392_v53  ;;  %5327 = vmatpush1.bf16.msra.mxu0 %v8393_v59  ;;  %v8443_v53 = vld [vmem:[#allocation5 + $0x534] ss:$8 sps:$4 sm:$0xff]   ;;  %v8444_v59 = vld [vmem:[#allocation5 + $0x430] ss:$8 sps:$4 sm:$0xff]  }
 0x8ab   : > { %5271 = vmatprep.subr.bf16.mxu1 %v8394_v42  ;;  %5328 = vmatprep.subr.bf16.mxu0 %v8395_v41  ;;  %v8445_v42 = vld [vmem:[#allocation5 + $0x530] ss:$8 sps:$4 sm:$0xff]   ;;  %v8446_v41 = vld [vmem:[#allocation5 + $0x444] ss:$8 sps:$4 sm:$0xff]  }
 0x8ae   : > { %5272 = vmatpush1.bf16.msra.mxu1 %v8396_v27  ;;  %5329 = vmatpush1.bf16.msra.mxu0 %v8397_v17  ;;  %v8447_v27 = vld [vmem:[#allocation5 + $0x544] ss:$8 sps:$4 sm:$0xff]   ;;  %v8448_v17 = vld [vmem:[#allocation5 + $0x440] ss:$8 sps:$4 sm:$0xff]  }
 0x8af   : > { %5273 = vmatprep.subr.bf16.mxu1 %v8398_v45  ;;  %5330 = vmatprep.subr.bf16.mxu0 %v8399_v60  ;;  %v8449_v45 = vld [vmem:[#allocation5 + $0x540] ss:$8 sps:$4 sm:$0xff]   ;;  %v8450_v60 = vld [vmem:[#allocation5 + $0x454] ss:$8 sps:$4 sm:$0xff]  }
 0x8b2   : > { %5274 = vmatpush1.bf16.msra.mxu1 %v8400_v25  ;;  %5331 = vmatpush1.bf16.msra.mxu0 %v8401_v23  ;;  %v8451_v25 = vld [vmem:[#allocation5 + $0x554] ss:$8 sps:$4 sm:$0xff]   ;;  %v8452_v23 = vld [vmem:[#allocation5 + $0x450] ss:$8 sps:$4 sm:$0xff]  }
 0x8b3   : > { %5275 = vmatprep.subr.bf16.mxu1 %v8402_v19  ;;  %5332 = vmatprep.subr.bf16.mxu0 %v8403_v54  ;;  %v8453_v19 = vld [vmem:[#allocation5 + $0x550] ss:$8 sps:$4 sm:$0xff]   ;;  %v8454_v54 = vld [vmem:[#allocation5 + $0x464] ss:$8 sps:$4 sm:$0xff]  }
 0x8b6   : > { %5276 = vmatpush1.bf16.msra.mxu1 %v8404_v20  ;;  %5333 = vmatpush1.bf16.msra.mxu0 %v8405_v58  ;;  %v8455_v20 = vld [vmem:[#allocation5 + $0x564] ss:$8 sps:$4 sm:$0xff]   ;;  %v8456_v58 = vld [vmem:[#allocation5 + $0x460] ss:$8 sps:$4 sm:$0xff]  }
 0x8b7   : > { %5277 = vmatprep.subr.bf16.mxu1 %v8406_v50  ;;  %5334 = vmatprep.subr.bf16.mxu0 %v8407_v36  ;;  %v8457_v50 = vld [vmem:[#allocation5 + $0x560] ss:$8 sps:$4 sm:$0xff]   ;;  %v8458_v36 = vld [vmem:[#allocation5 + $0x474] ss:$8 sps:$4 sm:$0xff]  }
 0x8ba   : > { %5278 = vmatpush1.bf16.msra.mxu1 %v8408_v31  ;;  %5335 = vmatpush1.bf16.msra.mxu0 %v8409_v7  ;;  %v8459_v31 = vld [vmem:[#allocation5 + $0x574] ss:$8 sps:$4 sm:$0xff]   ;;  %v8460_v7 = vld [vmem:[#allocation5 + $0x470] ss:$8 sps:$4 sm:$0xff]  }
 0x8bb   : > { %5279 = vmatprep.subr.bf16.mxu1 %v8410_v16  ;;  %5336 = vmatprep.subr.bf16.mxu0 %v8411_v39  ;;  %v8461_v16 = vld [vmem:[#allocation5 + $0x570] ss:$8 sps:$4 sm:$0xff]   ;;  %v8462_v39 = vld [vmem:[#allocation5 + $0x484] ss:$8 sps:$4 sm:$0xff]  }
 0x8be   : > { %5280 = vmatpush1.bf16.msra.mxu1 %v8412_v18  ;;  %5337 = vmatpush1.bf16.msra.mxu0 %v8413_v9  ;;  %v8463_v18 = vld [vmem:[#allocation5 + $0x584] ss:$8 sps:$4 sm:$0xff]   ;;  %v8464_v9 = vld [vmem:[#allocation5 + $0x480] ss:$8 sps:$4 sm:$0xff]  }
 0x8bf   : > { %5281 = vmatprep.subr.bf16.mxu1 %v8414_v55  ;;  %5338 = vmatprep.subr.bf16.mxu0 %v8415_v44  ;;  %v8465_v55 = vld [vmem:[#allocation5 + $0x580] ss:$8 sps:$4 sm:$0xff]   ;;  %v8466_v44 = vld [vmem:[#allocation5 + $0x494] ss:$8 sps:$4 sm:$0xff]  }
 0x8c2   : > { %5282 = vmatpush1.bf16.msra.mxu1 %v8416_v47  ;;  %5339 = vmatpush1.bf16.msra.mxu0 %v8417_v22  ;;  %v8467_v47 = vld [vmem:[#allocation5 + $0x594] ss:$8 sps:$4 sm:$0xff]   ;;  %v8468_v22 = vld [vmem:[#allocation5 + $0x490] ss:$8 sps:$4 sm:$0xff]  }
 0x8c3   : > { %5283 = vmatprep.subr.bf16.mxu1 %v8418_v48  ;;  %5340 = vmatprep.subr.bf16.mxu0 %v8419_v38  ;;  %v8469_v48 = vld [vmem:[#allocation5 + $0x590] ss:$8 sps:$4 sm:$0xff]   ;;  %v8470_v38 = vld [vmem:[#allocation5 + $0x4a4] ss:$8 sps:$4 sm:$0xff]  }
 0x8c6   : > { %5284 = vmatpush1.bf16.msra.mxu1 %v8420_v6  ;;  %5341 = vmatpush1.bf16.msra.mxu0 %v8421_v5  ;;  %v8471_v6 = vld [vmem:[#allocation5 + $0x5a4] ss:$8 sps:$4 sm:$0xff]   ;;  %v8472_v5 = vld [vmem:[#allocation5 + $0x4a0] ss:$8 sps:$4 sm:$0xff]  }
 0x8c7   : > { %5285 = vmatprep.subr.bf16.mxu1 %v8422_v3  ;;  %5342 = vmatprep.subr.bf16.mxu0 %v8423_v61  ;;  %v8473_v3 = vld [vmem:[#allocation5 + $0x5a0] ss:$8 sps:$4 sm:$0xff]   ;;  %v8474_v61 = vld [vmem:[#allocation5 + $0x4b4] ss:$8 sps:$4 sm:$0xff]  }
 0x8ca   : > { %5286 = vmatpush1.bf16.msra.mxu1 %v8424_v56  ;;  %5343 = vmatpush1.bf16.msra.mxu0 %v8425_v32  ;;  %v8475_v56 = vld [vmem:[#allocation5 + $0x5b4] ss:$8 sps:$4 sm:$0xff]   ;;  %v8476_v32 = vld [vmem:[#allocation5 + $0x4b0] ss:$8 sps:$4 sm:$0xff]  }
 0x8cb   : > { %5287 = vmatprep.subr.bf16.mxu1 %v8426_v62  ;;  %5344 = vmatprep.subr.bf16.mxu0 %v8427_v26  ;;  %v8477_v62 = vld [vmem:[#allocation5 + $0x5b0] ss:$8 sps:$4 sm:$0xff]   ;;  %v8478_v26 = vld [vmem:[#allocation5 + $0x4c4] ss:$8 sps:$4 sm:$0xff]  }
 0x8ce   : > { %5288 = vmatpush1.bf16.msra.mxu1 %v8428_v11  ;;  %5345 = vmatpush1.bf16.msra.mxu0 %v8429_v13  ;;  %v8479_v11 = vld [vmem:[#allocation5 + $0x5c4] ss:$8 sps:$4 sm:$0xff]   ;;  %v8480_v13 = vld [vmem:[#allocation5 + $0x4c0] ss:$8 sps:$4 sm:$0xff]  }
 0x8cf   : > { %5371 = vmatprep.subr.bf16.mxu1 %v8430_v21  ;;  %5428 = vmatprep.subr.bf16.mxu0 %v8431_v1  ;;  %v8481_v21 = vld [vmem:[#allocation5 + $0x5c0] ss:$8 sps:$4 sm:$0xff]   ;;  %v8482_v1 = vld [vmem:[#allocation5 + $0x4d4] ss:$8 sps:$4 sm:$0xff]  }
 0x8d1   : > { %5290 = vmatmul.mubr.bf16.vlgmr.msra.gmra.mrb[208].mxu1 %v11134_v0  ;;  %5347 = vmatmul.mubr.bf16.vlgmr.msra.gmra.mrb[224].mxu0 %v11134_v0 }
 0x8d2   : > { %5299 = vmatprep.mubr.bf16.mxu1 %v11156_v37  ;;  %5356 = vmatprep.mubr.bf16.mxu0 %v11156_v37 }
 0x8d3   : > { %5372 = vmatpush1.bf16.msra.mxu1 %v8432_v49  ;;  %5429 = vmatpush1.bf16.msra.mxu0 %v8433_v33  ;;  %v8483_v49 = vld [vmem:[#allocation5 + $0x5d4] ss:$8 sps:$4 sm:$0xff]   ;;  %v8484_v33 = vld [vmem:[#allocation5 + $0x4d0] ss:$8 sps:$4 sm:$0xff]  }
 0x8d4   : > { %5373 = vmatprep.subr.bf16.mxu1 %v8434_v12  ;;  %5430 = vmatprep.subr.bf16.mxu0 %v8435_v4  ;;  %v8485_v12 = vld [vmem:[#allocation5 + $0x5d0] ss:$8 sps:$4 sm:$0xff]   ;;  %v8486_v4 = vld [vmem:[#allocation5 + $0x4e4] ss:$8 sps:$4 sm:$0xff]  }
 0x8d7   : > { %5374 = vmatpush1.bf16.msra.mxu1 %v8436_v51  ;;  %5431 = vmatpush1.bf16.msra.mxu0 %v8437_v40  ;;  %v8487_v51 = vld [vmem:[#allocation5 + $0x5e4] ss:$8 sps:$4 sm:$0xff]   ;;  %v8488_v40 = vld [vmem:[#allocation5 + $0x4e0] ss:$8 sps:$4 sm:$0xff]  }
 0x8d8   : > { %5375 = vmatprep.subr.bf16.mxu1 %v8438_v28  ;;  %5432 = vmatprep.subr.bf16.mxu0 %v8439_v52  ;;  %v8489_v28 = vld [vmem:[#allocation5 + $0x5e0] ss:$8 sps:$4 sm:$0xff]   ;;  %v8490_v52 = vld [vmem:[#allocation5 + $0x4f4] ss:$8 sps:$4 sm:$0xff]  }
 0x8d9   : > { %5300 = vmatmul.mubr.bf16.gmra.mrb[212].mxu1 %v11160_v35  ;;  %5357 = vmatmul.mubr.bf16.gmra.mrb[228].mxu0 %v11160_v35 }
 0x8da   : > { %5403 = vmatprep.mubr.bf16.mxu1 %v11129_v14  ;;  %5460 = vmatprep.mubr.bf16.mxu0 %v11129_v14 }
 0x8db   : > { %5376 = vmatpush1.bf16.msra.mxu1 %v8440_v2  ;;  %5433 = vmatpush1.bf16.msra.mxu0 %v8441_v57  ;;  %v8491_v2 = vld [vmem:[#allocation5 + $0x5f4] ss:$8 sps:$4 sm:$0xff]   ;;  %v8492_v57 = vld [vmem:[#allocation5 + $0x4f0] ss:$8 sps:$4 sm:$0xff]  }
 0x8dc   : > { %5377 = vmatprep.subr.bf16.mxu1 %v8442_v30  ;;  %5434 = vmatprep.subr.bf16.mxu0 %v8443_v53  ;;  %v8493_v30 = vld [vmem:[#allocation5 + $0x5f0] ss:$8 sps:$4 sm:$0xff]   ;;  %v8494_v53 = vld [vmem:[#allocation5 + $0x604] ss:$8 sps:$4 sm:$0xff]  }
 0x8df   : > { %5378 = vmatpush1.bf16.msra.mxu1 %v8444_v59  ;;  %5435 = vmatpush1.bf16.msra.mxu0 %v8445_v42  ;;  %v8495_v59 = vld [vmem:[#allocation5 + $0x704] ss:$8 sps:$4 sm:$0xff]   ;;  %v8496_v42 = vld [vmem:[#allocation5 + $0x600] ss:$8 sps:$4 sm:$0xff]  }
 0x8e0   : > { %5379 = vmatprep.subr.bf16.mxu1 %v8446_v41  ;;  %5436 = vmatprep.subr.bf16.mxu0 %v8447_v27  ;;  %v8497_v41 = vld [vmem:[#allocation5 + $0x700] ss:$8 sps:$4 sm:$0xff]   ;;  %v8498_v27 = vld [vmem:[#allocation5 + $0x614] ss:$8 sps:$4 sm:$0xff]  }
 0x8e3   : > { %5380 = vmatpush1.bf16.msra.mxu1 %v8448_v17  ;;  %5437 = vmatpush1.bf16.msra.mxu0 %v8449_v45  ;;  %v8499_v17 = vld [vmem:[#allocation5 + $0x714] ss:$8 sps:$4 sm:$0xff]   ;;  %v8500_v45 = vld [vmem:[#allocation5 + $0x610] ss:$8 sps:$4 sm:$0xff]  }
 0x8e4   : > { %5381 = vmatprep.subr.bf16.mxu1 %v8450_v60  ;;  %5438 = vmatprep.subr.bf16.mxu0 %v8451_v25  ;;  %v8501_v60 = vld [vmem:[#allocation5 + $0x710] ss:$8 sps:$4 sm:$0xff]   ;;  %v8502_v25 = vld [vmem:[#allocation5 + $0x624] ss:$8 sps:$4 sm:$0xff]  }
 0x8e7   : > { %5382 = vmatpush1.bf16.msra.mxu1 %v8452_v23  ;;  %5439 = vmatpush1.bf16.msra.mxu0 %v8453_v19  ;;  %v8503_v23 = vld [vmem:[#allocation5 + $0x724] ss:$8 sps:$4 sm:$0xff]   ;;  %v8504_v19 = vld [vmem:[#allocation5 + $0x620] ss:$8 sps:$4 sm:$0xff]  }
 0x8e8   : > { %5383 = vmatprep.subr.bf16.mxu1 %v8454_v54  ;;  %5440 = vmatprep.subr.bf16.mxu0 %v8455_v20  ;;  %v8505_v54 = vld [vmem:[#allocation5 + $0x720] ss:$8 sps:$4 sm:$0xff]   ;;  %v8506_v20 = vld [vmem:[#allocation5 + $0x634] ss:$8 sps:$4 sm:$0xff]  }
 0x8eb   : > { %5384 = vmatpush1.bf16.msra.mxu1 %v8456_v58  ;;  %5441 = vmatpush1.bf16.msra.mxu0 %v8457_v50  ;;  %v8507_v58 = vld [vmem:[#allocation5 + $0x734] ss:$8 sps:$4 sm:$0xff]   ;;  %v8508_v50 = vld [vmem:[#allocation5 + $0x630] ss:$8 sps:$4 sm:$0xff]  }
 0x8ec   : > { %5385 = vmatprep.subr.bf16.mxu1 %v8458_v36  ;;  %5442 = vmatprep.subr.bf16.mxu0 %v8459_v31  ;;  %v8509_v36 = vld [vmem:[#allocation5 + $0x730] ss:$8 sps:$4 sm:$0xff]   ;;  %v8510_v31 = vld [vmem:[#allocation5 + $0x644] ss:$8 sps:$4 sm:$0xff]  }
 0x8ef   : > { %5386 = vmatpush1.bf16.msra.mxu1 %v8460_v7  ;;  %5443 = vmatpush1.bf16.msra.mxu0 %v8461_v16  ;;  %v8511_v7 = vld [vmem:[#allocation5 + $0x744] ss:$8 sps:$4 sm:$0xff]   ;;  %v8512_v16 = vld [vmem:[#allocation5 + $0x640] ss:$8 sps:$4 sm:$0xff]  }
 0x8f0   : > { %5387 = vmatprep.subr.bf16.mxu1 %v8462_v39  ;;  %5444 = vmatprep.subr.bf16.mxu0 %v8463_v18  ;;  %v8513_v39 = vld [vmem:[#allocation5 + $0x740] ss:$8 sps:$4 sm:$0xff]   ;;  %v8514_v18 = vld [vmem:[#allocation5 + $0x654] ss:$8 sps:$4 sm:$0xff]  }
 0x8f3   : > { %5388 = vmatpush1.bf16.msra.mxu1 %v8464_v9  ;;  %5445 = vmatpush1.bf16.msra.mxu0 %v8465_v55  ;;  %v8515_v9 = vld [vmem:[#allocation5 + $0x754] ss:$8 sps:$4 sm:$0xff]   ;;  %v8516_v55 = vld [vmem:[#allocation5 + $0x650] ss:$8 sps:$4 sm:$0xff]  }
 0x8f4   : > { %5389 = vmatprep.subr.bf16.mxu1 %v8466_v44  ;;  %5446 = vmatprep.subr.bf16.mxu0 %v8467_v47  ;;  %v8517_v44 = vld [vmem:[#allocation5 + $0x750] ss:$8 sps:$4 sm:$0xff]   ;;  %v8518_v47 = vld [vmem:[#allocation5 + $0x664] ss:$8 sps:$4 sm:$0xff]  }
 0x8f7   : > { %5390 = vmatpush1.bf16.msra.mxu1 %v8468_v22  ;;  %5447 = vmatpush1.bf16.msra.mxu0 %v8469_v48  ;;  %v8519_v22 = vld [vmem:[#allocation5 + $0x764] ss:$8 sps:$4 sm:$0xff]   ;;  %v8520_v48 = vld [vmem:[#allocation5 + $0x660] ss:$8 sps:$4 sm:$0xff]  }
 0x8f8   : > { %5391 = vmatprep.subr.bf16.mxu1 %v8470_v38  ;;  %5448 = vmatprep.subr.bf16.mxu0 %v8471_v6  ;;  %v8521_v38 = vld [vmem:[#allocation5 + $0x760] ss:$8 sps:$4 sm:$0xff]   ;;  %v8522_v6 = vld [vmem:[#allocation5 + $0x674] ss:$8 sps:$4 sm:$0xff]  }
 0x8fb   : > { %5392 = vmatpush1.bf16.msra.mxu1 %v8472_v5  ;;  %5449 = vmatpush1.bf16.msra.mxu0 %v8473_v3  ;;  %v8523_v5 = vld [vmem:[#allocation5 + $0x774] ss:$8 sps:$4 sm:$0xff]   ;;  %v8524_v3 = vld [vmem:[#allocation5 + $0x670] ss:$8 sps:$4 sm:$0xff]  }
 0x8fc   : > { %5393 = vmatprep.subr.bf16.mxu1 %v8474_v61  ;;  %5450 = vmatprep.subr.bf16.mxu0 %v8475_v56  ;;  %v8525_v61 = vld [vmem:[#allocation5 + $0x770] ss:$8 sps:$4 sm:$0xff]   ;;  %v8526_v56 = vld [vmem:[#allocation5 + $0x684] ss:$8 sps:$4 sm:$0xff]  }
 0x8ff   : > { %5394 = vmatpush1.bf16.msra.mxu1 %v8476_v32  ;;  %5451 = vmatpush1.bf16.msra.mxu0 %v8477_v62  ;;  %v8527_v32 = vld [vmem:[#allocation5 + $0x784] ss:$8 sps:$4 sm:$0xff]   ;;  %v8528_v62 = vld [vmem:[#allocation5 + $0x680] ss:$8 sps:$4 sm:$0xff]  }
 0x900   : > { %5395 = vmatprep.subr.bf16.mxu1 %v8478_v26  ;;  %5452 = vmatprep.subr.bf16.mxu0 %v8479_v11  ;;  %v8529_v26 = vld [vmem:[#allocation5 + $0x780] ss:$8 sps:$4 sm:$0xff]   ;;  %v8530_v11 = vld [vmem:[#allocation5 + $0x694] ss:$8 sps:$4 sm:$0xff]  }
 0x903   : > { %5396 = vmatpush1.bf16.msra.mxu1 %v8480_v13  ;;  %5453 = vmatpush1.bf16.msra.mxu0 %v8481_v21  ;;  %v8531_v13 = vld [vmem:[#allocation5 + $0x794] ss:$8 sps:$4 sm:$0xff]   ;;  %v8532_v21 = vld [vmem:[#allocation5 + $0x690] ss:$8 sps:$4 sm:$0xff]  }
 0x904   : > { %5397 = vmatprep.subr.bf16.mxu1 %v8482_v1  ;;  %5454 = vmatprep.subr.bf16.mxu0 %v8483_v49  ;;  %v8533_v1 = vld [vmem:[#allocation5 + $0x790] ss:$8 sps:$4 sm:$0xff]   ;;  %v8534_v49 = vld [vmem:[#allocation5 + $0x6a4] ss:$8 sps:$4 sm:$0xff]  }
 0x907   : > { %5398 = vmatpush1.bf16.msra.mxu1 %v8484_v33  ;;  %5455 = vmatpush1.bf16.msra.mxu0 %v8485_v12  ;;  %v8535_v33 = vld [vmem:[#allocation5 + $0x7a4] ss:$8 sps:$4 sm:$0xff]   ;;  %v8536_v12 = vld [vmem:[#allocation5 + $0x6a0] ss:$8 sps:$4 sm:$0xff]  }
 0x908   : > { %5399 = vmatprep.subr.bf16.mxu1 %v8486_v4  ;;  %5456 = vmatprep.subr.bf16.mxu0 %v8487_v51  ;;  %v8537_v4 = vld [vmem:[#allocation5 + $0x7a0] ss:$8 sps:$4 sm:$0xff]   ;;  %v8538_v51 = vld [vmem:[#allocation5 + $0x6b4] ss:$8 sps:$4 sm:$0xff]  }
 0x90b   : > { %5400 = vmatpush1.bf16.msra.mxu1 %v8488_v40  ;;  %5457 = vmatpush1.bf16.msra.mxu0 %v8489_v28  ;;  %v8539_v40 = vld [vmem:[#allocation5 + $0x7b4] ss:$8 sps:$4 sm:$0xff]   ;;  %v8540_v28 = vld [vmem:[#allocation5 + $0x6b0] ss:$8 sps:$4 sm:$0xff]  }
 0x90c   : > { %5401 = vmatprep.subr.bf16.mxu1 %v8490_v52  ;;  %5458 = vmatprep.subr.bf16.mxu0 %v8491_v2  ;;  %v8541_v52 = vld [vmem:[#allocation5 + $0x7b0] ss:$8 sps:$4 sm:$0xff]   ;;  %v8542_v2 = vld [vmem:[#allocation5 + $0x6c4] ss:$8 sps:$4 sm:$0xff]  }
 0x90f   : > { %5402 = vmatpush1.bf16.msra.mxu1 %v8492_v57  ;;  %5459 = vmatpush1.bf16.msra.mxu0 %v8493_v30  ;;  %v8543_v57 = vld [vmem:[#allocation5 + $0x7c4] ss:$8 sps:$4 sm:$0xff]   ;;  %v8544_v30 = vld [vmem:[#allocation5 + $0x6c0] ss:$8 sps:$4 sm:$0xff]  }
 0x910   : > { %5485 = vmatprep.subr.bf16.mxu1 %v8494_v53  ;;  %5542 = vmatprep.subr.bf16.mxu0 %v8495_v59  ;;  %v8545_v53 = vld [vmem:[#allocation5 + $0x7c0] ss:$8 sps:$4 sm:$0xff]   ;;  %v8546_v59 = vld [vmem:[#allocation5 + $0x6d4] ss:$8 sps:$4 sm:$0xff]  }
 0x912   : > { %5404 = vmatmul.mubr.bf16.vlgmr.msra.gmra.mrb[216].mxu1 %v11134_v0  ;;  %5461 = vmatmul.mubr.bf16.vlgmr.msra.gmra.mrb[232].mxu0 %v11134_v0 }
 0x913   : > { %5413 = vmatprep.mubr.bf16.mxu1 %v11156_v37  ;;  %5470 = vmatprep.mubr.bf16.mxu0 %v11156_v37 }
 0x914   : > { %5486 = vmatpush1.bf16.msra.mxu1 %v8496_v42  ;;  %5543 = vmatpush1.bf16.msra.mxu0 %v8497_v41  ;;  %v8547_v42 = vld [vmem:[#allocation5 + $0x7d4] ss:$8 sps:$4 sm:$0xff]   ;;  %v8548_v41 = vld [vmem:[#allocation5 + $0x6d0] ss:$8 sps:$4 sm:$0xff]  }
 0x915   : > { %5487 = vmatprep.subr.bf16.mxu1 %v8498_v27  ;;  %5544 = vmatprep.subr.bf16.mxu0 %v8499_v17  ;;  %v8549_v27 = vld [vmem:[#allocation5 + $0x7d0] ss:$8 sps:$4 sm:$0xff]   ;;  %v8550_v17 = vld [vmem:[#allocation5 + $0x6e4] ss:$8 sps:$4 sm:$0xff]  }
 0x918   : > { %5488 = vmatpush1.bf16.msra.mxu1 %v8500_v45  ;;  %5545 = vmatpush1.bf16.msra.mxu0 %v8501_v60  ;;  %v8551_v45 = vld [vmem:[#allocation5 + $0x7e4] ss:$8 sps:$4 sm:$0xff]   ;;  %v8552_v60 = vld [vmem:[#allocation5 + $0x6e0] ss:$8 sps:$4 sm:$0xff]  }
 0x919   : > { %5489 = vmatprep.subr.bf16.mxu1 %v8502_v25  ;;  %5546 = vmatprep.subr.bf16.mxu0 %v8503_v23  ;;  %v8553_v25 = vld [vmem:[#allocation5 + $0x7e0] ss:$8 sps:$4 sm:$0xff]   ;;  %v8554_v23 = vld [vmem:[#allocation5 + $0x6f4] ss:$8 sps:$4 sm:$0xff]  }
 0x91a   : > { %5414 = vmatmul.mubr.bf16.gmra.mrb[220].mxu1 %v11160_v35  ;;  %5471 = vmatmul.mubr.bf16.gmra.mrb[236].mxu0 %v11160_v35 }
 0x91b   : > { %5517 = vmatprep.mubr.bf16.mxu1 %v11129_v14  ;;  %5574 = vmatprep.mubr.bf16.mxu0 %v11129_v14 }
 0x91c   : > { %5490 = vmatpush1.bf16.msra.mxu1 %v8504_v19  ;;  %5547 = vmatpush1.bf16.msra.mxu0 %v8505_v54  ;;  %v8555_v19 = vld [vmem:[#allocation5 + $0x7f4] ss:$8 sps:$4 sm:$0xff]   ;;  %v8556_v54 = vld [vmem:[#allocation5 + $0x6f0] ss:$8 sps:$4 sm:$0xff]  }
 0x91d   : > { %5491 = vmatprep.subr.bf16.mxu1 %v8506_v20  ;;  %5548 = vmatprep.subr.bf16.mxu0 %v8507_v58  ;;  %v8557_v20 = vld [vmem:[#allocation5 + $0x7f0] ss:$8 sps:$4 sm:$0xff]   ;;  %v8558_v58 = vld [vmem:[#allocation5 + $0x804] ss:$8 sps:$4 sm:$0xff]  }
 0x920   : > { %5492 = vmatpush1.bf16.msra.mxu1 %v8508_v50  ;;  %5549 = vmatpush1.bf16.msra.mxu0 %v8509_v36  ;;  %v8559_v50 = vld [vmem:[#allocation5 + $0x800] ss:$8 sps:$4 sm:$0xff]   ;;  %v8560_v36 = vld [vmem:[#allocation5 + $0x814] ss:$8 sps:$4 sm:$0xff]  }
 0x921   : > { %5493 = vmatprep.subr.bf16.mxu1 %v8510_v31  ;;  %5550 = vmatprep.subr.bf16.mxu0 %v8511_v7  ;;  %v8561_v31 = vld [vmem:[#allocation5 + $0x810] ss:$8 sps:$4 sm:$0xff]   ;;  %v8562_v7 = vld [vmem:[#allocation5 + $0x824] ss:$8 sps:$4 sm:$0xff]  }
 0x924   : > { %5494 = vmatpush1.bf16.msra.mxu1 %v8512_v16  ;;  %5551 = vmatpush1.bf16.msra.mxu0 %v8513_v39  ;;  %v8563_v16 = vld [vmem:[#allocation5 + $0x820] ss:$8 sps:$4 sm:$0xff]   ;;  %v8564_v39 = vld [vmem:[#allocation5 + $0x834] ss:$8 sps:$4 sm:$0xff]  }
 0x925   : > { %5495 = vmatprep.subr.bf16.mxu1 %v8514_v18  ;;  %5552 = vmatprep.subr.bf16.mxu0 %v8515_v9  ;;  %v8565_v18 = vld [vmem:[#allocation5 + $0x830] ss:$8 sps:$4 sm:$0xff]   ;;  %v8566_v9 = vld [vmem:[#allocation5 + $0x844] ss:$8 sps:$4 sm:$0xff]  }
 0x928   : > { %5496 = vmatpush1.bf16.msra.mxu1 %v8516_v55  ;;  %5553 = vmatpush1.bf16.msra.mxu0 %v8517_v44 }
 0x929   : > { %5497 = vmatprep.subr.bf16.mxu1 %v8518_v47  ;;  %5554 = vmatprep.subr.bf16.mxu0 %v8519_v22 }
 0x92c   : > { %5498 = vmatpush1.bf16.msra.mxu1 %v8520_v48  ;;  %5555 = vmatpush1.bf16.msra.mxu0 %v8521_v38  ;;  %v8567_v48 = vld [vmem:[#allocation5 + $0x840] ss:$8 sps:$4 sm:$0xff]  }
 0x92d   : > { %5499 = vmatprep.subr.bf16.mxu1 %v8522_v6  ;;  %5556 = vmatprep.subr.bf16.mxu0 %v8523_v5  ;;  %v8568_v5 = vld [vmem:[#allocation5 + $0x854] ss:$8 sps:$4 sm:$0xff]  }
 0x930   : > { %5500 = vmatpush1.bf16.msra.mxu1 %v8524_v3  ;;  %5557 = vmatpush1.bf16.msra.mxu0 %v8525_v61 }
 0x931   : > { %5501 = vmatprep.subr.bf16.mxu1 %v8526_v56  ;;  %5558 = vmatprep.subr.bf16.mxu0 %v8527_v32 }
 0x934   : > { %5502 = vmatpush1.bf16.msra.mxu1 %v8528_v62  ;;  %5559 = vmatpush1.bf16.msra.mxu0 %v8529_v26  ;;  %v8569_v26 = vld [vmem:[#allocation5 + $0x850] ss:$8 sps:$4 sm:$0xff]  }
 0x935   : > { %5503 = vmatprep.subr.bf16.mxu1 %v8530_v11  ;;  %5560 = vmatprep.subr.bf16.mxu0 %v8531_v13  ;;  %v8570_v11 = vld [vmem:[#allocation5 + $0x864] ss:$8 sps:$4 sm:$0xff]   ;;  %v8571_v13 = vld [vmem:[#allocation5 + $0x860] ss:$8 sps:$4 sm:$0xff]  }
 0x938   : > { %5504 = vmatpush1.bf16.msra.mxu1 %v8532_v21  ;;  %5561 = vmatpush1.bf16.msra.mxu0 %v8533_v1  ;;  %v8572_v21 = vld [vmem:[#allocation5 + $0x874] ss:$8 sps:$4 sm:$0xff]   ;;  %v8573_v1 = vld [vmem:[#allocation5 + $0x870] ss:$8 sps:$4 sm:$0xff]  }
 0x939   : > { %5505 = vmatprep.subr.bf16.mxu1 %v8534_v49  ;;  %5562 = vmatprep.subr.bf16.mxu0 %v8535_v33  ;;  %v8574_v49 = vld [vmem:[#allocation5 + $0x884] ss:$8 sps:$4 sm:$0xff]   ;;  %v8575_v33 = vld [vmem:[#allocation5 + $0x880] ss:$8 sps:$4 sm:$0xff]  }
 0x93c   : > { %5506 = vmatpush1.bf16.msra.mxu1 %v8536_v12  ;;  %5563 = vmatpush1.bf16.msra.mxu0 %v8537_v4  ;;  %v8576_v12 = vld [vmem:[#allocation5 + $0x894] ss:$8 sps:$4 sm:$0xff]   ;;  %v8577_v4 = vld [vmem:[#allocation5 + $0x890] ss:$8 sps:$4 sm:$0xff]  }
 0x93d   : > { %5507 = vmatprep.subr.bf16.mxu1 %v8538_v51  ;;  %5564 = vmatprep.subr.bf16.mxu0 %v8539_v40  ;;  %v8578_v51 = vld [vmem:[#allocation5 + $0x8a4] ss:$8 sps:$4 sm:$0xff]  }
 0x940   : > { %5508 = vmatpush1.bf16.msra.mxu1 %v8540_v28  ;;  %5565 = vmatpush1.bf16.msra.mxu0 %v8541_v52 }
 0x941   : > { %5509 = vmatprep.subr.bf16.mxu1 %v8542_v2  ;;  %5566 = vmatprep.subr.bf16.mxu0 %v8543_v57 }
 0x944   : > { %5510 = vmatpush1.bf16.msra.mxu1 %v8544_v30  ;;  %5567 = vmatpush1.bf16.msra.mxu0 %v8545_v53  ;;  %v8579_v53 = vld [vmem:[#allocation5 + $0x8a0] ss:$8 sps:$4 sm:$0xff]  }
 0x945   : > { %5511 = vmatprep.subr.bf16.mxu1 %v8546_v59  ;;  %5568 = vmatprep.subr.bf16.mxu0 %v8547_v42 }
 0x948   : > { %5512 = vmatpush1.bf16.msra.mxu1 %v8548_v41  ;;  %5569 = vmatpush1.bf16.msra.mxu0 %v8549_v27 }
 0x949   : > { %5513 = vmatprep.subr.bf16.mxu1 %v8550_v17  ;;  %5570 = vmatprep.subr.bf16.mxu0 %v8551_v45  ;;  %v8580_v17 = vld [vmem:[#allocation5 + $0x8b4] ss:$8 sps:$4 sm:$0xff]  }
 0x94c   : > { %5514 = vmatpush1.bf16.msra.mxu1 %v8552_v60  ;;  %5571 = vmatpush1.bf16.msra.mxu0 %v8553_v25  ;;  %v8581_v25 = vld [vmem:[#allocation5 + $0x8b0] ss:$8 sps:$4 sm:$0xff]  }
 0x94d   : > { %5515 = vmatprep.subr.bf16.mxu1 %v8554_v23  ;;  %5572 = vmatprep.subr.bf16.mxu0 %v8555_v19  ;;  %v8582_v23 = vld [vmem:[#allocation5 + $0x8c4] ss:$8 sps:$4 sm:$0xff]   ;;  %v8583_v19 = vld [vmem:[#allocation5 + $0x8c0] ss:$8 sps:$4 sm:$0xff]  }
 0x950   : > { %5516 = vmatpush1.bf16.msra.mxu1 %v8556_v54  ;;  %5573 = vmatpush1.bf16.msra.mxu0 %v8557_v20  ;;  %v8584_v54 = vld [vmem:[#allocation5 + $0x8d4] ss:$8 sps:$4 sm:$0xff]   ;;  %v8585_v20 = vld [vmem:[#allocation5 + $0x8d0] ss:$8 sps:$4 sm:$0xff]  }
 0x951   : > { %5599 = vmatprep.subr.bf16.mxu1 %v8558_v58  ;;  %v8586_v58 = vld [vmem:[#allocation5 + $0x8e4] ss:$8 sps:$4 sm:$0xff]  }
 0x953   : > { %5518 = vmatmul.mubr.bf16.vlgmr.msra.gmra.mrb[224].mxu1 %v11134_v0  ;;  %5575 = vmatmul.mubr.bf16.vlgmr.msra.gmra.mrb[240].mxu0 %v11134_v0 }
 0x954   : > { %5527 = vmatprep.mubr.bf16.mxu1 %v11156_v37  ;;  %5584 = vmatprep.mubr.bf16.mxu0 %v11156_v37 }
 0x955   : > { %5600 = vmatpush1.bf16.msra.mxu1 %v8559_v50  ;;  %v8587_v50 = vld [vmem:[#allocation5 + $0x8e0] ss:$8 sps:$4 sm:$0xff]  }
 0x956   : > { %5601 = vmatprep.subr.bf16.mxu1 %v8560_v36  ;;  %v8588_v36 = vld [vmem:[#allocation5 + $0x8f4] ss:$8 sps:$4 sm:$0xff]  }
 0x959   : > { %5602 = vmatpush1.bf16.msra.mxu1 %v8561_v31  ;;  %v8589_v31 = vld [vmem:[#allocation5 + $0x8f0] ss:$8 sps:$4 sm:$0xff]  }
 0x95a   : > { %5603 = vmatprep.subr.bf16.mxu1 %v8562_v7  ;;  %v8590_v7 = vld [vmem:[#allocation5 + $0x4] ss:$8 sps:$4 sm:$0xff]  }
 0x95b   : > { %5528 = vmatmul.mubr.bf16.gmra.mrb[228].mxu1 %v11160_v35  ;;  %5585 = vmatmul.mubr.bf16.gmra.mrb[244].mxu0 %v11160_v35 }
 0x95c   : > { %5631 = vmatprep.mubr.bf16.mxu1 %v11129_v14 }
 0x95d   : > { %5604 = vmatpush1.bf16.msra.mxu1 %v8563_v16  ;;  %v8591_v16 = vld [vmem:[#allocation5] ss:$8 sps:$4 sm:$0xff]  }
 0x95e   : > { %5605 = vmatprep.subr.bf16.mxu1 %v8564_v39  ;;  %v8592_v39 = vld [vmem:[#allocation5 + $0x14] ss:$8 sps:$4 sm:$0xff]  }
 0x961   : > { %5606 = vmatpush1.bf16.msra.mxu1 %v8565_v18  ;;  %v8593_v18 = vld [vmem:[#allocation5 + $0x10] ss:$8 sps:$4 sm:$0xff]  }
 0x962   : > { %5607 = vmatprep.subr.bf16.mxu1 %v8566_v9  ;;  %v8594_v9 = vld [vmem:[#allocation5 + $0x24] ss:$8 sps:$4 sm:$0xff]  }
 0x963   : > { %v5177_v55 = vpop.f32.mrb[200].mxu1  ;;  %v5234_v44 = vpop.f32.mrb[216].mxu0 }
 0x964   : > { %v5179_v47 = vpop.f32.mrb[201].mxu1  ;;  %v5236_v22 = vpop.f32.mrb[217].mxu0 }
 0x965   : > { %5608 = vmatpush1.bf16.msra.mxu1 %v8567_v48  ;;  %v5181_v38 = vpop.f32.mrb[202].mxu1  ;;  %v5238_v6 = vpop.f32.mrb[218].mxu0 }
 0x966   : > { %5609 = vmatprep.subr.bf16.mxu1 %v8568_v5  ;;  %v5196_v3 = vpack.c.bf16 %v5181_v38, %v5177_v55  ;;  %v5253_v14 = vpack.c.bf16 %v5238_v6, %v5234_v44  ;;  %v5183_v61 = vpop.f32.mrb[203].mxu1  ;;  %v5240_v56 = vpop.f32.mrb[219].mxu0  ;;  %v8595_v55 = vld [vmem:[#allocation5 + $0x20] ss:$8 sps:$4 sm:$0xff]   ;;  %v8596_v44 = vld [vmem:[#allocation5 + $0x34] ss:$8 sps:$4 sm:$0xff]  }
 0x967   : > { %v5197_v32 = vpack.c.bf16 %v5183_v61, %v5179_v47  ;;  %v5254_v62 = vpack.c.bf16 %v5240_v56, %v5236_v22  ;;  %v8597_v47 = vld [vmem:[#allocation5 + $0x30] ss:$8 sps:$4 sm:$0xff]   ;;  %v8598_v22 = vld [vmem:[#allocation5 + $0x44] ss:$8 sps:$4 sm:$0xff]   ;;  %v8599_v6 = vld [vmem:[#allocation5 + $0x40] ss:$8 sps:$4 sm:$0xff]  }
 0x969   : > { %5610 = vmatpush1.bf16.msra.mxu1 %v8569_v26  ;;  %5704 = vmatprep.subr.bf16.mxu0 %v5197_v32 }
 0x96a   : > { %5611 = vmatprep.subr.bf16.mxu1 %v8570_v11  ;;  %5705 = vmatpush1.bf16.msra.mxu0 %v5196_v3  ;;  %v8601_v11 = vld [vmem:[#allocation5 + $0x50] ss:$8 sps:$4 sm:$0xff]  }
 0x96d   : > { %5612 = vmatpush1.bf16.msra.mxu1 %v8571_v13  ;;  %v8602_v13 = vld [vmem:[#allocation5 + $0x64] ss:$8 sps:$4 sm:$0xff]  }
 0x96e   : > { %5613 = vmatprep.subr.bf16.mxu1 %v8572_v21 }
 0x971   : > { %5614 = vmatpush1.bf16.msra.mxu1 %v8573_v1 }
 0x972   : > { %5615 = vmatprep.subr.bf16.mxu1 %v8574_v49 }
 0x975   : > { %5616 = vmatpush1.bf16.msra.mxu1 %v8575_v33 }
 0x976   : > { %5617 = vmatprep.subr.bf16.mxu1 %v8576_v12  ;;  %v8603_v12 = vld [vmem:[#allocation5 + $0x60] ss:$8 sps:$4 sm:$0xff]  }
 0x979   : > { %5618 = vmatpush1.bf16.msra.mxu1 %v8577_v4 }
 0x97a   : > { %5619 = vmatprep.subr.bf16.mxu1 %v8578_v51 }
 0x97b   : > { %v5187_v40 = vpop.f32.mrb[204].mxu1  ;;  %v5244_v28 = vpop.f32.mrb[220].mxu0 }
 0x97c   : > { %v5189_v52 = vpop.f32.mrb[205].mxu1  ;;  %v5246_v2 = vpop.f32.mrb[221].mxu0 }
 0x97d   : > { %v5191_v57 = vpop.f32.mrb[206].mxu1  ;;  %v5248_v30 = vpop.f32.mrb[222].mxu0  ;;  %5620 = vmatpush1.bf16.msra.mxu1 %v8579_v53 }
 0x97e   : > { %v5198_v59 = vpack.c.bf16 %v5191_v57, %v5187_v40  ;;  %v5255_v42 = vpack.c.bf16 %v5248_v30, %v5244_v28  ;;  %v5193_v41 = vpop.f32.mrb[207].mxu1  ;;  %v5250_v27 = vpop.f32.mrb[223].mxu0  ;;  %5621 = vmatprep.subr.bf16.mxu1 %v8580_v17  ;;  %v8604_v40 = vld [vmem:[#allocation5 + $0x74] ss:$8 sps:$4 sm:$0xff]   ;;  %v8609_v17 = vld [vmem:[#allocation5 + $0x90] ss:$8 sps:$4 sm:$0xff]  }
 0x97f   : > { %v5199_v45 = vpack.c.bf16 %v5193_v41, %v5189_v52  ;;  %v5256_v60 = vpack.c.bf16 %v5250_v27, %v5246_v2  ;;  %v8607_v41 = vld [vmem:[#allocation5 + $0x80] ss:$8 sps:$4 sm:$0xff]   ;;  %v8608_v27 = vld [vmem:[#allocation5 + $0x94] ss:$8 sps:$4 sm:$0xff]  }
 0x981   : > { %5706 = vmatprep.subr.bf16.mxu0 %v5199_v45  ;;  %5622 = vmatpush1.bf16.msra.mxu1 %v8581_v25  ;;  %v8610_v45 = vld [vmem:[#allocation5 + $0xa4] ss:$8 sps:$4 sm:$0xff]   ;;  %v8612_v25 = vld [vmem:[#allocation5 + $0xb4] ss:$8 sps:$4 sm:$0xff]  }
 0x982   : > { %5707 = vmatpush1.bf16.msra.mxu0 %v5198_v59  ;;  %5623 = vmatprep.subr.bf16.mxu1 %v8582_v23  ;;  %v8605_v59 = vld [vmem:[#allocation5 + $0x70] ss:$8 sps:$4 sm:$0xff]  }
 0x983   : > { %5708 = vmatprep.subr.bf16.mxu0 %v5254_v62  ;;  %v8613_v23 = vld [vmem:[#allocation5 + $0xb0] ss:$8 sps:$4 sm:$0xff]  }
 0x985   : > { %5624 = vmatpush1.bf16.msra.mxu1 %v8583_v19  ;;  %v8614_v19 = vld [vmem:[#allocation5 + $0xc4] ss:$8 sps:$4 sm:$0xff]  }
 0x986   : > { %5709 = vmatpush1.bf16.msra.mxu0 %v5253_v14  ;;  %5625 = vmatprep.subr.bf16.mxu1 %v8584_v54  ;;  %v8600_v14 = vld [vmem:[#allocation5 + $0x54] ss:$8 sps:$4 sm:$0xff]   ;;  %v8615_v54 = vld [vmem:[#allocation5 + $0xc0] ss:$8 sps:$4 sm:$0xff]  }
 0x987   : > { %5710 = vmatprep.subr.bf16.mxu0 %v5256_v60  ;;  %v8611_v60 = vld [vmem:[#allocation5 + $0xa0] ss:$8 sps:$4 sm:$0xff]  }
 0x989   : > { %5626 = vmatpush1.bf16.msra.mxu1 %v8585_v20  ;;  %v8616_v20 = vld [vmem:[#allocation5 + $0xd4] ss:$8 sps:$4 sm:$0xff]  }
 0x98a   : > { %5711 = vmatpush1.bf16.msra.mxu0 %v5255_v42  ;;  %5627 = vmatprep.subr.bf16.mxu1 %v8586_v58  ;;  %v8606_v42 = vld [vmem:[#allocation5 + $0x84] ss:$8 sps:$4 sm:$0xff]   ;;  %v8617_v58 = vld [vmem:[#allocation5 + $0xd0] ss:$8 sps:$4 sm:$0xff]  }
 0x98d   : > { %5628 = vmatpush1.bf16.msra.mxu1 %v8587_v50  ;;  %v8618_v50 = vld [vmem:[#allocation5 + $0xe4] ss:$8 sps:$4 sm:$0xff]  }
 0x98e   : > { %5629 = vmatprep.subr.bf16.mxu1 %v8588_v36  ;;  %v8619_v36 = vld [vmem:[#allocation5 + $0xe0] ss:$8 sps:$4 sm:$0xff]  }
 0x991   : > { %5630 = vmatpush1.bf16.msra.mxu1 %v8589_v31  ;;  %v8620_v31 = vld [vmem:[#allocation5 + $0xf4] ss:$8 sps:$4 sm:$0xff]  }
 0x992   : > { %5878 = vmatprep.subr.bf16.mxu1 %v8590_v7  ;;  %v8621_v7 = vld [vmem:[#allocation5 + $0xf0] ss:$8 sps:$4 sm:$0xff]  }
 0x994   : > { %5632 = vmatmul.mubr.bf16.vlgmr.msra.gmra.mrb[232].mxu1 %v11134_v0 }
 0x995   : > { %5641 = vmatprep.mubr.bf16.mxu1 %v11156_v37  ;;  %5879 = vmatpush1.bf16.msra.mxu1 %v8591_v16  ;;  %v8622_v16 = vld [vmem:[#allocation5 + $0x204] ss:$8 sps:$4 sm:$0xff]  }
 0x996   : > { %5880 = vmatprep.subr.bf16.mxu1 %v8592_v39 }
 0x999   : > { %5881 = vmatpush1.bf16.msra.mxu1 %v8593_v18 }
 0x99a   : > { %5882 = vmatprep.subr.bf16.mxu1 %v8594_v9 }
 0x99c   : > { %5642 = vmatmul.mubr.bf16.gmra.mrb[236].mxu1 %v11160_v35 }
 0x99d   : > { %5883 = vmatpush1.bf16.msra.mxu1 %v8595_v55 }
 0x99e   : > { %5884 = vmatprep.subr.bf16.mxu1 %v8596_v44 }
 0x9a1   : > { %5885 = vmatpush1.bf16.msra.mxu1 %v8597_v47 }
 0x9a2   : > { %5886 = vmatprep.subr.bf16.mxu1 %v8598_v22 }
 0x9a4   : > { %v5291_v0 = vpop.f32.mrb[208].mxu1  ;;  %v5348_v37 = vpop.f32.mrb[224].mxu0 }
 0x9a5   : > { %v5293_v48 = vpop.f32.mrb[209].mxu1  ;;  %v5350_v38 = vpop.f32.mrb[225].mxu0  ;;  %5887 = vmatpush1.bf16.msra.mxu1 %v8599_v6  ;;  %v5660_v6 = vld [vmem:[#allocation10 + $0x20] sm:$0xff] }
 0x9a6   : > { %v5295_v5 = vpop.f32.mrb[210].mxu1  ;;  %v5352_v3 = vpop.f32.mrb[226].mxu0  ;;  %5888 = vmatprep.subr.bf16.mxu1 %v8600_v14 }
 0x9a7   : > { %v5310_v61 = vpack.c.bf16 %v5295_v5, %v5291_v0  ;;  %v5367_v35 = vpack.c.bf16 %v5352_v3, %v5348_v37  ;;  %v5297_v56 = vpop.f32.mrb[211].mxu1  ;;  %v5354_v32 = vpop.f32.mrb[227].mxu0 }
 0x9a8   : > { %v5311_v62 = vpack.c.bf16 %v5297_v56, %v5293_v48  ;;  %v5368_v26 = vpack.c.bf16 %v5354_v32, %v5350_v38  ;;  %v5657_v38 = vld [vmem:[#allocation10 + $0x8] sm:$0xff] }
 0x9a9   : > { %5889 = vmatpush1.bf16.msra.mxu1 %v8601_v11  ;;  %v5669_v14 = vpack.c.bf16 %v5660_v6, %v5657_v38 }
 0x9aa   : > { %5712 = vmatprep.subr.bf16.mxu0 %v5311_v62  ;;  %5890 = vmatprep.subr.bf16.mxu1 %v8602_v13 }
 0x9ab   : > { %5713 = vmatpush1.bf16.msra.mxu0 %v5310_v61  ;;  %5736 = vmatprep.mubr.bf16.mxu0 %v5669_v14 }
 0x9ac   : > { %v5301_v21 = vpop.f32.mrb[212].mxu1  ;;  %v5358_v1 = vpop.f32.mrb[228].mxu0 }
 0x9ad   : > { %v5303_v49 = vpop.f32.mrb[213].mxu1  ;;  %v5360_v33 = vpop.f32.mrb[229].mxu0  ;;  %5891 = vmatpush1.bf16.msra.mxu1 %v8603_v12 }
 0x9ae   : > { %v5305_v4 = vpop.f32.mrb[214].mxu1  ;;  %v5362_v51 = vpop.f32.mrb[230].mxu0  ;;  %5892 = vmatprep.subr.bf16.mxu1 %v8604_v40 }
 0x9af   : > { %v5312_v28 = vpack.c.bf16 %v5305_v4, %v5301_v21  ;;  %v5369_v52 = vpack.c.bf16 %v5362_v51, %v5358_v1  ;;  %v5307_v2 = vpop.f32.mrb[215].mxu1  ;;  %v5364_v57 = vpop.f32.mrb[231].mxu0 }
 0x9b0   : > { %v5313_v30 = vpack.c.bf16 %v5307_v2, %v5303_v49  ;;  %v5370_v53 = vpack.c.bf16 %v5364_v57, %v5360_v33 }
 0x9b1   : > { %5893 = vmatpush1.bf16.msra.mxu1 %v8605_v59 }
 0x9b2   : > { %5714 = vmatprep.subr.bf16.mxu0 %v5313_v30  ;;  %5894 = vmatprep.subr.bf16.mxu1 %v8606_v42 }
 0x9b3   : > { %5715 = vmatpush1.bf16.msra.mxu0 %v5312_v28 }
 0x9b4   : > { %5716 = vmatprep.subr.bf16.mxu0 %v5368_v26 }
 0x9b5   : > { %5895 = vmatpush1.bf16.msra.mxu1 %v8607_v41 }
 0x9b6   : > { %5896 = vmatprep.subr.bf16.mxu1 %v8608_v27 }
 0x9b7   : > { %5717 = vmatpush1.bf16.msra.mxu0 %v5367_v35 }
 0x9b8   : > { %5718 = vmatprep.subr.bf16.mxu0 %v5370_v53 }
 0x9b9   : > { %5897 = vmatpush1.bf16.msra.mxu1 %v8609_v17 }
 0x9ba   : > { %5898 = vmatprep.subr.bf16.mxu1 %v8610_v45 }
 0x9bb   : > { %5719 = vmatpush1.bf16.msra.mxu0 %v5369_v52 }
 0x9bd   : > { %5899 = vmatpush1.bf16.msra.mxu1 %v8611_v60 }
 0x9be   : > { %5900 = vmatprep.subr.bf16.mxu1 %v8612_v25 }
 0x9c1   : > { %5901 = vmatpush1.bf16.msra.mxu1 %v8613_v23 }
 0x9c2   : > { %5902 = vmatprep.subr.bf16.mxu1 %v8614_v19 }
 0x9c5   : > { %5903 = vmatpush1.bf16.msra.mxu1 %v8615_v54 }
 0x9c6   : > { %5904 = vmatprep.subr.bf16.mxu1 %v8616_v20 }
 0x9c9   : > { %5905 = vmatpush1.bf16.msra.mxu1 %v8617_v58 }
 0x9ca   : > { %5906 = vmatprep.subr.bf16.mxu1 %v8618_v50 }
 0x9cd   : > { %5907 = vmatpush1.bf16.msra.mxu1 %v8619_v36  ;;  %v5656_v36 = vld [vmem:[#allocation10] sm:$0xff] }
 0x9ce   : > { %5908 = vmatprep.subr.bf16.mxu1 %v8620_v31  ;;  %v5659_v31 = vld [vmem:[#allocation10 + $0x18] sm:$0xff] }
 0x9d1   : > { %5909 = vmatpush1.bf16.msra.mxu1 %v8621_v7  ;;  %v5663_v7 = vld [vmem:[#allocation10 + $0x38] sm:$0xff] }
 0x9d2   : > { %5992 = vmatprep.subr.bf16.mxu1 %v8622_v16  ;;  %v5666_v16 = vld [vmem:[#allocation10 + $0x50] sm:$0xff] }
 0x9e5   : > { %v5405_v39 = vpop.f32.mrb[216].mxu1  ;;  %v5462_v18 = vpop.f32.mrb[232].mxu0 }
 0x9e6   : > { %v5407_v9 = vpop.f32.mrb[217].mxu1  ;;  %v5464_v55 = vpop.f32.mrb[233].mxu0 }
 0x9e7   : > { %v5409_v44 = vpop.f32.mrb[218].mxu1  ;;  %v5466_v47 = vpop.f32.mrb[234].mxu0 }
 0x9e8   : > { %v5424_v22 = vpack.c.bf16 %v5409_v44, %v5405_v39  ;;  %v5481_v0 = vpack.c.bf16 %v5466_v47, %v5462_v18  ;;  %v5411_v37 = vpop.f32.mrb[219].mxu1  ;;  %v5468_v48 = vpop.f32.mrb[235].mxu0  ;;  %v5668_v39 = vpack.c.bf16 %v5659_v31, %v5656_v36  ;;  %v5672_v18 = vpack.c.bf16 %v5666_v16, %v5663_v7  ;;  %v8651_v36 = vld [vmem:[#allocation5 + $0x1e4] ss:$8 sps:$4 sm:$0xff]   ;;  %v8652_v31 = vld [vmem:[#allocation5 + $0x1e0] ss:$8 sps:$4 sm:$0xff]  }
 0x9e9   : > { %v5425_v5 = vpack.c.bf16 %v5411_v37, %v5407_v9  ;;  %v5482_v3 = vpack.c.bf16 %v5468_v48, %v5464_v55  ;;  %v5662_v9 = vld [vmem:[#allocation10 + $0x30] sm:$0xff]  ;;  %v5665_v55 = vld [vmem:[#allocation10 + $0x48] sm:$0xff] }
 0x9ea   : > { %v5671_v44 = vpack.c.bf16 %v5665_v55, %v5662_v9  ;;  %v8653_v7 = vld [vmem:[#allocation5 + $0x1f4] ss:$8 sps:$4 sm:$0xff]   ;;  %v8654_v16 = vld [vmem:[#allocation5 + $0x1f0] ss:$8 sps:$4 sm:$0xff]  }
 0x9eb   : > { %5720 = vmatprep.subr.bf16.mxu0 %v5425_v5 }
 0x9ec   : > { %5721 = vmatpush1.bf16.msra.mxu0 %v5424_v22 }
 0x9ed   : > { %v5415_v61 = vpop.f32.mrb[220].mxu1  ;;  %v5472_v35 = vpop.f32.mrb[236].mxu0 }
 0x9ee   : > { %v5417_v56 = vpop.f32.mrb[221].mxu1  ;;  %v5474_v32 = vpop.f32.mrb[237].mxu0 }
 0x9ef   : > { %v5419_v62 = vpop.f32.mrb[222].mxu1  ;;  %v5476_v26 = vpop.f32.mrb[238].mxu0 }
 0x9f0   : > { %v5426_v11 = vpack.c.bf16 %v5419_v62, %v5415_v61  ;;  %v5483_v13 = vpack.c.bf16 %v5476_v26, %v5472_v35  ;;  %v5421_v21 = vpop.f32.mrb[223].mxu1  ;;  %v5478_v1 = vpop.f32.mrb[239].mxu0  ;;  %v5658_v35 = vld [vmem:[#allocation10 + $0x10] sm:$0xff]  ;;  %v8623_v26 = vld [vmem:[#allocation5 + $0x104] ss:$8 sps:$4 sm:$0xff]  }
 0x9f1   : > { %v5427_v49 = vpack.c.bf16 %v5421_v21, %v5417_v56  ;;  %v5484_v33 = vpack.c.bf16 %v5478_v1, %v5474_v32  ;;  %v5661_v56 = vld [vmem:[#allocation10 + $0x28] sm:$0xff]  ;;  %v8625_v1 = vld [vmem:[#allocation5 + $0x114] ss:$8 sps:$4 sm:$0xff]  }
 0x9f2   : > { %v5670_v62 = vpack.c.bf16 %v5661_v56, %v5658_v35  ;;  %v8624_v21 = vld [vmem:[#allocation5 + $0x100] ss:$8 sps:$4 sm:$0xff]  }
 0x9f3   : > { %5722 = vmatprep.subr.bf16.mxu0 %v5427_v49 }
 0x9f4   : > { %5723 = vmatpush1.bf16.msra.mxu0 %v5426_v11  ;;  %v5664_v11 = vld [vmem:[#allocation10 + $0x40] sm:$0xff] }
 0x9f5   : > { %5724 = vmatprep.subr.bf16.mxu0 %v5482_v3 }
 0x9f8   : > { %5725 = vmatpush1.bf16.msra.mxu0 %v5481_v0 }
 0x9f9   : > { %5726 = vmatprep.subr.bf16.mxu0 %v5484_v33  ;;  %v8626_v33 = vld [vmem:[#allocation5 + $0x110] ss:$8 sps:$4 sm:$0xff]  }
 0x9fc   : > { %5727 = vmatpush1.bf16.msra.mxu0 %v5483_v13  ;;  %v5667_v13 = vld [vmem:[#allocation10 + $0x58] sm:$0xff] }
 0x9fd   : > { %v5673_v49 = vpack.c.bf16 %v5667_v13, %v5664_v11 }
 0xa26   : > { %v5519_v12 = vpop.f32.mrb[224].mxu1  ;;  %v5576_v4 = vpop.f32.mrb[240].mxu0 }
 0xa27   : > { %v5521_v51 = vpop.f32.mrb[225].mxu1  ;;  %v5578_v40 = vpop.f32.mrb[241].mxu0 }
 0xa28   : > { %v5523_v28 = vpop.f32.mrb[226].mxu1  ;;  %v5580_v52 = vpop.f32.mrb[242].mxu0 }
 0xa29   : > { %v5538_v2 = vpack.c.bf16 %v5523_v28, %v5519_v12  ;;  %v5595_v57 = vpack.c.bf16 %v5580_v52, %v5576_v4  ;;  %v5525_v30 = vpop.f32.mrb[227].mxu1  ;;  %v5582_v53 = vpop.f32.mrb[243].mxu0  ;;  %v8627_v12 = vld [vmem:[#allocation5 + $0x124] ss:$8 sps:$4 sm:$0xff]   ;;  %v8628_v4 = vld [vmem:[#allocation5 + $0x120] ss:$8 sps:$4 sm:$0xff]  }
 0xa2a   : > { %v5539_v59 = vpack.c.bf16 %v5525_v30, %v5521_v51  ;;  %v5596_v42 = vpack.c.bf16 %v5582_v53, %v5578_v40  ;;  %v8629_v51 = vld [vmem:[#allocation5 + $0x134] ss:$8 sps:$4 sm:$0xff]   ;;  %v8630_v40 = vld [vmem:[#allocation5 + $0x130] ss:$8 sps:$4 sm:$0xff]   ;;  %v8631_v28 = vld [vmem:[#allocation5 + $0x144] ss:$8 sps:$4 sm:$0xff]  }
 0xa2b   : > { %v8632_v52 = vld [vmem:[#allocation5 + $0x140] ss:$8 sps:$4 sm:$0xff]   ;;  %v8635_v30 = vld [vmem:[#allocation5 + $0x164] ss:$8 sps:$4 sm:$0xff]  }
 0xa2c   : > { %5728 = vmatprep.subr.bf16.mxu0 %v5539_v59  ;;  %v8636_v53 = vld [vmem:[#allocation5 + $0x160] ss:$8 sps:$4 sm:$0xff]   ;;  %v8637_v59 = vld [vmem:[#allocation5 + $0x174] ss:$8 sps:$4 sm:$0xff]  }
 0xa2d   : > { %5729 = vmatpush1.bf16.msra.mxu0 %v5538_v2  ;;  %v8633_v2 = vld [vmem:[#allocation5 + $0x154] ss:$8 sps:$4 sm:$0xff]  }
 0xa2e   : > { %v5529_v41 = vpop.f32.mrb[228].mxu1  ;;  %v5586_v27 = vpop.f32.mrb[244].mxu0 }
 0xa2f   : > { %v5531_v17 = vpop.f32.mrb[229].mxu1  ;;  %v5588_v45 = vpop.f32.mrb[245].mxu0 }
 0xa30   : > { %v5533_v60 = vpop.f32.mrb[230].mxu1  ;;  %v5590_v25 = vpop.f32.mrb[246].mxu0 }
 0xa31   : > { %v5540_v23 = vpack.c.bf16 %v5533_v60, %v5529_v41  ;;  %v5597_v19 = vpack.c.bf16 %v5590_v25, %v5586_v27  ;;  %v5535_v54 = vpop.f32.mrb[231].mxu1  ;;  %v5592_v20 = vpop.f32.mrb[247].mxu0  ;;  %v8639_v41 = vld [vmem:[#allocation5 + $0x184] ss:$8 sps:$4 sm:$0xff]   ;;  %v8640_v27 = vld [vmem:[#allocation5 + $0x180] ss:$8 sps:$4 sm:$0xff]  }
 0xa32   : > { %v5541_v58 = vpack.c.bf16 %v5535_v54, %v5531_v17  ;;  %v5598_v50 = vpack.c.bf16 %v5592_v20, %v5588_v45  ;;  %v8641_v17 = vld [vmem:[#allocation5 + $0x194] ss:$8 sps:$4 sm:$0xff]   ;;  %v8642_v45 = vld [vmem:[#allocation5 + $0x190] ss:$8 sps:$4 sm:$0xff]   ;;  %v8643_v60 = vld [vmem:[#allocation5 + $0x1a4] ss:$8 sps:$4 sm:$0xff]  }
 0xa33   : > { %v8644_v25 = vld [vmem:[#allocation5 + $0x1a0] ss:$8 sps:$4 sm:$0xff]   ;;  %v8647_v54 = vld [vmem:[#allocation5 + $0x1c4] ss:$8 sps:$4 sm:$0xff]  }
 0xa34   : > { %5730 = vmatprep.subr.bf16.mxu0 %v5541_v58  ;;  %v8648_v20 = vld [vmem:[#allocation5 + $0x1c0] ss:$8 sps:$4 sm:$0xff]   ;;  %v8649_v58 = vld [vmem:[#allocation5 + $0x1d4] ss:$8 sps:$4 sm:$0xff]  }
 0xa35   : > { %5731 = vmatpush1.bf16.msra.mxu0 %v5540_v23  ;;  %v8645_v23 = vld [vmem:[#allocation5 + $0x1b4] ss:$8 sps:$4 sm:$0xff]  }
 0xa36   : > { %5732 = vmatprep.subr.bf16.mxu0 %v5596_v42  ;;  %v8638_v42 = vld [vmem:[#allocation5 + $0x170] ss:$8 sps:$4 sm:$0xff]  }
 0xa39   : > { %5733 = vmatpush1.bf16.msra.mxu0 %v5595_v57  ;;  %v8634_v57 = vld [vmem:[#allocation5 + $0x150] ss:$8 sps:$4 sm:$0xff]  }
 0xa3a   : > { %5734 = vmatprep.subr.bf16.mxu0 %v5598_v50  ;;  %v8650_v50 = vld [vmem:[#allocation5 + $0x1d0] ss:$8 sps:$4 sm:$0xff]  }
 0xa3d   : > { %5735 = vmatpush1.bf16.msra.mxu0 %v5597_v19  ;;  %v8646_v19 = vld [vmem:[#allocation5 + $0x1b0] ss:$8 sps:$4 sm:$0xff]  }
 0xa40   : > { %5737 = vmatmul.mubr.bf16.vlgmr.msra.gmra.mrb[248].mxu0 %v5668_v39  ;;  %v8655_v39 = vld [vmem:[#allocation5 + $0x304] ss:$8 sps:$4 sm:$0xff]  }
 0xa41   : > { %5746 = vmatprep.mubr.bf16.mxu0 %v5672_v18  ;;  %v5681_v18 = vpop.permute.xlu0 %5680 }
 0xa48   : > { %5747 = vmatmul.mubr.bf16.gmra.mrb[252].mxu0 %v5671_v44 }
 0xa49   : > { %5789 = vmatprep.mubr.bf16.mxu0 %v11435_v15 }
 0xa67   : > { %v5633_v47 = vpop.f32.mrb[232].mxu1 }
 0xa68   : > { %v5635_v22 = vpop.f32.mrb[233].mxu1 }
 0xa69   : > { %v5637_v0 = vpop.f32.mrb[234].mxu1 }
 0xa6a   : > { %v5652_v37 = vpack.c.bf16 %v5637_v0, %v5633_v47  ;;  %v5639_v48 = vpop.f32.mrb[235].mxu1  ;;  %v5686_v47 = vpop.permute.xlu1 %5685 }
 0xa6b   : > { %v5653_v38 = vpack.c.bf16 %v5639_v48, %v5635_v22 }
 0xa6d   : > { %5757 = vmatprep.subr.bf16.mxu0 %v5653_v38 }
 0xa6e   : > { %5758 = vmatpush1.bf16.msra.mxu0 %v5652_v37 }
 0xa6f   : > { %v5643_v6 = vpop.f32.mrb[236].mxu1 }
 0xa70   : > { %v5645_v5 = vpop.f32.mrb[237].mxu1 }
 0xa71   : > { %v5647_v3 = vpop.f32.mrb[238].mxu1 }
 0xa72   : > { %v5654_v14 = vpack.c.bf16 %v5647_v3, %v5643_v6  ;;  %v5649_v61 = vpop.f32.mrb[239].mxu1 }
 0xa73   : > { %v5655_v32 = vpack.c.bf16 %v5649_v61, %v5645_v5 }
 0xa75   : > { %5759 = vmatprep.subr.bf16.mxu0 %v5655_v32  ;;  %v5691_v32 = vpop.permute.xlu0 %5690 }
 0xa76   : > { %5760 = vmatpush1.bf16.msra.mxu0 %v5654_v14 }
 0xa77   : > { %5935 = vmatprep.subr.bf16.mxu0 %v8623_v26 }
 0xa79   : > { %7197 = vmatmul.mubr.msk.bf16.vlgmr.msra.gmra.mrb[248].mxu0 %vm4485_vm8, %v5670_v62 }
 0xa7a   : > { %5799 = vmatprep.mubr.bf16.mxu0 %v11435_v15  ;;  %5936 = vmatpush1.bf16.msra.mxu0 %v8624_v21  ;;  %v5696_v21 = vpop.permute.xlu1 %5695 }
 0xa7b   : > { %5937 = vmatprep.subr.bf16.mxu0 %v8625_v1 }
 0xa7e   : > { %5938 = vmatpush1.bf16.msra.mxu0 %v8626_v33 }
 0xa7f   : > { %5939 = vmatprep.subr.bf16.mxu0 %v8627_v12 }
 0xa81   : > { %7198 = vmatmul.mubr.msk.bf16.gmra.mrb[252].mxu0 %vm4485_vm8, %v5673_v49 }
 0xa82   : > { %5940 = vmatpush1.bf16.msra.mxu0 %v8628_v4 }
 0xa83   : > { %5941 = vmatprep.subr.bf16.mxu0 %v8629_v51 }
 0xa86   : > { %5942 = vmatpush1.bf16.msra.mxu0 %v8630_v40 }
 0xa87   : > { %5943 = vmatprep.subr.bf16.mxu0 %v8631_v28 }
 0xa8a   : > { %5944 = vmatpush1.bf16.msra.mxu0 %v8632_v52 }
 0xa8b   : > { %5945 = vmatprep.subr.bf16.mxu0 %v8633_v2 }
 0xa8e   : > { %5946 = vmatpush1.bf16.msra.mxu0 %v8634_v57 }
 0xa8f   : > { %5947 = vmatprep.subr.bf16.mxu0 %v8635_v30 }
 0xa92   : > { %5948 = vmatpush1.bf16.msra.mxu0 %v8636_v53 }
 0xa93   : > { %5949 = vmatprep.subr.bf16.mxu0 %v8637_v59 }
 0xa96   : > { %5950 = vmatpush1.bf16.msra.mxu0 %v8638_v42 }
 0xa97   : > { %5951 = vmatprep.subr.bf16.mxu0 %v8639_v41 }
 0xa9a   : > { %5952 = vmatpush1.bf16.msra.mxu0 %v8640_v27 }
 0xa9b   : > { %5953 = vmatprep.subr.bf16.mxu0 %v8641_v17 }
 0xa9e   : > { %5954 = vmatpush1.bf16.msra.mxu0 %v8642_v45 }
 0xa9f   : > { %5955 = vmatprep.subr.bf16.mxu0 %v8643_v60 }
 0xaa2   : > { %5956 = vmatpush1.bf16.msra.mxu0 %v8644_v25 }
 0xaa3   : > { %5957 = vmatprep.subr.bf16.mxu0 %v8645_v23 }
 0xaa6   : > { %5958 = vmatpush1.bf16.msra.mxu0 %v8646_v19 }
 0xaa7   : > { %5959 = vmatprep.subr.bf16.mxu0 %v8647_v54 }
 0xaaa   : > { %5960 = vmatpush1.bf16.msra.mxu0 %v8648_v20 }
 0xaab   : > { %5961 = vmatprep.subr.bf16.mxu0 %v8649_v58 }
 0xaae   : > { %5962 = vmatpush1.bf16.msra.mxu0 %v8650_v50 }
 0xaaf   : > { %5963 = vmatprep.subr.bf16.mxu0 %v8651_v36 }
 0xab2   : > { %5964 = vmatpush1.bf16.msra.mxu0 %v8652_v31 }
 0xab3   : > { %5965 = vmatprep.subr.bf16.mxu0 %v8653_v7 }
 0xab6   : > { %5966 = vmatpush1.bf16.msra.mxu0 %v8654_v16 }
 0xab7   : > { %6049 = vmatprep.subr.bf16.mxu0 %v8655_v39 }
 0xb4c   : > { %v5791_v9 = vpop.f32.mrb[248].mxu0 }
 0xb4d   : > { %v7254_v55 = vadd.f32 %v5791_v9, %v5681_v18  ;;  %v5793_v44 = vpop.f32.mrb[249].mxu0 }
 0xb4e   : > { %v7255_v22 = vadd.f32 %v5793_v44, %v5681_v18  ;;  %v5795_v0 = vpop.f32.mrb[250].mxu0 }
 0xb4f   : > { %v5818_v37 = vmin.f32 %v7254_v55, 0.0  ;;  %v7256_v48 = vadd.f32 %v5795_v0, %v5686_v47  ;;  %v5797_v38 = vpop.f32.mrb[251].mxu0  ;;  %vm5810_vm1 = vcmp.gt.f32.partialorder %v7254_v55, 0.0 }
 0xb50   : > { %v5819_v6 = vmin.f32 %v7255_v22, 0.0  ;;  %v7257_v5 = vadd.f32 %v5797_v38, %v5686_v47  ;;  %vm5811_vm2 = vcmp.gt.f32.partialorder %v7255_v22, 0.0 }
 0xb51   : > { %v5826_v3 = vmul.f32 1.442695, %v5818_v37  ;;  %v5820_v14 = vmin.f32 %v7256_v48, 0.0  ;;  %vm5812_vm3 = vcmp.gt.f32.partialorder %v7256_v48, 0.0 }
 0xb52   : > { %v5828_v61 = vmul.f32 1.442695, %v5819_v6  ;;  %v5821_v35 = vmin.f32 %v7257_v5, 0.0  ;;  %vm5813_vm4 = vcmp.gt.f32.partialorder %v7257_v5, 0.0 }
 0xb53   : > { %7982 = vpow2.f32 %v5826_v3  ;;  %v5830_v56 = vmul.f32 1.442695, %v5820_v14 }
 0xb54   : > { %7984 = vpow2.f32 %v5828_v61  ;;  %v5832_v62 = vmul.f32 1.442695, %v5821_v35  ;;  %v5801_v26 = vpop.f32.mrb[252].mxu0 }
 0xb55   : > { %7986 = vpow2.f32 %v5830_v56  ;;  %v7258_v11 = vadd.f32 %v5801_v26, %v5691_v32  ;;  %v5803_v13 = vpop.f32.mrb[253].mxu0  ;;  %v8657_v26 = vld [vmem:[#allocation5 + $0x300] ss:$8 sps:$4 sm:$0xff]  }
 0xb56   : > { %7988 = vpow2.f32 %v5832_v62  ;;  %v7259_v1 = vadd.f32 %v5803_v13, %v5691_v32  ;;  %v5805_v49 = vpop.f32.mrb[254].mxu0  ;;  %v8656_v62 = vld [vmem:[#allocation5 + $0x200] ss:$8 sps:$4 sm:$0xff]  }
 0xb57   : > { %v5822_v33 = vmin.f32 %v7258_v11, 0.0  ;;  %v7260_v12 = vadd.f32 %v5805_v49, %v5696_v21  ;;  %v5807_v4 = vpop.f32.mrb[255].mxu0  ;;  %vm5814_vm5 = vcmp.gt.f32.partialorder %v7258_v11, 0.0  ;;  %v8658_v49 = vld [vmem:[#allocation5 + $0x214] ss:$8 sps:$4 sm:$0xff]  }
 0xb58   : > { %v5823_v51 = vmin.f32 %v7259_v1, 0.0  ;;  %v11198_v40 = vadd.f32 %v5807_v4, %v5696_v21  ;;  %vm5815_vm6 = vcmp.gt.f32.partialorder %v7259_v1, 0.0 }
 0xb59   : > { %v5834_v28 = vmul.f32 1.442695, %v5822_v33  ;;  %v5824_v52 = vmin.f32 %v7260_v12, 0.0  ;;  %vm5816_vm7 = vcmp.gt.f32.partialorder %v7260_v12, 0.0 }
 0xb5a   : > { %v5836_v2 = vmul.f32 1.442695, %v5823_v51  ;;  %v5825_v57 = vmin.f32 %v11198_v40, 0.0  ;;  %vm5817_vm9 = vcmp.gt.f32.partialorder %v11198_v40, 0.0 }
 0xb5b   : > { %7990 = vpow2.f32 %v5834_v28  ;;  %v5838_v30 = vmul.f32 1.442695, %v5824_v52  ;;  %v8661_v52 = vld [vmem:[#allocation5 + $0x310] ss:$8 sps:$4 sm:$0xff]  }
 0xb5c   : > { %7992 = vpow2.f32 %v5836_v2  ;;  %v5840_v53 = vmul.f32 1.442695, %v5825_v57  ;;  %v8662_v2 = vld [vmem:[#allocation5 + $0x224] ss:$8 sps:$4 sm:$0xff]  }
 0xb5d   : > { %v7983_v59 = vpop.eup %7982  ;;  %7994 = vpow2.f32 %v5838_v30  ;;  %v8663_v57 = vld [vmem:[#allocation5 + $0x324] ss:$8 sps:$4 sm:$0xff]   ;;  %v8665_v30 = vld [vmem:[#allocation5 + $0x320] ss:$8 sps:$4 sm:$0xff]  }
 0xb5e   : > { %v7985_v42 = vpop.eup %7984  ;;  %v7199_v41 = vadd.f32 -1.0, %v7983_v59  ;;  %7996 = vpow2.f32 %v5840_v53  ;;  %v8666_v53 = vld [vmem:[#allocation5 + $0x234] ss:$8 sps:$4 sm:$0xff]  }
 0xb5f   : > { %v7987_v27 = vpop.eup %7986  ;;  %v7200_v17 = vadd.f32 -1.0, %v7985_v42  ;;  %v8667_v59 = vld [vmem:[#allocation5 + $0x334] ss:$8 sps:$4 sm:$0xff]   ;;  %v8668_v42 = vld [vmem:[#allocation5 + $0x230] ss:$8 sps:$4 sm:$0xff]  }
 0xb60   : > { %v7989_v45 = vpop.eup %7988  ;;  %v5850_v60 = vmul.f32 1.6732632, %v7199_v41  ;;  %v7201_v25 = vadd.f32 -1.0, %v7987_v27  ;;  %v8669_v41 = vld [vmem:[#allocation5 + $0x330] ss:$8 sps:$4 sm:$0xff]  }
 0xb61   : > { %v5851_v23 = vmul.f32 1.6732632, %v7200_v17  ;;  %v7202_v19 = vadd.f32 -1.0, %v7989_v45  ;;  %v8670_v27 = vld [vmem:[#allocation5 + $0x244] ss:$8 sps:$4 sm:$0xff]  }
 0xb62   : > { %v5858_v54 = vsel %vm5810_vm1, %v7254_v55, %v5850_v60  ;;  %v5852_v20 = vmul.f32 1.6732632, %v7201_v25  ;;  %v8671_v17 = vld [vmem:[#allocation5 + $0x344] ss:$8 sps:$4 sm:$0xff]   ;;  %v8672_v45 = vld [vmem:[#allocation5 + $0x240] ss:$8 sps:$4 sm:$0xff]  }
 0xb63   : > { %v5859_v58 = vsel %vm5811_vm2, %v7255_v22, %v5851_v23  ;;  %v5853_v50 = vmul.f32 1.6732632, %v7202_v19  ;;  %v5866_v7 = vmul.f32 1.050701, %v5858_v54  ;;  %v8673_v60 = vld [vmem:[#allocation5 + $0x340] ss:$8 sps:$4 sm:$0xff]  }
 0xb64   : > { %v5860_v36 = vsel %vm5812_vm3, %v7256_v48, %v5852_v20  ;;  %v5867_v9 = vmul.f32 1.050701, %v5859_v58  ;;  %v8674_v25 = vld [vmem:[#allocation5 + $0x254] ss:$8 sps:$4 sm:$0xff]   ;;  %v8676_v19 = vld [vmem:[#allocation5 + $0x250] ss:$8 sps:$4 sm:$0xff]  }
 0xb65   : > { %v7991_v31 = vpop.eup %7990  ;;  %v5868_v16 = vmul.f32 1.050701, %v5860_v36  ;;  %v5861_v39 = vsel %vm5813_vm4, %v7257_v5, %v5853_v50  ;;  %v8675_v23 = vld [vmem:[#allocation5 + $0x354] ss:$8 sps:$4 sm:$0xff]   ;;  %v8677_v54 = vld [vmem:[#allocation5 + $0x350] ss:$8 sps:$4 sm:$0xff]  }
 0xb66   : > { %v7993_v18 = vpop.eup %7992  ;;  %v5869_v44 = vmul.f32 1.050701, %v5861_v39  ;;  %v7203_v47 = vadd.f32 -1.0, %v7991_v31  ;;  %v8678_v20 = vld [vmem:[#allocation5 + $0x264] ss:$8 sps:$4 sm:$0xff]  }
 0xb67   : > { %v7995_v0 = vpop.eup %7994  ;;  %v11201_v37 = vpack.c.bf16 %v5868_v16, %v5866_v7  ;;  %v7204_v38 = vadd.f32 -1.0, %v7993_v18  ;;  %v8679_v58 = vld [vmem:[#allocation5 + $0x364] ss:$8 sps:$4 sm:$0xff]   ;;  %v8680_v50 = vld [vmem:[#allocation5 + $0x260] ss:$8 sps:$4 sm:$0xff]  }
 0xb68   : > { %v7997_v55 = vpop.eup %7996  ;;  %v11203_v6 = vpack.c.bf16 %v5869_v44, %v5867_v9  ;;  %v5854_v22 = vmul.f32 1.6732632, %v7203_v47  ;;  %v7205_v3 = vadd.f32 -1.0, %v7995_v0  ;;  %v8681_v36 = vld [vmem:[#allocation5 + $0x360] ss:$8 sps:$4 sm:$0xff]  }
 0xb69   : > { %v5855_v48 = vmul.f32 1.6732632, %v7204_v38  ;;  %v7206_v14 = vadd.f32 -1.0, %v7997_v55  ;;  %v8682_v31 = vld [vmem:[#allocation5 + $0x274] ss:$8 sps:$4 sm:$0xff]  }
 0xb6a   : > { %v5862_v61 = vsel %vm5814_vm5, %v7258_v11, %v5854_v22  ;;  %v5856_v35 = vmul.f32 1.6732632, %v7205_v3  ;;  %5910 = vmatprep.mubr.bf16.mxu1 %v11203_v6  ;;  %5967 = vmatprep.mubr.bf16.mxu0 %v11203_v6  ;;  %v8683_v7 = vld [vmem:[#allocation5 + $0x374] ss:$8 sps:$4 sm:$0xff]   ;;  %v8684_v16 = vld [vmem:[#allocation5 + $0x270] ss:$8 sps:$4 sm:$0xff]  }
 0xb6b   : > { %v5863_v5 = vsel %vm5815_vm6, %v7259_v1, %v5855_v48  ;;  %v5857_v56 = vmul.f32 1.6732632, %v7206_v14  ;;  %5911 = vmatmul.mubr.bf16.vlgmr.msra.gmra.mrb[240].mxu1 %v11201_v37  ;;  %5968 = vmatmul.mubr.bf16.vlgmr.msra.gmra.mrb[0].mxu0 %v11201_v37  ;;  %v5870_v11 = vmul.f32 1.050701, %v5862_v61  ;;  %v8659_v1 = vld [vmem:[#allocation5 + $0x314] ss:$8 sps:$4 sm:$0xff]  }
 0xb6c   : > { %v5864_v32 = vsel %vm5816_vm7, %v7260_v12, %v5856_v35  ;;  %5993 = vmatpush1.bf16.msra.mxu1 %v8656_v62  ;;  %6050 = vmatpush1.bf16.msra.mxu0 %v8657_v26  ;;  %v5871_v33 = vmul.f32 1.050701, %v5863_v5  ;;  %v8660_v12 = vld [vmem:[#allocation5 + $0x210] ss:$8 sps:$4 sm:$0xff]   ;;  %v8686_v18 = vld [vmem:[#allocation5 + $0x284] ss:$8 sps:$4 sm:$0xff]  }
 0xb6d   : > { %v5872_v13 = vmul.f32 1.050701, %v5864_v32  ;;  %v5865_v21 = vsel %vm5817_vm9, %v11198_v40, %v5857_v56  ;;  %5994 = vmatprep.subr.bf16.mxu1 %v8658_v49  ;;  %6051 = vmatprep.subr.bf16.mxu0 %v8659_v1  ;;  %v8664_v40 = vld [vmem:[#allocation5 + $0x220] ss:$8 sps:$4 sm:$0xff]   ;;  %v8685_v39 = vld [vmem:[#allocation5 + $0x370] ss:$8 sps:$4 sm:$0xff]  }
 0xb6e   : > { %v5873_v4 = vmul.f32 1.050701, %v5865_v21  ;;  %v8687_v9 = vld [vmem:[#allocation5 + $0x384] ss:$8 sps:$4 sm:$0xff]   ;;  %v8688_v44 = vld [vmem:[#allocation5 + $0x280] ss:$8 sps:$4 sm:$0xff]  }
 0xb6f   : > { %v11211_v51 = vpack.c.bf16 %v5872_v13, %v5870_v11  ;;  %v8689_v47 = vld [vmem:[#allocation5 + $0x380] ss:$8 sps:$4 sm:$0xff]   ;;  %v8690_v0 = vld [vmem:[#allocation5 + $0x294] ss:$8 sps:$4 sm:$0xff]   ;;  %v8692_v55 = vld [vmem:[#allocation5 + $0x290] ss:$8 sps:$4 sm:$0xff]  }
 0xb70   : > { %v11213_v28 = vpack.c.bf16 %v5873_v4, %v5871_v33  ;;  %5995 = vmatpush1.bf16.msra.mxu1 %v8660_v12  ;;  %6052 = vmatpush1.bf16.msra.mxu0 %v8661_v52  ;;  %v8691_v38 = vld [vmem:[#allocation5 + $0x394] ss:$8 sps:$4 sm:$0xff]   ;;  %v8693_v22 = vld [vmem:[#allocation5 + $0x390] ss:$8 sps:$4 sm:$0xff]   ;;  %v8694_v3 = vld [vmem:[#allocation5 + $0x2a4] ss:$8 sps:$4 sm:$0xff]  }
 0xb71   : > { %5996 = vmatprep.subr.bf16.mxu1 %v8662_v2  ;;  %6053 = vmatprep.subr.bf16.mxu0 %v8663_v57  ;;  %v8695_v48 = vld [vmem:[#allocation5 + $0x3a4] ss:$8 sps:$4 sm:$0xff]   ;;  %v8696_v14 = vld [vmem:[#allocation5 + $0x2a0] ss:$8 sps:$4 sm:$0xff]   ;;  %v8698_v35 = vld [vmem:[#allocation5 + $0x2b4] ss:$8 sps:$4 sm:$0xff]  }
 0xb72   : > { %5920 = vmatprep.mubr.bf16.mxu1 %v11213_v28  ;;  %5977 = vmatprep.mubr.bf16.mxu0 %v11213_v28  ;;  %v8697_v61 = vld [vmem:[#allocation5 + $0x3a0] ss:$8 sps:$4 sm:$0xff]   ;;  %v8699_v5 = vld [vmem:[#allocation5 + $0x3b4] ss:$8 sps:$4 sm:$0xff]   ;;  %v8700_v56 = vld [vmem:[#allocation5 + $0x2b0] ss:$8 sps:$4 sm:$0xff]  }
 0xb73   : > { %5921 = vmatmul.mubr.bf16.gmra.mrb[244].mxu1 %v11211_v51  ;;  %5978 = vmatmul.mubr.bf16.gmra.mrb[4].mxu0 %v11211_v51  ;;  %v8701_v32 = vld [vmem:[#allocation5 + $0x3b0] ss:$8 sps:$4 sm:$0xff]   ;;  %v8702_v62 = vld [vmem:[#allocation5 + $0x2c4] ss:$8 sps:$4 sm:$0xff]   ;;  %v8704_v11 = vld [vmem:[#allocation5 + $0x2c0] ss:$8 sps:$4 sm:$0xff]  }
 0xb74   : > { %5997 = vmatpush1.bf16.msra.mxu1 %v8664_v40  ;;  %6054 = vmatpush1.bf16.msra.mxu0 %v8665_v30  ;;  %v8703_v26 = vld [vmem:[#allocation5 + $0x3c4] ss:$8 sps:$4 sm:$0xff]   ;;  %v8705_v13 = vld [vmem:[#allocation5 + $0x3c0] ss:$8 sps:$4 sm:$0xff]   ;;  %v8706_v21 = vld [vmem:[#allocation5 + $0x2d4] ss:$8 sps:$4 sm:$0xff]  }
 0xb75   : > { %6024 = vmatprep.mubr.bf16.mxu1 %v11203_v6  ;;  %6081 = vmatprep.mubr.bf16.mxu0 %v11203_v6  ;;  %v8707_v49 = vld [vmem:[#allocation5 + $0x3d4] ss:$8 sps:$4 sm:$0xff]   ;;  %v8708_v1 = vld [vmem:[#allocation5 + $0x2d0] ss:$8 sps:$4 sm:$0xff]   ;;  %v8710_v4 = vld [vmem:[#allocation5 + $0x2e4] ss:$8 sps:$4 sm:$0xff]  }
 0xb76   : > { %5998 = vmatprep.subr.bf16.mxu1 %v8666_v53  ;;  %6055 = vmatprep.subr.bf16.mxu0 %v8667_v59  ;;  %v8709_v33 = vld [vmem:[#allocation5 + $0x3d0] ss:$8 sps:$4 sm:$0xff]   ;;  %v8711_v12 = vld [vmem:[#allocation5 + $0x3e4] ss:$8 sps:$4 sm:$0xff]   ;;  %v8712_v52 = vld [vmem:[#allocation5 + $0x2e0] ss:$8 sps:$4 sm:$0xff]  }
 0xb77   : > { %v8713_v2 = vld [vmem:[#allocation5 + $0x3e0] ss:$8 sps:$4 sm:$0xff]   ;;  %v8714_v57 = vld [vmem:[#allocation5 + $0x2f4] ss:$8 sps:$4 sm:$0xff]   ;;  %v8716_v30 = vld [vmem:[#allocation5 + $0x2f0] ss:$8 sps:$4 sm:$0xff]  }
 0xb78   : > { %5999 = vmatpush1.bf16.msra.mxu1 %v8668_v42  ;;  %6056 = vmatpush1.bf16.msra.mxu0 %v8669_v41  ;;  %v8715_v40 = vld [vmem:[#allocation5 + $0x3f4] ss:$8 sps:$4 sm:$0xff]   ;;  %v8717_v53 = vld [vmem:[#allocation5 + $0x3f0] ss:$8 sps:$4 sm:$0xff]   ;;  %v8718_v59 = vld [vmem:[#allocation5 + $0x404] ss:$8 sps:$4 sm:$0xff]  }
 0xb79   : > { %6000 = vmatprep.subr.bf16.mxu1 %v8670_v27  ;;  %6057 = vmatprep.subr.bf16.mxu0 %v8671_v17  ;;  %v8719_v42 = vld [vmem:[#allocation5 + $0x504] ss:$8 sps:$4 sm:$0xff]   ;;  %v8720_v41 = vld [vmem:[#allocation5 + $0x400] ss:$8 sps:$4 sm:$0xff]   ;;  %v8722_v17 = vld [vmem:[#allocation5 + $0x414] ss:$8 sps:$4 sm:$0xff]  }
 0xb7a   : > { %v8721_v27 = vld [vmem:[#allocation5 + $0x500] ss:$8 sps:$4 sm:$0xff]  }
 0xb7c   : > { %6001 = vmatpush1.bf16.msra.mxu1 %v8672_v45  ;;  %6058 = vmatpush1.bf16.msra.mxu0 %v8673_v60  ;;  %v8723_v45 = vld [vmem:[#allocation5 + $0x514] ss:$8 sps:$4 sm:$0xff]   ;;  %v8724_v60 = vld [vmem:[#allocation5 + $0x410] ss:$8 sps:$4 sm:$0xff]  }
 0xb7d   : > { %6002 = vmatprep.subr.bf16.mxu1 %v8674_v25  ;;  %6059 = vmatprep.subr.bf16.mxu0 %v8675_v23  ;;  %v8725_v25 = vld [vmem:[#allocation5 + $0x510] ss:$8 sps:$4 sm:$0xff]   ;;  %v8726_v23 = vld [vmem:[#allocation5 + $0x424] ss:$8 sps:$4 sm:$0xff]  }
 0xb80   : > { %6003 = vmatpush1.bf16.msra.mxu1 %v8676_v19  ;;  %6060 = vmatpush1.bf16.msra.mxu0 %v8677_v54  ;;  %v8727_v19 = vld [vmem:[#allocation5 + $0x524] ss:$8 sps:$4 sm:$0xff]   ;;  %v8728_v54 = vld [vmem:[#allocation5 + $0x420] ss:$8 sps:$4 sm:$0xff]  }
 0xb81   : > { %6004 = vmatprep.subr.bf16.mxu1 %v8678_v20  ;;  %6061 = vmatprep.subr.bf16.mxu0 %v8679_v58  ;;  %v8729_v20 = vld [vmem:[#allocation5 + $0x520] ss:$8 sps:$4 sm:$0xff]   ;;  %v8730_v58 = vld [vmem:[#allocation5 + $0x434] ss:$8 sps:$4 sm:$0xff]  }
 0xb84   : > { %6005 = vmatpush1.bf16.msra.mxu1 %v8680_v50  ;;  %6062 = vmatpush1.bf16.msra.mxu0 %v8681_v36  ;;  %v8731_v50 = vld [vmem:[#allocation5 + $0x534] ss:$8 sps:$4 sm:$0xff]   ;;  %v8732_v36 = vld [vmem:[#allocation5 + $0x430] ss:$8 sps:$4 sm:$0xff]  }
 0xb85   : > { %6006 = vmatprep.subr.bf16.mxu1 %v8682_v31  ;;  %6063 = vmatprep.subr.bf16.mxu0 %v8683_v7  ;;  %v8733_v31 = vld [vmem:[#allocation5 + $0x530] ss:$8 sps:$4 sm:$0xff]   ;;  %v8734_v7 = vld [vmem:[#allocation5 + $0x444] ss:$8 sps:$4 sm:$0xff]  }
 0xb88   : > { %6007 = vmatpush1.bf16.msra.mxu1 %v8684_v16  ;;  %6064 = vmatpush1.bf16.msra.mxu0 %v8685_v39  ;;  %v8735_v16 = vld [vmem:[#allocation5 + $0x544] ss:$8 sps:$4 sm:$0xff]   ;;  %v8736_v39 = vld [vmem:[#allocation5 + $0x440] ss:$8 sps:$4 sm:$0xff]  }
 0xb89   : > { %6008 = vmatprep.subr.bf16.mxu1 %v8686_v18  ;;  %6065 = vmatprep.subr.bf16.mxu0 %v8687_v9  ;;  %v8737_v18 = vld [vmem:[#allocation5 + $0x540] ss:$8 sps:$4 sm:$0xff]   ;;  %v8738_v9 = vld [vmem:[#allocation5 + $0x454] ss:$8 sps:$4 sm:$0xff]  }
 0xb8c   : > { %6009 = vmatpush1.bf16.msra.mxu1 %v8688_v44  ;;  %6066 = vmatpush1.bf16.msra.mxu0 %v8689_v47  ;;  %v8739_v44 = vld [vmem:[#allocation5 + $0x554] ss:$8 sps:$4 sm:$0xff]   ;;  %v8740_v47 = vld [vmem:[#allocation5 + $0x450] ss:$8 sps:$4 sm:$0xff]  }
 0xb8d   : > { %6010 = vmatprep.subr.bf16.mxu1 %v8690_v0  ;;  %6067 = vmatprep.subr.bf16.mxu0 %v8691_v38  ;;  %v8741_v0 = vld [vmem:[#allocation5 + $0x550] ss:$8 sps:$4 sm:$0xff]   ;;  %v8742_v38 = vld [vmem:[#allocation5 + $0x464] ss:$8 sps:$4 sm:$0xff]  }
 0xb90   : > { %6011 = vmatpush1.bf16.msra.mxu1 %v8692_v55  ;;  %6068 = vmatpush1.bf16.msra.mxu0 %v8693_v22  ;;  %v8743_v55 = vld [vmem:[#allocation5 + $0x564] ss:$8 sps:$4 sm:$0xff]   ;;  %v8744_v22 = vld [vmem:[#allocation5 + $0x460] ss:$8 sps:$4 sm:$0xff]  }
 0xb91   : > { %6012 = vmatprep.subr.bf16.mxu1 %v8694_v3  ;;  %6069 = vmatprep.subr.bf16.mxu0 %v8695_v48  ;;  %v8745_v3 = vld [vmem:[#allocation5 + $0x560] ss:$8 sps:$4 sm:$0xff]   ;;  %v8746_v48 = vld [vmem:[#allocation5 + $0x474] ss:$8 sps:$4 sm:$0xff]  }
 0xb94   : > { %6013 = vmatpush1.bf16.msra.mxu1 %v8696_v14  ;;  %6070 = vmatpush1.bf16.msra.mxu0 %v8697_v61  ;;  %v8747_v14 = vld [vmem:[#allocation5 + $0x574] ss:$8 sps:$4 sm:$0xff]   ;;  %v8748_v61 = vld [vmem:[#allocation5 + $0x470] ss:$8 sps:$4 sm:$0xff]  }
 0xb95   : > { %6014 = vmatprep.subr.bf16.mxu1 %v8698_v35  ;;  %6071 = vmatprep.subr.bf16.mxu0 %v8699_v5  ;;  %v8749_v35 = vld [vmem:[#allocation5 + $0x570] ss:$8 sps:$4 sm:$0xff]   ;;  %v8750_v5 = vld [vmem:[#allocation5 + $0x484] ss:$8 sps:$4 sm:$0xff]  }
 0xb98   : > { %6015 = vmatpush1.bf16.msra.mxu1 %v8700_v56  ;;  %6072 = vmatpush1.bf16.msra.mxu0 %v8701_v32  ;;  %v8751_v56 = vld [vmem:[#allocation5 + $0x584] ss:$8 sps:$4 sm:$0xff]   ;;  %v8752_v32 = vld [vmem:[#allocation5 + $0x480] ss:$8 sps:$4 sm:$0xff]  }
 0xb99   : > { %6016 = vmatprep.subr.bf16.mxu1 %v8702_v62  ;;  %6073 = vmatprep.subr.bf16.mxu0 %v8703_v26  ;;  %v8753_v62 = vld [vmem:[#allocation5 + $0x580] ss:$8 sps:$4 sm:$0xff]   ;;  %v8754_v26 = vld [vmem:[#allocation5 + $0x494] ss:$8 sps:$4 sm:$0xff]  }
 0xb9c   : > { %6017 = vmatpush1.bf16.msra.mxu1 %v8704_v11  ;;  %6074 = vmatpush1.bf16.msra.mxu0 %v8705_v13  ;;  %v8755_v11 = vld [vmem:[#allocation5 + $0x594] ss:$8 sps:$4 sm:$0xff]   ;;  %v8756_v13 = vld [vmem:[#allocation5 + $0x490] ss:$8 sps:$4 sm:$0xff]  }
 0xb9d   : > { %6018 = vmatprep.subr.bf16.mxu1 %v8706_v21  ;;  %6075 = vmatprep.subr.bf16.mxu0 %v8707_v49  ;;  %v8757_v21 = vld [vmem:[#allocation5 + $0x590] ss:$8 sps:$4 sm:$0xff]   ;;  %v8758_v49 = vld [vmem:[#allocation5 + $0x4a4] ss:$8 sps:$4 sm:$0xff]  }
 0xba0   : > { %6019 = vmatpush1.bf16.msra.mxu1 %v8708_v1  ;;  %6076 = vmatpush1.bf16.msra.mxu0 %v8709_v33  ;;  %v8759_v1 = vld [vmem:[#allocation5 + $0x5a4] ss:$8 sps:$4 sm:$0xff]   ;;  %v8760_v33 = vld [vmem:[#allocation5 + $0x4a0] ss:$8 sps:$4 sm:$0xff]  }
 0xba1   : > { %6020 = vmatprep.subr.bf16.mxu1 %v8710_v4  ;;  %6077 = vmatprep.subr.bf16.mxu0 %v8711_v12  ;;  %v8761_v4 = vld [vmem:[#allocation5 + $0x5a0] ss:$8 sps:$4 sm:$0xff]   ;;  %v8762_v12 = vld [vmem:[#allocation5 + $0x4b4] ss:$8 sps:$4 sm:$0xff]  }
 0xba4   : > { %6021 = vmatpush1.bf16.msra.mxu1 %v8712_v52  ;;  %6078 = vmatpush1.bf16.msra.mxu0 %v8713_v2  ;;  %v8763_v52 = vld [vmem:[#allocation5 + $0x5b4] ss:$8 sps:$4 sm:$0xff]   ;;  %v8764_v2 = vld [vmem:[#allocation5 + $0x4b0] ss:$8 sps:$4 sm:$0xff]  }
 0xba5   : > { %6022 = vmatprep.subr.bf16.mxu1 %v8714_v57  ;;  %6079 = vmatprep.subr.bf16.mxu0 %v8715_v40  ;;  %v8765_v57 = vld [vmem:[#allocation5 + $0x5b0] ss:$8 sps:$4 sm:$0xff]   ;;  %v8766_v40 = vld [vmem:[#allocation5 + $0x4c4] ss:$8 sps:$4 sm:$0xff]  }
 0xba8   : > { %6023 = vmatpush1.bf16.msra.mxu1 %v8716_v30  ;;  %6080 = vmatpush1.bf16.msra.mxu0 %v8717_v53  ;;  %v8767_v30 = vld [vmem:[#allocation5 + $0x5c4] ss:$8 sps:$4 sm:$0xff]   ;;  %v8768_v53 = vld [vmem:[#allocation5 + $0x4c0] ss:$8 sps:$4 sm:$0xff]  }
 0xba9   : > { %6106 = vmatprep.subr.bf16.mxu1 %v8718_v59  ;;  %6163 = vmatprep.subr.bf16.mxu0 %v8719_v42  ;;  %v8769_v59 = vld [vmem:[#allocation5 + $0x5c0] ss:$8 sps:$4 sm:$0xff]   ;;  %v8770_v42 = vld [vmem:[#allocation5 + $0x4d4] ss:$8 sps:$4 sm:$0xff]  }
 0xbab   : > { %6025 = vmatmul.mubr.bf16.vlgmr.msra.gmra.mrb[248].mxu1 %v11201_v37  ;;  %6082 = vmatmul.mubr.bf16.vlgmr.msra.gmra.mrb[8].mxu0 %v11201_v37 }
 0xbac   : > { %6034 = vmatprep.mubr.bf16.mxu1 %v11213_v28  ;;  %6091 = vmatprep.mubr.bf16.mxu0 %v11213_v28 }
 0xbad   : > { %6107 = vmatpush1.bf16.msra.mxu1 %v8720_v41  ;;  %6164 = vmatpush1.bf16.msra.mxu0 %v8721_v27  ;;  %v8771_v41 = vld [vmem:[#allocation5 + $0x5d4] ss:$8 sps:$4 sm:$0xff]   ;;  %v8772_v27 = vld [vmem:[#allocation5 + $0x4d0] ss:$8 sps:$4 sm:$0xff]  }
 0xbae   : > { %6108 = vmatprep.subr.bf16.mxu1 %v8722_v17  ;;  %6165 = vmatprep.subr.bf16.mxu0 %v8723_v45  ;;  %v8773_v17 = vld [vmem:[#allocation5 + $0x5d0] ss:$8 sps:$4 sm:$0xff]   ;;  %v8774_v45 = vld [vmem:[#allocation5 + $0x4e4] ss:$8 sps:$4 sm:$0xff]  }
 0xbb1   : > { %6109 = vmatpush1.bf16.msra.mxu1 %v8724_v60  ;;  %6166 = vmatpush1.bf16.msra.mxu0 %v8725_v25  ;;  %v8775_v60 = vld [vmem:[#allocation5 + $0x5e4] ss:$8 sps:$4 sm:$0xff]   ;;  %v8776_v25 = vld [vmem:[#allocation5 + $0x4e0] ss:$8 sps:$4 sm:$0xff]  }
 0xbb2   : > { %6110 = vmatprep.subr.bf16.mxu1 %v8726_v23  ;;  %6167 = vmatprep.subr.bf16.mxu0 %v8727_v19  ;;  %v8777_v23 = vld [vmem:[#allocation5 + $0x5e0] ss:$8 sps:$4 sm:$0xff]   ;;  %v8778_v19 = vld [vmem:[#allocation5 + $0x4f4] ss:$8 sps:$4 sm:$0xff]  }
 0xbb3   : > { %6035 = vmatmul.mubr.bf16.gmra.mrb[252].mxu1 %v11211_v51  ;;  %6092 = vmatmul.mubr.bf16.gmra.mrb[12].mxu0 %v11211_v51 }
 0xbb4   : > { %6138 = vmatprep.mubr.bf16.mxu1 %v11203_v6  ;;  %6195 = vmatprep.mubr.bf16.mxu0 %v11203_v6 }
 0xbb5   : > { %6111 = vmatpush1.bf16.msra.mxu1 %v8728_v54  ;;  %6168 = vmatpush1.bf16.msra.mxu0 %v8729_v20  ;;  %v8779_v54 = vld [vmem:[#allocation5 + $0x5f4] ss:$8 sps:$4 sm:$0xff]   ;;  %v8780_v20 = vld [vmem:[#allocation5 + $0x4f0] ss:$8 sps:$4 sm:$0xff]  }
 0xbb6   : > { %6112 = vmatprep.subr.bf16.mxu1 %v8730_v58  ;;  %6169 = vmatprep.subr.bf16.mxu0 %v8731_v50  ;;  %v8781_v58 = vld [vmem:[#allocation5 + $0x5f0] ss:$8 sps:$4 sm:$0xff]   ;;  %v8782_v50 = vld [vmem:[#allocation5 + $0x604] ss:$8 sps:$4 sm:$0xff]  }
 0xbb9   : > { %6113 = vmatpush1.bf16.msra.mxu1 %v8732_v36  ;;  %6170 = vmatpush1.bf16.msra.mxu0 %v8733_v31  ;;  %v8783_v36 = vld [vmem:[#allocation5 + $0x704] ss:$8 sps:$4 sm:$0xff]   ;;  %v8784_v31 = vld [vmem:[#allocation5 + $0x600] ss:$8 sps:$4 sm:$0xff]  }
 0xbba   : > { %6114 = vmatprep.subr.bf16.mxu1 %v8734_v7  ;;  %6171 = vmatprep.subr.bf16.mxu0 %v8735_v16  ;;  %v8785_v7 = vld [vmem:[#allocation5 + $0x700] ss:$8 sps:$4 sm:$0xff]   ;;  %v8786_v16 = vld [vmem:[#allocation5 + $0x614] ss:$8 sps:$4 sm:$0xff]  }
 0xbbd   : > { %6115 = vmatpush1.bf16.msra.mxu1 %v8736_v39  ;;  %6172 = vmatpush1.bf16.msra.mxu0 %v8737_v18  ;;  %v8787_v39 = vld [vmem:[#allocation5 + $0x714] ss:$8 sps:$4 sm:$0xff]   ;;  %v8788_v18 = vld [vmem:[#allocation5 + $0x610] ss:$8 sps:$4 sm:$0xff]  }
 0xbbe   : > { %6116 = vmatprep.subr.bf16.mxu1 %v8738_v9  ;;  %6173 = vmatprep.subr.bf16.mxu0 %v8739_v44  ;;  %v8789_v9 = vld [vmem:[#allocation5 + $0x710] ss:$8 sps:$4 sm:$0xff]   ;;  %v8790_v44 = vld [vmem:[#allocation5 + $0x624] ss:$8 sps:$4 sm:$0xff]  }
 0xbc1   : > { %6117 = vmatpush1.bf16.msra.mxu1 %v8740_v47  ;;  %6174 = vmatpush1.bf16.msra.mxu0 %v8741_v0  ;;  %v8791_v47 = vld [vmem:[#allocation5 + $0x724] ss:$8 sps:$4 sm:$0xff]   ;;  %v8792_v0 = vld [vmem:[#allocation5 + $0x620] ss:$8 sps:$4 sm:$0xff]  }
 0xbc2   : > { %6118 = vmatprep.subr.bf16.mxu1 %v8742_v38  ;;  %6175 = vmatprep.subr.bf16.mxu0 %v8743_v55  ;;  %v8793_v38 = vld [vmem:[#allocation5 + $0x720] ss:$8 sps:$4 sm:$0xff]   ;;  %v8794_v55 = vld [vmem:[#allocation5 + $0x634] ss:$8 sps:$4 sm:$0xff]  }
 0xbc5   : > { %6119 = vmatpush1.bf16.msra.mxu1 %v8744_v22  ;;  %6176 = vmatpush1.bf16.msra.mxu0 %v8745_v3  ;;  %v8795_v22 = vld [vmem:[#allocation5 + $0x734] ss:$8 sps:$4 sm:$0xff]   ;;  %v8796_v3 = vld [vmem:[#allocation5 + $0x630] ss:$8 sps:$4 sm:$0xff]  }
 0xbc6   : > { %6120 = vmatprep.subr.bf16.mxu1 %v8746_v48  ;;  %6177 = vmatprep.subr.bf16.mxu0 %v8747_v14  ;;  %v8797_v48 = vld [vmem:[#allocation5 + $0x730] ss:$8 sps:$4 sm:$0xff]   ;;  %v8798_v14 = vld [vmem:[#allocation5 + $0x644] ss:$8 sps:$4 sm:$0xff]  }
 0xbc9   : > { %6121 = vmatpush1.bf16.msra.mxu1 %v8748_v61  ;;  %6178 = vmatpush1.bf16.msra.mxu0 %v8749_v35  ;;  %v8799_v61 = vld [vmem:[#allocation5 + $0x744] ss:$8 sps:$4 sm:$0xff]   ;;  %v8800_v35 = vld [vmem:[#allocation5 + $0x640] ss:$8 sps:$4 sm:$0xff]  }
 0xbca   : > { %6122 = vmatprep.subr.bf16.mxu1 %v8750_v5  ;;  %6179 = vmatprep.subr.bf16.mxu0 %v8751_v56  ;;  %v8801_v5 = vld [vmem:[#allocation5 + $0x740] ss:$8 sps:$4 sm:$0xff]   ;;  %v8802_v56 = vld [vmem:[#allocation5 + $0x654] ss:$8 sps:$4 sm:$0xff]  }
 0xbcd   : > { %6123 = vmatpush1.bf16.msra.mxu1 %v8752_v32  ;;  %6180 = vmatpush1.bf16.msra.mxu0 %v8753_v62  ;;  %v8803_v32 = vld [vmem:[#allocation5 + $0x754] ss:$8 sps:$4 sm:$0xff]   ;;  %v8804_v62 = vld [vmem:[#allocation5 + $0x650] ss:$8 sps:$4 sm:$0xff]  }
 0xbce   : > { %6124 = vmatprep.subr.bf16.mxu1 %v8754_v26  ;;  %6181 = vmatprep.subr.bf16.mxu0 %v8755_v11  ;;  %v8805_v26 = vld [vmem:[#allocation5 + $0x750] ss:$8 sps:$4 sm:$0xff]   ;;  %v8806_v11 = vld [vmem:[#allocation5 + $0x664] ss:$8 sps:$4 sm:$0xff]  }
 0xbd1   : > { %6125 = vmatpush1.bf16.msra.mxu1 %v8756_v13  ;;  %6182 = vmatpush1.bf16.msra.mxu0 %v8757_v21  ;;  %v8807_v13 = vld [vmem:[#allocation5 + $0x764] ss:$8 sps:$4 sm:$0xff]   ;;  %v8808_v21 = vld [vmem:[#allocation5 + $0x660] ss:$8 sps:$4 sm:$0xff]  }
 0xbd2   : > { %6126 = vmatprep.subr.bf16.mxu1 %v8758_v49  ;;  %6183 = vmatprep.subr.bf16.mxu0 %v8759_v1  ;;  %v8809_v49 = vld [vmem:[#allocation5 + $0x760] ss:$8 sps:$4 sm:$0xff]   ;;  %v8810_v1 = vld [vmem:[#allocation5 + $0x674] ss:$8 sps:$4 sm:$0xff]  }
 0xbd5   : > { %6127 = vmatpush1.bf16.msra.mxu1 %v8760_v33  ;;  %6184 = vmatpush1.bf16.msra.mxu0 %v8761_v4  ;;  %v8811_v33 = vld [vmem:[#allocation5 + $0x774] ss:$8 sps:$4 sm:$0xff]   ;;  %v8812_v4 = vld [vmem:[#allocation5 + $0x670] ss:$8 sps:$4 sm:$0xff]  }
 0xbd6   : > { %6128 = vmatprep.subr.bf16.mxu1 %v8762_v12  ;;  %6185 = vmatprep.subr.bf16.mxu0 %v8763_v52  ;;  %v8813_v12 = vld [vmem:[#allocation5 + $0x770] ss:$8 sps:$4 sm:$0xff]   ;;  %v8814_v52 = vld [vmem:[#allocation5 + $0x684] ss:$8 sps:$4 sm:$0xff]  }
 0xbd9   : > { %6129 = vmatpush1.bf16.msra.mxu1 %v8764_v2  ;;  %6186 = vmatpush1.bf16.msra.mxu0 %v8765_v57  ;;  %v8815_v2 = vld [vmem:[#allocation5 + $0x784] ss:$8 sps:$4 sm:$0xff]   ;;  %v8816_v57 = vld [vmem:[#allocation5 + $0x680] ss:$8 sps:$4 sm:$0xff]  }
 0xbda   : > { %6130 = vmatprep.subr.bf16.mxu1 %v8766_v40  ;;  %6187 = vmatprep.subr.bf16.mxu0 %v8767_v30  ;;  %v8817_v40 = vld [vmem:[#allocation5 + $0x780] ss:$8 sps:$4 sm:$0xff]   ;;  %v8818_v30 = vld [vmem:[#allocation5 + $0x694] ss:$8 sps:$4 sm:$0xff]  }
 0xbdd   : > { %6131 = vmatpush1.bf16.msra.mxu1 %v8768_v53  ;;  %6188 = vmatpush1.bf16.msra.mxu0 %v8769_v59  ;;  %v8819_v53 = vld [vmem:[#allocation5 + $0x794] ss:$8 sps:$4 sm:$0xff]   ;;  %v8820_v59 = vld [vmem:[#allocation5 + $0x690] ss:$8 sps:$4 sm:$0xff]  }
 0xbde   : > { %6132 = vmatprep.subr.bf16.mxu1 %v8770_v42  ;;  %6189 = vmatprep.subr.bf16.mxu0 %v8771_v41  ;;  %v8821_v42 = vld [vmem:[#allocation5 + $0x790] ss:$8 sps:$4 sm:$0xff]   ;;  %v8822_v41 = vld [vmem:[#allocation5 + $0x6a4] ss:$8 sps:$4 sm:$0xff]  }
 0xbe1   : > { %6133 = vmatpush1.bf16.msra.mxu1 %v8772_v27  ;;  %6190 = vmatpush1.bf16.msra.mxu0 %v8773_v17  ;;  %v8823_v27 = vld [vmem:[#allocation5 + $0x7a4] ss:$8 sps:$4 sm:$0xff]   ;;  %v8824_v17 = vld [vmem:[#allocation5 + $0x6a0] ss:$8 sps:$4 sm:$0xff]  }
 0xbe2   : > { %6134 = vmatprep.subr.bf16.mxu1 %v8774_v45  ;;  %6191 = vmatprep.subr.bf16.mxu0 %v8775_v60  ;;  %v8825_v45 = vld [vmem:[#allocation5 + $0x7a0] ss:$8 sps:$4 sm:$0xff]   ;;  %v8826_v60 = vld [vmem:[#allocation5 + $0x6b4] ss:$8 sps:$4 sm:$0xff]  }
 0xbe5   : > { %6135 = vmatpush1.bf16.msra.mxu1 %v8776_v25  ;;  %6192 = vmatpush1.bf16.msra.mxu0 %v8777_v23  ;;  %v8827_v25 = vld [vmem:[#allocation5 + $0x7b4] ss:$8 sps:$4 sm:$0xff]   ;;  %v8828_v23 = vld [vmem:[#allocation5 + $0x6b0] ss:$8 sps:$4 sm:$0xff]  }
 0xbe6   : > { %6136 = vmatprep.subr.bf16.mxu1 %v8778_v19  ;;  %6193 = vmatprep.subr.bf16.mxu0 %v8779_v54  ;;  %v8829_v19 = vld [vmem:[#allocation5 + $0x7b0] ss:$8 sps:$4 sm:$0xff]   ;;  %v8830_v54 = vld [vmem:[#allocation5 + $0x6c4] ss:$8 sps:$4 sm:$0xff]  }
 0xbe9   : > { %6137 = vmatpush1.bf16.msra.mxu1 %v8780_v20  ;;  %6194 = vmatpush1.bf16.msra.mxu0 %v8781_v58  ;;  %v8831_v20 = vld [vmem:[#allocation5 + $0x7c4] ss:$8 sps:$4 sm:$0xff]   ;;  %v8832_v58 = vld [vmem:[#allocation5 + $0x6c0] ss:$8 sps:$4 sm:$0xff]  }
 0xbea   : > { %6220 = vmatprep.subr.bf16.mxu1 %v8782_v50  ;;  %6277 = vmatprep.subr.bf16.mxu0 %v8783_v36  ;;  %v8833_v50 = vld [vmem:[#allocation5 + $0x7c0] ss:$8 sps:$4 sm:$0xff]   ;;  %v8834_v36 = vld [vmem:[#allocation5 + $0x6d4] ss:$8 sps:$4 sm:$0xff]  }
 0xbec   : > { %6139 = vmatmul.mubr.bf16.vlgmr.msra.gmra.mrb[0].mxu1 %v11201_v37  ;;  %6196 = vmatmul.mubr.bf16.vlgmr.msra.gmra.mrb[16].mxu0 %v11201_v37 }
 0xbed   : > { %6148 = vmatprep.mubr.bf16.mxu1 %v11213_v28  ;;  %6205 = vmatprep.mubr.bf16.mxu0 %v11213_v28 }
 0xbee   : > { %6221 = vmatpush1.bf16.msra.mxu1 %v8784_v31  ;;  %6278 = vmatpush1.bf16.msra.mxu0 %v8785_v7  ;;  %v8835_v31 = vld [vmem:[#allocation5 + $0x7d4] ss:$8 sps:$4 sm:$0xff]   ;;  %v8836_v7 = vld [vmem:[#allocation5 + $0x6d0] ss:$8 sps:$4 sm:$0xff]  }
 0xbef   : > { %6222 = vmatprep.subr.bf16.mxu1 %v8786_v16  ;;  %6279 = vmatprep.subr.bf16.mxu0 %v8787_v39  ;;  %v8837_v16 = vld [vmem:[#allocation5 + $0x7d0] ss:$8 sps:$4 sm:$0xff]   ;;  %v8838_v39 = vld [vmem:[#allocation5 + $0x6e4] ss:$8 sps:$4 sm:$0xff]  }
 0xbf2   : > { %6223 = vmatpush1.bf16.msra.mxu1 %v8788_v18  ;;  %6280 = vmatpush1.bf16.msra.mxu0 %v8789_v9  ;;  %v8839_v18 = vld [vmem:[#allocation5 + $0x7e4] ss:$8 sps:$4 sm:$0xff]   ;;  %v8840_v9 = vld [vmem:[#allocation5 + $0x6e0] ss:$8 sps:$4 sm:$0xff]  }
 0xbf3   : > { %6224 = vmatprep.subr.bf16.mxu1 %v8790_v44  ;;  %6281 = vmatprep.subr.bf16.mxu0 %v8791_v47  ;;  %v8841_v44 = vld [vmem:[#allocation5 + $0x7e0] ss:$8 sps:$4 sm:$0xff]   ;;  %v8842_v47 = vld [vmem:[#allocation5 + $0x6f4] ss:$8 sps:$4 sm:$0xff]  }
 0xbf4   : > { %6149 = vmatmul.mubr.bf16.gmra.mrb[4].mxu1 %v11211_v51  ;;  %6206 = vmatmul.mubr.bf16.gmra.mrb[20].mxu0 %v11211_v51 }
 0xbf5   : > { %6252 = vmatprep.mubr.bf16.mxu1 %v11203_v6  ;;  %6309 = vmatprep.mubr.bf16.mxu0 %v11203_v6 }
 0xbf6   : > { %6225 = vmatpush1.bf16.msra.mxu1 %v8792_v0  ;;  %6282 = vmatpush1.bf16.msra.mxu0 %v8793_v38  ;;  %v8843_v0 = vld [vmem:[#allocation5 + $0x7f4] ss:$8 sps:$4 sm:$0xff]   ;;  %v8844_v38 = vld [vmem:[#allocation5 + $0x6f0] ss:$8 sps:$4 sm:$0xff]  }
 0xbf7   : > { %6226 = vmatprep.subr.bf16.mxu1 %v8794_v55  ;;  %6283 = vmatprep.subr.bf16.mxu0 %v8795_v22  ;;  %v8845_v55 = vld [vmem:[#allocation5 + $0x7f0] ss:$8 sps:$4 sm:$0xff]   ;;  %v8846_v22 = vld [vmem:[#allocation5 + $0x804] ss:$8 sps:$4 sm:$0xff]  }
 0xbfa   : > { %6227 = vmatpush1.bf16.msra.mxu1 %v8796_v3  ;;  %6284 = vmatpush1.bf16.msra.mxu0 %v8797_v48  ;;  %v8847_v3 = vld [vmem:[#allocation5 + $0x800] ss:$8 sps:$4 sm:$0xff]   ;;  %v8848_v48 = vld [vmem:[#allocation5 + $0x814] ss:$8 sps:$4 sm:$0xff]  }
 0xbfb   : > { %6228 = vmatprep.subr.bf16.mxu1 %v8798_v14  ;;  %6285 = vmatprep.subr.bf16.mxu0 %v8799_v61  ;;  %v8849_v14 = vld [vmem:[#allocation5 + $0x810] ss:$8 sps:$4 sm:$0xff]   ;;  %v8850_v61 = vld [vmem:[#allocation5 + $0x824] ss:$8 sps:$4 sm:$0xff]  }
 0xbfe   : > { %6229 = vmatpush1.bf16.msra.mxu1 %v8800_v35  ;;  %6286 = vmatpush1.bf16.msra.mxu0 %v8801_v5  ;;  %v8851_v35 = vld [vmem:[#allocation5 + $0x820] ss:$8 sps:$4 sm:$0xff]   ;;  %v8852_v5 = vld [vmem:[#allocation5 + $0x834] ss:$8 sps:$4 sm:$0xff]  }
 0xbff   : > { %6230 = vmatprep.subr.bf16.mxu1 %v8802_v56  ;;  %6287 = vmatprep.subr.bf16.mxu0 %v8803_v32  ;;  %v8853_v56 = vld [vmem:[#allocation5 + $0x830] ss:$8 sps:$4 sm:$0xff]   ;;  %v8854_v32 = vld [vmem:[#allocation5 + $0x844] ss:$8 sps:$4 sm:$0xff]  }
 0xc02   : > { %6231 = vmatpush1.bf16.msra.mxu1 %v8804_v62  ;;  %6288 = vmatpush1.bf16.msra.mxu0 %v8805_v26 }
 0xc03   : > { %6232 = vmatprep.subr.bf16.mxu1 %v8806_v11  ;;  %6289 = vmatprep.subr.bf16.mxu0 %v8807_v13  ;;  %v8855_v11 = vld [vmem:[#allocation5 + $0x840] ss:$8 sps:$4 sm:$0xff]  }
 0xc06   : > { %6233 = vmatpush1.bf16.msra.mxu1 %v8808_v21  ;;  %6290 = vmatpush1.bf16.msra.mxu0 %v8809_v49  ;;  %v8856_v49 = vld [vmem:[#allocation5 + $0x854] ss:$8 sps:$4 sm:$0xff]  }
 0xc07   : > { %6234 = vmatprep.subr.bf16.mxu1 %v8810_v1  ;;  %6291 = vmatprep.subr.bf16.mxu0 %v8811_v33 }
 0xc0a   : > { %6235 = vmatpush1.bf16.msra.mxu1 %v8812_v4  ;;  %6292 = vmatpush1.bf16.msra.mxu0 %v8813_v12 }
 0xc0b   : > { %6236 = vmatprep.subr.bf16.mxu1 %v8814_v52  ;;  %6293 = vmatprep.subr.bf16.mxu0 %v8815_v2 }
 0xc0e   : > { %6237 = vmatpush1.bf16.msra.mxu1 %v8816_v57  ;;  %6294 = vmatpush1.bf16.msra.mxu0 %v8817_v40  ;;  %v8857_v40 = vld [vmem:[#allocation5 + $0x850] ss:$8 sps:$4 sm:$0xff]  }
 0xc0f   : > { %6238 = vmatprep.subr.bf16.mxu1 %v8818_v30  ;;  %6295 = vmatprep.subr.bf16.mxu0 %v8819_v53  ;;  %v8858_v30 = vld [vmem:[#allocation5 + $0x864] ss:$8 sps:$4 sm:$0xff]  }
 0xc12   : > { %6239 = vmatpush1.bf16.msra.mxu1 %v8820_v59  ;;  %6296 = vmatpush1.bf16.msra.mxu0 %v8821_v42  ;;  %v8859_v42 = vld [vmem:[#allocation5 + $0x860] ss:$8 sps:$4 sm:$0xff]  }
 0xc13   : > { %6240 = vmatprep.subr.bf16.mxu1 %v8822_v41  ;;  %6297 = vmatprep.subr.bf16.mxu0 %v8823_v27 }
 0xc16   : > { %6241 = vmatpush1.bf16.msra.mxu1 %v8824_v17  ;;  %6298 = vmatpush1.bf16.msra.mxu0 %v8825_v45  ;;  %v8860_v17 = vld [vmem:[#allocation5 + $0x874] ss:$8 sps:$4 sm:$0xff]  }
 0xc17   : > { %6242 = vmatprep.subr.bf16.mxu1 %v8826_v60  ;;  %6299 = vmatprep.subr.bf16.mxu0 %v8827_v25 }
 0xc1a   : > { %6243 = vmatpush1.bf16.msra.mxu1 %v8828_v23  ;;  %6300 = vmatpush1.bf16.msra.mxu0 %v8829_v19 }
 0xc1b   : > { %6244 = vmatprep.subr.bf16.mxu1 %v8830_v54  ;;  %6301 = vmatprep.subr.bf16.mxu0 %v8831_v20 }
 0xc1e   : > { %6245 = vmatpush1.bf16.msra.mxu1 %v8832_v58  ;;  %6302 = vmatpush1.bf16.msra.mxu0 %v8833_v50  ;;  %v8861_v50 = vld [vmem:[#allocation5 + $0x870] ss:$8 sps:$4 sm:$0xff]  }
 0xc1f   : > { %6246 = vmatprep.subr.bf16.mxu1 %v8834_v36  ;;  %6303 = vmatprep.subr.bf16.mxu0 %v8835_v31  ;;  %v8862_v36 = vld [vmem:[#allocation5 + $0x884] ss:$8 sps:$4 sm:$0xff]   ;;  %v8863_v31 = vld [vmem:[#allocation5 + $0x880] ss:$8 sps:$4 sm:$0xff]  }
 0xc22   : > { %6247 = vmatpush1.bf16.msra.mxu1 %v8836_v7  ;;  %6304 = vmatpush1.bf16.msra.mxu0 %v8837_v16  ;;  %v8864_v7 = vld [vmem:[#allocation5 + $0x894] ss:$8 sps:$4 sm:$0xff]   ;;  %v8865_v16 = vld [vmem:[#allocation5 + $0x890] ss:$8 sps:$4 sm:$0xff]  }
 0xc23   : > { %6248 = vmatprep.subr.bf16.mxu1 %v8838_v39  ;;  %6305 = vmatprep.subr.bf16.mxu0 %v8839_v18  ;;  %v8866_v39 = vld [vmem:[#allocation5 + $0x8a4] ss:$8 sps:$4 sm:$0xff]   ;;  %v8867_v18 = vld [vmem:[#allocation5 + $0x8a0] ss:$8 sps:$4 sm:$0xff]  }
 0xc26   : > { %6249 = vmatpush1.bf16.msra.mxu1 %v8840_v9  ;;  %6306 = vmatpush1.bf16.msra.mxu0 %v8841_v44  ;;  %v8868_v9 = vld [vmem:[#allocation5 + $0x8b4] ss:$8 sps:$4 sm:$0xff]   ;;  %v8869_v44 = vld [vmem:[#allocation5 + $0x8b0] ss:$8 sps:$4 sm:$0xff]  }
 0xc27   : > { %6250 = vmatprep.subr.bf16.mxu1 %v8842_v47  ;;  %6307 = vmatprep.subr.bf16.mxu0 %v8843_v0  ;;  %v8870_v47 = vld [vmem:[#allocation5 + $0x8c4] ss:$8 sps:$4 sm:$0xff]   ;;  %v8871_v0 = vld [vmem:[#allocation5 + $0x8c0] ss:$8 sps:$4 sm:$0xff]  }
 0xc2a   : > { %6251 = vmatpush1.bf16.msra.mxu1 %v8844_v38  ;;  %6308 = vmatpush1.bf16.msra.mxu0 %v8845_v55  ;;  %v8872_v38 = vld [vmem:[#allocation5 + $0x8d4] ss:$8 sps:$4 sm:$0xff]   ;;  %v8873_v55 = vld [vmem:[#allocation5 + $0x8d0] ss:$8 sps:$4 sm:$0xff]  }
 0xc2b   : > { %6334 = vmatprep.subr.bf16.mxu1 %v8846_v22  ;;  %v8874_v22 = vld [vmem:[#allocation5 + $0x8e4] ss:$8 sps:$4 sm:$0xff]  }
 0xc2d   : > { %6253 = vmatmul.mubr.bf16.vlgmr.msra.gmra.mrb[8].mxu1 %v11201_v37  ;;  %6310 = vmatmul.mubr.bf16.vlgmr.msra.gmra.mrb[24].mxu0 %v11201_v37 }
 0xc2e   : > { %6262 = vmatprep.mubr.bf16.mxu1 %v11213_v28  ;;  %6319 = vmatprep.mubr.bf16.mxu0 %v11213_v28 }
 0xc2f   : > { %6335 = vmatpush1.bf16.msra.mxu1 %v8847_v3  ;;  %v8875_v3 = vld [vmem:[#allocation5 + $0x8e0] ss:$8 sps:$4 sm:$0xff]  }
 0xc30   : > { %6336 = vmatprep.subr.bf16.mxu1 %v8848_v48  ;;  %v8876_v48 = vld [vmem:[#allocation5 + $0x8f4] ss:$8 sps:$4 sm:$0xff]  }
 0xc33   : > { %6337 = vmatpush1.bf16.msra.mxu1 %v8849_v14  ;;  %v8877_v14 = vld [vmem:[#allocation5 + $0x8f0] ss:$8 sps:$4 sm:$0xff]  }
 0xc34   : > { %6338 = vmatprep.subr.bf16.mxu1 %v8850_v61 }
 0xc35   : > { %6263 = vmatmul.mubr.bf16.gmra.mrb[12].mxu1 %v11211_v51  ;;  %6320 = vmatmul.mubr.bf16.gmra.mrb[28].mxu0 %v11211_v51 }
 0xc36   : > { %6366 = vmatprep.mubr.bf16.mxu1 %v11203_v6 }
 0xc37   : > { %6339 = vmatpush1.bf16.msra.mxu1 %v8851_v35 }
 0xc38   : > { %6340 = vmatprep.subr.bf16.mxu1 %v8852_v5 }
 0xc3b   : > { %6341 = vmatpush1.bf16.msra.mxu1 %v8853_v56 }
 0xc3c   : > { %6342 = vmatprep.subr.bf16.mxu1 %v8854_v32 }
 0xc3e   : > { %v5912_v62 = vpop.f32.mrb[240].mxu1  ;;  %v5969_v26 = vpop.f32.mrb[0].mxu0 }
 0xc3f   : > { %6343 = vmatpush1.bf16.msra.mxu1 %v8855_v11  ;;  %v5914_v13 = vpop.f32.mrb[241].mxu1  ;;  %v5971_v21 = vpop.f32.mrb[1].mxu0 }
 0xc40   : > { %6344 = vmatprep.subr.bf16.mxu1 %v8856_v49  ;;  %v5916_v1 = vpop.f32.mrb[242].mxu1  ;;  %v5973_v33 = vpop.f32.mrb[2].mxu0 }
 0xc41   : > { %v5931_v4 = vpack.c.bf16 %v5916_v1, %v5912_v62  ;;  %v5988_v6 = vpack.c.bf16 %v5973_v33, %v5969_v26  ;;  %v5918_v12 = vpop.f32.mrb[243].mxu1  ;;  %v5975_v52 = vpop.f32.mrb[3].mxu0 }
 0xc42   : > { %v5932_v2 = vpack.c.bf16 %v5918_v12, %v5914_v13  ;;  %v5989_v57 = vpack.c.bf16 %v5975_v52, %v5971_v21 }
 0xc43   : > { %6345 = vmatpush1.bf16.msra.mxu1 %v8857_v40 }
 0xc44   : > { %6346 = vmatprep.subr.bf16.mxu1 %v8858_v30  ;;  %6439 = vmatprep.subr.bf16.mxu0 %v5932_v2 }
 0xc45   : > { %6440 = vmatpush1.bf16.msra.mxu0 %v5931_v4 }
 0xc46   : > { %v5922_v53 = vpop.f32.mrb[244].mxu1  ;;  %v5979_v59 = vpop.f32.mrb[4].mxu0 }
 0xc47   : > { %6347 = vmatpush1.bf16.msra.mxu1 %v8859_v42  ;;  %v5924_v41 = vpop.f32.mrb[245].mxu1  ;;  %v5981_v27 = vpop.f32.mrb[5].mxu0 }
 0xc48   : > { %6348 = vmatprep.subr.bf16.mxu1 %v8860_v17  ;;  %v5926_v45 = vpop.f32.mrb[246].mxu1  ;;  %v5983_v60 = vpop.f32.mrb[6].mxu0 }
 0xc49   : > { %v5933_v25 = vpack.c.bf16 %v5926_v45, %v5922_v53  ;;  %v5990_v23 = vpack.c.bf16 %v5983_v60, %v5979_v59  ;;  %v5928_v19 = vpop.f32.mrb[247].mxu1  ;;  %v5985_v54 = vpop.f32.mrb[7].mxu0  ;;  %v6392_v53 = vld [vmem:[#allocation11 + $0x8] sm:$0xff]  ;;  %v6395_v59 = vld [vmem:[#allocation11 + $0x20] sm:$0xff] }
 0xc4a   : > { %v5934_v20 = vpack.c.bf16 %v5928_v19, %v5924_v41  ;;  %v5991_v58 = vpack.c.bf16 %v5985_v54, %v5981_v27  ;;  %v6404_v42 = vpack.c.bf16 %v6395_v59, %v6392_v53 }
 0xc4b   : > { %6349 = vmatpush1.bf16.msra.mxu1 %v8861_v50 }
 0xc4c   : > { %6350 = vmatprep.subr.bf16.mxu1 %v8862_v36  ;;  %6441 = vmatprep.subr.bf16.mxu0 %v5934_v20 }
 0xc4d   : > { %6442 = vmatpush1.bf16.msra.mxu0 %v5933_v25  ;;  %6471 = vmatprep.mubr.bf16.mxu0 %v6404_v42  ;;  %v6397_v42 = vld [vmem:[#allocation11 + $0x30] sm:$0xff] }
 0xc4e   : > { %6443 = vmatprep.subr.bf16.mxu0 %v5989_v57 }
 0xc4f   : > { %6351 = vmatpush1.bf16.msra.mxu1 %v8863_v31 }
 0xc50   : > { %6352 = vmatprep.subr.bf16.mxu1 %v8864_v7 }
 0xc51   : > { %6444 = vmatpush1.bf16.msra.mxu0 %v5988_v6 }
 0xc52   : > { %6445 = vmatprep.subr.bf16.mxu0 %v5991_v58 }
 0xc53   : > { %6353 = vmatpush1.bf16.msra.mxu1 %v8865_v16 }
 0xc54   : > { %6354 = vmatprep.subr.bf16.mxu1 %v8866_v39 }
 0xc55   : > { %6446 = vmatpush1.bf16.msra.mxu0 %v5990_v23 }
 0xc57   : > { %6355 = vmatpush1.bf16.msra.mxu1 %v8867_v18 }
 0xc58   : > { %6356 = vmatprep.subr.bf16.mxu1 %v8868_v9 }
 0xc5b   : > { %6357 = vmatpush1.bf16.msra.mxu1 %v8869_v44 }
 0xc5c   : > { %6358 = vmatprep.subr.bf16.mxu1 %v8870_v47 }
 0xc5f   : > { %6359 = vmatpush1.bf16.msra.mxu1 %v8871_v0 }
 0xc60   : > { %6360 = vmatprep.subr.bf16.mxu1 %v8872_v38 }
 0xc63   : > { %6361 = vmatpush1.bf16.msra.mxu1 %v8873_v55 }
 0xc64   : > { %6362 = vmatprep.subr.bf16.mxu1 %v8874_v22 }
 0xc67   : > { %6363 = vmatpush1.bf16.msra.mxu1 %v8875_v3 }
 0xc68   : > { %6364 = vmatprep.subr.bf16.mxu1 %v8876_v48 }
 0xc6b   : > { %6365 = vmatpush1.bf16.msra.mxu1 %v8877_v14 }
 0xc6e   : > { %6367 = vmatmul.mubr.bf16.vlgmr.msra.gmra.mrb[16].mxu1 %v11201_v37 }
 0xc6f   : > { %6376 = vmatprep.mubr.bf16.mxu1 %v11213_v28 }
 0xc76   : > { %6377 = vmatmul.mubr.bf16.gmra.mrb[20].mxu1 %v11211_v51 }
 0xc77   : > { %6534 = vmatprep.mubr.bf16.mxu1 %v11435_v15 }
 0xc7e   : > { %v6026_v61 = vpop.f32.mrb[248].mxu1  ;;  %v6083_v35 = vpop.f32.mrb[8].mxu0 }
 0xc7f   : > { %v6028_v5 = vpop.f32.mrb[249].mxu1  ;;  %v6085_v56 = vpop.f32.mrb[9].mxu0 }
 0xc80   : > { %v6030_v32 = vpop.f32.mrb[250].mxu1  ;;  %v6087_v62 = vpop.f32.mrb[10].mxu0 }
 0xc81   : > { %v6045_v26 = vpack.c.bf16 %v6030_v32, %v6026_v61  ;;  %v6102_v11 = vpack.c.bf16 %v6087_v62, %v6083_v35  ;;  %v6032_v13 = vpop.f32.mrb[251].mxu1  ;;  %v6089_v21 = vpop.f32.mrb[11].mxu0 }
 0xc82   : > { %v6046_v49 = vpack.c.bf16 %v6032_v13, %v6028_v5  ;;  %v6103_v1 = vpack.c.bf16 %v6089_v21, %v6085_v56 }
 0xc84   : > { %6447 = vmatprep.subr.bf16.mxu0 %v6046_v49 }
 0xc85   : > { %6448 = vmatpush1.bf16.msra.mxu0 %v6045_v26 }
 0xc86   : > { %v6036_v37 = vpop.f32.mrb[252].mxu1  ;;  %v6093_v28 = vpop.f32.mrb[12].mxu0 }
 0xc87   : > { %v6038_v33 = vpop.f32.mrb[253].mxu1  ;;  %v6095_v51 = vpop.f32.mrb[13].mxu0 }
 0xc88   : > { %v6040_v4 = vpop.f32.mrb[254].mxu1  ;;  %v6097_v6 = vpop.f32.mrb[14].mxu0 }
 0xc89   : > { %v6047_v12 = vpack.c.bf16 %v6040_v4, %v6036_v37  ;;  %v6104_v52 = vpack.c.bf16 %v6097_v6, %v6093_v28  ;;  %v6042_v2 = vpop.f32.mrb[255].mxu1  ;;  %v6099_v57 = vpop.f32.mrb[15].mxu0 }
 0xc8a   : > { %v6048_v40 = vpack.c.bf16 %v6042_v2, %v6038_v33  ;;  %v6105_v30 = vpack.c.bf16 %v6099_v57, %v6095_v51  ;;  %v6391_v2 = vld [vmem:[#allocation11] sm:$0xff]  ;;  %v6394_v57 = vld [vmem:[#allocation11 + $0x18] sm:$0xff] }
 0xc8b   : > { %v6403_v53 = vpack.c.bf16 %v6394_v57, %v6391_v2 }
 0xc8c   : > { %6449 = vmatprep.subr.bf16.mxu0 %v6048_v40  ;;  %v6398_v40 = vld [vmem:[#allocation11 + $0x38] sm:$0xff] }
 0xc8d   : > { %6450 = vmatpush1.bf16.msra.mxu0 %v6047_v12 }
 0xc8e   : > { %6451 = vmatprep.subr.bf16.mxu0 %v6103_v1 }
 0xc91   : > { %6452 = vmatpush1.bf16.msra.mxu0 %v6102_v11 }
 0xc92   : > { %6453 = vmatprep.subr.bf16.mxu0 %v6105_v30  ;;  %v6401_v30 = vld [vmem:[#allocation11 + $0x50] sm:$0xff] }
 0xc93   : > { %v6407_v59 = vpack.c.bf16 %v6401_v30, %v6398_v40 }
 0xc95   : > { %6454 = vmatpush1.bf16.msra.mxu0 %v6104_v52 }
 0xcbf   : > { %v6140_v41 = vpop.f32.mrb[0].mxu1  ;;  %v6197_v27 = vpop.f32.mrb[16].mxu0 }
 0xcc0   : > { %v6142_v17 = vpop.f32.mrb[1].mxu1  ;;  %v6199_v45 = vpop.f32.mrb[17].mxu0 }
 0xcc1   : > { %v6144_v60 = vpop.f32.mrb[2].mxu1  ;;  %v6201_v25 = vpop.f32.mrb[18].mxu0 }
 0xcc2   : > { %v6159_v23 = vpack.c.bf16 %v6144_v60, %v6140_v41  ;;  %v6216_v19 = vpack.c.bf16 %v6201_v25, %v6197_v27  ;;  %v6146_v54 = vpop.f32.mrb[3].mxu1  ;;  %v6203_v20 = vpop.f32.mrb[19].mxu0  ;;  %v6400_v41 = vld [vmem:[#allocation11 + $0x48] sm:$0xff] }
 0xcc3   : > { %v6160_v58 = vpack.c.bf16 %v6146_v54, %v6142_v17  ;;  %v6217_v50 = vpack.c.bf16 %v6203_v20, %v6199_v45  ;;  %v6406_v27 = vpack.c.bf16 %v6400_v41, %v6397_v42 }
 0xcc5   : > { %6455 = vmatprep.subr.bf16.mxu0 %v6160_v58 }
 0xcc6   : > { %6456 = vmatpush1.bf16.msra.mxu0 %v6159_v23 }
 0xcc7   : > { %v6150_v36 = vpop.f32.mrb[4].mxu1  ;;  %v6207_v31 = vpop.f32.mrb[20].mxu0 }
 0xcc8   : > { %v6152_v7 = vpop.f32.mrb[5].mxu1  ;;  %v6209_v16 = vpop.f32.mrb[21].mxu0 }
 0xcc9   : > { %v6154_v39 = vpop.f32.mrb[6].mxu1  ;;  %v6211_v18 = vpop.f32.mrb[22].mxu0 }
 0xcca   : > { %v6161_v9 = vpack.c.bf16 %v6154_v39, %v6150_v36  ;;  %v6218_v44 = vpack.c.bf16 %v6211_v18, %v6207_v31  ;;  %v6156_v47 = vpop.f32.mrb[7].mxu1  ;;  %v6213_v0 = vpop.f32.mrb[23].mxu0  ;;  %v6402_v39 = vld [vmem:[#allocation11 + $0x58] sm:$0xff] }
 0xccb   : > { %v6162_v38 = vpack.c.bf16 %v6156_v47, %v6152_v7  ;;  %v6219_v55 = vpack.c.bf16 %v6213_v0, %v6209_v16  ;;  %v6396_v7 = vld [vmem:[#allocation11 + $0x28] sm:$0xff]  ;;  %v6399_v16 = vld [vmem:[#allocation11 + $0x40] sm:$0xff] }
 0xccd   : > { %6457 = vmatprep.subr.bf16.mxu0 %v6162_v38 }
 0xcce   : > { %6458 = vmatpush1.bf16.msra.mxu0 %v6161_v9 }
 0xccf   : > { %6459 = vmatprep.subr.bf16.mxu0 %v6217_v50  ;;  %v6393_v50 = vld [vmem:[#allocation11 + $0x10] sm:$0xff] }
 0xcd0   : > { %v6405_v9 = vpack.c.bf16 %v6396_v7, %v6393_v50 }
 0xcd2   : > { %6460 = vmatpush1.bf16.msra.mxu0 %v6216_v19 }
 0xcd3   : > { %6461 = vmatprep.subr.bf16.mxu0 %v6219_v55 }
 0xcd6   : > { %6462 = vmatpush1.bf16.msra.mxu0 %v6218_v44  ;;  %v6408_v44 = vpack.c.bf16 %v6402_v39, %v6399_v16 }
 0xd00   : > { %v6254_v22 = vpop.f32.mrb[8].mxu1  ;;  %v6311_v3 = vpop.f32.mrb[24].mxu0 }
 0xd01   : > { %v6256_v48 = vpop.f32.mrb[9].mxu1  ;;  %v6313_v14 = vpop.f32.mrb[25].mxu0 }
 0xd02   : > { %v6258_v61 = vpop.f32.mrb[10].mxu1  ;;  %v6315_v35 = vpop.f32.mrb[26].mxu0 }
 0xd03   : > { %v6273_v5 = vpack.c.bf16 %v6258_v61, %v6254_v22  ;;  %v6330_v56 = vpack.c.bf16 %v6315_v35, %v6311_v3  ;;  %v6260_v32 = vpop.f32.mrb[11].mxu1  ;;  %v6317_v62 = vpop.f32.mrb[27].mxu0 }
 0xd04   : > { %v6274_v26 = vpack.c.bf16 %v6260_v32, %v6256_v48  ;;  %v6331_v11 = vpack.c.bf16 %v6317_v62, %v6313_v14  ;;  %v6416_v22 = vpop.permute.xlu0 %6415  ;;  %v6421_v3 = vpop.permute.xlu1 %6420 }
 0xd06   : > { %6463 = vmatprep.subr.bf16.mxu0 %v6274_v26 }
 0xd07   : > { %6464 = vmatpush1.bf16.msra.mxu0 %v6273_v5 }
 0xd08   : > { %v6264_v13 = vpop.f32.mrb[12].mxu1  ;;  %v6321_v21 = vpop.f32.mrb[28].mxu0 }
 0xd09   : > { %v6266_v49 = vpop.f32.mrb[13].mxu1  ;;  %v6323_v1 = vpop.f32.mrb[29].mxu0 }
 0xd0a   : > { %v6268_v37 = vpop.f32.mrb[14].mxu1  ;;  %v6325_v28 = vpop.f32.mrb[30].mxu0 }
 0xd0b   : > { %v6275_v33 = vpack.c.bf16 %v6268_v37, %v6264_v13  ;;  %v6332_v51 = vpack.c.bf16 %v6325_v28, %v6321_v21  ;;  %v6270_v4 = vpop.f32.mrb[15].mxu1  ;;  %v6327_v6 = vpop.f32.mrb[31].mxu0 }
 0xd0c   : > { %v6276_v12 = vpack.c.bf16 %v6270_v4, %v6266_v49  ;;  %v6333_v52 = vpack.c.bf16 %v6327_v6, %v6323_v1  ;;  %v6426_v48 = vpop.permute.xlu0 %6425  ;;  %v6431_v14 = vpop.permute.xlu1 %6430 }
 0xd0e   : > { %6465 = vmatprep.subr.bf16.mxu0 %v6276_v12 }
 0xd0f   : > { %6466 = vmatpush1.bf16.msra.mxu0 %v6275_v33 }
 0xd10   : > { %6467 = vmatprep.subr.bf16.mxu0 %v6331_v11 }
 0xd13   : > { %6468 = vmatpush1.bf16.msra.mxu0 %v6330_v56 }
 0xd14   : > { %6469 = vmatprep.subr.bf16.mxu0 %v6333_v52 }
 0xd17   : > { %6470 = vmatpush1.bf16.msra.mxu0 %v6332_v51 }
 0xd1a   : > { %6472 = vmatmul.mubr.bf16.vlgmr.msra.gmra.mrb[32].mxu0 %v6403_v53 }
 0xd1b   : > { %6481 = vmatprep.mubr.bf16.mxu0 %v6407_v59 }
 0xd22   : > { %6482 = vmatmul.mubr.bf16.gmra.mrb[36].mxu0 %v6406_v27 }
 0xd23   : > { %6524 = vmatprep.mubr.bf16.mxu0 %v11435_v15 }
 0xd41   : > { %v6368_v17 = vpop.f32.mrb[16].mxu1 }
 0xd42   : > { %v6370_v45 = vpop.f32.mrb[17].mxu1 }
 0xd43   : > { %v6372_v60 = vpop.f32.mrb[18].mxu1 }
 0xd44   : > { %v6387_v25 = vpack.c.bf16 %v6372_v60, %v6368_v17  ;;  %v6374_v23 = vpop.f32.mrb[19].mxu1 }
 0xd45   : > { %v6388_v19 = vpack.c.bf16 %v6374_v23, %v6370_v45 }
 0xd47   : > { %6492 = vmatprep.subr.bf16.mxu0 %v6388_v19  ;;  %7226 = vmatprep.subr.bf16.mxu1 %v6388_v19 }
 0xd48   : > { %6493 = vmatpush1.bf16.msra.mxu0 %v6387_v25  ;;  %7228 = vmatpush1.bf16.msra.mxu1 %v6387_v25 }
 0xd49   : > { %v6378_v54 = vpop.f32.mrb[20].mxu1 }
 0xd4a   : > { %v6380_v20 = vpop.f32.mrb[21].mxu1 }
 0xd4b   : > { %v6382_v58 = vpop.f32.mrb[22].mxu1 }
 0xd4c   : > { %v6389_v36 = vpack.c.bf16 %v6382_v58, %v6378_v54  ;;  %v6384_v31 = vpop.f32.mrb[23].mxu1 }
 0xd4d   : > { %v6390_v18 = vpack.c.bf16 %v6384_v31, %v6380_v20 }
 0xd4f   : > { %6494 = vmatprep.subr.bf16.mxu0 %v6390_v18  ;;  %7227 = vmatprep.subr.bf16.mxu1 %v6390_v18 }
 0xd50   : > { %6495 = vmatpush1.bf16.msra.mxu0 %v6389_v36  ;;  %7229 = vmatpush1.bf16.msra.mxu1 %v6389_v36 }
 0xd53   : > { %7207 = vmatmul.mubr.msk.bf16.vlgmr.msra.gmra.mrb[32].mxu0 %vm4485_vm8, %v6405_v9  ;;  %7208 = vmatmul.mubr.msk.bf16.vlgmr.msra.gmra.mrb[24].mxu1 %vm4485_vm8, %v6408_v44 }
 0xd54   : > { %6681 = vmatprep.mubr.bf16.mxu1 %v11435_v15 }
 0xdf5   : > { %v6483_v47 = vpop.f32.mrb[36].mxu0 }
 0xdf6   : > { %v6485_v0 = vpop.f32.mrb[37].mxu0  ;;  %v6484_v61 = vadd.f32 %v6483_v47, %v6426_v48 }
 0xdf7   : > { %v6487_v38 = vpop.f32.mrb[38].mxu0  ;;  %v6486_v35 = vadd.f32 %v6485_v0, %v6426_v48 }
 0xdf8   : > { %v6489_v55 = vpop.f32.mrb[39].mxu0  ;;  %v6488_v37 = vadd.f32 %v6487_v38, %v6431_v14 }
 0xdf9   : > { %v6490_v6 = vadd.f32 %v6489_v55, %v6431_v14 }
 0xe26   : > { %v6526_v5 = vpop.f32.mrb[32].mxu0  ;;  %v6536_v56 = vpop.f32.mrb[24].mxu1 }
 0xe27   : > { %v7262_v32 = vadd.f32 %v6526_v5, %v6416_v22  ;;  %v11252_v62 = vadd.f32 %v6536_v56, %v6484_v61  ;;  %v6528_v26 = vpop.f32.mrb[33].mxu0  ;;  %v6538_v11 = vpop.f32.mrb[25].mxu1 }
 0xe28   : > { %v11254_v13 = vadd.f32 %v6528_v26, %v6416_v22  ;;  %v11256_v21 = vadd.f32 %v6538_v11, %v6486_v35  ;;  %v6530_v49 = vpop.f32.mrb[34].mxu0  ;;  %v6540_v1 = vpop.f32.mrb[26].mxu1 }
 0xe29   : > { %v6553_v28 = vmin.f32 %v7262_v32, 0.0  ;;  %v6557_v33 = vmin.f32 %v11252_v62, 0.0  ;;  %v6532_v51 = vpop.f32.mrb[35].mxu0  ;;  %v6542_v4 = vpop.f32.mrb[27].mxu1  ;;  %v7264_v40 = vadd.f32 %v6530_v49, %v6421_v3  ;;  %v6541_v30 = vadd.f32 %v6540_v1, %v6488_v37 }
 0xe2a   : > { %v6554_v12 = vmin.f32 %v11254_v13, 0.0  ;;  %v6558_v52 = vmin.f32 %v11256_v21, 0.0  ;;  %v7265_v42 = vadd.f32 %v6532_v51, %v6421_v3  ;;  %v11261_v41 = vadd.f32 %v6542_v4, %v6490_v6 }
 0xe2b   : > { %v6561_v2 = vmul.f32 1.442695, %v6553_v28  ;;  %v6569_v57 = vmul.f32 1.442695, %v6557_v33  ;;  %v6555_v27 = vmin.f32 %v7264_v40, 0.0  ;;  %v6559_v17 = vmin.f32 %v6541_v30, 0.0 }
 0xe2c   : > { %v6563_v53 = vmul.f32 1.442695, %v6554_v12  ;;  %v6571_v59 = vmul.f32 1.442695, %v6558_v52  ;;  %v6556_v45 = vmin.f32 %v7265_v42, 0.0  ;;  %v6560_v25 = vmin.f32 %v11261_v41, 0.0 }
 0xe2d   : > { %7998 = vpow2.f32 %v6561_v2  ;;  %v6565_v60 = vmul.f32 1.442695, %v6555_v27  ;;  %v6573_v23 = vmul.f32 1.442695, %v6559_v17  ;;  %vm6545_vm10 = vcmp.gt.f32.partialorder %v7262_v32, 0.0 }
 0xe2e   : > { %8000 = vpow2.f32 %v6569_v57  ;;  %v6567_v19 = vmul.f32 1.442695, %v6556_v45  ;;  %v6575_v54 = vmul.f32 1.442695, %v6560_v25  ;;  %vm6549_vm11 = vcmp.gt.f32.partialorder %v11252_v62, 0.0  ;;  %v6612_v45 = vld [vmem:[#allocation13 + $0x18] sm:$0xff] }
 0xe2f   : > { %8002 = vpow2.f32 %v6563_v53  ;;  %vm6546_vm12 = vcmp.gt.f32.partialorder %v11254_v13, 0.0  ;;  %vm6550_vm13 = vcmp.gt.f32.partialorder %v11256_v21, 0.0  ;;  %vm6547_vm14 = vcmp.gt.f32.partialorder %v7264_v40, 0.0 }
 0xe30   : > { %8004 = vpow2.f32 %v6571_v59  ;;  %vm6551_vm15 = vcmp.gt.f32.partialorder %v6541_v30, 0.0  ;;  %vm6548_vm0 = vcmp.gt.f32.partialorder %v7265_v42, 0.0  ;;  %vm6552_vm1 = vcmp.gt.f32.partialorder %v11261_v41, 0.0 }
 0xe31   : > { %8006 = vpow2.f32 %v6565_v60  ;;  %v6626_v60 = vpop.permute.xlu0 %6625 }
 0xe32   : > { %8008 = vpow2.f32 %v6573_v23 }
 0xe33   : > { %8010 = vpow2.f32 %v6567_v19 }
 0xe34   : > { %8012 = vpow2.f32 %v6575_v54  ;;  %v6631_v54 = vpop.permute.xlu1 %6630 }
 0xe37   : > { %v7999_v20 = vpop.eup %7998 }
 0xe38   : > { %v8001_v58 = vpop.eup %8000  ;;  %v7209_v50 = vadd.f32 -1.0, %v7999_v20 }
 0xe39   : > { %v8003_v36 = vpop.eup %8002  ;;  %v7213_v31 = vadd.f32 -1.0, %v8001_v58 }
 0xe3a   : > { %v8005_v7 = vpop.eup %8004  ;;  %v6585_v16 = vmul.f32 1.6732632, %v7209_v50  ;;  %v7210_v39 = vadd.f32 -1.0, %v8003_v36 }
 0xe3b   : > { %v8007_v18 = vpop.eup %8006  ;;  %v6589_v9 = vmul.f32 1.6732632, %v7213_v31  ;;  %v7214_v44 = vadd.f32 -1.0, %v8005_v7 }
 0xe3c   : > { %v8009_v47 = vpop.eup %8008  ;;  %v6586_v0 = vmul.f32 1.6732632, %v7210_v39  ;;  %v7211_v38 = vadd.f32 -1.0, %v8007_v18  ;;  %v6593_v22 = vsel %vm6545_vm10, %v7262_v32, %v6585_v16  ;;  %v6636_v18 = vpop.permute.xlu0 %6635 }
 0xe3d   : > { %v8011_v55 = vpop.eup %8010  ;;  %v6590_v3 = vmul.f32 1.6732632, %v7214_v44  ;;  %v7215_v48 = vadd.f32 -1.0, %v8009_v47  ;;  %v6597_v5 = vsel %vm6549_vm11, %v11252_v62, %v6589_v9  ;;  %v6601_v11 = vmul.f32 1.050701, %v6593_v22  ;;  %v6641_v47 = vpop.permute.xlu1 %6640 }
 0xe3e   : > { %v8013_v14 = vpop.eup %8012  ;;  %v6587_v61 = vmul.f32 1.6732632, %v7211_v38  ;;  %v7212_v35 = vadd.f32 -1.0, %v8011_v55  ;;  %v6594_v49 = vsel %vm6546_vm12, %v11254_v13, %v6586_v0  ;;  %v6605_v4 = vmul.f32 1.050701, %v6597_v5 }
 0xe3f   : > { %v6591_v56 = vmul.f32 1.6732632, %v7215_v48  ;;  %v7216_v26 = vadd.f32 -1.0, %v8013_v14  ;;  %v6598_v37 = vsel %vm6550_vm13, %v11256_v21, %v6590_v3  ;;  %v6602_v12 = vmul.f32 1.050701, %v6594_v49  ;;  %v6609_v21 = vld [vmem:[#allocation13] sm:$0xff] }
 0xe40   : > { %v6595_v32 = vsel %vm6547_vm14, %v7264_v40, %v6587_v61  ;;  %v6588_v1 = vmul.f32 1.6732632, %v7212_v35  ;;  %v6606_v13 = vmul.f32 1.050701, %v6598_v37 }
 0xe41   : > { %v6603_v28 = vmul.f32 1.050701, %v6595_v32  ;;  %v6599_v33 = vsel %vm6551_vm15, %v6541_v30, %v6591_v56  ;;  %v6592_v51 = vmul.f32 1.6732632, %v7216_v26  ;;  %v6610_v30 = vld [vmem:[#allocation13 + $0x8] sm:$0xff] }
 0xe42   : > { %v6607_v6 = vmul.f32 1.050701, %v6599_v33  ;;  %v6596_v62 = vsel %vm6548_vm0, %v7265_v42, %v6588_v1  ;;  %v6613_v17 = vpack.c.bf16 %v6610_v30, %v6609_v21  ;;  %v6611_v42 = vld [vmem:[#allocation13 + $0x10] sm:$0xff] }
 0xe43   : > { %v6615_v52 = vpack.c.bf16 %v6603_v28, %v6601_v11  ;;  %v6604_v2 = vmul.f32 1.050701, %v6596_v62  ;;  %v6600_v57 = vsel %vm6552_vm1, %v11261_v41, %v6592_v51  ;;  %v6614_v41 = vpack.c.bf16 %v6612_v45, %v6611_v42 }
 0xe44   : > { %v6617_v40 = vpack.c.bf16 %v6607_v6, %v6605_v4  ;;  %v6608_v53 = vmul.f32 1.050701, %v6600_v57 }
 0xe45   : > { %v6616_v59 = vpack.c.bf16 %v6604_v2, %v6602_v12 }
 0xe46   : > { %v6618_v27 = vpack.c.bf16 %v6608_v53, %v6606_v13 }
 0xe47   : > { %6649 = vmatprep.subr.bf16.mxu1 %v6616_v59 }
 0xe48   : > { %6650 = vmatpush1.bf16.msra.mxu1 %v6615_v52 }
 0xe49   : > { %6651 = vmatprep.subr.bf16.mxu1 %v6618_v27 }
 0xe4c   : > { %6652 = vmatpush1.bf16.msra.mxu1 %v6617_v40 }
 0xe4f   : > { %7217 = vmatmul.mubr.msk.bf16.vlgmr.msra.gmra.mrb[28].mxu1 %vm4485_vm8, %v6613_v17 }
 0xe50   : > { %6691 = vmatprep.mubr.bf16.mxu1 %v11435_v15 }
 0xe57   : > { %7218 = vmatmul.mubr.msk.bf16.gmra.mrb[32].mxu1 %vm4485_vm8, %v6614_v41 }
 0xf22   : > { %v6683_v25 = vpop.f32.mrb[28].mxu1 }
 0xf23   : > { %v6684_v23 = vadd.f32 %v6683_v25, %v6626_v60  ;;  %v6685_v19 = vpop.f32.mrb[29].mxu1 }
 0xf24   : > { %v6686_v20 = vadd.f32 %v6685_v19, %v6626_v60  ;;  %v6687_v58 = vpop.f32.mrb[30].mxu1 }
 0xf25   : > { %v6702_v50 = vadd.f32 %v6684_v23, %v11103_v43  ;;  %v6688_v36 = vadd.f32 %v6687_v58, %v6631_v54  ;;  %v6689_v31 = vpop.f32.mrb[31].mxu1 }
 0xf26   : > { %v6703_v7 = vadd.f32 %v6686_v20, %v11113_v34  ;;  %v6690_v15 = vadd.f32 %v6689_v31, %v6631_v54 }
 0xf27   : > { %6710 = vst [vmem:[%s572_s23] sm:$0xff] %v6702_v50  ;;  %v6704_v16 = vadd.f32 %v6688_v36, %v11119_v46 }
 0xf28   : > { %6711 = vst [vmem:[%s572_s23 + $0x8] sm:$0xff] %v6703_v7  ;;  %v6705_v39 = vadd.f32 %v6690_v15, %v11123_v8 }
 0xf29   : > { %6712 = vst [vmem:[%s572_s23 + $0x10] sm:$0xff] %v6704_v16 }
 0xf2a   : > { %6713 = vst [vmem:[%s572_s23 + $0x18] sm:$0xff] %v6705_v39  ;;  %v6693_v9 = vpop.f32.mrb[32].mxu1 }
 0xf2b   : > { %v6694_v44 = vadd.f32 %v6693_v9, %v6636_v18  ;;  %v6695_v43 = vpop.f32.mrb[33].mxu1 }
 0xf2c   : > { %v6696_v0 = vadd.f32 %v6695_v43, %v6636_v18  ;;  %v6697_v34 = vpop.f32.mrb[34].mxu1 }
 0xf2d   : > { %v6706_v38 = vadd.f32 %v6694_v44, %v11143_v63  ;;  %v6698_v55 = vadd.f32 %v6697_v34, %v6641_v47  ;;  %v6699_v46 = vpop.f32.mrb[35].mxu1 }
 0xf2e   : > { %v6707_v8 = vadd.f32 %v6696_v0, %v11148_v29  ;;  %v6700_v22 = vadd.f32 %v6699_v46, %v6641_v47 }
 0xf2f   : > { %6714 = vst [vmem:[%s572_s23 + $0x20] sm:$0xff] %v6706_v38  ;;  %v6708_v3 = vadd.f32 %v6698_v55, %v11150_v24 }
 0xf30   : > { %6715 = vst [vmem:[%s572_s23 + $0x28] sm:$0xff] %v6707_v8  ;;  %v6709_v63 = vadd.f32 %v6700_v22, %v11152_v10 }
 0xf31   : > { %6716 = vst [vmem:[%s572_s23 + $0x30] sm:$0xff] %v6708_v3 }
 0xf32   : > { %6717 = vst [vmem:[%s572_s23 + $0x38] sm:$0xff] %v6709_v63 }
 0xf33   : > { %9089 = shalt.err (!%p9086_p8)
}
 0xf34   : > { %s9090_s23 = scalar_lea.hbm %s11293_s19, 1024  ;;  %s9094_s1 = scalar_lea.hbm %s11454_s14, 2048 }
 0xf35   : > { %p9091_p7 = scmp.ne.s32.totalorder %s11293_s19, %s9090_s23  ;;  %p9095_p3 = scmp.lt.u32.totalorder %s11293_s19, %s11454_s14 }
 0xf36   : > { %p9096_p0 = scmp.lt.u32.totalorder %s9094_s1, %s9090_s23  ;;  %p9098_p6 = scmp.lt.u32.totalorder %s9090_s23, %s11293_s19 }
 0xf37   : > { %p9092_p9 = pnand %p9091_p7, %p11455_p5 }
 0xf38   : > { %p9097_p2 = por %p9096_p0, %p9095_p3 }
 0xf39   : > { %p9093_p4 = pneg %p9092_p9 }
 0xf3a   : > { %p9099_p10 = por %p9098_p6, %p9097_p2 }
 0xf3c   : > { %p9100_p1 = pnand %p9099_p10, %p9093_p4 }
 0xf3e   : > { %9103 = shalt.err (!%p9100_p1)
}
 0xf3f   : > { %s9173_s0 = smov 256   ;;  %s9174_s3 = smov 16  }
 0xf40   : > { %7344 = dma.vmem_to_hbm [thread:$0]  (%p11455_p5), %s11286_s13, 1024, %s11293_s19, %s6719_s17, %s9173_s0, %s9173_s0, %s9174_s3  }
 0xf41 PF: > { %s6747_s11 = sand.u32 1, %s9142_s29   ;;  %p11456_p11 = scmp.ne.s32.totalorder %s11402_s6, 0 }
 0xf42   : > { %p11457_p12 = scmp.ge.s32.totalorder %s9154_s16, 2  ;;  %s6748_s23 = scalar_lea.sflag [#allocation4], %s6747_s11 }
 0xf44   : > { %p7370_p13 = pnand %p11457_p12, %p11456_p11 }
 0xf46   : > { %9137 = dma.done.wait (!%p7370_p13), %s6748_s23, 1024  }
 0xf47   : > { %9139 = vsyncadd (!%p7370_p13), %s6748_s23, 4294966272  ;;  %p30_p8 = scmp.ge.s32.totalorder %s9444_s21, 4   ;;  %s11458_s29 = smov %s9146_s30 }
 0xf48   : > { %s11459_s30 = smov %s9150_s15  ;;  %s11460_s15 = smov %s9455_s24 }
 0xf49   : > { %s11461_s16 = smov %s9444_s21  ;;  %32 = sbr.rel (!%p30_p8) target bundleno = 19 (0x13), region = 153 }
 0xf50   :  { %6753 = vsyncpa [#allocation3], 1 }
 0xf51   :  { %6755 = vsyncpa [#allocation3 + $0x1], 1 }
 0xf52   :  { %6756 = vsyncpa [#allocation6], 1 }
 0xf53   :  { %6757 = vsyncpa [#allocation9], 1 }
 0xf54   :  { %6758 = vsyncpa [#allocation12], 1 }
 0xf55   :  { %6759 = vsyncpa [#allocation4], 1 }
 0xf56   :  { %6761 = vsyncpa [#allocation4 + $0x1], 1 }

</bundles_post_ra>
